<compile_context>
chip_gen: v7x
topology: tpu7x:2x2x1
jax: 0.10.0
libtpu: 0.0.40
codegen_flags: <defaults>
</compile_context>

<pallas_src>
import jax
import jax.numpy as jnp
from jax import lax
from jax.experimental import pallas as pl
from jax.experimental.pallas import tpu as pltpu

# Border pixels of the (pre-BatchNorm) activation are padded with this
# sentinel.  The consuming kernel applies relu(x * scale + shift) with
# scale = gamma / sqrt(var + eps) > 0 (gamma is BatchNorm2d's default 1.0),
# so the sentinel maps exactly to 0 -- i.e. the zero padding of the
# *post-activation* feature map that ConvTranspose2d requires.
_PAD_SENTINEL = -1e9
_MAX_TILE_M = 1024


# ----------------------------- Pallas kernels ------------------------------

def _fc_stats_kernel(x_ref, w_ref, y_ref, ssum_ref, ssq_ref):
    """Layer 1: 1x1-input ConvTranspose2d == dense matmul (lane dim 16*Cout)."""
    y = jnp.dot(x_ref[...], w_ref[...], preferred_element_type=jnp.float32)
    y_ref[...] = y.astype(y_ref.dtype)
    ssum_ref[...] = jnp.sum(y, axis=0, keepdims=True)
    ssq_ref[...] = jnp.sum(y * y, axis=0, keepdims=True)


def _deconv_bn_kernel(scale_ref, shift_ref, p_ref, w_ref,
                      y_ref, ssum_ref, ssq_ref):
    """Subpixel stride-2 deconv tile: fused previous-layer BN+ReLU on the
    patch read, bf16 MXU matmul with f32 accumulation, per-channel BN
    partial sums emitted for the next layer."""
    p = p_ref[0, :, :].astype(jnp.float32)                        # (9Cin, tm)
    act = jnp.maximum(p * scale_ref[...] + shift_ref[...], 0.0)   # prev BN+ReLU
    y = jnp.dot(w_ref[...], act.astype(jnp.bfloat16),
                preferred_element_type=jnp.float32)               # (4Cout, tm)
    y_ref[0, :, :] = y.astype(y_ref.dtype)
    ssum_ref[0, 0] = jnp.sum(y, axis=1, keepdims=True)
    ssq_ref[0, 0] = jnp.sum(y * y, axis=1, keepdims=True)


def _deconv_tanh_kernel(scale_ref, shift_ref, p_ref, w_ref, y_ref):
    """Last layer: same matmul but with Tanh fused into the epilogue."""
    p = p_ref[0, :, :].astype(jnp.float32)
    act = jnp.maximum(p * scale_ref[...] + shift_ref[...], 0.0)
    y = jnp.dot(w_ref[...], act.astype(jnp.bfloat16),
                preferred_element_type=jnp.float32)
    y_ref[0, :, :] = jnp.tanh(y).astype(y_ref.dtype)


# --------------------------- pallas_call wrappers ---------------------------

def _first_layer(x, w_mat):
    n, k = x.shape
    cols = w_mat.shape[1]
    return pl.pallas_call(
        _fc_stats_kernel,
        out_shape=(jax.ShapeDtypeStruct((n, cols), jnp.bfloat16),
                   jax.ShapeDtypeStruct((1, cols), jnp.float32),
                   jax.ShapeDtypeStruct((1, cols), jnp.float32)),
        grid=(1,),
        in_specs=[pl.BlockSpec((n, k), lambda i: (0, 0)),
                  pl.BlockSpec((k, cols), lambda i: (0, 0))],
        out_specs=(pl.BlockSpec((n, cols), lambda i: (0, 0)),
                   pl.BlockSpec((1, cols), lambda i: (0, 0)),
                   pl.BlockSpec((1, cols), lambda i: (0, 0))),
        compiler_params=pltpu.CompilerParams(
            dimension_semantics=("arbitrary",)),
    )(x, w_mat)


def _deconv2x_layer(p, w_sub, scale_rows, shift_rows, *, last, out_dtype):
    n, kdim, hw = p.shape          # (N, 9*Cin, H*W)
    rows = w_sub.shape[0]          # 4*Cout
    tm = min(hw, _MAX_TILE_M)
    while hw % tm:                 # always divides for this architecture
        tm //= 2
    n_mt = hw // tm
    grid = (n, n_mt)

    in_specs = [
        pl.BlockSpec((kdim, 1), lambda i, j: (0, 0)),         # prev BN scale
        pl.BlockSpec((kdim, 1), lambda i, j: (0, 0)),         # prev BN shift
        pl.BlockSpec((1, kdim, tm), lambda i, j: (i, 0, j)),  # patches^T tile
        pl.BlockSpec((rows, kdim), lambda i, j: (0, 0)),      # subpixel weights
    ]
    cparams = pltpu.CompilerParams(
        dimension_semantics=("parallel", "parallel"))

    if last:
        y = pl.pallas_call(
            _deconv_tanh_kernel,
            out_shape=jax.ShapeDtypeStruct((n, rows, hw), out_dtype),
            grid=grid,
            in_specs=in_specs,
            out_specs=pl.BlockSpec((1, rows, tm), lambda i, j: (i, 0, j)),
            compiler_params=cparams,
        )(scale_rows, shift_rows, p, w_sub)
        return y, None, None

    return pl.pallas_call(
        _deconv_bn_kernel,
        out_shape=(jax.ShapeDtypeStruct((n, rows, hw), out_dtype),
                   jax.ShapeDtypeStruct((n, n_mt, rows, 1), jnp.float32),
                   jax.ShapeDtypeStruct((n, n_mt, rows, 1), jnp.float32)),
        grid=grid,
        in_specs=in_specs,
        out_specs=(pl.BlockSpec((1, rows, tm), lambda i, j: (i, 0, j)),
                   pl.BlockSpec((1, 1, rows, 1), lambda i, j: (i, j, 0, 0)),
                   pl.BlockSpec((1, 1, rows, 1), lambda i, j: (i, j, 0, 0))),
        compiler_params=cparams,
    )(scale_rows, shift_rows, p, w_sub)


# ------------------------------ JAX glue ------------------------------------

def _subpixel_weight(w):
    """PyTorch ConvTranspose2d weight (Cin, Cout, 4, 4), stride 2, pad 1 ->
    combined subpixel matrix (4*Cout, 9*Cin).

    Rows of the returned matrix (after transpose) are (cout, parity_a,
    parity_b); columns are (tap = 3*dy + dx, cin) over the 3x3 neighbourhood.
    Output pixel (2t+a, 2u+b) only uses 2x2 of the 9 taps; unused entries
    are zero.  kh mapping: (a, dy) -> {(0,0):3, (0,1):1, (1,1):2, (1,2):0}.
    """
    cin, cout = w.shape[0], w.shape[1]
    kh_of = {(0, 0): 3, (0, 1): 1, (1, 1): 2, (1, 2): 0}
    zero = jnp.zeros((cin, cout), w.dtype)
    taps = []
    for dy in range(3):
        for dx in range(3):
            per_a = []
            for a in range(2):
                per_b = []
                for b in range(2):
                    if (a, dy) in kh_of and (b, dx) in kh_of:
                        per_b.append(w[:, :, kh_of[(a, dy)], kh_of[(b, dx)]])
                    else:
                        per_b.append(zero)
                per_a.append(jnp.stack(per_b, axis=-1))    # (cin, cout, 2)
            taps.append(jnp.stack(per_a, axis=-2))         # (cin, cout, 2, 2)
    wmat = jnp.stack(taps, axis=0)                         # (9, cin, cout, 2, 2)
    wmat = wmat.reshape(9 * cin, 4 * cout)                 # rows (tap, ci)
    return wmat.T.astype(jnp.bfloat16)                     # (4*cout, 9*cin)


def _patchesT(x_nchw, pad_value):
    """3x3-tap transposed im2col: (N, C, H, W) -> (N, 9*C, H*W).

    Pure data movement (pad + shifted slices); the border uses the sentinel
    so that the in-kernel BN+ReLU maps it to exactly zero.
    """
    n, c, h, w = x_nchw.shape
    xp = jnp.pad(x_nchw, ((0, 0), (0, 0), (1, 1), (1, 1)),
                 constant_values=pad_value)
    taps = [xp[:, :, dy:dy + h, dx:dx + w]
            for dy in range(3) for dx in range(3)]
    return jnp.stack(taps, axis=1).reshape(n, 9 * c, h * w)


def _depth_to_space(y, cout, h, w):
    """(N, 4*Cout, H*W) with rows (cout, a, b) -> NCHW (N, Cout, 2H, 2W)."""
    n = y.shape[0]
    return (y.reshape(n, cout, 2, 2, h, w)
             .transpose(0, 1, 4, 2, 5, 3)
             .reshape(n, cout, 2 * h, 2 * w))


def _bn_scale_shift(ssum, ssq, gamma, beta, *, group, count):
    """Fold per-tile partial sums into PyTorch training-mode BN scale/shift
    (biased batch variance, eps=1e-5).  O(C) work only."""
    c = gamma.shape[0]
    s = jnp.sum(ssum.reshape(-1, c, group), axis=(0, 2))
    q = jnp.sum(ssq.reshape(-1, c, group), axis=(0, 2))
    mean = s / count
    var = jnp.maximum(q / count - mean * mean, 0.0)
    scale = gamma * lax.rsqrt(var + 1e-5)
    shift = beta - mean * scale
    return scale, shift


def _bn_row_vectors(scale, shift):
    """Expand per-channel BN scale/shift to per-(tap, channel) row vectors."""
    c = scale.shape[0]
    return (jnp.tile(scale, 9).reshape(9 * c, 1).astype(jnp.float32),
            jnp.tile(shift, 9).reshape(9 * c, 1).astype(jnp.float32))


def make_generator_params(key, nz, ngf, nc):
    """Deterministic DCGAN-style init (N(0, 0.02)) for the 5 deconv layers."""
    layer_defs = [(nz, ngf * 8), (ngf * 8, ngf * 4), (ngf * 4, ngf * 2),
                  (ngf * 2, ngf), (ngf, nc)]
    keys = jax.random.split(key, len(layer_defs))
    weights, gammas, betas = [], [], []
    for k, (cin, cout) in zip(keys, layer_defs):
        weights.append(0.02 * jax.random.normal(k, (cin, cout, 4, 4),
                                                jnp.float32))
        gammas.append(jnp.ones((cout,), jnp.float32))   # BatchNorm2d defaults
        betas.append(jnp.zeros((cout,), jnp.float32))
    return weights, gammas, betas


@jax.jit
def generator_forward(x_nchw, weights, gammas, betas):
    n = x_nchw.shape[0]
    nz = x_nchw.shape[1]
    num_layers = len(weights)

    # ---- layer 1: ConvTranspose2d(nz, ngf*8, 4, 1, 0) on a 1x1 input -------
    w0 = weights[0]                                         # (nz, C1, 4, 4)
    c1 = w0.shape[1]
    w0_mat = w0.reshape(nz, c1 * 16).astype(jnp.bfloat16)   # cols (co, kh, kw)
    x0 = x_nchw.reshape(n, nz).astype(jnp.bfloat16)
    y, ssum, ssq = _first_layer(x0, w0_mat)                 # (n, 16*C1) pre-BN
    scale, shift = _bn_scale_shift(ssum, ssq, gammas[0], betas[0],
                                   group=16, count=n * 16)
    x = y.reshape(n, c1, 4, 4)                              # NCHW, pre-BN

    # ---- layers 2..5: stride-2 subpixel ConvTranspose2d ---------------------
    out = None
    for i in range(1, num_layers):
        w_i = weights[i]
        cin, cout = w_i.shape[0], w_i.shape[1]
        h, wd = x.shape[2], x.shape[3]
        last = i == num_layers - 1

        p = _patchesT(x, _PAD_SENTINEL)                     # (n, 9*cin, h*w)
        w_sub = _subpixel_weight(w_i)                       # (4*cout, 9*cin)
        scale_rows, shift_rows = _bn_row_vectors(scale, shift)

        y, ssum, ssq = _deconv2x_layer(
            p, w_sub, scale_rows, shift_rows, last=last,
            out_dtype=jnp.float32 if last else jnp.bfloat16)

        if last:
            out = _depth_to_space(y, cout, h, wd)           # (n, nc, 2h, 2w)
        else:
            scale, shift = _bn_scale_shift(ssum, ssq, gammas[i], betas[i],
                                           group=4, count=n * 4 * h * wd)
            x = _depth_to_space(y, cout, h, wd)             # pre-BN, bf16
    return out


# --------------------------------- main --------------------------------------

if __name__ == "__main__":
    nz, ngf, nc = 16, 8, 3
    batch = 2

    key = jax.random.PRNGKey(0)
    k_w, k_x = jax.random.split(key)
    weights, gammas, betas = make_generator_params(k_w, nz, ngf, nc)

    # PyTorch-style latent input: NCHW (N, nz, 1, 1)
    x = jax.random.normal(k_x, (batch, nz, 1, 1), jnp.float32)

    out = generator_forward(x, weights, gammas, betas)
    out = jax.block_until_ready(out)

    assert out.shape == (batch, nc, 64, 64), out.shape
    assert out.dtype == jnp.float32
    assert bool(jnp.all(jnp.isfinite(out)))
    assert bool(jnp.all(jnp.abs(out) <= 1.0))   # tanh range

    print("KERNEL_OK")
</pallas_src>

<mosaic_0001>
module attributes {stable_mosaic.version = 11 : i64} {
  func.func @_fc_stats_kernel(%arg0: i32, %arg1: memref<2x16xbf16, #tpu.memory_space<vmem>>, %arg2: memref<16x1024xbf16, #tpu.memory_space<vmem>>, %arg3: memref<2x1024xbf16, #tpu.memory_space<vmem>>, %arg4: memref<1x1024xf32, #tpu.memory_space<vmem>>, %arg5: memref<1x1024xf32, #tpu.memory_space<vmem>>) attributes {dimension_semantics = [#tpu.dimension_semantics<arbitrary>], iteration_bounds = array<i64: 1>, scalar_prefetch = 0 : i64, scratch_operands = 0 : i64, tpu.core_type = #tpu.core_type<tc>, window_params = [{pipeline_mode = #tpu.pipeline_mode<synchronous>, transform_indices = @transform_0, window_bounds = array<i64: 2, 16>}, {pipeline_mode = #tpu.pipeline_mode<synchronous>, transform_indices = @transform_1, window_bounds = array<i64: 16, 1024>}, {pipeline_mode = #tpu.pipeline_mode<synchronous>, transform_indices = @transform_2, window_bounds = array<i64: 2, 1024>}, {pipeline_mode = #tpu.pipeline_mode<synchronous>, transform_indices = @transform_3, window_bounds = array<i64: 1, 1024>}, {pipeline_mode = #tpu.pipeline_mode<synchronous>, transform_indices = @transform_4, window_bounds = array<i64: 1, 1024>}]} {
    %c0 = arith.constant 0 : index
    %c0_0 = arith.constant 0 : index
    %0 = vector.load %arg1[%c0, %c0_0] : memref<2x16xbf16, #tpu.memory_space<vmem>>, vector<2x16xbf16>
    %c0_1 = arith.constant 0 : index
    %c0_2 = arith.constant 0 : index
    %1 = vector.load %arg2[%c0_1, %c0_2] : memref<16x1024xbf16, #tpu.memory_space<vmem>>, vector<16x1024xbf16>
    %cst = arith.constant dense<0.000000e+00> : vector<2x1024xf32>
    %2 = tpu.matmul %0, %1, %cst {dimension_numbers = #tpu.dot_dimension_numbers<[1], [0], [0], [1], [0, 0, 1, 1], [], []>} : vector<2x16xbf16>, vector<16x1024xbf16>, vector<2x1024xf32> -> vector<2x1024xf32>
    %3 = arith.truncf %2 : vector<2x1024xf32> to vector<2x1024xbf16>
    %c0_3 = arith.constant 0 : index
    %c0_4 = arith.constant 0 : index
    %4 = vector.load %arg3[%c0_3, %c0_4] : memref<2x1024xbf16, #tpu.memory_space<vmem>>, vector<2x1024xbf16>
    tpu.vector_store %arg3[%c0_3, %c0_4], %3 {strides = array<i32>} : memref<2x1024xbf16, #tpu.memory_space<vmem>>, vector<2x1024xbf16>,
    %cst_5 = arith.constant dense<0.000000e+00> : vector<1024xf32>
    %5 = vector.multi_reduction <add>, %2, %cst_5 [0] : vector<2x1024xf32> to vector<1024xf32>
    %6 = vector.shape_cast %5 : vector<1024xf32> to vector<1x1024xf32>
    %c0_6 = arith.constant 0 : index
    %c0_7 = arith.constant 0 : index
    %7 = vector.load %arg4[%c0_6, %c0_7] : memref<1x1024xf32, #tpu.memory_space<vmem>>, vector<1x1024xf32>
    tpu.vector_store %arg4[%c0_6, %c0_7], %6 {strides = array<i32>} : memref<1x1024xf32, #tpu.memory_space<vmem>>, vector<1x1024xf32>,
    %8 = arith.mulf %2, %2 : vector<2x1024xf32>
    %cst_8 = arith.constant dense<0.000000e+00> : vector<1024xf32>
    %9 = vector.multi_reduction <add>, %8, %cst_8 [0] : vector<2x1024xf32> to vector<1024xf32>
    %10 = vector.shape_cast %9 : vector<1024xf32> to vector<1x1024xf32>
    %c0_9 = arith.constant 0 : index
    %c0_10 = arith.constant 0 : index
    %11 = vector.load %arg5[%c0_9, %c0_10] : memref<1x1024xf32, #tpu.memory_space<vmem>>, vector<1x1024xf32>
    tpu.vector_store %arg5[%c0_9, %c0_10], %10 {strides = array<i32>} : memref<1x1024xf32, #tpu.memory_space<vmem>>, vector<1x1024xf32>,
    return
  }
  func.func @transform_0(%arg0: i32) -> (i32, i32) {
    %c0_i32 = arith.constant 0 : i32
    %c0_i32_0 = arith.constant 0 : i32
    %c0_i32_1 = arith.constant 0 : i32
    return %c0_i32, %c0_i32_0 : i32, i32
  }
  func.func @transform_1(%arg0: i32) -> (i32, i32) {
    %c0_i32 = arith.constant 0 : i32
    %c0_i32_0 = arith.constant 0 : i32
    %c0_i32_1 = arith.constant 0 : i32
    return %c0_i32, %c0_i32_0 : i32, i32
  }
  func.func @transform_2(%arg0: i32) -> (i32, i32) {
    %c0_i32 = arith.constant 0 : i32
    %c0_i32_0 = arith.constant 0 : i32
    %c0_i32_1 = arith.constant 0 : i32
    return %c0_i32, %c0_i32_0 : i32, i32
  }
  func.func @transform_3(%arg0: i32) -> (i32, i32) {
    %c0_i32 = arith.constant 0 : i32
    %c0_i32_0 = arith.constant 0 : i32
    %c0_i32_1 = arith.constant 0 : i32
    return %c0_i32, %c0_i32_0 : i32, i32
  }
  func.func @transform_4(%arg0: i32) -> (i32, i32) {
    %c0_i32 = arith.constant 0 : i32
    %c0_i32_0 = arith.constant 0 : i32
    %c0_i32_1 = arith.constant 0 : i32
    return %c0_i32, %c0_i32_0 : i32, i32
  }
}

module attributes {stable_mosaic.version = 11 : i64} {
  func.func @_deconv_bn_kernel(%arg0: i32, %arg1: i32, %arg2: memref<576x1xf32, #tpu.memory_space<vmem>>, %arg3: memref<576x1xf32, #tpu.memory_space<vmem>>, %arg4: memref<1x576x16xbf16, #tpu.memory_space<vmem>>, %arg5: memref<128x576xbf16, #tpu.memory_space<vmem>>, %arg6: memref<1x128x16xbf16, #tpu.memory_space<vmem>>, %arg7: memref<1x1x128x1xf32, #tpu.memory_space<vmem>>, %arg8: memref<1x1x128x1xf32, #tpu.memory_space<vmem>>) attributes {dimension_semantics = [#tpu.dimension_semantics<parallel>, #tpu.dimension_semantics<parallel>], iteration_bounds = array<i64: 2, 1>, scalar_prefetch = 0 : i64, scratch_operands = 0 : i64, tpu.core_type = #tpu.core_type<tc>, window_params = [{pipeline_mode = #tpu.pipeline_mode<synchronous>, transform_indices = @transform_0, window_bounds = array<i64: 576, 1>}, {pipeline_mode = #tpu.pipeline_mode<synchronous>, transform_indices = @transform_1, window_bounds = array<i64: 576, 1>}, {transform_indices = @transform_2, window_bounds = array<i64: 1, 576, 16>}, {pipeline_mode = #tpu.pipeline_mode<synchronous>, transform_indices = @transform_3, window_bounds = array<i64: 128, 576>}, {transform_indices = @transform_4, window_bounds = array<i64: 1, 128, 16>}, {transform_indices = @transform_5, window_bounds = array<i64: 1, 1, 128, 1>}, {transform_indices = @transform_6, window_bounds = array<i64: 1, 1, 128, 1>}]} {
    %c0 = arith.constant 0 : index
    %c0_0 = arith.constant 0 : index
    %c0_1 = arith.constant 0 : index
    %0 = vector.load %arg4[%c0, %c0_0, %c0_1] : memref<1x576x16xbf16, #tpu.memory_space<vmem>>, vector<1x576x16xbf16>
    %1 = vector.shape_cast %0 : vector<1x576x16xbf16> to vector<576x16xbf16>
    %2 = arith.extf %1 : vector<576x16xbf16> to vector<576x16xf32>
    %c0_2 = arith.constant 0 : index
    %c0_3 = arith.constant 0 : index
    %3 = vector.load %arg2[%c0_2, %c0_3] : memref<576x1xf32, #tpu.memory_space<vmem>>, vector<576x1xf32>
    %4 = vector.broadcast %3 : vector<576x1xf32> to vector<576x16xf32>
    %5 = arith.mulf %2, %4 : vector<576x16xf32>
    %c0_4 = arith.constant 0 : index
    %c0_5 = arith.constant 0 : index
    %6 = vector.load %arg3[%c0_4, %c0_5] : memref<576x1xf32, #tpu.memory_space<vmem>>, vector<576x1xf32>
    %7 = vector.broadcast %6 : vector<576x1xf32> to vector<576x16xf32>
    %8 = arith.addf %5, %7 : vector<576x16xf32>
    %cst = arith.constant 0.000000e+00 : f32
    %9 = vector.broadcast %cst : f32 to vector<576x16xf32>
    %10 = arith.maximumf %8, %9 : vector<576x16xf32>
    %c0_6 = arith.constant 0 : index
    %c0_7 = arith.constant 0 : index
    %11 = vector.load %arg5[%c0_6, %c0_7] : memref<128x576xbf16, #tpu.memory_space<vmem>>, vector<128x576xbf16>
    %12 = arith.truncf %10 : vector<576x16xf32> to vector<576x16xbf16>
    %cst_8 = arith.constant dense<0.000000e+00> : vector<128x16xf32>
    %13 = tpu.matmul %11, %12, %cst_8 {dimension_numbers = #tpu.dot_dimension_numbers<[1], [0], [0], [1], [0, 0, 1, 1], [], []>} : vector<128x576xbf16>, vector<576x16xbf16>, vector<128x16xf32> -> vector<128x16xf32>
    %14 = arith.truncf %13 : vector<128x16xf32> to vector<128x16xbf16>
    %c0_9 = arith.constant 0 : index
    %c0_10 = arith.constant 0 : index
    %c0_11 = arith.constant 0 : index
    %15 = vector.load %arg6[%c0_9, %c0_10, %c0_11] : memref<1x128x16xbf16, #tpu.memory_space<vmem>>, vector<1x128x16xbf16>
    %16 = vector.shape_cast %15 : vector<1x128x16xbf16> to vector<128x16xbf16>
    %17 = vector.shape_cast %14 : vector<128x16xbf16> to vector<1x128x16xbf16>
    tpu.vector_store %arg6[%c0_9, %c0_10, %c0_11], %17 {strides = array<i32>} : memref<1x128x16xbf16, #tpu.memory_space<vmem>>, vector<1x128x16xbf16>,
    %cst_12 = arith.constant dense<0.000000e+00> : vector<128xf32>
    %18 = vector.multi_reduction <add>, %13, %cst_12 [1] : vector<128x16xf32> to vector<128xf32>
    %19 = vector.shape_cast %18 : vector<128xf32> to vector<128x1xf32>
    %c0_13 = arith.constant 0 : index
    %c0_14 = arith.constant 0 : index
    %c0_15 = arith.constant 0 : index
    %c0_16 = arith.constant 0 : index
    %20 = vector.load %arg7[%c0_13, %c0_14, %c0_15, %c0_16] : memref<1x1x128x1xf32, #tpu.memory_space<vmem>>, vector<1x1x128x1xf32>
    %21 = vector.shape_cast %20 : vector<1x1x128x1xf32> to vector<128x1xf32>
    %22 = vector.shape_cast %19 : vector<128x1xf32> to vector<1x1x128x1xf32>
    tpu.vector_store %arg7[%c0_13, %c0_14, %c0_15, %c0_16], %22 {strides = array<i32>} : memref<1x1x128x1xf32, #tpu.memory_space<vmem>>, vector<1x1x128x1xf32>,
    %23 = arith.mulf %13, %13 : vector<128x16xf32>
    %cst_17 = arith.constant dense<0.000000e+00> : vector<128xf32>
    %24 = vector.multi_reduction <add>, %23, %cst_17 [1] : vector<128x16xf32> to vector<128xf32>
    %25 = vector.shape_cast %24 : vector<128xf32> to vector<128x1xf32>
    %c0_18 = arith.constant 0 : index
    %c0_19 = arith.constant 0 : index
    %c0_20 = arith.constant 0 : index
    %c0_21 = arith.constant 0 : index
    %26 = vector.load %arg8[%c0_18, %c0_19, %c0_20, %c0_21] : memref<1x1x128x1xf32, #tpu.memory_space<vmem>>, vector<1x1x128x1xf32>
    %27 = vector.shape_cast %26 : vector<1x1x128x1xf32> to vector<128x1xf32>
    %28 = vector.shape_cast %25 : vector<128x1xf32> to vector<1x1x128x1xf32>
    tpu.vector_store %arg8[%c0_18, %c0_19, %c0_20, %c0_21], %28 {strides = array<i32>} : memref<1x1x128x1xf32, #tpu.memory_space<vmem>>, vector<1x1x128x1xf32>,
    return
  }
  func.func @transform_0(%arg0: i32, %arg1: i32) -> (i32, i32) {
    %c0_i32 = arith.constant 0 : i32
    %c0_i32_0 = arith.constant 0 : i32
    %c0_i32_1 = arith.constant 0 : i32
    return %c0_i32, %c0_i32_0 : i32, i32
  }
  func.func @transform_1(%arg0: i32, %arg1: i32) -> (i32, i32) {
    %c0_i32 = arith.constant 0 : i32
    %c0_i32_0 = arith.constant 0 : i32
    %c0_i32_1 = arith.constant 0 : i32
    return %c0_i32, %c0_i32_0 : i32, i32
  }
  func.func @transform_2(%arg0: i32, %arg1: i32) -> (i32, i32, i32) {
    %c0_i32 = arith.constant 0 : i32
    %c0_i32_0 = arith.constant 0 : i32
    return %arg0, %c0_i32, %arg1 : i32, i32, i32
  }
  func.func @transform_3(%arg0: i32, %arg1: i32) -> (i32, i32) {
    %c0_i32 = arith.constant 0 : i32
    %c0_i32_0 = arith.constant 0 : i32
    %c0_i32_1 = arith.constant 0 : i32
    return %c0_i32, %c0_i32_0 : i32, i32
  }
  func.func @transform_4(%arg0: i32, %arg1: i32) -> (i32, i32, i32) {
    %c0_i32 = arith.constant 0 : i32
    %c0_i32_0 = arith.constant 0 : i32
    return %arg0, %c0_i32, %arg1 : i32, i32, i32
  }
  func.func @transform_5(%arg0: i32, %arg1: i32) -> (i32, i32, i32, i32) {
    %c0_i32 = arith.constant 0 : i32
    %c0_i32_0 = arith.constant 0 : i32
    %c0_i32_1 = arith.constant 0 : i32
    return %arg0, %arg1, %c0_i32, %c0_i32_0 : i32, i32, i32, i32
  }
  func.func @transform_6(%arg0: i32, %arg1: i32) -> (i32, i32, i32, i32) {
    %c0_i32 = arith.constant 0 : i32
    %c0_i32_0 = arith.constant 0 : i32
    %c0_i32_1 = arith.constant 0 : i32
    return %arg0, %arg1, %c0_i32, %c0_i32_0 : i32, i32, i32, i32
  }
}

module attributes {stable_mosaic.version = 11 : i64} {
  func.func @_deconv_bn_kernel(%arg0: i32, %arg1: i32, %arg2: memref<288x1xf32, #tpu.memory_space<vmem>>, %arg3: memref<288x1xf32, #tpu.memory_space<vmem>>, %arg4: memref<1x288x64xbf16, #tpu.memory_space<vmem>>, %arg5: memref<64x288xbf16, #tpu.memory_space<vmem>>, %arg6: memref<1x64x64xbf16, #tpu.memory_space<vmem>>, %arg7: memref<1x1x64x1xf32, #tpu.memory_space<vmem>>, %arg8: memref<1x1x64x1xf32, #tpu.memory_space<vmem>>) attributes {dimension_semantics = [#tpu.dimension_semantics<parallel>, #tpu.dimension_semantics<parallel>], iteration_bounds = array<i64: 2, 1>, scalar_prefetch = 0 : i64, scratch_operands = 0 : i64, tpu.core_type = #tpu.core_type<tc>, window_params = [{pipeline_mode = #tpu.pipeline_mode<synchronous>, transform_indices = @transform_0, window_bounds = array<i64: 288, 1>}, {pipeline_mode = #tpu.pipeline_mode<synchronous>, transform_indices = @transform_1, window_bounds = array<i64: 288, 1>}, {transform_indices = @transform_2, window_bounds = array<i64: 1, 288, 64>}, {pipeline_mode = #tpu.pipeline_mode<synchronous>, transform_indices = @transform_3, window_bounds = array<i64: 64, 288>}, {transform_indices = @transform_4, window_bounds = array<i64: 1, 64, 64>}, {transform_indices = @transform_5, window_bounds = array<i64: 1, 1, 64, 1>}, {transform_indices = @transform_6, window_bounds = array<i64: 1, 1, 64, 1>}]} {
    %c0 = arith.constant 0 : index
    %c0_0 = arith.constant 0 : index
    %c0_1 = arith.constant 0 : index
    %0 = vector.load %arg4[%c0, %c0_0, %c0_1] : memref<1x288x64xbf16, #tpu.memory_space<vmem>>, vector<1x288x64xbf16>
    %1 = vector.shape_cast %0 : vector<1x288x64xbf16> to vector<288x64xbf16>
    %2 = arith.extf %1 : vector<288x64xbf16> to vector<288x64xf32>
    %c0_2 = arith.constant 0 : index
    %c0_3 = arith.constant 0 : index
    %3 = vector.load %arg2[%c0_2, %c0_3] : memref<288x1xf32, #tpu.memory_space<vmem>>, vector<288x1xf32>
    %4 = vector.broadcast %3 : vector<288x1xf32> to vector<288x64xf32>
    %5 = arith.mulf %2, %4 : vector<288x64xf32>
    %c0_4 = arith.constant 0 : index
    %c0_5 = arith.constant 0 : index
    %6 = vector.load %arg3[%c0_4, %c0_5] : memref<288x1xf32, #tpu.memory_space<vmem>>, vector<288x1xf32>
    %7 = vector.broadcast %6 : vector<288x1xf32> to vector<288x64xf32>
    %8 = arith.addf %5, %7 : vector<288x64xf32>
    %cst = arith.constant 0.000000e+00 : f32
    %9 = vector.broadcast %cst : f32 to vector<288x64xf32>
    %10 = arith.maximumf %8, %9 : vector<288x64xf32>
    %c0_6 = arith.constant 0 : index
    %c0_7 = arith.constant 0 : index
    %11 = vector.load %arg5[%c0_6, %c0_7] : memref<64x288xbf16, #tpu.memory_space<vmem>>, vector<64x288xbf16>
    %12 = arith.truncf %10 : vector<288x64xf32> to vector<288x64xbf16>
    %cst_8 = arith.constant dense<0.000000e+00> : vector<64x64xf32>
    %13 = tpu.matmul %11, %12, %cst_8 {dimension_numbers = #tpu.dot_dimension_numbers<[1], [0], [0], [1], [0, 0, 1, 1], [], []>} : vector<64x288xbf16>, vector<288x64xbf16>, vector<64x64xf32> -> vector<64x64xf32>
    %14 = arith.truncf %13 : vector<64x64xf32> to vector<64x64xbf16>
    %c0_9 = arith.constant 0 : index
    %c0_10 = arith.constant 0 : index
    %c0_11 = arith.constant 0 : index
    %15 = vector.load %arg6[%c0_9, %c0_10, %c0_11] : memref<1x64x64xbf16, #tpu.memory_space<vmem>>, vector<1x64x64xbf16>
    %16 = vector.shape_cast %15 : vector<1x64x64xbf16> to vector<64x64xbf16>
    %17 = vector.shape_cast %14 : vector<64x64xbf16> to vector<1x64x64xbf16>
    tpu.vector_store %arg6[%c0_9, %c0_10, %c0_11], %17 {strides = array<i32>} : memref<1x64x64xbf16, #tpu.memory_space<vmem>>, vector<1x64x64xbf16>,
    %cst_12 = arith.constant dense<0.000000e+00> : vector<64xf32>
    %18 = vector.multi_reduction <add>, %13, %cst_12 [1] : vector<64x64xf32> to vector<64xf32>
    %19 = vector.shape_cast %18 : vector<64xf32> to vector<64x1xf32>
    %c0_13 = arith.constant 0 : index
    %c0_14 = arith.constant 0 : index
    %c0_15 = arith.constant 0 : index
    %c0_16 = arith.constant 0 : index
    %20 = vector.load %arg7[%c0_13, %c0_14, %c0_15, %c0_16] : memref<1x1x64x1xf32, #tpu.memory_space<vmem>>, vector<1x1x64x1xf32>
    %21 = vector.shape_cast %20 : vector<1x1x64x1xf32> to vector<64x1xf32>
    %22 = vector.shape_cast %19 : vector<64x1xf32> to vector<1x1x64x1xf32>
    tpu.vector_store %arg7[%c0_13, %c0_14, %c0_15, %c0_16], %22 {strides = array<i32>} : memref<1x1x64x1xf32, #tpu.memory_space<vmem>>, vector<1x1x64x1xf32>,
    %23 = arith.mulf %13, %13 : vector<64x64xf32>
    %cst_17 = arith.constant dense<0.000000e+00> : vector<64xf32>
    %24 = vector.multi_reduction <add>, %23, %cst_17 [1] : vector<64x64xf32> to vector<64xf32>
    %25 = vector.shape_cast %24 : vector<64xf32> to vector<64x1xf32>
    %c0_18 = arith.constant 0 : index
    %c0_19 = arith.constant 0 : index
    %c0_20 = arith.constant 0 : index
    %c0_21 = arith.constant 0 : index
    %26 = vector.load %arg8[%c0_18, %c0_19, %c0_20, %c0_21] : memref<1x1x64x1xf32, #tpu.memory_space<vmem>>, vector<1x1x64x1xf32>
    %27 = vector.shape_cast %26 : vector<1x1x64x1xf32> to vector<64x1xf32>
    %28 = vector.shape_cast %25 : vector<64x1xf32> to vector<1x1x64x1xf32>
    tpu.vector_store %arg8[%c0_18, %c0_19, %c0_20, %c0_21], %28 {strides = array<i32>} : memref<1x1x64x1xf32, #tpu.memory_space<vmem>>, vector<1x1x64x1xf32>,
    return
  }
  func.func @transform_0(%arg0: i32, %arg1: i32) -> (i32, i32) {
    %c0_i32 = arith.constant 0 : i32
    %c0_i32_0 = arith.constant 0 : i32
    %c0_i32_1 = arith.constant 0 : i32
    return %c0_i32, %c0_i32_0 : i32, i32
  }
  func.func @transform_1(%arg0: i32, %arg1: i32) -> (i32, i32) {
    %c0_i32 = arith.constant 0 : i32
    %c0_i32_0 = arith.constant 0 : i32
    %c0_i32_1 = arith.constant 0 : i32
    return %c0_i32, %c0_i32_0 : i32, i32
  }
  func.func @transform_2(%arg0: i32, %arg1: i32) -> (i32, i32, i32) {
    %c0_i32 = arith.constant 0 : i32
    %c0_i32_0 = arith.constant 0 : i32
    return %arg0, %c0_i32, %arg1 : i32, i32, i32
  }
  func.func @transform_3(%arg0: i32, %arg1: i32) -> (i32, i32) {
    %c0_i32 = arith.constant 0 : i32
    %c0_i32_0 = arith.constant 0 : i32
    %c0_i32_1 = arith.constant 0 : i32
    return %c0_i32, %c0_i32_0 : i32, i32
  }
  func.func @transform_4(%arg0: i32, %arg1: i32) -> (i32, i32, i32) {
    %c0_i32 = arith.constant 0 : i32
    %c0_i32_0 = arith.constant 0 : i32
    return %arg0, %c0_i32, %arg1 : i32, i32, i32
  }
  func.func @transform_5(%arg0: i32, %arg1: i32) -> (i32, i32, i32, i32) {
    %c0_i32 = arith.constant 0 : i32
    %c0_i32_0 = arith.constant 0 : i32
    %c0_i32_1 = arith.constant 0 : i32
    return %arg0, %arg1, %c0_i32, %c0_i32_0 : i32, i32, i32, i32
  }
  func.func @transform_6(%arg0: i32, %arg1: i32) -> (i32, i32, i32, i32) {
    %c0_i32 = arith.constant 0 : i32
    %c0_i32_0 = arith.constant 0 : i32
    %c0_i32_1 = arith.constant 0 : i32
    return %arg0, %arg1, %c0_i32, %c0_i32_0 : i32, i32, i32, i32
  }
}

module attributes {stable_mosaic.version = 11 : i64} {
  func.func @_deconv_bn_kernel(%arg0: i32, %arg1: i32, %arg2: memref<144x1xf32, #tpu.memory_space<vmem>>, %arg3: memref<144x1xf32, #tpu.memory_space<vmem>>, %arg4: memref<1x144x256xbf16, #tpu.memory_space<vmem>>, %arg5: memref<32x144xbf16, #tpu.memory_space<vmem>>, %arg6: memref<1x32x256xbf16, #tpu.memory_space<vmem>>, %arg7: memref<1x1x32x1xf32, #tpu.memory_space<vmem>>, %arg8: memref<1x1x32x1xf32, #tpu.memory_space<vmem>>) attributes {dimension_semantics = [#tpu.dimension_semantics<parallel>, #tpu.dimension_semantics<parallel>], iteration_bounds = array<i64: 2, 1>, scalar_prefetch = 0 : i64, scratch_operands = 0 : i64, tpu.core_type = #tpu.core_type<tc>, window_params = [{pipeline_mode = #tpu.pipeline_mode<synchronous>, transform_indices = @transform_0, window_bounds = array<i64: 144, 1>}, {pipeline_mode = #tpu.pipeline_mode<synchronous>, transform_indices = @transform_1, window_bounds = array<i64: 144, 1>}, {transform_indices = @transform_2, window_bounds = array<i64: 1, 144, 256>}, {pipeline_mode = #tpu.pipeline_mode<synchronous>, transform_indices = @transform_3, window_bounds = array<i64: 32, 144>}, {transform_indices = @transform_4, window_bounds = array<i64: 1, 32, 256>}, {transform_indices = @transform_5, window_bounds = array<i64: 1, 1, 32, 1>}, {transform_indices = @transform_6, window_bounds = array<i64: 1, 1, 32, 1>}]} {
    %c0 = arith.constant 0 : index
    %c0_0 = arith.constant 0 : index
    %c0_1 = arith.constant 0 : index
    %0 = vector.load %arg4[%c0, %c0_0, %c0_1] : memref<1x144x256xbf16, #tpu.memory_space<vmem>>, vector<1x144x256xbf16>
    %1 = vector.shape_cast %0 : vector<1x144x256xbf16> to vector<144x256xbf16>
    %2 = arith.extf %1 : vector<144x256xbf16> to vector<144x256xf32>
    %c0_2 = arith.constant 0 : index
    %c0_3 = arith.constant 0 : index
    %3 = vector.load %arg2[%c0_2, %c0_3] : memref<144x1xf32, #tpu.memory_space<vmem>>, vector<144x1xf32>
    %4 = vector.broadcast %3 : vector<144x1xf32> to vector<144x256xf32>
    %5 = arith.mulf %2, %4 : vector<144x256xf32>
    %c0_4 = arith.constant 0 : index
    %c0_5 = arith.constant 0 : index
    %6 = vector.load %arg3[%c0_4, %c0_5] : memref<144x1xf32, #tpu.memory_space<vmem>>, vector<144x1xf32>
    %7 = vector.broadcast %6 : vector<144x1xf32> to vector<144x256xf32>
    %8 = arith.addf %5, %7 : vector<144x256xf32>
    %cst = arith.constant 0.000000e+00 : f32
    %9 = vector.broadcast %cst : f32 to vector<144x256xf32>
    %10 = arith.maximumf %8, %9 : vector<144x256xf32>
    %c0_6 = arith.constant 0 : index
    %c0_7 = arith.constant 0 : index
    %11 = vector.load %arg5[%c0_6, %c0_7] : memref<32x144xbf16, #tpu.memory_space<vmem>>, vector<32x144xbf16>
    %12 = arith.truncf %10 : vector<144x256xf32> to vector<144x256xbf16>
    %cst_8 = arith.constant dense<0.000000e+00> : vector<32x256xf32>
    %13 = tpu.matmul %11, %12, %cst_8 {dimension_numbers = #tpu.dot_dimension_numbers<[1], [0], [0], [1], [0, 0, 1, 1], [], []>} : vector<32x144xbf16>, vector<144x256xbf16>, vector<32x256xf32> -> vector<32x256xf32>
    %14 = arith.truncf %13 : vector<32x256xf32> to vector<32x256xbf16>
    %c0_9 = arith.constant 0 : index
    %c0_10 = arith.constant 0 : index
    %c0_11 = arith.constant 0 : index
    %15 = vector.load %arg6[%c0_9, %c0_10, %c0_11] : memref<1x32x256xbf16, #tpu.memory_space<vmem>>, vector<1x32x256xbf16>
    %16 = vector.shape_cast %15 : vector<1x32x256xbf16> to vector<32x256xbf16>
    %17 = vector.shape_cast %14 : vector<32x256xbf16> to vector<1x32x256xbf16>
    tpu.vector_store %arg6[%c0_9, %c0_10, %c0_11], %17 {strides = array<i32>} : memref<1x32x256xbf16, #tpu.memory_space<vmem>>, vector<1x32x256xbf16>,
    %cst_12 = arith.constant dense<0.000000e+00> : vector<32xf32>
    %18 = vector.multi_reduction <add>, %13, %cst_12 [1] : vector<32x256xf32> to vector<32xf32>
    %19 = vector.shape_cast %18 : vector<32xf32> to vector<32x1xf32>
    %c0_13 = arith.constant 0 : index
    %c0_14 = arith.constant 0 : index
    %c0_15 = arith.constant 0 : index
    %c0_16 = arith.constant 0 : index
    %20 = vector.load %arg7[%c0_13, %c0_14, %c0_15, %c0_16] : memref<1x1x32x1xf32, #tpu.memory_space<vmem>>, vector<1x1x32x1xf32>
    %21 = vector.shape_cast %20 : vector<1x1x32x1xf32> to vector<32x1xf32>
    %22 = vector.shape_cast %19 : vector<32x1xf32> to vector<1x1x32x1xf32>
    tpu.vector_store %arg7[%c0_13, %c0_14, %c0_15, %c0_16], %22 {strides = array<i32>} : memref<1x1x32x1xf32, #tpu.memory_space<vmem>>, vector<1x1x32x1xf32>,
    %23 = arith.mulf %13, %13 : vector<32x256xf32>
    %cst_17 = arith.constant dense<0.000000e+00> : vector<32xf32>
    %24 = vector.multi_reduction <add>, %23, %cst_17 [1] : vector<32x256xf32> to vector<32xf32>
    %25 = vector.shape_cast %24 : vector<32xf32> to vector<32x1xf32>
    %c0_18 = arith.constant 0 : index
    %c0_19 = arith.constant 0 : index
    %c0_20 = arith.constant 0 : index
    %c0_21 = arith.constant 0 : index
    %26 = vector.load %arg8[%c0_18, %c0_19, %c0_20, %c0_21] : memref<1x1x32x1xf32, #tpu.memory_space<vmem>>, vector<1x1x32x1xf32>
    %27 = vector.shape_cast %26 : vector<1x1x32x1xf32> to vector<32x1xf32>
    %28 = vector.shape_cast %25 : vector<32x1xf32> to vector<1x1x32x1xf32>
    tpu.vector_store %arg8[%c0_18, %c0_19, %c0_20, %c0_21], %28 {strides = array<i32>} : memref<1x1x32x1xf32, #tpu.memory_space<vmem>>, vector<1x1x32x1xf32>,
    return
  }
  func.func @transform_0(%arg0: i32, %arg1: i32) -> (i32, i32) {
    %c0_i32 = arith.constant 0 : i32
    %c0_i32_0 = arith.constant 0 : i32
    %c0_i32_1 = arith.constant 0 : i32
    return %c0_i32, %c0_i32_0 : i32, i32
  }
  func.func @transform_1(%arg0: i32, %arg1: i32) -> (i32, i32) {
    %c0_i32 = arith.constant 0 : i32
    %c0_i32_0 = arith.constant 0 : i32
    %c0_i32_1 = arith.constant 0 : i32
    return %c0_i32, %c0_i32_0 : i32, i32
  }
  func.func @transform_2(%arg0: i32, %arg1: i32) -> (i32, i32, i32) {
    %c0_i32 = arith.constant 0 : i32
    %c0_i32_0 = arith.constant 0 : i32
    return %arg0, %c0_i32, %arg1 : i32, i32, i32
  }
  func.func @transform_3(%arg0: i32, %arg1: i32) -> (i32, i32) {
    %c0_i32 = arith.constant 0 : i32
    %c0_i32_0 = arith.constant 0 : i32
    %c0_i32_1 = arith.constant 0 : i32
    return %c0_i32, %c0_i32_0 : i32, i32
  }
  func.func @transform_4(%arg0: i32, %arg1: i32) -> (i32, i32, i32) {
    %c0_i32 = arith.constant 0 : i32
    %c0_i32_0 = arith.constant 0 : i32
    return %arg0, %c0_i32, %arg1 : i32, i32, i32
  }
  func.func @transform_5(%arg0: i32, %arg1: i32) -> (i32, i32, i32, i32) {
    %c0_i32 = arith.constant 0 : i32
    %c0_i32_0 = arith.constant 0 : i32
    %c0_i32_1 = arith.constant 0 : i32
    return %arg0, %arg1, %c0_i32, %c0_i32_0 : i32, i32, i32, i32
  }
  func.func @transform_6(%arg0: i32, %arg1: i32) -> (i32, i32, i32, i32) {
    %c0_i32 = arith.constant 0 : i32
    %c0_i32_0 = arith.constant 0 : i32
    %c0_i32_1 = arith.constant 0 : i32
    return %arg0, %arg1, %c0_i32, %c0_i32_0 : i32, i32, i32, i32
  }
}

module attributes {stable_mosaic.version = 11 : i64} {
  func.func @_deconv_tanh_kernel(%arg0: i32, %arg1: i32, %arg2: memref<72x1xf32, #tpu.memory_space<vmem>>, %arg3: memref<72x1xf32, #tpu.memory_space<vmem>>, %arg4: memref<1x72x1024xbf16, #tpu.memory_space<vmem>>, %arg5: memref<12x72xbf16, #tpu.memory_space<vmem>>, %arg6: memref<1x12x1024xf32, #tpu.memory_space<vmem>>) attributes {dimension_semantics = [#tpu.dimension_semantics<parallel>, #tpu.dimension_semantics<parallel>], iteration_bounds = array<i64: 2, 1>, scalar_prefetch = 0 : i64, scratch_operands = 0 : i64, tpu.core_type = #tpu.core_type<tc>, window_params = [{pipeline_mode = #tpu.pipeline_mode<synchronous>, transform_indices = @transform_0, window_bounds = array<i64: 72, 1>}, {pipeline_mode = #tpu.pipeline_mode<synchronous>, transform_indices = @transform_1, window_bounds = array<i64: 72, 1>}, {transform_indices = @transform_2, window_bounds = array<i64: 1, 72, 1024>}, {pipeline_mode = #tpu.pipeline_mode<synchronous>, transform_indices = @transform_3, window_bounds = array<i64: 12, 72>}, {transform_indices = @transform_4, window_bounds = array<i64: 1, 12, 1024>}]} {
    %c0 = arith.constant 0 : index
    %c0_0 = arith.constant 0 : index
    %c0_1 = arith.constant 0 : index
    %0 = vector.load %arg4[%c0, %c0_0, %c0_1] : memref<1x72x1024xbf16, #tpu.memory_space<vmem>>, vector<1x72x1024xbf16>
    %1 = vector.shape_cast %0 : vector<1x72x1024xbf16> to vector<72x1024xbf16>
    %2 = arith.extf %1 : vector<72x1024xbf16> to vector<72x1024xf32>
    %c0_2 = arith.constant 0 : index
    %c0_3 = arith.constant 0 : index
    %3 = vector.load %arg2[%c0_2, %c0_3] : memref<72x1xf32, #tpu.memory_space<vmem>>, vector<72x1xf32>
    %4 = vector.broadcast %3 : vector<72x1xf32> to vector<72x1024xf32>
    %5 = arith.mulf %2, %4 : vector<72x1024xf32>
    %c0_4 = arith.constant 0 : index
    %c0_5 = arith.constant 0 : index
    %6 = vector.load %arg3[%c0_4, %c0_5] : memref<72x1xf32, #tpu.memory_space<vmem>>, vector<72x1xf32>
    %7 = vector.broadcast %6 : vector<72x1xf32> to vector<72x1024xf32>
    %8 = arith.addf %5, %7 : vector<72x1024xf32>
    %cst = arith.constant 0.000000e+00 : f32
    %9 = vector.broadcast %cst : f32 to vector<72x1024xf32>
    %10 = arith.maximumf %8, %9 : vector<72x1024xf32>
    %c0_6 = arith.constant 0 : index
    %c0_7 = arith.constant 0 : index
    %11 = vector.load %arg5[%c0_6, %c0_7] : memref<12x72xbf16, #tpu.memory_space<vmem>>, vector<12x72xbf16>
    %12 = arith.truncf %10 : vector<72x1024xf32> to vector<72x1024xbf16>
    %cst_8 = arith.constant dense<0.000000e+00> : vector<12x1024xf32>
    %13 = tpu.matmul %11, %12, %cst_8 {dimension_numbers = #tpu.dot_dimension_numbers<[1], [0], [0], [1], [0, 0, 1, 1], [], []>} : vector<12x72xbf16>, vector<72x1024xbf16>, vector<12x1024xf32> -> vector<12x1024xf32>
    %14 = math.tanh %13 : vector<12x1024xf32>
    %c0_9 = arith.constant 0 : index
    %c0_10 = arith.constant 0 : index
    %c0_11 = arith.constant 0 : index
    %15 = vector.load %arg6[%c0_9, %c0_10, %c0_11] : memref<1x12x1024xf32, #tpu.memory_space<vmem>>, vector<1x12x1024xf32>
    %16 = vector.shape_cast %15 : vector<1x12x1024xf32> to vector<12x1024xf32>
    %17 = vector.shape_cast %14 : vector<12x1024xf32> to vector<1x12x1024xf32>
    tpu.vector_store %arg6[%c0_9, %c0_10, %c0_11], %17 {strides = array<i32>} : memref<1x12x1024xf32, #tpu.memory_space<vmem>>, vector<1x12x1024xf32>,
    return
  }
  func.func @transform_0(%arg0: i32, %arg1: i32) -> (i32, i32) {
    %c0_i32 = arith.constant 0 : i32
    %c0_i32_0 = arith.constant 0 : i32
    %c0_i32_1 = arith.constant 0 : i32
    return %c0_i32, %c0_i32_0 : i32, i32
  }
  func.func @transform_1(%arg0: i32, %arg1: i32) -> (i32, i32) {
    %c0_i32 = arith.constant 0 : i32
    %c0_i32_0 = arith.constant 0 : i32
    %c0_i32_1 = arith.constant 0 : i32
    return %c0_i32, %c0_i32_0 : i32, i32
  }
  func.func @transform_2(%arg0: i32, %arg1: i32) -> (i32, i32, i32) {
    %c0_i32 = arith.constant 0 : i32
    %c0_i32_0 = arith.constant 0 : i32
    return %arg0, %c0_i32, %arg1 : i32, i32, i32
  }
  func.func @transform_3(%arg0: i32, %arg1: i32) -> (i32, i32) {
    %c0_i32 = arith.constant 0 : i32
    %c0_i32_0 = arith.constant 0 : i32
    %c0_i32_1 = arith.constant 0 : i32
    return %c0_i32, %c0_i32_0 : i32, i32
  }
  func.func @transform_4(%arg0: i32, %arg1: i32) -> (i32, i32, i32) {
    %c0_i32 = arith.constant 0 : i32
    %c0_i32_0 = arith.constant 0 : i32
    return %arg0, %c0_i32, %arg1 : i32, i32, i32
  }
}

</mosaic_0001>

<bundles_post_ra>
// kernel: tile.48
= control target key start
LH: loop header
LB: loop body
LE: loop exit
PB: predicated region body
PF: predicated region fallthrough
CT: control target
= control target key end

     0   :  { %s28_s0 = inlined_call_operand.vmem [shape: f32[64], index: 0, kind: input, shape index: {}]   ;;  %s29_s1 = inlined_call_operand.vmem [shape: f32[9,64], index: 1, kind: output, shape index: {}]  }
   0x1   :  { %v4_v0 = vld [vmem:[%s28_s0] ss:$0 sm:$0xff] }
   0x2   :  { %5 = vst [vmem:[%s29_s1] sm:$0xff] %v4_v0  ;;  %8 = vst [vmem:[%s29_s1 + $0x8] sm:$0xff] %v4_v0 }

// kernel: generator_forward.5
= control target key start
LH: loop header
LB: loop body
LE: loop exit
PB: predicated region body
PF: predicated region fallthrough
CT: control target
= control target key end

     0   :  { %v568_v3 = vmov 0   ;;  %vm64_vm0 = vcmask 130048   ;;  %v569_v18 = vmov 1966171168   ;;  %v255_v20 = vlaneseq  ;;  %s706_s1 = inlined_call_operand.vmem [shape: bf16[16,1024], index: 1, kind: input, shape index: {}]   ;;  %s707_s0 = inlined_call_operand.vmem [shape: bf16[2,16], index: 0, kind: input, shape index: {}]   ;;  %s708_s2 = inlined_call_operand.vmem [shape: bf16[2,1024], index: 2, kind: output, shape index: {0}]   ;;  %s709_s3 = inlined_call_operand.vmem [shape: f32[1,1024], index: 3, kind: output, shape index: {1}]   ;;  %s710_s4 = inlined_call_operand.vmem [shape: f32[1,1024], index: 4, kind: output, shape index: {2}]  }
   0x1   :  { %v16_v0 = vld [vmem:[%s706_s1] sm:$0xff]  ;;  %v17_v2 = vld [vmem:[%s706_s1 + $0x8] sm:$0xff]  ;;  %100 = vmatprep.mubr.bf16.mxu0 %v568_v3  ;;  %141 = vmatprep.mubr.bf16.mxu1 %v568_v3  ;;  %v18_v7 = vld [vmem:[%s706_s1 + $0x10] sm:$0xff]  ;;  %v253_v19 = vunpack.c.l.s4 %v569_v18  ;;  %vm299_vm1 = vcmask 1041408  }
   0x2   :  { %v20_v1 = vld [vmem:[%s706_s1 + $0x20] sm:$0xff]  ;;  %v21_v5 = vld [vmem:[%s706_s1 + $0x28] sm:$0xff]  ;;  %v22_v10 = vld [vmem:[%s706_s1 + $0x30] sm:$0xff]  ;;  %v256_v22 = vshrl.u32 %v255_v20, 7 }
   0x3   :  { %v551_v4 = vcombine.high %v16_v0, %v20_v1  ;;  %v550_v6 = vcombine.low %v16_v0, %v20_v1  ;;  %v553_v8 = vcombine.high %v17_v2, %v21_v5  ;;  %v552_v9 = vcombine.low %v17_v2, %v21_v5  ;;  %v19_v11 = vld [vmem:[%s706_s1 + $0x18] sm:$0xff]  ;;  %v15_v15 = vld [vmem:[%s707_s0] sm:$0x1] }
   0x4   :  { %v23_v12 = vld [vmem:[%s706_s1 + $0x38] sm:$0xff]  ;;  %v555_v13 = vcombine.high %v18_v7, %v22_v10  ;;  %v554_v16 = vcombine.low %v18_v7, %v22_v10  ;;  %v254_v21 = vunpack.c.0.s8 %v253_v19 }
   0x5   :  { %68 = vmatprep.subr.bf16.mxu0 %v551_v4  ;;  %v557_v14 = vcombine.high %v19_v11, %v23_v12  ;;  %109 = vmatprep.subr.bf16.mxu1 %v553_v8  ;;  %v556_v17 = vcombine.low %v19_v11, %v23_v12 }
   0x6   :  { %69 = vmatpush1.bf16.msra.mxu0 %v550_v6  ;;  %110 = vmatpush1.bf16.msra.mxu1 %v552_v9  ;;  %v622_v24 = vsub.s32 %v254_v21, %v256_v22 }
   0x7   :  { %150 = vmatprep.subr.bf16.mxu0 %v555_v13  ;;  %191 = vmatprep.subr.bf16.mxu1 %v557_v14 }
   0x9   :  { %558 = vmatmul.mubr.msk.bf16.vlgmr.msra.gmra.mrb[0].mxu0 %vm64_vm0, %v15_v15  ;;  %559 = vmatmul.mubr.msk.bf16.vlgmr.msra.gmra.mrb[0].mxu1 %vm64_vm0, %v15_v15 }
   0xa   :  { %151 = vmatpush1.bf16.msra.mxu0 %v554_v16  ;;  %192 = vmatpush1.bf16.msra.mxu1 %v556_v17 }
   0xb   :  { %182 = vmatprep.mubr.bf16.mxu0 %v568_v3  ;;  %223 = vmatprep.mubr.bf16.mxu1 %v568_v3 }
  0x11   :  { %560 = vmatmul.mubr.msk.bf16.vlgmr.msra.gmra.mrb[4].mxu0 %vm64_vm0, %v15_v15  ;;  %561 = vmatmul.mubr.msk.bf16.vlgmr.msra.gmra.mrb[4].mxu1 %vm64_vm0, %v15_v15 }
  0xdc   :  { %v102_v23 = vpop.f32.mrb[0].mxu0  ;;  %v143_v27 = vpop.f32.mrb[0].mxu1 }
  0xdd   :  { %v300_v25 = vsel %vm299_vm1, %v102_v23, 0.0  ;;  %v415_v26 = vmul.f32 %v102_v23, %v102_v23  ;;  %v104_v28 = vpop.f32.mrb[1].mxu0  ;;  %v314_v30 = vsel %vm299_vm1, %v143_v27, 0.0  ;;  %v417_v31 = vmul.f32 %v143_v27, %v143_v27  ;;  %v145_v33 = vpop.f32.mrb[1].mxu1 }
  0xde   :  { %v301_v29 = vrot.slane %v300_v25, 4  ;;  %v562_v32 = vpack.c.bf16 %v104_v28, %v102_v23  ;;  %v106_v34 = vpop.f32.mrb[2].mxu0  ;;  %v315_v36 = vrot.slane %v314_v30, 4  ;;  %v307_v37 = vsel %vm299_vm1, %v104_v28, 0.0  ;;  %v147_v39 = vpop.f32.mrb[2].mxu1 }
  0xdf   :  { %v423_v35 = vsel %vm299_vm1, %v415_v26, 0.0  ;;  %v416_v38 = vmul.f32 %v104_v28, %v104_v28  ;;  %v107_v40 = vpop.f32.mrb[3].mxu0  ;;  %v437_v43 = vsel %vm299_vm1, %v417_v31, 0.0  ;;  %v148_v45 = vpop.f32.mrb[3].mxu1  ;;  %v308_v48 = vrot.slane %v307_v37, 4 }
  0xe0   :  { %v302_v41 = vadd.f32 %v301_v29, %v300_v25  ;;  %v424_v42 = vrot.slane %v423_v35, 4  ;;  %v630_v44 = vrot.slane %v562_v32, %v622_v24  ;;  %v316_v46 = vadd.f32 %v315_v36, %v314_v30 }
  0xe1   :  { %v438_v47 = vrot.slane %v437_v43, 4  ;;  %v430_v49 = vsel %vm299_vm1, %v416_v38, 0.0  ;;  %v563_v53 = vpack.c.bf16 %v145_v33, %v143_v27  ;;  %v309_v56 = vadd.f32 %v308_v48, %v307_v37 }
  0xe2   :  { %v303_v50 = vrot.slane %v302_v41, 2  ;;  %v425_v51 = vadd.f32 %v424_v42, %v423_v35  ;;  %v431_v52 = vrot.slane %v430_v49, 4  ;;  %v317_v54 = vrot.slane %v316_v46, 2 }
  0xe3   :  { %v439_v55 = vadd.f32 %v438_v47, %v437_v43  ;;  %v321_v57 = vsel %vm299_vm1, %v145_v33, 0.0  ;;  %v635_v61 = vrot.slane %v563_v53, %v622_v24  ;;  %v310_v1 = vrot.slane %v309_v56, 2 }
  0xe4   :  { %v304_v58 = vadd.f32 %v303_v50, %v302_v41  ;;  %v426_v59 = vrot.slane %v425_v51, 2  ;;  %v432_v60 = vadd.f32 %v431_v52, %v430_v49  ;;  %v637_v62 = vpop.f32.mrb[4].mxu0  ;;  %v318_v63 = vadd.f32 %v317_v54, %v316_v46  ;;  %v639_v3 = vpop.f32.mrb[4].mxu1 }
  0xe5   :  { %v440_v0 = vrot.slane %v439_v55, 2  ;;  %v322_v2 = vrot.slane %v321_v57, 4  ;;  %v641_v4 = vpop.f32.mrb[5].mxu0  ;;  %v280_v8 = vcombine.low %v630_v44, %v635_v61  ;;  %v645_v9 = vpop.f32.mrb[5].mxu1  ;;  %v311_v12 = vadd.f32 %v310_v1, %v309_v56 }
  0xe6   :  { %v305_v5 = vrot.slane %v304_v58, 1  ;;  %v427_v6 = vadd.f32 %v426_v59, %v425_v51  ;;  %v433_v7 = vrot.slane %v432_v60, 2  ;;  %v188_v10 = vpop.f32.mrb[6].mxu0  ;;  %v319_v11 = vrot.slane %v318_v63, 1  ;;  %v229_v14 = vpop.f32.mrb[6].mxu1 }
  0xe7   :  { %v323_v13 = vadd.f32 %v322_v2, %v321_v57  ;;  %v189_v15 = vpop.f32.mrb[7].mxu0  ;;  %v230_v18 = vpop.f32.mrb[7].mxu1  ;;  %v441_v20 = vadd.f32 %v440_v0, %v439_v55  ;;  %v312_v21 = vrot.slane %v311_v12, 1  ;;  %v418_v26 = vmul.f32 %v145_v33, %v145_v33 }
  0xe8   :  { %v428_v16 = vrot.slane %v427_v6, 1  ;;  %v434_v17 = vadd.f32 %v433_v7, %v432_v60  ;;  %v306_v19 = vadd.f32 %v305_v5, %v304_v58  ;;  %v328_v27 = vsel %vm299_vm1, %v637_v62, 0.0 }
  0xe9   :  { %v324_v22 = vrot.slane %v323_v13, 2  ;;  %v320_v28 = vadd.f32 %v319_v11, %v318_v63  ;;  %v313_v29 = vadd.f32 %v312_v21, %v311_v12  ;;  %v329_v31 = vrot.slane %v328_v27, 4 }
  0xea   :  { %v429_v23 = vadd.f32 %v428_v16, %v427_v6  ;;  %v435_v25 = vrot.slane %v434_v17, 1  ;;  %v444_v34 = vsel %vm299_vm1, %v418_v26, 0.0  ;;  %v419_v35 = vmul.f32 %v637_v62, %v637_v62 }
  0xeb   :  { %v325_v30 = vadd.f32 %v324_v22, %v323_v13  ;;  %v342_v36 = vsel %vm299_vm1, %v639_v3, 0.0  ;;  %v364_v37 = vcombine.low %v306_v19, %v313_v29  ;;  %v445_v39 = vrot.slane %v444_v34, 4 }
  0xec   :  { %v436_v32 = vadd.f32 %v435_v25, %v434_v17  ;;  %v330_v33 = vadd.f32 %v329_v31, %v328_v27  ;;  %v451_v41 = vsel %vm299_vm1, %v419_v35, 0.0  ;;  %v343_v42 = vrot.slane %v342_v36, 4 }
  0xed   :  { %v326_v38 = vrot.slane %v325_v30, 1  ;;  %v421_v43 = vmul.f32 %v639_v3, %v639_v3  ;;  %v446_v45 = vadd.f32 %v445_v39, %v444_v34  ;;  %v442_v47 = vrot.slane %v441_v20, 1 }
  0xee   :  { %v487_v40 = vcombine.low %v429_v23, %v436_v32  ;;  %v331_v46 = vrot.slane %v330_v33, 2  ;;  %v658_v48 = vrot.slane %v364_v37, %v622_v24  ;;  %v452_v49 = vrot.slane %v451_v41, 4 }
  0xef   :  { %v327_v44 = vadd.f32 %v326_v38, %v325_v30  ;;  %v465_v50 = vsel %vm299_vm1, %v421_v43, 0.0  ;;  %v447_v52 = vrot.slane %v446_v45, 2  ;;  %v344_v53 = vadd.f32 %v343_v42, %v342_v36 }
  0xf0   :  { %v466_v54 = vrot.slane %v465_v50, 4  ;;  %v332_v55 = vadd.f32 %v331_v46, %v330_v33  ;;  %v453_v56 = vadd.f32 %v452_v49, %v451_v41  ;;  %v564_v57 = vpack.c.bf16 %v641_v4, %v637_v62 }
  0xf1   :  { %v365_v51 = vcombine.low %v320_v28, %v327_v44  ;;  %v335_v58 = vsel %vm299_vm1, %v641_v4, 0.0  ;;  %v448_v60 = vadd.f32 %v447_v52, %v446_v45  ;;  %v443_v1 = vadd.f32 %v442_v47, %v441_v20 }
  0xf2   :  { %v467_v61 = vadd.f32 %v466_v54, %v465_v50  ;;  %v454_v63 = vrot.slane %v453_v56, 2  ;;  %v336_v0 = vrot.slane %v335_v58, 4  ;;  %v345_v6 = vrot.slane %v344_v53, 2 }
  0xf3   :  { %v666_v59 = vrot.slane %v365_v51, %v622_v24  ;;  %v449_v5 = vrot.slane %v448_v60, 1  ;;  %v288_v7 = vrot.slane %v280_v8, %v622_v24  ;;  %v333_v10 = vrot.slane %v332_v55, 1 }
  0xf4   :  { %v337_v62 = vadd.f32 %v336_v0, %v335_v58  ;;  %v420_v11 = vmul.f32 %v641_v4, %v641_v4  ;;  %v468_v13 = vrot.slane %v467_v61, 2  ;;  %v272_v14 = vrot.slane %v564_v57, %v622_v24 }
  0xf5   :  { %v396_v2 = vcombine.low %v658_v48, %v666_v59  ;;  %v450_v12 = vadd.f32 %v449_v5, %v448_v60  ;;  %v565_v15 = vpack.c.bf16 %v645_v9, %v639_v3  ;;  %v497_v16 = vrot.slane %v487_v40, %v622_v24 }
  0xf6   :  { %v455_v17 = vadd.f32 %v454_v63, %v453_v56  ;;  %v338_v18 = vrot.slane %v337_v62, 2  ;;  %v458_v19 = vsel %vm299_vm1, %v420_v11, 0.0  ;;  %v346_v8 = vadd.f32 %v345_v6, %v344_v53 }
  0xf7   :  { %v488_v20 = vcombine.low %v443_v1, %v450_v12  ;;  %v459_v21 = vrot.slane %v458_v19, 4  ;;  %v279_v22 = vrot.slane %v565_v15, %v622_v24  ;;  %v334_v23 = vadd.f32 %v333_v10, %v332_v55 }
  0xf8   :  { %v339_v4 = vadd.f32 %v338_v18, %v337_v62  ;;  %v349_v25 = vsel %vm299_vm1, %v645_v9, 0.0  ;;  %v422_v26 = vmul.f32 %v645_v9, %v645_v9  ;;  %v469_v27 = vadd.f32 %v468_v13, %v467_v61 }
  0xf9   :  { %v504_v3 = vrot.slane %v488_v20, %v622_v24  ;;  %v460_v28 = vadd.f32 %v459_v21, %v458_v19  ;;  %v281_v29 = vcombine.low %v272_v14, %v279_v22  ;;  %v456_v30 = vrot.slane %v455_v17, 1 }
  0xfa   :  { %v340_v31 = vrot.slane %v339_v4, 1  ;;  %v350_v32 = vrot.slane %v349_v25, 4  ;;  %v472_v34 = vsel %vm299_vm1, %v422_v26, 0.0  ;;  %v347_v42 = vrot.slane %v346_v8, 1 }
  0xfb   :  { %v519_v35 = vcombine.low %v497_v16, %v504_v3  ;;  %v461_v36 = vrot.slane %v460_v28, 2  ;;  %v295_v37 = vrot.slane %v281_v29, %v622_v24  ;;  %v473_v38 = vrot.slane %v472_v34, 4 }
  0xfc   :  { %v341_v39 = vadd.f32 %v340_v31, %v339_v4  ;;  %v351_v33 = vadd.f32 %v350_v32, %v349_v25  ;;  %v457_v45 = vadd.f32 %v456_v30, %v455_v17  ;;  %v470_v46 = vrot.slane %v469_v27, 1 }
  0xfd   :  { %v462_v40 = vadd.f32 %v461_v36, %v460_v28  ;;  %v296_v41 = vcombine.low %v288_v7, %v295_v37  ;;  %v474_v9 = vadd.f32 %v473_v38, %v472_v34  ;;  %v348_v53 = vadd.f32 %v347_v42, %v346_v8 }
  0xfe   :  { %v366_v43 = vcombine.low %v334_v23, %v341_v39  ;;  %v352_v44 = vrot.slane %v351_v33, 2  ;;  %v471_v55 = vadd.f32 %v470_v46, %v469_v27  ;;  %v404_v62 = vrot.slane %v396_v2, %v622_v24 }
  0xff   :  { %v463_v47 = vrot.slane %v462_v40, 1  ;;  %298 = vst [vmem:[%s708_s2] sm:$0xff] %v296_v41  ;;  %v475_v49 = vrot.slane %v474_v9, 2  ;;  %v527_v12 = vrot.slane %v519_v35, %v622_v24 }
 0x100   :  { %v353_v50 = vadd.f32 %v352_v44, %v351_v33  ;;  %v388_v61 = vrot.slane %v366_v43, %v622_v24 }
 0x101   :  { %v464_v51 = vadd.f32 %v463_v47, %v462_v40  ;;  %v476_v52 = vadd.f32 %v475_v49, %v474_v9 }
 0x102   :  { %v354_v54 = vrot.slane %v353_v50, 1 }
 0x103   :  { %v489_v56 = vcombine.low %v457_v45, %v464_v51  ;;  %v477_v57 = vrot.slane %v476_v52, 1 }
 0x104   :  { %v355_v58 = vadd.f32 %v354_v54, %v353_v50 }
 0x105   :  { %v478_v60 = vadd.f32 %v477_v57, %v476_v52  ;;  %v511_v0 = vrot.slane %v489_v56, %v622_v24 }
 0x106   :  { %v367_v63 = vcombine.low %v348_v53, %v355_v58 }
 0x107   :  { %v490_v1 = vcombine.low %v471_v55, %v478_v60 }
 0x108   :  { %v395_v5 = vrot.slane %v367_v63, %v622_v24 }
 0x109   :  { %v518_v6 = vrot.slane %v490_v1, %v622_v24 }
 0x10a   :  { %v397_v7 = vcombine.low %v388_v61, %v395_v5 }
 0x10b   :  { %v520_v10 = vcombine.low %v511_v0, %v518_v6 }
 0x10c   :  { %v411_v11 = vrot.slane %v397_v7, %v622_v24 }
 0x10d   :  { %v534_v13 = vrot.slane %v520_v10, %v622_v24 }
 0x10e   :  { %v412_v14 = vcombine.low %v404_v62, %v411_v11 }
 0x10f   :  { %v535_v15 = vcombine.low %v527_v12, %v534_v13 }
 0x110   :  { %414 = vst [vmem:[%s709_s3] sm:$0xff] %v412_v14 }
 0x111   :  { %537 = vst [vmem:[%s710_s4] sm:$0xff] %v535_v15 }

// kernel: tile.0
= control target key start
LH: loop header
LB: loop body
LE: loop exit
PB: predicated region body
PF: predicated region fallthrough
CT: control target
= control target key end

     0   :  { %s2427_s8 = smov 126   ;;  %s2428_s9 = smov 127   ;;  %vm3_vm0 = vcmask 7168   ;;  %s5077_s0 = inlined_call_operand.vmem [shape: f32[9,64], index: 0, kind: input, shape index: {}]   ;;  %s5078_s1 = inlined_call_operand.vmem [shape: f32[576,1], index: 1, kind: output, shape index: {}]  }
   0x1   :  { %v2503_v0 = vld [vmem:[%s5077_s0] sm:$0xff]   ;;  %v1752_v1 = vld [vmem:[%s5077_s0 + $0x8] sm:$0x1]   ;;  %s2429_s16 = smov 125   ;;  %s2430_s19 = smov 124  }
   0x2   :  { %52 = vrot.lane.b32.xlu1 %v2503_v0, %s2427_s8  ;;  %25 = vrot.lane.b32.xlu0 %v2503_v0, %s2428_s9  ;;  %v1742_v2 = vld [vmem:[%s5077_s0 + $0x8] sm:$0x1]   ;;  %s2431_s22 = smov 123   ;;  %s2432_s25 = smov 122   ;;  %v2587_v21 = vld [vmem:[%s5077_s0] sm:$0xff]  }
   0x3   :  { %v1762_v3 = vld [vmem:[%s5077_s0 + $0x8] sm:$0x1]   ;;  %s2433_s28 = smov 121   ;;  %s2434_s2 = smov 120   ;;  %4 = vst.msk [vmem:[%s5078_s1] sm:$0x1] %vm3_vm0, %v2587_v21  }
   0x4   :  { %v1772_v4 = vld [vmem:[%s5077_s0 + $0x8] sm:$0x1]   ;;  %s2435_s5 = smov 119   ;;  %s2437_s11 = smov 117   ;;  %1725 = vst.msk [vmem:[%s5078_s1 + $0x3f] sm:$0x2] %vm3_vm0, %v2587_v21  }
   0x5   :  { %v1782_v5 = vld [vmem:[%s5077_s0 + $0x8] sm:$0x1]   ;;  %s2438_s14 = smov 116   ;;  %s2439_s17 = smov 115   ;;  %1726 = vst.msk [vmem:[%s5078_s1 + $0x7e] sm:$0x4] %vm3_vm0, %v2587_v21  }
   0x6   :  { %73 = vrot.lane.b32.xlu1 %v1752_v1, %s2427_s8  ;;  %46 = vrot.lane.b32.xlu0 %v1742_v2, %s2428_s9  ;;  %v1792_v6 = vld [vmem:[%s5077_s0 + $0x8] sm:$0x1]   ;;  %s2436_s8 = smov 118   ;;  %s2440_s20 = smov 114   ;;  %1727 = vst.msk [vmem:[%s5078_s1 + $0xbd] sm:$0x8] %vm3_vm0, %v2587_v21  }
   0x7   :  { %v1802_v7 = vld [vmem:[%s5077_s0 + $0x8] sm:$0x1]   ;;  %s2441_s23 = smov 113   ;;  %s2442_s26 = smov 112   ;;  %1728 = vst.msk [vmem:[%s5078_s1 + $0xfc] sm:$0x10] %vm3_vm0, %v2587_v21  }
   0x8   :  { %v1812_v8 = vld [vmem:[%s5077_s0 + $0x8] sm:$0x1]   ;;  %s2443_s29 = smov 111   ;;  %s2444_s3 = smov 110   ;;  %1729 = vst.msk [vmem:[%s5078_s1 + $0x13b] sm:$0x20] %vm3_vm0, %v2587_v21  }
   0x9   :  { %v1822_v9 = vld [vmem:[%s5077_s0 + $0x8] sm:$0x1]   ;;  %s2445_s6 = smov 109   ;;  %1730 = vst.msk [vmem:[%s5078_s1 + $0x17a] sm:$0x40] %vm3_vm0, %v2587_v21   ;;  %s2447_s30 = smov 107  }
   0xa   :  { %100 = vrot.lane.b32.xlu1 %v1762_v3, %s2429_s16  ;;  %79 = vrot.lane.b32.xlu0 %v2503_v0, %s2429_s16  ;;  %v1832_v10 = vld [vmem:[%s5077_s0 + $0x8] sm:$0x1]   ;;  %1731 = vst.msk [vmem:[%s5078_s1 + $0x1b9] sm:$0x80] %vm3_vm0, %v2587_v21   ;;  %s2448_s4 = smov 106   ;;  %s2449_s7 = smov 105  }
   0xb   :  { %v1842_v11 = vld [vmem:[%s5077_s0 + $0x8] sm:$0x1]   ;;  %s2450_s10 = smov 104   ;;  %s2451_s13 = smov 103  }
   0xc   :  { %v1852_v12 = vld [vmem:[%s5077_s0 + $0x8] sm:$0x1]   ;;  %s2452_s16 = smov 102   ;;  %s2457_s9 = smov 97  }
   0xd   :  { %v1862_v13 = vld [vmem:[%s5077_s0 + $0x8] sm:$0x1]   ;;  %s2462_s27 = smov 92   ;;  %s2466_s24 = smov 88  }
   0xe   :  { %127 = vrot.lane.b32.xlu1 %v1772_v4, %s2430_s19  ;;  %106 = vrot.lane.b32.xlu0 %v2503_v0, %s2430_s19  ;;  %v1872_v14 = vld [vmem:[%s5077_s0 + $0x8] sm:$0x1]   ;;  %s2453_s19 = smov 101   ;;  %s2470_s21 = smov 84  }
   0xf   :  { %v1882_v15 = vld [vmem:[%s5077_s0 + $0x8] sm:$0x1]   ;;  %s2474_s18 = smov 80   ;;  %s2478_s15 = smov 76  }
  0x10   :  { %v1892_v16 = vld [vmem:[%s5077_s0 + $0x8] sm:$0x1]   ;;  %s2482_s12 = smov 72  }
  0x11   :  { %v1902_v17 = vld [vmem:[%s5077_s0 + $0x8] sm:$0x1]  }
  0x12   :  { %154 = vrot.lane.b32.xlu1 %v1782_v5, %s2431_s22  ;;  %133 = vrot.lane.b32.xlu0 %v2503_v0, %s2431_s22  ;;  %v1912_v18 = vld [vmem:[%s5077_s0 + $0x8] sm:$0x1]   ;;  %s2454_s22 = smov 100  }
  0x13   :  { %v1922_v19 = vld [vmem:[%s5077_s0 + $0x8] sm:$0x1]  }
  0x14   :  { %v1932_v20 = vld [vmem:[%s5077_s0 + $0x8] sm:$0x1]  }
  0x15   :  { %v1942_v22 = vld [vmem:[%s5077_s0 + $0x8] sm:$0x1]  }
  0x16   :  { %181 = vrot.lane.b32.xlu1 %v1792_v6, %s2432_s25  ;;  %160 = vrot.lane.b32.xlu0 %v2503_v0, %s2432_s25  ;;  %v1952_v23 = vld [vmem:[%s5077_s0 + $0x8] sm:$0x1]   ;;  %s2455_s25 = smov 99  }
  0x17   :  { %v1962_v24 = vld [vmem:[%s5077_s0 + $0x8] sm:$0x1]  }
  0x18   :  { %v1972_v25 = vld [vmem:[%s5077_s0 + $0x8] sm:$0x1]  }
  0x19   :  { %v1982_v26 = vld [vmem:[%s5077_s0 + $0x8] sm:$0x1]  }
  0x1a   :  { %208 = vrot.lane.b32.xlu1 %v1802_v7, %s2433_s28  ;;  %187 = vrot.lane.b32.xlu0 %v2503_v0, %s2433_s28  ;;  %v1992_v27 = vld [vmem:[%s5077_s0 + $0x8] sm:$0x1]   ;;  %s2480_s28 = smov 74  }
  0x1b   :  { %v2002_v28 = vld [vmem:[%s5077_s0 + $0x8] sm:$0x1]  }
  0x1c   :  { %v2012_v29 = vld [vmem:[%s5077_s0 + $0x8] sm:$0x1]  }
  0x1d   :  { %v2022_v30 = vld [vmem:[%s5077_s0 + $0x8] sm:$0x1]  }
  0x1e   :  { %235 = vrot.lane.b32.xlu1 %v1812_v8, %s2434_s2  ;;  %214 = vrot.lane.b32.xlu0 %v2503_v0, %s2434_s2  ;;  %v2032_v31 = vld [vmem:[%s5077_s0 + $0x8] sm:$0x1]   ;;  %s2456_s2 = smov 98  }
  0x1f   :  { %v2042_v34 = vld [vmem:[%s5077_s0 + $0x8] sm:$0x1]  }
  0x20   :  { %v2052_v37 = vld [vmem:[%s5077_s0 + $0x8] sm:$0x1]  }
  0x21   :  { %v2062_v40 = vld [vmem:[%s5077_s0 + $0x8] sm:$0x1]  }
  0x22   :  { %262 = vrot.lane.b32.xlu1 %v1822_v9, %s2435_s5  ;;  %241 = vrot.lane.b32.xlu0 %v2503_v0, %s2435_s5  ;;  %v2072_v43 = vld [vmem:[%s5077_s0 + $0x8] sm:$0x1]   ;;  %s2472_s5 = smov 82  }
  0x23   :  { %v2082_v46 = vld [vmem:[%s5077_s0 + $0x8] sm:$0x1]  }
  0x24   :  { %v2092_v49 = vld [vmem:[%s5077_s0 + $0x8] sm:$0x1]  }
  0x25   :  { %v2102_v52 = vld [vmem:[%s5077_s0 + $0x8] sm:$0x1]  }
  0x26   :  { %289 = vrot.lane.b32.xlu1 %v1832_v10, %s2436_s8  ;;  %268 = vrot.lane.b32.xlu0 %v2503_v0, %s2436_s8  ;;  %v2112_v55 = vld [vmem:[%s5077_s0 + $0x8] sm:$0x1]   ;;  %s2468_s8 = smov 86  }
  0x27   :  { %v2122_v58 = vld [vmem:[%s5077_s0 + $0x8] sm:$0x1]  }
  0x28   :  { %v2132_v61 = vld [vmem:[%s5077_s0 + $0x8] sm:$0x1]  }
  0x29   :  { %v2142_v1 = vld [vmem:[%s5077_s0 + $0x8] sm:$0x1]  }
  0x2a   :  { %316 = vrot.lane.b32.xlu1 %v1842_v11, %s2437_s11  ;;  %295 = vrot.lane.b32.xlu0 %v2503_v0, %s2437_s11  ;;  %s2446_s11 = smov 108   ;;  %v2152_v4 = vld [vmem:[%s5077_s0 + $0x8] sm:$0x1]  }
  0x2b   :  { %v2162_v7 = vld [vmem:[%s5077_s0 + $0x8] sm:$0x1]  }
  0x2c   :  { %v2172_v10 = vld [vmem:[%s5077_s0 + $0x8] sm:$0x1]  }
  0x2e   :  { %343 = vrot.lane.b32.xlu1 %v1852_v12, %s2438_s14  ;;  %322 = vrot.lane.b32.xlu0 %v2503_v0, %s2438_s14  ;;  %s2460_s14 = smov 94  }
  0x32   :  { %370 = vrot.lane.b32.xlu1 %v1862_v13, %s2439_s17  ;;  %349 = vrot.lane.b32.xlu0 %v2503_v0, %s2439_s17  ;;  %v2182_v13 = vld [vmem:[%s5077_s0 + $0x8] sm:$0x1]   ;;  %s2485_s17 = smov 69  }
  0x36   :  { %397 = vrot.lane.b32.xlu1 %v1872_v14, %s2440_s20  ;;  %376 = vrot.lane.b32.xlu0 %v2503_v0, %s2440_s20  ;;  %s2481_s20 = smov 73  }
  0x3a   :  { %424 = vrot.lane.b32.xlu1 %v1882_v15, %s2441_s23  ;;  %403 = vrot.lane.b32.xlu0 %v2503_v0, %s2441_s23  ;;  %s2477_s23 = smov 77  }
  0x3e   :  { %451 = vrot.lane.b32.xlu1 %v1892_v16, %s2442_s26  ;;  %430 = vrot.lane.b32.xlu0 %v2503_v0, %s2442_s26  ;;  %v2192_v16 = vld [vmem:[%s5077_s0 + $0x8] sm:$0x1]   ;;  %s2473_s26 = smov 81  }
  0x42   :  { %478 = vrot.lane.b32.xlu1 %v1902_v17, %s2443_s29  ;;  %457 = vrot.lane.b32.xlu0 %v2503_v0, %s2443_s29  ;;  %s2469_s29 = smov 85  }
  0x46   :  { %505 = vrot.lane.b32.xlu1 %v1912_v18, %s2444_s3  ;;  %484 = vrot.lane.b32.xlu0 %v2503_v0, %s2444_s3  ;;  %s2465_s3 = smov 89  }
  0x4a   :  { %532 = vrot.lane.b32.xlu1 %v1922_v19, %s2445_s6  ;;  %511 = vrot.lane.b32.xlu0 %v2503_v0, %s2445_s6  ;;  %s2461_s6 = smov 93   ;;  %v2202_v19 = vld [vmem:[%s5077_s0 + $0x8] sm:$0x1]  }
  0x4e   :  { %559 = vrot.lane.b32.xlu1 %v1932_v20, %s2446_s11  ;;  %538 = vrot.lane.b32.xlu0 %v2503_v0, %s2446_s11  ;;  %s2464_s11 = smov 90  }
  0x52   :  { %586 = vrot.lane.b32.xlu1 %v1942_v22, %s2447_s30  ;;  %565 = vrot.lane.b32.xlu0 %v2503_v0, %s2447_s30  ;;  %s2458_s30 = smov 96  }
  0x56   :  { %613 = vrot.lane.b32.xlu1 %v1952_v23, %s2448_s4  ;;  %592 = vrot.lane.b32.xlu0 %v2503_v0, %s2448_s4  ;;  %v2212_v23 = vld [vmem:[%s5077_s0 + $0x8] sm:$0x1]   ;;  %s2483_s4 = smov 71  }
  0x5a   :  { %640 = vrot.lane.b32.xlu1 %v1962_v24, %s2449_s7  ;;  %619 = vrot.lane.b32.xlu0 %v2503_v0, %s2449_s7  ;;  %s2479_s7 = smov 75  }
  0x5e   :  { %667 = vrot.lane.b32.xlu1 %v1972_v25, %s2450_s10  ;;  %646 = vrot.lane.b32.xlu0 %v2503_v0, %s2450_s10  ;;  %s2475_s10 = smov 79  }
  0x62   :  { %694 = vrot.lane.b32.xlu1 %v1982_v26, %s2451_s13  ;;  %673 = vrot.lane.b32.xlu0 %v2503_v0, %s2451_s13  ;;  %s2471_s13 = smov 83   ;;  %v2222_v26 = vld [vmem:[%s5077_s0 + $0x8] sm:$0x1]  }
  0x66   :  { %721 = vrot.lane.b32.xlu1 %v1992_v27, %s2452_s16  ;;  %700 = vrot.lane.b32.xlu0 %v2503_v0, %s2452_s16  ;;  %s2467_s16 = smov 87  }
  0x6a   :  { %748 = vrot.lane.b32.xlu1 %v2002_v28, %s2453_s19  ;;  %727 = vrot.lane.b32.xlu0 %v2503_v0, %s2453_s19  ;;  %s2463_s19 = smov 91  }
  0x6e   :  { %775 = vrot.lane.b32.xlu1 %v2012_v29, %s2454_s22  ;;  %754 = vrot.lane.b32.xlu0 %v2503_v0, %s2454_s22  ;;  %s2459_s22 = smov 95   ;;  %v2232_v29 = vld [vmem:[%s5077_s0 + $0x8] sm:$0x1]  }
  0x72   :  { %802 = vrot.lane.b32.xlu1 %v2022_v30, %s2455_s25  ;;  %781 = vrot.lane.b32.xlu0 %v2503_v0, %s2455_s25  ;;  %s2484_s25 = smov 70  }
  0x74   :  { %v53_v32 = vpop.permute.xlu1 %52   ;;  %v26_v33 = vpop.permute.xlu0 %25  }
  0x75   :  { %1744 = vst.msk [vmem:[%s5078_s1 + $0x2] sm:$0x1] %vm3_vm0, %v53_v32   ;;  %1745 = vst.msk [vmem:[%s5078_s1 + $0x41] sm:$0x2] %vm3_vm0, %v53_v32  }
  0x76   :  { %1746 = vst.msk [vmem:[%s5078_s1 + $0x80] sm:$0x4] %vm3_vm0, %v53_v32   ;;  %1747 = vst.msk [vmem:[%s5078_s1 + $0xbf] sm:$0x8] %vm3_vm0, %v53_v32   ;;  %829 = vrot.lane.b32.xlu1 %v2032_v31, %s2456_s2  ;;  %808 = vrot.lane.b32.xlu0 %v2503_v0, %s2456_s2  ;;  %s2476_s2 = smov 78  }
  0x77   :  { %1748 = vst.msk [vmem:[%s5078_s1 + $0xfe] sm:$0x10] %vm3_vm0, %v53_v32   ;;  %1749 = vst.msk [vmem:[%s5078_s1 + $0x13d] sm:$0x20] %vm3_vm0, %v53_v32  }
  0x78   :  { %1750 = vst.msk [vmem:[%s5078_s1 + $0x17c] sm:$0x40] %vm3_vm0, %v53_v32   ;;  %1751 = vst.msk [vmem:[%s5078_s1 + $0x1bb] sm:$0x80] %vm3_vm0, %v53_v32   ;;  %v74_v35 = vpop.permute.xlu1 %73   ;;  %v47_v36 = vpop.permute.xlu0 %46   ;;  %v2242_v32 = vld [vmem:[%s5077_s0 + $0x8] sm:$0x1]  }
  0x79   :  { %1734 = vst.msk [vmem:[%s5078_s1 + $0x1] sm:$0x1] %vm3_vm0, %v26_v33   ;;  %1735 = vst.msk [vmem:[%s5078_s1 + $0x40] sm:$0x2] %vm3_vm0, %v26_v33  }
  0x7a   :  { %1736 = vst.msk [vmem:[%s5078_s1 + $0x7f] sm:$0x4] %vm3_vm0, %v26_v33   ;;  %1737 = vst.msk [vmem:[%s5078_s1 + $0xbe] sm:$0x8] %vm3_vm0, %v26_v33   ;;  %856 = vrot.lane.b32.xlu1 %v2042_v34, %s2457_s9  ;;  %835 = vrot.lane.b32.xlu0 %v2503_v0, %s2457_s9 }
  0x7b   :  { %1738 = vst.msk [vmem:[%s5078_s1 + $0xfd] sm:$0x10] %vm3_vm0, %v26_v33   ;;  %1739 = vst.msk [vmem:[%s5078_s1 + $0x13c] sm:$0x20] %vm3_vm0, %v26_v33  }
  0x7c   :  { %1740 = vst.msk [vmem:[%s5078_s1 + $0x17b] sm:$0x40] %vm3_vm0, %v26_v33   ;;  %1741 = vst.msk [vmem:[%s5078_s1 + $0x1ba] sm:$0x80] %vm3_vm0, %v26_v33   ;;  %v101_v38 = vpop.permute.xlu1 %100   ;;  %v80_v39 = vpop.permute.xlu0 %79  }
  0x7d   :  { %1753 = vst.msk [vmem:[%s5078_s1 + $0x202] sm:$0x1] %vm3_vm0, %v74_v35   ;;  %1743 = vst.msk [vmem:[%s5078_s1 + $0x201] sm:$0x1] %vm3_vm0, %v47_v36  }
  0x7e   :  { %1763 = vst.msk [vmem:[%s5078_s1 + $0x203] sm:$0x1] %vm3_vm0, %v101_v38   ;;  %1754 = vst.msk [vmem:[%s5078_s1 + $0x3] sm:$0x1] %vm3_vm0, %v80_v39   ;;  %883 = vrot.lane.b32.xlu1 %v2052_v37, %s2458_s30  ;;  %862 = vrot.lane.b32.xlu0 %v2503_v0, %s2458_s30 }
  0x7f   :  { %1755 = vst.msk [vmem:[%s5078_s1 + $0x42] sm:$0x2] %vm3_vm0, %v80_v39   ;;  %1756 = vst.msk [vmem:[%s5078_s1 + $0x81] sm:$0x4] %vm3_vm0, %v80_v39   ;;  %v2262_v37 = vld [vmem:[%s5077_s0 + $0x8] sm:$0x1]  }
  0x80   :  { %1757 = vst.msk [vmem:[%s5078_s1 + $0xc0] sm:$0x8] %vm3_vm0, %v80_v39   ;;  %1758 = vst.msk [vmem:[%s5078_s1 + $0xff] sm:$0x10] %vm3_vm0, %v80_v39   ;;  %v128_v41 = vpop.permute.xlu1 %127   ;;  %v107_v42 = vpop.permute.xlu0 %106  }
  0x81   :  { %1759 = vst.msk [vmem:[%s5078_s1 + $0x13e] sm:$0x20] %vm3_vm0, %v80_v39   ;;  %1760 = vst.msk [vmem:[%s5078_s1 + $0x17d] sm:$0x40] %vm3_vm0, %v80_v39  }
  0x82   :  { %1761 = vst.msk [vmem:[%s5078_s1 + $0x1bc] sm:$0x80] %vm3_vm0, %v80_v39   ;;  %1773 = vst.msk [vmem:[%s5078_s1 + $0x204] sm:$0x1] %vm3_vm0, %v128_v41   ;;  %910 = vrot.lane.b32.xlu1 %v2062_v40, %s2459_s22  ;;  %889 = vrot.lane.b32.xlu0 %v2503_v0, %s2459_s22 }
  0x83   :  { %1764 = vst.msk [vmem:[%s5078_s1 + $0x4] sm:$0x1] %vm3_vm0, %v107_v42   ;;  %1765 = vst.msk [vmem:[%s5078_s1 + $0x43] sm:$0x2] %vm3_vm0, %v107_v42   ;;  %v2272_v40 = vld [vmem:[%s5077_s0 + $0x8] sm:$0x1]  }
  0x84   :  { %1766 = vst.msk [vmem:[%s5078_s1 + $0x82] sm:$0x4] %vm3_vm0, %v107_v42   ;;  %1767 = vst.msk [vmem:[%s5078_s1 + $0xc1] sm:$0x8] %vm3_vm0, %v107_v42   ;;  %v155_v44 = vpop.permute.xlu1 %154   ;;  %v134_v45 = vpop.permute.xlu0 %133  }
  0x85   :  { %1768 = vst.msk [vmem:[%s5078_s1 + $0x100] sm:$0x10] %vm3_vm0, %v107_v42   ;;  %1769 = vst.msk [vmem:[%s5078_s1 + $0x13f] sm:$0x20] %vm3_vm0, %v107_v42  }
  0x86   :  { %1770 = vst.msk [vmem:[%s5078_s1 + $0x17e] sm:$0x40] %vm3_vm0, %v107_v42   ;;  %1771 = vst.msk [vmem:[%s5078_s1 + $0x1bd] sm:$0x80] %vm3_vm0, %v107_v42   ;;  %937 = vrot.lane.b32.xlu1 %v2072_v43, %s2460_s14  ;;  %916 = vrot.lane.b32.xlu0 %v2503_v0, %s2460_s14 }
  0x87   :  { %1783 = vst.msk [vmem:[%s5078_s1 + $0x205] sm:$0x1] %vm3_vm0, %v155_v44   ;;  %1774 = vst.msk [vmem:[%s5078_s1 + $0x5] sm:$0x1] %vm3_vm0, %v134_v45   ;;  %v2282_v43 = vld [vmem:[%s5077_s0 + $0x8] sm:$0x1]  }
  0x88   :  { %1775 = vst.msk [vmem:[%s5078_s1 + $0x44] sm:$0x2] %vm3_vm0, %v134_v45   ;;  %1776 = vst.msk [vmem:[%s5078_s1 + $0x83] sm:$0x4] %vm3_vm0, %v134_v45   ;;  %v182_v47 = vpop.permute.xlu1 %181   ;;  %v161_v48 = vpop.permute.xlu0 %160  }
  0x89   :  { %1777 = vst.msk [vmem:[%s5078_s1 + $0xc2] sm:$0x8] %vm3_vm0, %v134_v45   ;;  %1778 = vst.msk [vmem:[%s5078_s1 + $0x101] sm:$0x10] %vm3_vm0, %v134_v45  }
  0x8a   :  { %1779 = vst.msk [vmem:[%s5078_s1 + $0x140] sm:$0x20] %vm3_vm0, %v134_v45   ;;  %1780 = vst.msk [vmem:[%s5078_s1 + $0x17f] sm:$0x40] %vm3_vm0, %v134_v45   ;;  %964 = vrot.lane.b32.xlu1 %v2082_v46, %s2461_s6  ;;  %943 = vrot.lane.b32.xlu0 %v2503_v0, %s2461_s6 }
  0x8b   :  { %1781 = vst.msk [vmem:[%s5078_s1 + $0x1be] sm:$0x80] %vm3_vm0, %v134_v45   ;;  %1793 = vst.msk [vmem:[%s5078_s1 + $0x206] sm:$0x1] %vm3_vm0, %v182_v47   ;;  %v2292_v46 = vld [vmem:[%s5077_s0 + $0x8] sm:$0x1]  }
  0x8c   :  { %1784 = vst.msk [vmem:[%s5078_s1 + $0x6] sm:$0x1] %vm3_vm0, %v161_v48   ;;  %1785 = vst.msk [vmem:[%s5078_s1 + $0x45] sm:$0x2] %vm3_vm0, %v161_v48   ;;  %v209_v50 = vpop.permute.xlu1 %208   ;;  %v188_v51 = vpop.permute.xlu0 %187  }
  0x8d   :  { %1786 = vst.msk [vmem:[%s5078_s1 + $0x84] sm:$0x4] %vm3_vm0, %v161_v48   ;;  %1787 = vst.msk [vmem:[%s5078_s1 + $0xc3] sm:$0x8] %vm3_vm0, %v161_v48  }
  0x8e   :  { %1788 = vst.msk [vmem:[%s5078_s1 + $0x102] sm:$0x10] %vm3_vm0, %v161_v48   ;;  %1789 = vst.msk [vmem:[%s5078_s1 + $0x141] sm:$0x20] %vm3_vm0, %v161_v48   ;;  %991 = vrot.lane.b32.xlu1 %v2092_v49, %s2462_s27  ;;  %970 = vrot.lane.b32.xlu0 %v2503_v0, %s2462_s27 }
  0x8f   :  { %1790 = vst.msk [vmem:[%s5078_s1 + $0x180] sm:$0x40] %vm3_vm0, %v161_v48   ;;  %1791 = vst.msk [vmem:[%s5078_s1 + $0x1bf] sm:$0x80] %vm3_vm0, %v161_v48   ;;  %v2302_v49 = vld [vmem:[%s5077_s0 + $0x8] sm:$0x1]  }
  0x90   :  { %1803 = vst.msk [vmem:[%s5078_s1 + $0x207] sm:$0x1] %vm3_vm0, %v209_v50   ;;  %1794 = vst.msk [vmem:[%s5078_s1 + $0x7] sm:$0x1] %vm3_vm0, %v188_v51   ;;  %v236_v53 = vpop.permute.xlu1 %235   ;;  %v215_v54 = vpop.permute.xlu0 %214  }
  0x91   :  { %1795 = vst.msk [vmem:[%s5078_s1 + $0x46] sm:$0x2] %vm3_vm0, %v188_v51   ;;  %1796 = vst.msk [vmem:[%s5078_s1 + $0x85] sm:$0x4] %vm3_vm0, %v188_v51  }
  0x92   :  { %1797 = vst.msk [vmem:[%s5078_s1 + $0xc4] sm:$0x8] %vm3_vm0, %v188_v51   ;;  %1798 = vst.msk [vmem:[%s5078_s1 + $0x103] sm:$0x10] %vm3_vm0, %v188_v51   ;;  %1018 = vrot.lane.b32.xlu1 %v2102_v52, %s2463_s19  ;;  %997 = vrot.lane.b32.xlu0 %v2503_v0, %s2463_s19 }
  0x93   :  { %1799 = vst.msk [vmem:[%s5078_s1 + $0x142] sm:$0x20] %vm3_vm0, %v188_v51   ;;  %1800 = vst.msk [vmem:[%s5078_s1 + $0x181] sm:$0x40] %vm3_vm0, %v188_v51   ;;  %v2312_v52 = vld [vmem:[%s5077_s0 + $0x8] sm:$0x1]  }
  0x94   :  { %1801 = vst.msk [vmem:[%s5078_s1 + $0x1c0] sm:$0x80] %vm3_vm0, %v188_v51   ;;  %1813 = vst.msk [vmem:[%s5078_s1 + $0x208] sm:$0x1] %vm3_vm0, %v236_v53   ;;  %v263_v56 = vpop.permute.xlu1 %262   ;;  %v242_v57 = vpop.permute.xlu0 %241  }
  0x95   :  { %1804 = vst.msk [vmem:[%s5078_s1 + $0x8] sm:$0x1] %vm3_vm0, %v215_v54   ;;  %1805 = vst.msk [vmem:[%s5078_s1 + $0x47] sm:$0x2] %vm3_vm0, %v215_v54  }
  0x96   :  { %1806 = vst.msk [vmem:[%s5078_s1 + $0x86] sm:$0x4] %vm3_vm0, %v215_v54   ;;  %1807 = vst.msk [vmem:[%s5078_s1 + $0xc5] sm:$0x8] %vm3_vm0, %v215_v54   ;;  %1045 = vrot.lane.b32.xlu1 %v2112_v55, %s2464_s11  ;;  %1024 = vrot.lane.b32.xlu0 %v2503_v0, %s2464_s11 }
  0x97   :  { %1808 = vst.msk [vmem:[%s5078_s1 + $0x104] sm:$0x10] %vm3_vm0, %v215_v54   ;;  %1809 = vst.msk [vmem:[%s5078_s1 + $0x143] sm:$0x20] %vm3_vm0, %v215_v54   ;;  %v2322_v55 = vld [vmem:[%s5077_s0 + $0x8] sm:$0x1]  }
  0x98   :  { %1810 = vst.msk [vmem:[%s5078_s1 + $0x182] sm:$0x40] %vm3_vm0, %v215_v54   ;;  %1811 = vst.msk [vmem:[%s5078_s1 + $0x1c1] sm:$0x80] %vm3_vm0, %v215_v54   ;;  %v290_v59 = vpop.permute.xlu1 %289   ;;  %v269_v60 = vpop.permute.xlu0 %268  }
  0x99   :  { %1823 = vst.msk [vmem:[%s5078_s1 + $0x209] sm:$0x1] %vm3_vm0, %v263_v56   ;;  %1814 = vst.msk [vmem:[%s5078_s1 + $0x9] sm:$0x1] %vm3_vm0, %v242_v57  }
  0x9a   :  { %1815 = vst.msk [vmem:[%s5078_s1 + $0x48] sm:$0x2] %vm3_vm0, %v242_v57   ;;  %1816 = vst.msk [vmem:[%s5078_s1 + $0x87] sm:$0x4] %vm3_vm0, %v242_v57   ;;  %1072 = vrot.lane.b32.xlu1 %v2122_v58, %s2465_s3  ;;  %1051 = vrot.lane.b32.xlu0 %v2503_v0, %s2465_s3 }
  0x9b   :  { %1817 = vst.msk [vmem:[%s5078_s1 + $0xc6] sm:$0x8] %vm3_vm0, %v242_v57   ;;  %1818 = vst.msk [vmem:[%s5078_s1 + $0x105] sm:$0x10] %vm3_vm0, %v242_v57   ;;  %v2332_v58 = vld [vmem:[%s5077_s0 + $0x8] sm:$0x1]  }
  0x9c   :  { %1819 = vst.msk [vmem:[%s5078_s1 + $0x144] sm:$0x20] %vm3_vm0, %v242_v57   ;;  %1820 = vst.msk [vmem:[%s5078_s1 + $0x183] sm:$0x40] %vm3_vm0, %v242_v57   ;;  %v317_v62 = vpop.permute.xlu1 %316   ;;  %v296_v63 = vpop.permute.xlu0 %295  }
  0x9d   :  { %1821 = vst.msk [vmem:[%s5078_s1 + $0x1c2] sm:$0x80] %vm3_vm0, %v242_v57   ;;  %1833 = vst.msk [vmem:[%s5078_s1 + $0x20a] sm:$0x1] %vm3_vm0, %v290_v59  }
  0x9e   :  { %1824 = vst.msk [vmem:[%s5078_s1 + $0xa] sm:$0x1] %vm3_vm0, %v269_v60   ;;  %1825 = vst.msk [vmem:[%s5078_s1 + $0x49] sm:$0x2] %vm3_vm0, %v269_v60   ;;  %1099 = vrot.lane.b32.xlu1 %v2132_v61, %s2466_s24  ;;  %1078 = vrot.lane.b32.xlu0 %v2503_v0, %s2466_s24 }
  0x9f   :  { %1826 = vst.msk [vmem:[%s5078_s1 + $0x88] sm:$0x4] %vm3_vm0, %v269_v60   ;;  %1827 = vst.msk [vmem:[%s5078_s1 + $0xc7] sm:$0x8] %vm3_vm0, %v269_v60   ;;  %v1732_v61 = vld [vmem:[%s5077_s0 + $0x8] sm:$0x1]  }
  0xa0   :  { %1828 = vst.msk [vmem:[%s5078_s1 + $0x106] sm:$0x10] %vm3_vm0, %v269_v60   ;;  %1829 = vst.msk [vmem:[%s5078_s1 + $0x145] sm:$0x20] %vm3_vm0, %v269_v60   ;;  %v344_v2 = vpop.permute.xlu1 %343   ;;  %v323_v3 = vpop.permute.xlu0 %322  }
  0xa1   :  { %1830 = vst.msk [vmem:[%s5078_s1 + $0x184] sm:$0x40] %vm3_vm0, %v269_v60   ;;  %1831 = vst.msk [vmem:[%s5078_s1 + $0x1c3] sm:$0x80] %vm3_vm0, %v269_v60  }
  0xa2   :  { %1843 = vst.msk [vmem:[%s5078_s1 + $0x20b] sm:$0x1] %vm3_vm0, %v317_v62   ;;  %1834 = vst.msk [vmem:[%s5078_s1 + $0xb] sm:$0x1] %vm3_vm0, %v296_v63   ;;  %1126 = vrot.lane.b32.xlu1 %v2142_v1, %s2467_s16  ;;  %1105 = vrot.lane.b32.xlu0 %v2503_v0, %s2467_s16 }
  0xa3   :  { %1835 = vst.msk [vmem:[%s5078_s1 + $0x4a] sm:$0x2] %vm3_vm0, %v296_v63   ;;  %1836 = vst.msk [vmem:[%s5078_s1 + $0x89] sm:$0x4] %vm3_vm0, %v296_v63   ;;  %v2342_v62 = vld [vmem:[%s5077_s0 + $0x8] sm:$0x1]  }
  0xa4   :  { %1837 = vst.msk [vmem:[%s5078_s1 + $0xc8] sm:$0x8] %vm3_vm0, %v296_v63   ;;  %1838 = vst.msk [vmem:[%s5078_s1 + $0x107] sm:$0x10] %vm3_vm0, %v296_v63   ;;  %v371_v5 = vpop.permute.xlu1 %370   ;;  %v350_v6 = vpop.permute.xlu0 %349  }
  0xa5   :  { %1839 = vst.msk [vmem:[%s5078_s1 + $0x146] sm:$0x20] %vm3_vm0, %v296_v63   ;;  %1840 = vst.msk [vmem:[%s5078_s1 + $0x185] sm:$0x40] %vm3_vm0, %v296_v63  }
  0xa6   :  { %1841 = vst.msk [vmem:[%s5078_s1 + $0x1c4] sm:$0x80] %vm3_vm0, %v296_v63   ;;  %1853 = vst.msk [vmem:[%s5078_s1 + $0x20c] sm:$0x1] %vm3_vm0, %v344_v2   ;;  %1153 = vrot.lane.b32.xlu1 %v2152_v4, %s2468_s8  ;;  %1132 = vrot.lane.b32.xlu0 %v2503_v0, %s2468_s8 }
  0xa7   :  { %1844 = vst.msk [vmem:[%s5078_s1 + $0xc] sm:$0x1] %vm3_vm0, %v323_v3   ;;  %1845 = vst.msk [vmem:[%s5078_s1 + $0x4b] sm:$0x2] %vm3_vm0, %v323_v3   ;;  %v2352_v2 = vld [vmem:[%s5077_s0 + $0x8] sm:$0x1]  }
  0xa8   :  { %1846 = vst.msk [vmem:[%s5078_s1 + $0x8a] sm:$0x4] %vm3_vm0, %v323_v3   ;;  %1847 = vst.msk [vmem:[%s5078_s1 + $0xc9] sm:$0x8] %vm3_vm0, %v323_v3   ;;  %v398_v8 = vpop.permute.xlu1 %397   ;;  %v377_v9 = vpop.permute.xlu0 %376  }
  0xa9   :  { %1848 = vst.msk [vmem:[%s5078_s1 + $0x108] sm:$0x10] %vm3_vm0, %v323_v3   ;;  %1849 = vst.msk [vmem:[%s5078_s1 + $0x147] sm:$0x20] %vm3_vm0, %v323_v3  }
  0xaa   :  { %1850 = vst.msk [vmem:[%s5078_s1 + $0x186] sm:$0x40] %vm3_vm0, %v323_v3   ;;  %1851 = vst.msk [vmem:[%s5078_s1 + $0x1c5] sm:$0x80] %vm3_vm0, %v323_v3   ;;  %1180 = vrot.lane.b32.xlu1 %v2162_v7, %s2469_s29  ;;  %1159 = vrot.lane.b32.xlu0 %v2503_v0, %s2469_s29 }
  0xab   :  { %1863 = vst.msk [vmem:[%s5078_s1 + $0x20d] sm:$0x1] %vm3_vm0, %v371_v5   ;;  %1854 = vst.msk [vmem:[%s5078_s1 + $0xd] sm:$0x1] %vm3_vm0, %v350_v6   ;;  %v2362_v5 = vld [vmem:[%s5077_s0 + $0x8] sm:$0x1]  }
  0xac   :  { %1855 = vst.msk [vmem:[%s5078_s1 + $0x4c] sm:$0x2] %vm3_vm0, %v350_v6   ;;  %1856 = vst.msk [vmem:[%s5078_s1 + $0x8b] sm:$0x4] %vm3_vm0, %v350_v6   ;;  %v425_v11 = vpop.permute.xlu1 %424   ;;  %v404_v12 = vpop.permute.xlu0 %403  }
  0xad   :  { %1857 = vst.msk [vmem:[%s5078_s1 + $0xca] sm:$0x8] %vm3_vm0, %v350_v6   ;;  %1858 = vst.msk [vmem:[%s5078_s1 + $0x109] sm:$0x10] %vm3_vm0, %v350_v6  }
  0xae   :  { %1859 = vst.msk [vmem:[%s5078_s1 + $0x148] sm:$0x20] %vm3_vm0, %v350_v6   ;;  %1860 = vst.msk [vmem:[%s5078_s1 + $0x187] sm:$0x40] %vm3_vm0, %v350_v6   ;;  %1207 = vrot.lane.b32.xlu1 %v2172_v10, %s2470_s21  ;;  %1186 = vrot.lane.b32.xlu0 %v2503_v0, %s2470_s21 }
  0xaf   :  { %1861 = vst.msk [vmem:[%s5078_s1 + $0x1c6] sm:$0x80] %vm3_vm0, %v350_v6   ;;  %1873 = vst.msk [vmem:[%s5078_s1 + $0x20e] sm:$0x1] %vm3_vm0, %v398_v8  }
  0xb0   :  { %1864 = vst.msk [vmem:[%s5078_s1 + $0xe] sm:$0x1] %vm3_vm0, %v377_v9   ;;  %1865 = vst.msk [vmem:[%s5078_s1 + $0x4d] sm:$0x2] %vm3_vm0, %v377_v9   ;;  %v452_v14 = vpop.permute.xlu1 %451   ;;  %v431_v15 = vpop.permute.xlu0 %430  }
  0xb1   :  { %1866 = vst.msk [vmem:[%s5078_s1 + $0x8c] sm:$0x4] %vm3_vm0, %v377_v9   ;;  %1867 = vst.msk [vmem:[%s5078_s1 + $0xcb] sm:$0x8] %vm3_vm0, %v377_v9  }
  0xb2   :  { %1868 = vst.msk [vmem:[%s5078_s1 + $0x10a] sm:$0x10] %vm3_vm0, %v377_v9   ;;  %1869 = vst.msk [vmem:[%s5078_s1 + $0x149] sm:$0x20] %vm3_vm0, %v377_v9   ;;  %1234 = vrot.lane.b32.xlu1 %v2182_v13, %s2471_s13  ;;  %1213 = vrot.lane.b32.xlu0 %v2503_v0, %s2471_s13  ;;  %s2486_s13 = smov 68  }
  0xb3   :  { %1870 = vst.msk [vmem:[%s5078_s1 + $0x188] sm:$0x40] %vm3_vm0, %v377_v9   ;;  %1871 = vst.msk [vmem:[%s5078_s1 + $0x1c7] sm:$0x80] %vm3_vm0, %v377_v9  }
  0xb4   :  { %1883 = vst.msk [vmem:[%s5078_s1 + $0x20f] sm:$0x1] %vm3_vm0, %v425_v11   ;;  %1874 = vst.msk [vmem:[%s5078_s1 + $0xf] sm:$0x1] %vm3_vm0, %v404_v12   ;;  %v479_v17 = vpop.permute.xlu1 %478   ;;  %v458_v18 = vpop.permute.xlu0 %457  }
  0xb5   :  { %1875 = vst.msk [vmem:[%s5078_s1 + $0x4e] sm:$0x2] %vm3_vm0, %v404_v12   ;;  %1876 = vst.msk [vmem:[%s5078_s1 + $0x8d] sm:$0x4] %vm3_vm0, %v404_v12  }
  0xb6   :  { %1877 = vst.msk [vmem:[%s5078_s1 + $0xcc] sm:$0x8] %vm3_vm0, %v404_v12   ;;  %1878 = vst.msk [vmem:[%s5078_s1 + $0x10b] sm:$0x10] %vm3_vm0, %v404_v12   ;;  %1261 = vrot.lane.b32.xlu1 %v2192_v16, %s2472_s5  ;;  %1240 = vrot.lane.b32.xlu0 %v2503_v0, %s2472_s5  ;;  %s2487_s5 = smov 67  }
  0xb7   :  { %1879 = vst.msk [vmem:[%s5078_s1 + $0x14a] sm:$0x20] %vm3_vm0, %v404_v12   ;;  %1880 = vst.msk [vmem:[%s5078_s1 + $0x189] sm:$0x40] %vm3_vm0, %v404_v12  }
  0xb8   :  { %1881 = vst.msk [vmem:[%s5078_s1 + $0x1c8] sm:$0x80] %vm3_vm0, %v404_v12   ;;  %1893 = vst.msk [vmem:[%s5078_s1 + $0x210] sm:$0x1] %vm3_vm0, %v452_v14   ;;  %v506_v20 = vpop.permute.xlu1 %505   ;;  %v485_v22 = vpop.permute.xlu0 %484  }
  0xb9   :  { %1884 = vst.msk [vmem:[%s5078_s1 + $0x10] sm:$0x1] %vm3_vm0, %v431_v15   ;;  %1885 = vst.msk [vmem:[%s5078_s1 + $0x4f] sm:$0x2] %vm3_vm0, %v431_v15  }
  0xba   :  { %1886 = vst.msk [vmem:[%s5078_s1 + $0x8e] sm:$0x4] %vm3_vm0, %v431_v15   ;;  %1887 = vst.msk [vmem:[%s5078_s1 + $0xcd] sm:$0x8] %vm3_vm0, %v431_v15   ;;  %1288 = vrot.lane.b32.xlu1 %v2202_v19, %s2473_s26  ;;  %1267 = vrot.lane.b32.xlu0 %v2503_v0, %s2473_s26  ;;  %s2488_s26 = smov 66  }
  0xbb   :  { %1888 = vst.msk [vmem:[%s5078_s1 + $0x10c] sm:$0x10] %vm3_vm0, %v431_v15   ;;  %1889 = vst.msk [vmem:[%s5078_s1 + $0x14b] sm:$0x20] %vm3_vm0, %v431_v15  }
  0xbc   :  { %1890 = vst.msk [vmem:[%s5078_s1 + $0x18a] sm:$0x40] %vm3_vm0, %v431_v15   ;;  %1891 = vst.msk [vmem:[%s5078_s1 + $0x1c9] sm:$0x80] %vm3_vm0, %v431_v15   ;;  %v533_v24 = vpop.permute.xlu1 %532   ;;  %v512_v25 = vpop.permute.xlu0 %511  }
  0xbd   :  { %1903 = vst.msk [vmem:[%s5078_s1 + $0x211] sm:$0x1] %vm3_vm0, %v479_v17   ;;  %1894 = vst.msk [vmem:[%s5078_s1 + $0x11] sm:$0x1] %vm3_vm0, %v458_v18  }
  0xbe   :  { %1895 = vst.msk [vmem:[%s5078_s1 + $0x50] sm:$0x2] %vm3_vm0, %v458_v18   ;;  %1896 = vst.msk [vmem:[%s5078_s1 + $0x8f] sm:$0x4] %vm3_vm0, %v458_v18   ;;  %1315 = vrot.lane.b32.xlu1 %v2212_v23, %s2474_s18  ;;  %1294 = vrot.lane.b32.xlu0 %v2503_v0, %s2474_s18 }
  0xbf   :  { %1897 = vst.msk [vmem:[%s5078_s1 + $0xce] sm:$0x8] %vm3_vm0, %v458_v18   ;;  %1898 = vst.msk [vmem:[%s5078_s1 + $0x10d] sm:$0x10] %vm3_vm0, %v458_v18  }
  0xc0   :  { %1899 = vst.msk [vmem:[%s5078_s1 + $0x14c] sm:$0x20] %vm3_vm0, %v458_v18   ;;  %1900 = vst.msk [vmem:[%s5078_s1 + $0x18b] sm:$0x40] %vm3_vm0, %v458_v18   ;;  %v560_v27 = vpop.permute.xlu1 %559   ;;  %v539_v28 = vpop.permute.xlu0 %538  }
  0xc1   :  { %1901 = vst.msk [vmem:[%s5078_s1 + $0x1ca] sm:$0x80] %vm3_vm0, %v458_v18   ;;  %1913 = vst.msk [vmem:[%s5078_s1 + $0x212] sm:$0x1] %vm3_vm0, %v506_v20  }
  0xc2   :  { %1904 = vst.msk [vmem:[%s5078_s1 + $0x12] sm:$0x1] %vm3_vm0, %v485_v22   ;;  %1905 = vst.msk [vmem:[%s5078_s1 + $0x51] sm:$0x2] %vm3_vm0, %v485_v22   ;;  %1342 = vrot.lane.b32.xlu1 %v2222_v26, %s2475_s10  ;;  %1321 = vrot.lane.b32.xlu0 %v2503_v0, %s2475_s10 }
  0xc3   :  { %1906 = vst.msk [vmem:[%s5078_s1 + $0x90] sm:$0x4] %vm3_vm0, %v485_v22   ;;  %1907 = vst.msk [vmem:[%s5078_s1 + $0xcf] sm:$0x8] %vm3_vm0, %v485_v22  }
  0xc4   :  { %1908 = vst.msk [vmem:[%s5078_s1 + $0x10e] sm:$0x10] %vm3_vm0, %v485_v22   ;;  %1909 = vst.msk [vmem:[%s5078_s1 + $0x14d] sm:$0x20] %vm3_vm0, %v485_v22   ;;  %v587_v30 = vpop.permute.xlu1 %586   ;;  %v566_v31 = vpop.permute.xlu0 %565  }
  0xc5   :  { %1910 = vst.msk [vmem:[%s5078_s1 + $0x18c] sm:$0x40] %vm3_vm0, %v485_v22   ;;  %1911 = vst.msk [vmem:[%s5078_s1 + $0x1cb] sm:$0x80] %vm3_vm0, %v485_v22  }
  0xc6   :  { %1923 = vst.msk [vmem:[%s5078_s1 + $0x213] sm:$0x1] %vm3_vm0, %v533_v24   ;;  %1914 = vst.msk [vmem:[%s5078_s1 + $0x13] sm:$0x1] %vm3_vm0, %v512_v25   ;;  %1369 = vrot.lane.b32.xlu1 %v2232_v29, %s2476_s2  ;;  %1348 = vrot.lane.b32.xlu0 %v2503_v0, %s2476_s2 }
  0xc7   :  { %1915 = vst.msk [vmem:[%s5078_s1 + $0x52] sm:$0x2] %vm3_vm0, %v512_v25   ;;  %1916 = vst.msk [vmem:[%s5078_s1 + $0x91] sm:$0x4] %vm3_vm0, %v512_v25  }
  0xc8   :  { %1917 = vst.msk [vmem:[%s5078_s1 + $0xd0] sm:$0x8] %vm3_vm0, %v512_v25   ;;  %1918 = vst.msk [vmem:[%s5078_s1 + $0x10f] sm:$0x10] %vm3_vm0, %v512_v25   ;;  %v614_v33 = vpop.permute.xlu1 %613   ;;  %v593_v34 = vpop.permute.xlu0 %592  }
  0xc9   :  { %1919 = vst.msk [vmem:[%s5078_s1 + $0x14e] sm:$0x20] %vm3_vm0, %v512_v25   ;;  %1920 = vst.msk [vmem:[%s5078_s1 + $0x18d] sm:$0x40] %vm3_vm0, %v512_v25  }
  0xca   :  { %1921 = vst.msk [vmem:[%s5078_s1 + $0x1cc] sm:$0x80] %vm3_vm0, %v512_v25   ;;  %1933 = vst.msk [vmem:[%s5078_s1 + $0x214] sm:$0x1] %vm3_vm0, %v560_v27   ;;  %1396 = vrot.lane.b32.xlu1 %v2242_v32, %s2477_s23  ;;  %1375 = vrot.lane.b32.xlu0 %v2503_v0, %s2477_s23 }
  0xcb   :  { %1924 = vst.msk [vmem:[%s5078_s1 + $0x14] sm:$0x1] %vm3_vm0, %v539_v28   ;;  %1925 = vst.msk [vmem:[%s5078_s1 + $0x53] sm:$0x2] %vm3_vm0, %v539_v28   ;;  %v2252_v0 = vld [vmem:[%s5077_s0 + $0x8] sm:$0x1]  }
  0xcc   :  { %1926 = vst.msk [vmem:[%s5078_s1 + $0x92] sm:$0x4] %vm3_vm0, %v539_v28   ;;  %1927 = vst.msk [vmem:[%s5078_s1 + $0xd1] sm:$0x8] %vm3_vm0, %v539_v28   ;;  %v641_v35 = vpop.permute.xlu1 %640   ;;  %v620_v36 = vpop.permute.xlu0 %619  }
  0xcd   :  { %1928 = vst.msk [vmem:[%s5078_s1 + $0x110] sm:$0x10] %vm3_vm0, %v539_v28   ;;  %1929 = vst.msk [vmem:[%s5078_s1 + $0x14f] sm:$0x20] %vm3_vm0, %v539_v28  }
  0xce   :  { %1930 = vst.msk [vmem:[%s5078_s1 + $0x18e] sm:$0x40] %vm3_vm0, %v539_v28   ;;  %1931 = vst.msk [vmem:[%s5078_s1 + $0x1cd] sm:$0x80] %vm3_vm0, %v539_v28   ;;  %1423 = vrot.lane.b32.xlu1 %v2252_v0, %s2478_s15  ;;  %1402 = vrot.lane.b32.xlu0 %v2587_v21, %s2478_s15 }
  0xcf   :  { %1943 = vst.msk [vmem:[%s5078_s1 + $0x215] sm:$0x1] %vm3_vm0, %v587_v30   ;;  %1934 = vst.msk [vmem:[%s5078_s1 + $0x15] sm:$0x1] %vm3_vm0, %v566_v31  }
  0xd0   :  { %1935 = vst.msk [vmem:[%s5078_s1 + $0x54] sm:$0x2] %vm3_vm0, %v566_v31   ;;  %1936 = vst.msk [vmem:[%s5078_s1 + $0x93] sm:$0x4] %vm3_vm0, %v566_v31   ;;  %v668_v38 = vpop.permute.xlu1 %667   ;;  %v647_v39 = vpop.permute.xlu0 %646  }
  0xd1   :  { %1937 = vst.msk [vmem:[%s5078_s1 + $0xd2] sm:$0x8] %vm3_vm0, %v566_v31   ;;  %1938 = vst.msk [vmem:[%s5078_s1 + $0x111] sm:$0x10] %vm3_vm0, %v566_v31  }
  0xd2   :  { %1939 = vst.msk [vmem:[%s5078_s1 + $0x150] sm:$0x20] %vm3_vm0, %v566_v31   ;;  %1940 = vst.msk [vmem:[%s5078_s1 + $0x18f] sm:$0x40] %vm3_vm0, %v566_v31   ;;  %1450 = vrot.lane.b32.xlu1 %v2262_v37, %s2479_s7  ;;  %1429 = vrot.lane.b32.xlu0 %v2587_v21, %s2479_s7 }
  0xd3   :  { %1941 = vst.msk [vmem:[%s5078_s1 + $0x1ce] sm:$0x80] %vm3_vm0, %v566_v31   ;;  %1953 = vst.msk [vmem:[%s5078_s1 + $0x216] sm:$0x1] %vm3_vm0, %v614_v33  }
  0xd4   :  { %1944 = vst.msk [vmem:[%s5078_s1 + $0x16] sm:$0x1] %vm3_vm0, %v593_v34   ;;  %1945 = vst.msk [vmem:[%s5078_s1 + $0x55] sm:$0x2] %vm3_vm0, %v593_v34   ;;  %v695_v41 = vpop.permute.xlu1 %694   ;;  %v674_v42 = vpop.permute.xlu0 %673  }
  0xd5   :  { %1946 = vst.msk [vmem:[%s5078_s1 + $0x94] sm:$0x4] %vm3_vm0, %v593_v34   ;;  %1947 = vst.msk [vmem:[%s5078_s1 + $0xd3] sm:$0x8] %vm3_vm0, %v593_v34  }
  0xd6   :  { %1948 = vst.msk [vmem:[%s5078_s1 + $0x112] sm:$0x10] %vm3_vm0, %v593_v34   ;;  %1949 = vst.msk [vmem:[%s5078_s1 + $0x151] sm:$0x20] %vm3_vm0, %v593_v34   ;;  %1477 = vrot.lane.b32.xlu1 %v2272_v40, %s2480_s28  ;;  %1456 = vrot.lane.b32.xlu0 %v2587_v21, %s2480_s28 }
  0xd7   :  { %1950 = vst.msk [vmem:[%s5078_s1 + $0x190] sm:$0x40] %vm3_vm0, %v593_v34   ;;  %1951 = vst.msk [vmem:[%s5078_s1 + $0x1cf] sm:$0x80] %vm3_vm0, %v593_v34  }
  0xd8   :  { %1963 = vst.msk [vmem:[%s5078_s1 + $0x217] sm:$0x1] %vm3_vm0, %v641_v35   ;;  %1954 = vst.msk [vmem:[%s5078_s1 + $0x17] sm:$0x1] %vm3_vm0, %v620_v36   ;;  %v722_v44 = vpop.permute.xlu1 %721   ;;  %v701_v45 = vpop.permute.xlu0 %700  }
  0xd9   :  { %1955 = vst.msk [vmem:[%s5078_s1 + $0x56] sm:$0x2] %vm3_vm0, %v620_v36   ;;  %1956 = vst.msk [vmem:[%s5078_s1 + $0x95] sm:$0x4] %vm3_vm0, %v620_v36  }
  0xda   :  { %1957 = vst.msk [vmem:[%s5078_s1 + $0xd4] sm:$0x8] %vm3_vm0, %v620_v36   ;;  %1958 = vst.msk [vmem:[%s5078_s1 + $0x113] sm:$0x10] %vm3_vm0, %v620_v36   ;;  %1504 = vrot.lane.b32.xlu1 %v2282_v43, %s2481_s20  ;;  %1483 = vrot.lane.b32.xlu0 %v2587_v21, %s2481_s20 }
  0xdb   :  { %1959 = vst.msk [vmem:[%s5078_s1 + $0x152] sm:$0x20] %vm3_vm0, %v620_v36   ;;  %1960 = vst.msk [vmem:[%s5078_s1 + $0x191] sm:$0x40] %vm3_vm0, %v620_v36  }
  0xdc   :  { %1961 = vst.msk [vmem:[%s5078_s1 + $0x1d0] sm:$0x80] %vm3_vm0, %v620_v36   ;;  %1973 = vst.msk [vmem:[%s5078_s1 + $0x218] sm:$0x1] %vm3_vm0, %v668_v38   ;;  %v749_v47 = vpop.permute.xlu1 %748   ;;  %v728_v48 = vpop.permute.xlu0 %727  }
  0xdd   :  { %1964 = vst.msk [vmem:[%s5078_s1 + $0x18] sm:$0x1] %vm3_vm0, %v647_v39   ;;  %1965 = vst.msk [vmem:[%s5078_s1 + $0x57] sm:$0x2] %vm3_vm0, %v647_v39  }
  0xde   :  { %1966 = vst.msk [vmem:[%s5078_s1 + $0x96] sm:$0x4] %vm3_vm0, %v647_v39   ;;  %1967 = vst.msk [vmem:[%s5078_s1 + $0xd5] sm:$0x8] %vm3_vm0, %v647_v39   ;;  %1531 = vrot.lane.b32.xlu1 %v2292_v46, %s2482_s12  ;;  %1510 = vrot.lane.b32.xlu0 %v2587_v21, %s2482_s12 }
  0xdf   :  { %1968 = vst.msk [vmem:[%s5078_s1 + $0x114] sm:$0x10] %vm3_vm0, %v647_v39   ;;  %1969 = vst.msk [vmem:[%s5078_s1 + $0x153] sm:$0x20] %vm3_vm0, %v647_v39  }
  0xe0   :  { %1970 = vst.msk [vmem:[%s5078_s1 + $0x192] sm:$0x40] %vm3_vm0, %v647_v39   ;;  %1971 = vst.msk [vmem:[%s5078_s1 + $0x1d1] sm:$0x80] %vm3_vm0, %v647_v39   ;;  %v776_v50 = vpop.permute.xlu1 %775   ;;  %v755_v51 = vpop.permute.xlu0 %754  }
  0xe1   :  { %1983 = vst.msk [vmem:[%s5078_s1 + $0x219] sm:$0x1] %vm3_vm0, %v695_v41   ;;  %1974 = vst.msk [vmem:[%s5078_s1 + $0x19] sm:$0x1] %vm3_vm0, %v674_v42  }
  0xe2   :  { %1975 = vst.msk [vmem:[%s5078_s1 + $0x58] sm:$0x2] %vm3_vm0, %v674_v42   ;;  %1976 = vst.msk [vmem:[%s5078_s1 + $0x97] sm:$0x4] %vm3_vm0, %v674_v42   ;;  %1558 = vrot.lane.b32.xlu1 %v2302_v49, %s2483_s4  ;;  %1537 = vrot.lane.b32.xlu0 %v2587_v21, %s2483_s4 }
  0xe3   :  { %1977 = vst.msk [vmem:[%s5078_s1 + $0xd6] sm:$0x8] %vm3_vm0, %v674_v42   ;;  %1978 = vst.msk [vmem:[%s5078_s1 + $0x115] sm:$0x10] %vm3_vm0, %v674_v42  }
  0xe4   :  { %1979 = vst.msk [vmem:[%s5078_s1 + $0x154] sm:$0x20] %vm3_vm0, %v674_v42   ;;  %1980 = vst.msk [vmem:[%s5078_s1 + $0x193] sm:$0x40] %vm3_vm0, %v674_v42   ;;  %v803_v53 = vpop.permute.xlu1 %802   ;;  %v782_v54 = vpop.permute.xlu0 %781  }
  0xe5   :  { %1981 = vst.msk [vmem:[%s5078_s1 + $0x1d2] sm:$0x80] %vm3_vm0, %v674_v42   ;;  %1993 = vst.msk [vmem:[%s5078_s1 + $0x21a] sm:$0x1] %vm3_vm0, %v722_v44  }
  0xe6   :  { %1984 = vst.msk [vmem:[%s5078_s1 + $0x1a] sm:$0x1] %vm3_vm0, %v701_v45   ;;  %1985 = vst.msk [vmem:[%s5078_s1 + $0x59] sm:$0x2] %vm3_vm0, %v701_v45   ;;  %1585 = vrot.lane.b32.xlu1 %v2312_v52, %s2484_s25  ;;  %1564 = vrot.lane.b32.xlu0 %v2587_v21, %s2484_s25 }
  0xe7   :  { %1986 = vst.msk [vmem:[%s5078_s1 + $0x98] sm:$0x4] %vm3_vm0, %v701_v45   ;;  %1987 = vst.msk [vmem:[%s5078_s1 + $0xd7] sm:$0x8] %vm3_vm0, %v701_v45  }
  0xe8   :  { %1988 = vst.msk [vmem:[%s5078_s1 + $0x116] sm:$0x10] %vm3_vm0, %v701_v45   ;;  %1989 = vst.msk [vmem:[%s5078_s1 + $0x155] sm:$0x20] %vm3_vm0, %v701_v45   ;;  %v830_v56 = vpop.permute.xlu1 %829   ;;  %v809_v57 = vpop.permute.xlu0 %808  }
  0xe9   :  { %1990 = vst.msk [vmem:[%s5078_s1 + $0x194] sm:$0x40] %vm3_vm0, %v701_v45   ;;  %1991 = vst.msk [vmem:[%s5078_s1 + $0x1d3] sm:$0x80] %vm3_vm0, %v701_v45  }
  0xea   :  { %2003 = vst.msk [vmem:[%s5078_s1 + $0x21b] sm:$0x1] %vm3_vm0, %v749_v47   ;;  %1994 = vst.msk [vmem:[%s5078_s1 + $0x1b] sm:$0x1] %vm3_vm0, %v728_v48   ;;  %1612 = vrot.lane.b32.xlu1 %v2322_v55, %s2485_s17  ;;  %1591 = vrot.lane.b32.xlu0 %v2587_v21, %s2485_s17  ;;  %s2489_s17 = smov 65  }
  0xeb   :  { %1995 = vst.msk [vmem:[%s5078_s1 + $0x5a] sm:$0x2] %vm3_vm0, %v728_v48   ;;  %1996 = vst.msk [vmem:[%s5078_s1 + $0x99] sm:$0x4] %vm3_vm0, %v728_v48  }
  0xec   :  { %1997 = vst.msk [vmem:[%s5078_s1 + $0xd8] sm:$0x8] %vm3_vm0, %v728_v48   ;;  %1998 = vst.msk [vmem:[%s5078_s1 + $0x117] sm:$0x10] %vm3_vm0, %v728_v48   ;;  %v857_v59 = vpop.permute.xlu1 %856   ;;  %v836_v60 = vpop.permute.xlu0 %835  }
  0xed   :  { %1999 = vst.msk [vmem:[%s5078_s1 + $0x156] sm:$0x20] %vm3_vm0, %v728_v48   ;;  %2000 = vst.msk [vmem:[%s5078_s1 + $0x195] sm:$0x40] %vm3_vm0, %v728_v48  }
  0xee   :  { %2001 = vst.msk [vmem:[%s5078_s1 + $0x1d4] sm:$0x80] %vm3_vm0, %v728_v48   ;;  %2013 = vst.msk [vmem:[%s5078_s1 + $0x21c] sm:$0x1] %vm3_vm0, %v776_v50   ;;  %1639 = vrot.lane.b32.xlu1 %v2332_v58, %s2486_s13  ;;  %1618 = vrot.lane.b32.xlu0 %v2587_v21, %s2486_s13 }
  0xef   :  { %2004 = vst.msk [vmem:[%s5078_s1 + $0x1c] sm:$0x1] %vm3_vm0, %v755_v51   ;;  %2005 = vst.msk [vmem:[%s5078_s1 + $0x5b] sm:$0x2] %vm3_vm0, %v755_v51  }
  0xf0   :  { %2006 = vst.msk [vmem:[%s5078_s1 + $0x9a] sm:$0x4] %vm3_vm0, %v755_v51   ;;  %2007 = vst.msk [vmem:[%s5078_s1 + $0xd9] sm:$0x8] %vm3_vm0, %v755_v51   ;;  %v884_v63 = vpop.permute.xlu1 %883   ;;  %v863_v1 = vpop.permute.xlu0 %862  }
  0xf1   :  { %2008 = vst.msk [vmem:[%s5078_s1 + $0x118] sm:$0x10] %vm3_vm0, %v755_v51   ;;  %2009 = vst.msk [vmem:[%s5078_s1 + $0x157] sm:$0x20] %vm3_vm0, %v755_v51  }
  0xf2   :  { %2010 = vst.msk [vmem:[%s5078_s1 + $0x196] sm:$0x40] %vm3_vm0, %v755_v51   ;;  %2011 = vst.msk [vmem:[%s5078_s1 + $0x1d5] sm:$0x80] %vm3_vm0, %v755_v51   ;;  %1666 = vrot.lane.b32.xlu1 %v2342_v62, %s2487_s5  ;;  %1645 = vrot.lane.b32.xlu0 %v2587_v21, %s2487_s5 }
  0xf3   :  { %2023 = vst.msk [vmem:[%s5078_s1 + $0x21d] sm:$0x1] %vm3_vm0, %v803_v53   ;;  %2014 = vst.msk [vmem:[%s5078_s1 + $0x1d] sm:$0x1] %vm3_vm0, %v782_v54  }
  0xf4   :  { %2015 = vst.msk [vmem:[%s5078_s1 + $0x5c] sm:$0x2] %vm3_vm0, %v782_v54   ;;  %2016 = vst.msk [vmem:[%s5078_s1 + $0x9b] sm:$0x4] %vm3_vm0, %v782_v54   ;;  %v911_v3 = vpop.permute.xlu1 %910   ;;  %v890_v4 = vpop.permute.xlu0 %889  }
  0xf5   :  { %2017 = vst.msk [vmem:[%s5078_s1 + $0xda] sm:$0x8] %vm3_vm0, %v782_v54   ;;  %2018 = vst.msk [vmem:[%s5078_s1 + $0x119] sm:$0x10] %vm3_vm0, %v782_v54  }
  0xf6   :  { %2019 = vst.msk [vmem:[%s5078_s1 + $0x158] sm:$0x20] %vm3_vm0, %v782_v54   ;;  %2020 = vst.msk [vmem:[%s5078_s1 + $0x197] sm:$0x40] %vm3_vm0, %v782_v54   ;;  %1693 = vrot.lane.b32.xlu1 %v2352_v2, %s2488_s26  ;;  %1672 = vrot.lane.b32.xlu0 %v2587_v21, %s2488_s26 }
  0xf7   :  { %2021 = vst.msk [vmem:[%s5078_s1 + $0x1d6] sm:$0x80] %vm3_vm0, %v782_v54   ;;  %2033 = vst.msk [vmem:[%s5078_s1 + $0x21e] sm:$0x1] %vm3_vm0, %v830_v56  }
  0xf8   :  { %2024 = vst.msk [vmem:[%s5078_s1 + $0x1e] sm:$0x1] %vm3_vm0, %v809_v57   ;;  %2025 = vst.msk [vmem:[%s5078_s1 + $0x5d] sm:$0x2] %vm3_vm0, %v809_v57   ;;  %v938_v6 = vpop.permute.xlu1 %937   ;;  %v917_v7 = vpop.permute.xlu0 %916  }
  0xf9   :  { %2026 = vst.msk [vmem:[%s5078_s1 + $0x9c] sm:$0x4] %vm3_vm0, %v809_v57   ;;  %2027 = vst.msk [vmem:[%s5078_s1 + $0xdb] sm:$0x8] %vm3_vm0, %v809_v57  }
  0xfa   :  { %2028 = vst.msk [vmem:[%s5078_s1 + $0x11a] sm:$0x10] %vm3_vm0, %v809_v57   ;;  %2029 = vst.msk [vmem:[%s5078_s1 + $0x159] sm:$0x20] %vm3_vm0, %v809_v57   ;;  %1720 = vrot.lane.b32.xlu1 %v2362_v5, %s2489_s17  ;;  %1699 = vrot.lane.b32.xlu0 %v2587_v21, %s2489_s17 }
  0xfb   :  { %2030 = vst.msk [vmem:[%s5078_s1 + $0x198] sm:$0x40] %vm3_vm0, %v809_v57   ;;  %2031 = vst.msk [vmem:[%s5078_s1 + $0x1d7] sm:$0x80] %vm3_vm0, %v809_v57  }
  0xfc   :  { %2043 = vst.msk [vmem:[%s5078_s1 + $0x21f] sm:$0x1] %vm3_vm0, %v857_v59   ;;  %2034 = vst.msk [vmem:[%s5078_s1 + $0x1f] sm:$0x1] %vm3_vm0, %v836_v60   ;;  %v965_v21 = vpop.permute.xlu1 %964   ;;  %v944_v8 = vpop.permute.xlu0 %943  }
  0xfd   :  { %2035 = vst.msk [vmem:[%s5078_s1 + $0x5e] sm:$0x2] %vm3_vm0, %v836_v60   ;;  %2036 = vst.msk [vmem:[%s5078_s1 + $0x9d] sm:$0x4] %vm3_vm0, %v836_v60  }
  0xfe   :  { %2037 = vst.msk [vmem:[%s5078_s1 + $0xdc] sm:$0x8] %vm3_vm0, %v836_v60   ;;  %2038 = vst.msk [vmem:[%s5078_s1 + $0x11b] sm:$0x10] %vm3_vm0, %v836_v60  }
  0xff   :  { %2039 = vst.msk [vmem:[%s5078_s1 + $0x15a] sm:$0x20] %vm3_vm0, %v836_v60   ;;  %2040 = vst.msk [vmem:[%s5078_s1 + $0x199] sm:$0x40] %vm3_vm0, %v836_v60  }
 0x100   :  { %2041 = vst.msk [vmem:[%s5078_s1 + $0x1d8] sm:$0x80] %vm3_vm0, %v836_v60   ;;  %1733 = vst.msk [vmem:[%s5078_s1 + $0x200] sm:$0x1] %vm3_vm0, %v1732_v61   ;;  %v992_v9 = vpop.permute.xlu1 %991   ;;  %v971_v10 = vpop.permute.xlu0 %970  }
 0x101   :  { %2053 = vst.msk [vmem:[%s5078_s1 + $0x220] sm:$0x1] %vm3_vm0, %v884_v63   ;;  %2044 = vst.msk [vmem:[%s5078_s1 + $0x20] sm:$0x1] %vm3_vm0, %v863_v1  }
 0x102   :  { %2045 = vst.msk [vmem:[%s5078_s1 + $0x5f] sm:$0x2] %vm3_vm0, %v863_v1   ;;  %2046 = vst.msk [vmem:[%s5078_s1 + $0x9e] sm:$0x4] %vm3_vm0, %v863_v1  }
 0x103   :  { %2047 = vst.msk [vmem:[%s5078_s1 + $0xdd] sm:$0x8] %vm3_vm0, %v863_v1   ;;  %2048 = vst.msk [vmem:[%s5078_s1 + $0x11c] sm:$0x10] %vm3_vm0, %v863_v1  }
 0x104   :  { %2049 = vst.msk [vmem:[%s5078_s1 + $0x15b] sm:$0x20] %vm3_vm0, %v863_v1   ;;  %2050 = vst.msk [vmem:[%s5078_s1 + $0x19a] sm:$0x40] %vm3_vm0, %v863_v1   ;;  %v1019_v11 = vpop.permute.xlu1 %1018   ;;  %v998_v12 = vpop.permute.xlu0 %997  }
 0x105   :  { %2051 = vst.msk [vmem:[%s5078_s1 + $0x1d9] sm:$0x80] %vm3_vm0, %v863_v1   ;;  %2063 = vst.msk [vmem:[%s5078_s1 + $0x221] sm:$0x1] %vm3_vm0, %v911_v3  }
 0x106   :  { %2054 = vst.msk [vmem:[%s5078_s1 + $0x21] sm:$0x1] %vm3_vm0, %v890_v4   ;;  %2055 = vst.msk [vmem:[%s5078_s1 + $0x60] sm:$0x2] %vm3_vm0, %v890_v4  }
 0x107   :  { %2056 = vst.msk [vmem:[%s5078_s1 + $0x9f] sm:$0x4] %vm3_vm0, %v890_v4   ;;  %2057 = vst.msk [vmem:[%s5078_s1 + $0xde] sm:$0x8] %vm3_vm0, %v890_v4  }
 0x108   :  { %2058 = vst.msk [vmem:[%s5078_s1 + $0x11d] sm:$0x10] %vm3_vm0, %v890_v4   ;;  %2059 = vst.msk [vmem:[%s5078_s1 + $0x15c] sm:$0x20] %vm3_vm0, %v890_v4   ;;  %v1046_v13 = vpop.permute.xlu1 %1045   ;;  %v1025_v14 = vpop.permute.xlu0 %1024  }
 0x109   :  { %2060 = vst.msk [vmem:[%s5078_s1 + $0x19b] sm:$0x40] %vm3_vm0, %v890_v4   ;;  %2061 = vst.msk [vmem:[%s5078_s1 + $0x1da] sm:$0x80] %vm3_vm0, %v890_v4  }
 0x10a   :  { %2073 = vst.msk [vmem:[%s5078_s1 + $0x222] sm:$0x1] %vm3_vm0, %v938_v6   ;;  %2064 = vst.msk [vmem:[%s5078_s1 + $0x22] sm:$0x1] %vm3_vm0, %v917_v7  }
 0x10b   :  { %2065 = vst.msk [vmem:[%s5078_s1 + $0x61] sm:$0x2] %vm3_vm0, %v917_v7   ;;  %2066 = vst.msk [vmem:[%s5078_s1 + $0xa0] sm:$0x4] %vm3_vm0, %v917_v7  }
 0x10c   :  { %2067 = vst.msk [vmem:[%s5078_s1 + $0xdf] sm:$0x8] %vm3_vm0, %v917_v7   ;;  %2068 = vst.msk [vmem:[%s5078_s1 + $0x11e] sm:$0x10] %vm3_vm0, %v917_v7   ;;  %v1073_v15 = vpop.permute.xlu1 %1072   ;;  %v1052_v16 = vpop.permute.xlu0 %1051  }
 0x10d   :  { %2069 = vst.msk [vmem:[%s5078_s1 + $0x15d] sm:$0x20] %vm3_vm0, %v917_v7   ;;  %2070 = vst.msk [vmem:[%s5078_s1 + $0x19c] sm:$0x40] %vm3_vm0, %v917_v7  }
 0x10e   :  { %2071 = vst.msk [vmem:[%s5078_s1 + $0x1db] sm:$0x80] %vm3_vm0, %v917_v7   ;;  %2083 = vst.msk [vmem:[%s5078_s1 + $0x223] sm:$0x1] %vm3_vm0, %v965_v21  }
 0x10f   :  { %2074 = vst.msk [vmem:[%s5078_s1 + $0x23] sm:$0x1] %vm3_vm0, %v944_v8   ;;  %2075 = vst.msk [vmem:[%s5078_s1 + $0x62] sm:$0x2] %vm3_vm0, %v944_v8  }
 0x110   :  { %2076 = vst.msk [vmem:[%s5078_s1 + $0xa1] sm:$0x4] %vm3_vm0, %v944_v8   ;;  %2077 = vst.msk [vmem:[%s5078_s1 + $0xe0] sm:$0x8] %vm3_vm0, %v944_v8   ;;  %v1100_v17 = vpop.permute.xlu1 %1099   ;;  %v1079_v18 = vpop.permute.xlu0 %1078  }
 0x111   :  { %2078 = vst.msk [vmem:[%s5078_s1 + $0x11f] sm:$0x10] %vm3_vm0, %v944_v8   ;;  %2079 = vst.msk [vmem:[%s5078_s1 + $0x15e] sm:$0x20] %vm3_vm0, %v944_v8  }
 0x112   :  { %2080 = vst.msk [vmem:[%s5078_s1 + $0x19d] sm:$0x40] %vm3_vm0, %v944_v8   ;;  %2081 = vst.msk [vmem:[%s5078_s1 + $0x1dc] sm:$0x80] %vm3_vm0, %v944_v8  }
 0x113   :  { %2093 = vst.msk [vmem:[%s5078_s1 + $0x224] sm:$0x1] %vm3_vm0, %v992_v9   ;;  %2084 = vst.msk [vmem:[%s5078_s1 + $0x24] sm:$0x1] %vm3_vm0, %v971_v10  }
 0x114   :  { %2085 = vst.msk [vmem:[%s5078_s1 + $0x63] sm:$0x2] %vm3_vm0, %v971_v10   ;;  %2086 = vst.msk [vmem:[%s5078_s1 + $0xa2] sm:$0x4] %vm3_vm0, %v971_v10   ;;  %v1127_v19 = vpop.permute.xlu1 %1126   ;;  %v1106_v20 = vpop.permute.xlu0 %1105  }
 0x115   :  { %2087 = vst.msk [vmem:[%s5078_s1 + $0xe1] sm:$0x8] %vm3_vm0, %v971_v10   ;;  %2088 = vst.msk [vmem:[%s5078_s1 + $0x120] sm:$0x10] %vm3_vm0, %v971_v10  }
 0x116   :  { %2089 = vst.msk [vmem:[%s5078_s1 + $0x15f] sm:$0x20] %vm3_vm0, %v971_v10   ;;  %2090 = vst.msk [vmem:[%s5078_s1 + $0x19e] sm:$0x40] %vm3_vm0, %v971_v10  }
 0x117   :  { %2091 = vst.msk [vmem:[%s5078_s1 + $0x1dd] sm:$0x80] %vm3_vm0, %v971_v10   ;;  %2103 = vst.msk [vmem:[%s5078_s1 + $0x225] sm:$0x1] %vm3_vm0, %v1019_v11  }
 0x118   :  { %2094 = vst.msk [vmem:[%s5078_s1 + $0x25] sm:$0x1] %vm3_vm0, %v998_v12   ;;  %2095 = vst.msk [vmem:[%s5078_s1 + $0x64] sm:$0x2] %vm3_vm0, %v998_v12   ;;  %v1154_v22 = vpop.permute.xlu1 %1153   ;;  %v1133_v23 = vpop.permute.xlu0 %1132  }
 0x119   :  { %2096 = vst.msk [vmem:[%s5078_s1 + $0xa3] sm:$0x4] %vm3_vm0, %v998_v12   ;;  %2097 = vst.msk [vmem:[%s5078_s1 + $0xe2] sm:$0x8] %vm3_vm0, %v998_v12  }
 0x11a   :  { %2098 = vst.msk [vmem:[%s5078_s1 + $0x121] sm:$0x10] %vm3_vm0, %v998_v12   ;;  %2099 = vst.msk [vmem:[%s5078_s1 + $0x160] sm:$0x20] %vm3_vm0, %v998_v12  }
 0x11b   :  { %2100 = vst.msk [vmem:[%s5078_s1 + $0x19f] sm:$0x40] %vm3_vm0, %v998_v12   ;;  %2101 = vst.msk [vmem:[%s5078_s1 + $0x1de] sm:$0x80] %vm3_vm0, %v998_v12  }
 0x11c   :  { %2113 = vst.msk [vmem:[%s5078_s1 + $0x226] sm:$0x1] %vm3_vm0, %v1046_v13   ;;  %2104 = vst.msk [vmem:[%s5078_s1 + $0x26] sm:$0x1] %vm3_vm0, %v1025_v14   ;;  %v1181_v24 = vpop.permute.xlu1 %1180   ;;  %v1160_v25 = vpop.permute.xlu0 %1159  }
 0x11d   :  { %2105 = vst.msk [vmem:[%s5078_s1 + $0x65] sm:$0x2] %vm3_vm0, %v1025_v14   ;;  %2106 = vst.msk [vmem:[%s5078_s1 + $0xa4] sm:$0x4] %vm3_vm0, %v1025_v14  }
 0x11e   :  { %2107 = vst.msk [vmem:[%s5078_s1 + $0xe3] sm:$0x8] %vm3_vm0, %v1025_v14   ;;  %2108 = vst.msk [vmem:[%s5078_s1 + $0x122] sm:$0x10] %vm3_vm0, %v1025_v14  }
 0x11f   :  { %2109 = vst.msk [vmem:[%s5078_s1 + $0x161] sm:$0x20] %vm3_vm0, %v1025_v14   ;;  %2110 = vst.msk [vmem:[%s5078_s1 + $0x1a0] sm:$0x40] %vm3_vm0, %v1025_v14  }
 0x120   :  { %2111 = vst.msk [vmem:[%s5078_s1 + $0x1df] sm:$0x80] %vm3_vm0, %v1025_v14   ;;  %2123 = vst.msk [vmem:[%s5078_s1 + $0x227] sm:$0x1] %vm3_vm0, %v1073_v15   ;;  %v1208_v26 = vpop.permute.xlu1 %1207   ;;  %v1187_v27 = vpop.permute.xlu0 %1186  }
 0x121   :  { %2114 = vst.msk [vmem:[%s5078_s1 + $0x27] sm:$0x1] %vm3_vm0, %v1052_v16   ;;  %2115 = vst.msk [vmem:[%s5078_s1 + $0x66] sm:$0x2] %vm3_vm0, %v1052_v16  }
 0x122   :  { %2116 = vst.msk [vmem:[%s5078_s1 + $0xa5] sm:$0x4] %vm3_vm0, %v1052_v16   ;;  %2117 = vst.msk [vmem:[%s5078_s1 + $0xe4] sm:$0x8] %vm3_vm0, %v1052_v16  }
 0x123   :  { %2118 = vst.msk [vmem:[%s5078_s1 + $0x123] sm:$0x10] %vm3_vm0, %v1052_v16   ;;  %2119 = vst.msk [vmem:[%s5078_s1 + $0x162] sm:$0x20] %vm3_vm0, %v1052_v16  }
 0x124   :  { %2120 = vst.msk [vmem:[%s5078_s1 + $0x1a1] sm:$0x40] %vm3_vm0, %v1052_v16   ;;  %2121 = vst.msk [vmem:[%s5078_s1 + $0x1e0] sm:$0x80] %vm3_vm0, %v1052_v16   ;;  %v1235_v28 = vpop.permute.xlu1 %1234   ;;  %v1214_v29 = vpop.permute.xlu0 %1213  }
 0x125   :  { %2133 = vst.msk [vmem:[%s5078_s1 + $0x228] sm:$0x1] %vm3_vm0, %v1100_v17   ;;  %2124 = vst.msk [vmem:[%s5078_s1 + $0x28] sm:$0x1] %vm3_vm0, %v1079_v18  }
 0x126   :  { %2125 = vst.msk [vmem:[%s5078_s1 + $0x67] sm:$0x2] %vm3_vm0, %v1079_v18   ;;  %2126 = vst.msk [vmem:[%s5078_s1 + $0xa6] sm:$0x4] %vm3_vm0, %v1079_v18  }
 0x127   :  { %2127 = vst.msk [vmem:[%s5078_s1 + $0xe5] sm:$0x8] %vm3_vm0, %v1079_v18   ;;  %2128 = vst.msk [vmem:[%s5078_s1 + $0x124] sm:$0x10] %vm3_vm0, %v1079_v18  }
 0x128   :  { %2129 = vst.msk [vmem:[%s5078_s1 + $0x163] sm:$0x20] %vm3_vm0, %v1079_v18   ;;  %2130 = vst.msk [vmem:[%s5078_s1 + $0x1a2] sm:$0x40] %vm3_vm0, %v1079_v18   ;;  %v1262_v30 = vpop.permute.xlu1 %1261   ;;  %v1241_v31 = vpop.permute.xlu0 %1240  }
 0x129   :  { %2131 = vst.msk [vmem:[%s5078_s1 + $0x1e1] sm:$0x80] %vm3_vm0, %v1079_v18   ;;  %2143 = vst.msk [vmem:[%s5078_s1 + $0x229] sm:$0x1] %vm3_vm0, %v1127_v19  }
 0x12a   :  { %2134 = vst.msk [vmem:[%s5078_s1 + $0x29] sm:$0x1] %vm3_vm0, %v1106_v20   ;;  %2135 = vst.msk [vmem:[%s5078_s1 + $0x68] sm:$0x2] %vm3_vm0, %v1106_v20  }
 0x12b   :  { %2136 = vst.msk [vmem:[%s5078_s1 + $0xa7] sm:$0x4] %vm3_vm0, %v1106_v20   ;;  %2137 = vst.msk [vmem:[%s5078_s1 + $0xe6] sm:$0x8] %vm3_vm0, %v1106_v20  }
 0x12c   :  { %2138 = vst.msk [vmem:[%s5078_s1 + $0x125] sm:$0x10] %vm3_vm0, %v1106_v20   ;;  %2139 = vst.msk [vmem:[%s5078_s1 + $0x164] sm:$0x20] %vm3_vm0, %v1106_v20   ;;  %v1289_v32 = vpop.permute.xlu1 %1288   ;;  %v1268_v33 = vpop.permute.xlu0 %1267  }
 0x12d   :  { %2140 = vst.msk [vmem:[%s5078_s1 + $0x1a3] sm:$0x40] %vm3_vm0, %v1106_v20   ;;  %2141 = vst.msk [vmem:[%s5078_s1 + $0x1e2] sm:$0x80] %vm3_vm0, %v1106_v20  }
 0x12e   :  { %2153 = vst.msk [vmem:[%s5078_s1 + $0x22a] sm:$0x1] %vm3_vm0, %v1154_v22   ;;  %2144 = vst.msk [vmem:[%s5078_s1 + $0x2a] sm:$0x1] %vm3_vm0, %v1133_v23  }
 0x12f   :  { %2145 = vst.msk [vmem:[%s5078_s1 + $0x69] sm:$0x2] %vm3_vm0, %v1133_v23   ;;  %2146 = vst.msk [vmem:[%s5078_s1 + $0xa8] sm:$0x4] %vm3_vm0, %v1133_v23  }
 0x130   :  { %2147 = vst.msk [vmem:[%s5078_s1 + $0xe7] sm:$0x8] %vm3_vm0, %v1133_v23   ;;  %2148 = vst.msk [vmem:[%s5078_s1 + $0x126] sm:$0x10] %vm3_vm0, %v1133_v23   ;;  %v1316_v34 = vpop.permute.xlu1 %1315   ;;  %v1295_v0 = vpop.permute.xlu0 %1294  }
 0x131   :  { %2149 = vst.msk [vmem:[%s5078_s1 + $0x165] sm:$0x20] %vm3_vm0, %v1133_v23   ;;  %2150 = vst.msk [vmem:[%s5078_s1 + $0x1a4] sm:$0x40] %vm3_vm0, %v1133_v23  }
 0x132   :  { %2151 = vst.msk [vmem:[%s5078_s1 + $0x1e3] sm:$0x80] %vm3_vm0, %v1133_v23   ;;  %2163 = vst.msk [vmem:[%s5078_s1 + $0x22b] sm:$0x1] %vm3_vm0, %v1181_v24  }
 0x133   :  { %2154 = vst.msk [vmem:[%s5078_s1 + $0x2b] sm:$0x1] %vm3_vm0, %v1160_v25   ;;  %2155 = vst.msk [vmem:[%s5078_s1 + $0x6a] sm:$0x2] %vm3_vm0, %v1160_v25  }
 0x134   :  { %2156 = vst.msk [vmem:[%s5078_s1 + $0xa9] sm:$0x4] %vm3_vm0, %v1160_v25   ;;  %2157 = vst.msk [vmem:[%s5078_s1 + $0xe8] sm:$0x8] %vm3_vm0, %v1160_v25   ;;  %v1343_v35 = vpop.permute.xlu1 %1342   ;;  %v1322_v36 = vpop.permute.xlu0 %1321  }
 0x135   :  { %2158 = vst.msk [vmem:[%s5078_s1 + $0x127] sm:$0x10] %vm3_vm0, %v1160_v25   ;;  %2159 = vst.msk [vmem:[%s5078_s1 + $0x166] sm:$0x20] %vm3_vm0, %v1160_v25  }
 0x136   :  { %2160 = vst.msk [vmem:[%s5078_s1 + $0x1a5] sm:$0x40] %vm3_vm0, %v1160_v25   ;;  %2161 = vst.msk [vmem:[%s5078_s1 + $0x1e4] sm:$0x80] %vm3_vm0, %v1160_v25  }
 0x137   :  { %2173 = vst.msk [vmem:[%s5078_s1 + $0x22c] sm:$0x1] %vm3_vm0, %v1208_v26   ;;  %2164 = vst.msk [vmem:[%s5078_s1 + $0x2c] sm:$0x1] %vm3_vm0, %v1187_v27  }
 0x138   :  { %2165 = vst.msk [vmem:[%s5078_s1 + $0x6b] sm:$0x2] %vm3_vm0, %v1187_v27   ;;  %2166 = vst.msk [vmem:[%s5078_s1 + $0xaa] sm:$0x4] %vm3_vm0, %v1187_v27   ;;  %v1370_v37 = vpop.permute.xlu1 %1369   ;;  %v1349_v38 = vpop.permute.xlu0 %1348  }
 0x139   :  { %2167 = vst.msk [vmem:[%s5078_s1 + $0xe9] sm:$0x8] %vm3_vm0, %v1187_v27   ;;  %2168 = vst.msk [vmem:[%s5078_s1 + $0x128] sm:$0x10] %vm3_vm0, %v1187_v27  }
 0x13a   :  { %2169 = vst.msk [vmem:[%s5078_s1 + $0x167] sm:$0x20] %vm3_vm0, %v1187_v27   ;;  %2170 = vst.msk [vmem:[%s5078_s1 + $0x1a6] sm:$0x40] %vm3_vm0, %v1187_v27  }
 0x13b   :  { %2171 = vst.msk [vmem:[%s5078_s1 + $0x1e5] sm:$0x80] %vm3_vm0, %v1187_v27   ;;  %2183 = vst.msk [vmem:[%s5078_s1 + $0x22d] sm:$0x1] %vm3_vm0, %v1235_v28  }
 0x13c   :  { %2174 = vst.msk [vmem:[%s5078_s1 + $0x2d] sm:$0x1] %vm3_vm0, %v1214_v29   ;;  %2175 = vst.msk [vmem:[%s5078_s1 + $0x6c] sm:$0x2] %vm3_vm0, %v1214_v29   ;;  %v1397_v39 = vpop.permute.xlu1 %1396   ;;  %v1376_v40 = vpop.permute.xlu0 %1375  }
 0x13d   :  { %2176 = vst.msk [vmem:[%s5078_s1 + $0xab] sm:$0x4] %vm3_vm0, %v1214_v29   ;;  %2177 = vst.msk [vmem:[%s5078_s1 + $0xea] sm:$0x8] %vm3_vm0, %v1214_v29  }
 0x13e   :  { %2178 = vst.msk [vmem:[%s5078_s1 + $0x129] sm:$0x10] %vm3_vm0, %v1214_v29   ;;  %2179 = vst.msk [vmem:[%s5078_s1 + $0x168] sm:$0x20] %vm3_vm0, %v1214_v29  }
 0x13f   :  { %2180 = vst.msk [vmem:[%s5078_s1 + $0x1a7] sm:$0x40] %vm3_vm0, %v1214_v29   ;;  %2181 = vst.msk [vmem:[%s5078_s1 + $0x1e6] sm:$0x80] %vm3_vm0, %v1214_v29  }
 0x140   :  { %2193 = vst.msk [vmem:[%s5078_s1 + $0x22e] sm:$0x1] %vm3_vm0, %v1262_v30   ;;  %2184 = vst.msk [vmem:[%s5078_s1 + $0x2e] sm:$0x1] %vm3_vm0, %v1241_v31   ;;  %v1424_v41 = vpop.permute.xlu1 %1423   ;;  %v1403_v42 = vpop.permute.xlu0 %1402  }
 0x141   :  { %2185 = vst.msk [vmem:[%s5078_s1 + $0x6d] sm:$0x2] %vm3_vm0, %v1241_v31   ;;  %2186 = vst.msk [vmem:[%s5078_s1 + $0xac] sm:$0x4] %vm3_vm0, %v1241_v31  }
 0x142   :  { %2187 = vst.msk [vmem:[%s5078_s1 + $0xeb] sm:$0x8] %vm3_vm0, %v1241_v31   ;;  %2188 = vst.msk [vmem:[%s5078_s1 + $0x12a] sm:$0x10] %vm3_vm0, %v1241_v31  }
 0x143   :  { %2189 = vst.msk [vmem:[%s5078_s1 + $0x169] sm:$0x20] %vm3_vm0, %v1241_v31   ;;  %2190 = vst.msk [vmem:[%s5078_s1 + $0x1a8] sm:$0x40] %vm3_vm0, %v1241_v31  }
 0x144   :  { %2191 = vst.msk [vmem:[%s5078_s1 + $0x1e7] sm:$0x80] %vm3_vm0, %v1241_v31   ;;  %2203 = vst.msk [vmem:[%s5078_s1 + $0x22f] sm:$0x1] %vm3_vm0, %v1289_v32   ;;  %v1451_v43 = vpop.permute.xlu1 %1450   ;;  %v1430_v44 = vpop.permute.xlu0 %1429  }
 0x145   :  { %2194 = vst.msk [vmem:[%s5078_s1 + $0x2f] sm:$0x1] %vm3_vm0, %v1268_v33   ;;  %2195 = vst.msk [vmem:[%s5078_s1 + $0x6e] sm:$0x2] %vm3_vm0, %v1268_v33  }
 0x146   :  { %2196 = vst.msk [vmem:[%s5078_s1 + $0xad] sm:$0x4] %vm3_vm0, %v1268_v33   ;;  %2197 = vst.msk [vmem:[%s5078_s1 + $0xec] sm:$0x8] %vm3_vm0, %v1268_v33  }
 0x147   :  { %2198 = vst.msk [vmem:[%s5078_s1 + $0x12b] sm:$0x10] %vm3_vm0, %v1268_v33   ;;  %2199 = vst.msk [vmem:[%s5078_s1 + $0x16a] sm:$0x20] %vm3_vm0, %v1268_v33  }
 0x148   :  { %2200 = vst.msk [vmem:[%s5078_s1 + $0x1a9] sm:$0x40] %vm3_vm0, %v1268_v33   ;;  %2201 = vst.msk [vmem:[%s5078_s1 + $0x1e8] sm:$0x80] %vm3_vm0, %v1268_v33   ;;  %v1478_v45 = vpop.permute.xlu1 %1477   ;;  %v1457_v46 = vpop.permute.xlu0 %1456  }
 0x149   :  { %2213 = vst.msk [vmem:[%s5078_s1 + $0x230] sm:$0x1] %vm3_vm0, %v1316_v34   ;;  %2204 = vst.msk [vmem:[%s5078_s1 + $0x30] sm:$0x1] %vm3_vm0, %v1295_v0  }
 0x14a   :  { %2205 = vst.msk [vmem:[%s5078_s1 + $0x6f] sm:$0x2] %vm3_vm0, %v1295_v0   ;;  %2206 = vst.msk [vmem:[%s5078_s1 + $0xae] sm:$0x4] %vm3_vm0, %v1295_v0  }
 0x14b   :  { %2207 = vst.msk [vmem:[%s5078_s1 + $0xed] sm:$0x8] %vm3_vm0, %v1295_v0   ;;  %2208 = vst.msk [vmem:[%s5078_s1 + $0x12c] sm:$0x10] %vm3_vm0, %v1295_v0  }
 0x14c   :  { %2209 = vst.msk [vmem:[%s5078_s1 + $0x16b] sm:$0x20] %vm3_vm0, %v1295_v0   ;;  %2210 = vst.msk [vmem:[%s5078_s1 + $0x1aa] sm:$0x40] %vm3_vm0, %v1295_v0   ;;  %v1505_v47 = vpop.permute.xlu1 %1504   ;;  %v1484_v48 = vpop.permute.xlu0 %1483  }
 0x14d   :  { %2211 = vst.msk [vmem:[%s5078_s1 + $0x1e9] sm:$0x80] %vm3_vm0, %v1295_v0   ;;  %2223 = vst.msk [vmem:[%s5078_s1 + $0x231] sm:$0x1] %vm3_vm0, %v1343_v35  }
 0x14e   :  { %2214 = vst.msk [vmem:[%s5078_s1 + $0x31] sm:$0x1] %vm3_vm0, %v1322_v36   ;;  %2215 = vst.msk [vmem:[%s5078_s1 + $0x70] sm:$0x2] %vm3_vm0, %v1322_v36  }
 0x14f   :  { %2216 = vst.msk [vmem:[%s5078_s1 + $0xaf] sm:$0x4] %vm3_vm0, %v1322_v36   ;;  %2217 = vst.msk [vmem:[%s5078_s1 + $0xee] sm:$0x8] %vm3_vm0, %v1322_v36  }
 0x150   :  { %2218 = vst.msk [vmem:[%s5078_s1 + $0x12d] sm:$0x10] %vm3_vm0, %v1322_v36   ;;  %2219 = vst.msk [vmem:[%s5078_s1 + $0x16c] sm:$0x20] %vm3_vm0, %v1322_v36   ;;  %v1532_v49 = vpop.permute.xlu1 %1531   ;;  %v1511_v50 = vpop.permute.xlu0 %1510  }
 0x151   :  { %2220 = vst.msk [vmem:[%s5078_s1 + $0x1ab] sm:$0x40] %vm3_vm0, %v1322_v36   ;;  %2221 = vst.msk [vmem:[%s5078_s1 + $0x1ea] sm:$0x80] %vm3_vm0, %v1322_v36  }
 0x152   :  { %2233 = vst.msk [vmem:[%s5078_s1 + $0x232] sm:$0x1] %vm3_vm0, %v1370_v37   ;;  %2224 = vst.msk [vmem:[%s5078_s1 + $0x32] sm:$0x1] %vm3_vm0, %v1349_v38  }
 0x153   :  { %2225 = vst.msk [vmem:[%s5078_s1 + $0x71] sm:$0x2] %vm3_vm0, %v1349_v38   ;;  %2226 = vst.msk [vmem:[%s5078_s1 + $0xb0] sm:$0x4] %vm3_vm0, %v1349_v38  }
 0x154   :  { %2227 = vst.msk [vmem:[%s5078_s1 + $0xef] sm:$0x8] %vm3_vm0, %v1349_v38   ;;  %2228 = vst.msk [vmem:[%s5078_s1 + $0x12e] sm:$0x10] %vm3_vm0, %v1349_v38   ;;  %v1559_v51 = vpop.permute.xlu1 %1558   ;;  %v1538_v52 = vpop.permute.xlu0 %1537  }
 0x155   :  { %2229 = vst.msk [vmem:[%s5078_s1 + $0x16d] sm:$0x20] %vm3_vm0, %v1349_v38   ;;  %2230 = vst.msk [vmem:[%s5078_s1 + $0x1ac] sm:$0x40] %vm3_vm0, %v1349_v38  }
 0x156   :  { %2231 = vst.msk [vmem:[%s5078_s1 + $0x1eb] sm:$0x80] %vm3_vm0, %v1349_v38   ;;  %2243 = vst.msk [vmem:[%s5078_s1 + $0x233] sm:$0x1] %vm3_vm0, %v1397_v39  }
 0x157   :  { %2234 = vst.msk [vmem:[%s5078_s1 + $0x33] sm:$0x1] %vm3_vm0, %v1376_v40   ;;  %2235 = vst.msk [vmem:[%s5078_s1 + $0x72] sm:$0x2] %vm3_vm0, %v1376_v40  }
 0x158   :  { %2236 = vst.msk [vmem:[%s5078_s1 + $0xb1] sm:$0x4] %vm3_vm0, %v1376_v40   ;;  %2237 = vst.msk [vmem:[%s5078_s1 + $0xf0] sm:$0x8] %vm3_vm0, %v1376_v40   ;;  %v1586_v53 = vpop.permute.xlu1 %1585   ;;  %v1565_v54 = vpop.permute.xlu0 %1564  }
 0x159   :  { %2238 = vst.msk [vmem:[%s5078_s1 + $0x12f] sm:$0x10] %vm3_vm0, %v1376_v40   ;;  %2239 = vst.msk [vmem:[%s5078_s1 + $0x16e] sm:$0x20] %vm3_vm0, %v1376_v40  }
 0x15a   :  { %2240 = vst.msk [vmem:[%s5078_s1 + $0x1ad] sm:$0x40] %vm3_vm0, %v1376_v40   ;;  %2241 = vst.msk [vmem:[%s5078_s1 + $0x1ec] sm:$0x80] %vm3_vm0, %v1376_v40  }
 0x15b   :  { %2253 = vst.msk [vmem:[%s5078_s1 + $0x234] sm:$0x1] %vm3_vm0, %v1424_v41   ;;  %2244 = vst.msk [vmem:[%s5078_s1 + $0x34] sm:$0x1] %vm3_vm0, %v1403_v42  }
 0x15c   :  { %2245 = vst.msk [vmem:[%s5078_s1 + $0x73] sm:$0x2] %vm3_vm0, %v1403_v42   ;;  %2246 = vst.msk [vmem:[%s5078_s1 + $0xb2] sm:$0x4] %vm3_vm0, %v1403_v42   ;;  %v1613_v55 = vpop.permute.xlu1 %1612   ;;  %v1592_v56 = vpop.permute.xlu0 %1591  }
 0x15d   :  { %2247 = vst.msk [vmem:[%s5078_s1 + $0xf1] sm:$0x8] %vm3_vm0, %v1403_v42   ;;  %2248 = vst.msk [vmem:[%s5078_s1 + $0x130] sm:$0x10] %vm3_vm0, %v1403_v42  }
 0x15e   :  { %2249 = vst.msk [vmem:[%s5078_s1 + $0x16f] sm:$0x20] %vm3_vm0, %v1403_v42   ;;  %2250 = vst.msk [vmem:[%s5078_s1 + $0x1ae] sm:$0x40] %vm3_vm0, %v1403_v42  }
 0x15f   :  { %2251 = vst.msk [vmem:[%s5078_s1 + $0x1ed] sm:$0x80] %vm3_vm0, %v1403_v42   ;;  %2263 = vst.msk [vmem:[%s5078_s1 + $0x235] sm:$0x1] %vm3_vm0, %v1451_v43  }
 0x160   :  { %2254 = vst.msk [vmem:[%s5078_s1 + $0x35] sm:$0x1] %vm3_vm0, %v1430_v44   ;;  %2255 = vst.msk [vmem:[%s5078_s1 + $0x74] sm:$0x2] %vm3_vm0, %v1430_v44   ;;  %v1640_v57 = vpop.permute.xlu1 %1639   ;;  %v1619_v58 = vpop.permute.xlu0 %1618  }
 0x161   :  { %2256 = vst.msk [vmem:[%s5078_s1 + $0xb3] sm:$0x4] %vm3_vm0, %v1430_v44   ;;  %2257 = vst.msk [vmem:[%s5078_s1 + $0xf2] sm:$0x8] %vm3_vm0, %v1430_v44  }
 0x162   :  { %2258 = vst.msk [vmem:[%s5078_s1 + $0x131] sm:$0x10] %vm3_vm0, %v1430_v44   ;;  %2259 = vst.msk [vmem:[%s5078_s1 + $0x170] sm:$0x20] %vm3_vm0, %v1430_v44  }
 0x163   :  { %2260 = vst.msk [vmem:[%s5078_s1 + $0x1af] sm:$0x40] %vm3_vm0, %v1430_v44   ;;  %2261 = vst.msk [vmem:[%s5078_s1 + $0x1ee] sm:$0x80] %vm3_vm0, %v1430_v44  }
 0x164   :  { %2273 = vst.msk [vmem:[%s5078_s1 + $0x236] sm:$0x1] %vm3_vm0, %v1478_v45   ;;  %2264 = vst.msk [vmem:[%s5078_s1 + $0x36] sm:$0x1] %vm3_vm0, %v1457_v46   ;;  %v1667_v59 = vpop.permute.xlu1 %1666   ;;  %v1646_v60 = vpop.permute.xlu0 %1645  }
 0x165   :  { %2265 = vst.msk [vmem:[%s5078_s1 + $0x75] sm:$0x2] %vm3_vm0, %v1457_v46   ;;  %2266 = vst.msk [vmem:[%s5078_s1 + $0xb4] sm:$0x4] %vm3_vm0, %v1457_v46  }
 0x166   :  { %2267 = vst.msk [vmem:[%s5078_s1 + $0xf3] sm:$0x8] %vm3_vm0, %v1457_v46   ;;  %2268 = vst.msk [vmem:[%s5078_s1 + $0x132] sm:$0x10] %vm3_vm0, %v1457_v46  }
 0x167   :  { %2269 = vst.msk [vmem:[%s5078_s1 + $0x171] sm:$0x20] %vm3_vm0, %v1457_v46   ;;  %2270 = vst.msk [vmem:[%s5078_s1 + $0x1b0] sm:$0x40] %vm3_vm0, %v1457_v46  }
 0x168   :  { %2271 = vst.msk [vmem:[%s5078_s1 + $0x1ef] sm:$0x80] %vm3_vm0, %v1457_v46   ;;  %2283 = vst.msk [vmem:[%s5078_s1 + $0x237] sm:$0x1] %vm3_vm0, %v1505_v47   ;;  %v1694_v61 = vpop.permute.xlu1 %1693   ;;  %v1673_v62 = vpop.permute.xlu0 %1672  }
 0x169   :  { %2274 = vst.msk [vmem:[%s5078_s1 + $0x37] sm:$0x1] %vm3_vm0, %v1484_v48   ;;  %2275 = vst.msk [vmem:[%s5078_s1 + $0x76] sm:$0x2] %vm3_vm0, %v1484_v48  }
 0x16a   :  { %2276 = vst.msk [vmem:[%s5078_s1 + $0xb5] sm:$0x4] %vm3_vm0, %v1484_v48   ;;  %2277 = vst.msk [vmem:[%s5078_s1 + $0xf4] sm:$0x8] %vm3_vm0, %v1484_v48  }
 0x16b   :  { %2278 = vst.msk [vmem:[%s5078_s1 + $0x133] sm:$0x10] %vm3_vm0, %v1484_v48   ;;  %2279 = vst.msk [vmem:[%s5078_s1 + $0x172] sm:$0x20] %vm3_vm0, %v1484_v48  }
 0x16c   :  { %2280 = vst.msk [vmem:[%s5078_s1 + $0x1b1] sm:$0x40] %vm3_vm0, %v1484_v48   ;;  %2281 = vst.msk [vmem:[%s5078_s1 + $0x1f0] sm:$0x80] %vm3_vm0, %v1484_v48   ;;  %v1721_v63 = vpop.permute.xlu1 %1720   ;;  %v1700_v1 = vpop.permute.xlu0 %1699  }
 0x16d   :  { %2293 = vst.msk [vmem:[%s5078_s1 + $0x238] sm:$0x1] %vm3_vm0, %v1532_v49   ;;  %2284 = vst.msk [vmem:[%s5078_s1 + $0x38] sm:$0x1] %vm3_vm0, %v1511_v50  }
 0x16e   :  { %2285 = vst.msk [vmem:[%s5078_s1 + $0x77] sm:$0x2] %vm3_vm0, %v1511_v50   ;;  %2286 = vst.msk [vmem:[%s5078_s1 + $0xb6] sm:$0x4] %vm3_vm0, %v1511_v50  }
 0x16f   :  { %2287 = vst.msk [vmem:[%s5078_s1 + $0xf5] sm:$0x8] %vm3_vm0, %v1511_v50   ;;  %2288 = vst.msk [vmem:[%s5078_s1 + $0x134] sm:$0x10] %vm3_vm0, %v1511_v50  }
 0x170   :  { %2289 = vst.msk [vmem:[%s5078_s1 + $0x173] sm:$0x20] %vm3_vm0, %v1511_v50   ;;  %2290 = vst.msk [vmem:[%s5078_s1 + $0x1b2] sm:$0x40] %vm3_vm0, %v1511_v50  }
 0x171   :  { %2291 = vst.msk [vmem:[%s5078_s1 + $0x1f1] sm:$0x80] %vm3_vm0, %v1511_v50   ;;  %2303 = vst.msk [vmem:[%s5078_s1 + $0x239] sm:$0x1] %vm3_vm0, %v1559_v51  }
 0x172   :  { %2294 = vst.msk [vmem:[%s5078_s1 + $0x39] sm:$0x1] %vm3_vm0, %v1538_v52   ;;  %2295 = vst.msk [vmem:[%s5078_s1 + $0x78] sm:$0x2] %vm3_vm0, %v1538_v52  }
 0x173   :  { %2296 = vst.msk [vmem:[%s5078_s1 + $0xb7] sm:$0x4] %vm3_vm0, %v1538_v52   ;;  %2297 = vst.msk [vmem:[%s5078_s1 + $0xf6] sm:$0x8] %vm3_vm0, %v1538_v52  }
 0x174   :  { %2298 = vst.msk [vmem:[%s5078_s1 + $0x135] sm:$0x10] %vm3_vm0, %v1538_v52   ;;  %2299 = vst.msk [vmem:[%s5078_s1 + $0x174] sm:$0x20] %vm3_vm0, %v1538_v52  }
 0x175   :  { %2300 = vst.msk [vmem:[%s5078_s1 + $0x1b3] sm:$0x40] %vm3_vm0, %v1538_v52   ;;  %2301 = vst.msk [vmem:[%s5078_s1 + $0x1f2] sm:$0x80] %vm3_vm0, %v1538_v52  }
 0x176   :  { %2313 = vst.msk [vmem:[%s5078_s1 + $0x23a] sm:$0x1] %vm3_vm0, %v1586_v53   ;;  %2304 = vst.msk [vmem:[%s5078_s1 + $0x3a] sm:$0x1] %vm3_vm0, %v1565_v54  }
 0x177   :  { %2305 = vst.msk [vmem:[%s5078_s1 + $0x79] sm:$0x2] %vm3_vm0, %v1565_v54   ;;  %2306 = vst.msk [vmem:[%s5078_s1 + $0xb8] sm:$0x4] %vm3_vm0, %v1565_v54  }
 0x178   :  { %2307 = vst.msk [vmem:[%s5078_s1 + $0xf7] sm:$0x8] %vm3_vm0, %v1565_v54   ;;  %2308 = vst.msk [vmem:[%s5078_s1 + $0x136] sm:$0x10] %vm3_vm0, %v1565_v54  }
 0x179   :  { %2309 = vst.msk [vmem:[%s5078_s1 + $0x175] sm:$0x20] %vm3_vm0, %v1565_v54   ;;  %2310 = vst.msk [vmem:[%s5078_s1 + $0x1b4] sm:$0x40] %vm3_vm0, %v1565_v54  }
 0x17a   :  { %2311 = vst.msk [vmem:[%s5078_s1 + $0x1f3] sm:$0x80] %vm3_vm0, %v1565_v54   ;;  %2323 = vst.msk [vmem:[%s5078_s1 + $0x23b] sm:$0x1] %vm3_vm0, %v1613_v55  }
 0x17b   :  { %2314 = vst.msk [vmem:[%s5078_s1 + $0x3b] sm:$0x1] %vm3_vm0, %v1592_v56   ;;  %2315 = vst.msk [vmem:[%s5078_s1 + $0x7a] sm:$0x2] %vm3_vm0, %v1592_v56  }
 0x17c   :  { %2316 = vst.msk [vmem:[%s5078_s1 + $0xb9] sm:$0x4] %vm3_vm0, %v1592_v56   ;;  %2317 = vst.msk [vmem:[%s5078_s1 + $0xf8] sm:$0x8] %vm3_vm0, %v1592_v56  }
 0x17d   :  { %2318 = vst.msk [vmem:[%s5078_s1 + $0x137] sm:$0x10] %vm3_vm0, %v1592_v56   ;;  %2319 = vst.msk [vmem:[%s5078_s1 + $0x176] sm:$0x20] %vm3_vm0, %v1592_v56  }
 0x17e   :  { %2320 = vst.msk [vmem:[%s5078_s1 + $0x1b5] sm:$0x40] %vm3_vm0, %v1592_v56   ;;  %2321 = vst.msk [vmem:[%s5078_s1 + $0x1f4] sm:$0x80] %vm3_vm0, %v1592_v56  }
 0x17f   :  { %2333 = vst.msk [vmem:[%s5078_s1 + $0x23c] sm:$0x1] %vm3_vm0, %v1640_v57   ;;  %2324 = vst.msk [vmem:[%s5078_s1 + $0x3c] sm:$0x1] %vm3_vm0, %v1619_v58  }
 0x180   :  { %2325 = vst.msk [vmem:[%s5078_s1 + $0x7b] sm:$0x2] %vm3_vm0, %v1619_v58   ;;  %2326 = vst.msk [vmem:[%s5078_s1 + $0xba] sm:$0x4] %vm3_vm0, %v1619_v58  }
 0x181   :  { %2327 = vst.msk [vmem:[%s5078_s1 + $0xf9] sm:$0x8] %vm3_vm0, %v1619_v58   ;;  %2328 = vst.msk [vmem:[%s5078_s1 + $0x138] sm:$0x10] %vm3_vm0, %v1619_v58  }
 0x182   :  { %2329 = vst.msk [vmem:[%s5078_s1 + $0x177] sm:$0x20] %vm3_vm0, %v1619_v58   ;;  %2330 = vst.msk [vmem:[%s5078_s1 + $0x1b6] sm:$0x40] %vm3_vm0, %v1619_v58  }
 0x183   :  { %2331 = vst.msk [vmem:[%s5078_s1 + $0x1f5] sm:$0x80] %vm3_vm0, %v1619_v58   ;;  %2343 = vst.msk [vmem:[%s5078_s1 + $0x23d] sm:$0x1] %vm3_vm0, %v1667_v59  }
 0x184   :  { %2334 = vst.msk [vmem:[%s5078_s1 + $0x3d] sm:$0x1] %vm3_vm0, %v1646_v60   ;;  %2335 = vst.msk [vmem:[%s5078_s1 + $0x7c] sm:$0x2] %vm3_vm0, %v1646_v60  }
 0x185   :  { %2336 = vst.msk [vmem:[%s5078_s1 + $0xbb] sm:$0x4] %vm3_vm0, %v1646_v60   ;;  %2337 = vst.msk [vmem:[%s5078_s1 + $0xfa] sm:$0x8] %vm3_vm0, %v1646_v60  }
 0x186   :  { %2338 = vst.msk [vmem:[%s5078_s1 + $0x139] sm:$0x10] %vm3_vm0, %v1646_v60   ;;  %2339 = vst.msk [vmem:[%s5078_s1 + $0x178] sm:$0x20] %vm3_vm0, %v1646_v60  }
 0x187   :  { %2340 = vst.msk [vmem:[%s5078_s1 + $0x1b7] sm:$0x40] %vm3_vm0, %v1646_v60   ;;  %2341 = vst.msk [vmem:[%s5078_s1 + $0x1f6] sm:$0x80] %vm3_vm0, %v1646_v60  }
 0x188   :  { %2353 = vst.msk [vmem:[%s5078_s1 + $0x23e] sm:$0x1] %vm3_vm0, %v1694_v61   ;;  %2344 = vst.msk [vmem:[%s5078_s1 + $0x3e] sm:$0x1] %vm3_vm0, %v1673_v62  }
 0x189   :  { %2345 = vst.msk [vmem:[%s5078_s1 + $0x7d] sm:$0x2] %vm3_vm0, %v1673_v62   ;;  %2346 = vst.msk [vmem:[%s5078_s1 + $0xbc] sm:$0x4] %vm3_vm0, %v1673_v62  }
 0x18a   :  { %2347 = vst.msk [vmem:[%s5078_s1 + $0xfb] sm:$0x8] %vm3_vm0, %v1673_v62   ;;  %2348 = vst.msk [vmem:[%s5078_s1 + $0x13a] sm:$0x10] %vm3_vm0, %v1673_v62  }
 0x18b   :  { %2349 = vst.msk [vmem:[%s5078_s1 + $0x179] sm:$0x20] %vm3_vm0, %v1673_v62   ;;  %2350 = vst.msk [vmem:[%s5078_s1 + $0x1b8] sm:$0x40] %vm3_vm0, %v1673_v62  }
 0x18c   :  { %2351 = vst.msk [vmem:[%s5078_s1 + $0x1f7] sm:$0x80] %vm3_vm0, %v1673_v62   ;;  %2363 = vst.msk [vmem:[%s5078_s1 + $0x23f] sm:$0x1] %vm3_vm0, %v1721_v63  }
 0x18d   :  { %2354 = vst.msk [vmem:[%s5078_s1 + $0x3f] sm:$0x1] %vm3_vm0, %v1700_v1   ;;  %2355 = vst.msk [vmem:[%s5078_s1 + $0x7e] sm:$0x2] %vm3_vm0, %v1700_v1  }
 0x18e   :  { %2356 = vst.msk [vmem:[%s5078_s1 + $0xbd] sm:$0x4] %vm3_vm0, %v1700_v1   ;;  %2357 = vst.msk [vmem:[%s5078_s1 + $0xfc] sm:$0x8] %vm3_vm0, %v1700_v1  }
 0x18f   :  { %2358 = vst.msk [vmem:[%s5078_s1 + $0x13b] sm:$0x10] %vm3_vm0, %v1700_v1   ;;  %2359 = vst.msk [vmem:[%s5078_s1 + $0x17a] sm:$0x20] %vm3_vm0, %v1700_v1  }
 0x190   :  { %2360 = vst.msk [vmem:[%s5078_s1 + $0x1b9] sm:$0x40] %vm3_vm0, %v1700_v1   ;;  %2361 = vst.msk [vmem:[%s5078_s1 + $0x1f8] sm:$0x80] %vm3_vm0, %v1700_v1  }

// kernel: tile.58
= control target key start
LH: loop header
LB: loop body
LE: loop exit
PB: predicated region body
PF: predicated region fallthrough
CT: control target
= control target key end

     0   :  { %s28_s0 = inlined_call_operand.vmem [shape: f32[32], index: 0, kind: input, shape index: {}]   ;;  %s29_s1 = inlined_call_operand.vmem [shape: f32[9,32], index: 1, kind: output, shape index: {}]  }
   0x1   :  { %v4_v0 = vld [vmem:[%s28_s0] ss:$0 sm:$0xff] }
   0x2   :  { %5 = vst [vmem:[%s29_s1] sm:$0xff] %v4_v0  ;;  %8 = vst [vmem:[%s29_s1 + $0x8] sm:$0xff] %v4_v0 }

// kernel: tile.2
= control target key start
LH: loop header
LB: loop body
LE: loop exit
PB: predicated region body
PF: predicated region fallthrough
CT: control target
= control target key end

     0   :  { %vm3_vm0 = vcmask 7168   ;;  %s1211_s8 = smov 126   ;;  %s1212_s9 = smov 127   ;;  %s2544_s0 = inlined_call_operand.vmem [shape: f32[9,32], index: 0, kind: input, shape index: {}]   ;;  %s2545_s1 = inlined_call_operand.vmem [shape: f32[288,1], index: 1, kind: output, shape index: {}]  }
   0x1   :  { %v1255_v0 = vld [vmem:[%s2544_s0] sm:$0xff]   ;;  %v888_v1 = vld [vmem:[%s2544_s0 + $0x8] sm:$0x1]   ;;  %s1213_s3 = smov 125   ;;  %s1214_s6 = smov 124  }
   0x2   :  { %52 = vrot.lane.b32.xlu1 %v1255_v0, %s1211_s8  ;;  %25 = vrot.lane.b32.xlu0 %v1255_v0, %s1212_s9  ;;  %4 = vst.msk [vmem:[%s2545_s1] sm:$0x1] %vm3_vm0, %v1255_v0   ;;  %861 = vst.msk [vmem:[%s2545_s1 + $0x1f] sm:$0x2] %vm3_vm0, %v1255_v0   ;;  %s1216_s12 = smov 122   ;;  %s1217_s15 = smov 121  }
   0x3   :  { %862 = vst.msk [vmem:[%s2545_s1 + $0x3e] sm:$0x4] %vm3_vm0, %v1255_v0   ;;  %863 = vst.msk [vmem:[%s2545_s1 + $0x5d] sm:$0x8] %vm3_vm0, %v1255_v0   ;;  %v878_v2 = vld [vmem:[%s2544_s0 + $0x8] sm:$0x1]  }
   0x4   :  { %864 = vst.msk [vmem:[%s2545_s1 + $0x7c] sm:$0x10] %vm3_vm0, %v1255_v0   ;;  %865 = vst.msk [vmem:[%s2545_s1 + $0x9b] sm:$0x20] %vm3_vm0, %v1255_v0   ;;  %v898_v3 = vld [vmem:[%s2544_s0 + $0x8] sm:$0x1]  }
   0x5   :  { %866 = vst.msk [vmem:[%s2545_s1 + $0xba] sm:$0x40] %vm3_vm0, %v1255_v0   ;;  %867 = vst.msk [vmem:[%s2545_s1 + $0xd9] sm:$0x80] %vm3_vm0, %v1255_v0   ;;  %v908_v4 = vld [vmem:[%s2544_s0 + $0x8] sm:$0x1]  }
   0x6   :  { %73 = vrot.lane.b32.xlu1 %v888_v1, %s1211_s8  ;;  %46 = vrot.lane.b32.xlu0 %v878_v2, %s1212_s9  ;;  %v918_v5 = vld [vmem:[%s2544_s0 + $0x8] sm:$0x1]   ;;  %s1215_s9 = smov 123   ;;  %s1218_s18 = smov 120  }
   0x7   :  { %v928_v6 = vld [vmem:[%s2544_s0 + $0x8] sm:$0x1]   ;;  %s1219_s21 = smov 119   ;;  %s1220_s24 = smov 118  }
   0x8   :  { %v938_v7 = vld [vmem:[%s2544_s0 + $0x8] sm:$0x1]   ;;  %s1221_s27 = smov 117   ;;  %s1222_s30 = smov 116  }
   0x9   :  { %v948_v8 = vld [vmem:[%s2544_s0 + $0x8] sm:$0x1]   ;;  %s1223_s4 = smov 115   ;;  %s1224_s7 = smov 114  }
   0xa   :  { %100 = vrot.lane.b32.xlu1 %v898_v3, %s1213_s3  ;;  %79 = vrot.lane.b32.xlu0 %v1255_v0, %s1213_s3  ;;  %v958_v9 = vld [vmem:[%s2544_s0 + $0x8] sm:$0x1]   ;;  %s1225_s10 = smov 113   ;;  %s1226_s13 = smov 112  }
   0xb   :  { %v968_v10 = vld [vmem:[%s2544_s0 + $0x8] sm:$0x1]   ;;  %s1227_s16 = smov 111   ;;  %s1228_s19 = smov 110  }
   0xc   :  { %v978_v11 = vld [vmem:[%s2544_s0 + $0x8] sm:$0x1]   ;;  %s1229_s22 = smov 109   ;;  %s1230_s25 = smov 108  }
   0xd   :  { %v988_v12 = vld [vmem:[%s2544_s0 + $0x8] sm:$0x1]   ;;  %s1231_s28 = smov 107   ;;  %s1232_s2 = smov 106  }
   0xe   :  { %127 = vrot.lane.b32.xlu1 %v908_v4, %s1214_s6  ;;  %106 = vrot.lane.b32.xlu0 %v1255_v0, %s1214_s6  ;;  %v998_v13 = vld [vmem:[%s2544_s0 + $0x8] sm:$0x1]   ;;  %s1233_s5 = smov 105   ;;  %s1234_s8 = smov 104  }
   0xf   :  { %v1008_v14 = vld [vmem:[%s2544_s0 + $0x8] sm:$0x1]   ;;  %s1235_s11 = smov 103   ;;  %s1236_s14 = smov 102  }
  0x10   :  { %v1018_v15 = vld [vmem:[%s2544_s0 + $0x8] sm:$0x1]   ;;  %s1237_s17 = smov 101  }
  0x11   :  { %v1028_v16 = vld [vmem:[%s2544_s0 + $0x8] sm:$0x1]  }
  0x12   :  { %154 = vrot.lane.b32.xlu1 %v918_v5, %s1215_s9  ;;  %133 = vrot.lane.b32.xlu0 %v1255_v0, %s1215_s9  ;;  %v1038_v17 = vld [vmem:[%s2544_s0 + $0x8] sm:$0x1]  }
  0x13   :  { %v1048_v18 = vld [vmem:[%s2544_s0 + $0x8] sm:$0x1]  }
  0x14   :  { %v1058_v19 = vld [vmem:[%s2544_s0 + $0x8] sm:$0x1]  }
  0x15   :  { %v1068_v20 = vld [vmem:[%s2544_s0 + $0x8] sm:$0x1]  }
  0x16   :  { %181 = vrot.lane.b32.xlu1 %v928_v6, %s1216_s12  ;;  %160 = vrot.lane.b32.xlu0 %v1255_v0, %s1216_s12  ;;  %v1078_v21 = vld [vmem:[%s2544_s0 + $0x8] sm:$0x1]  }
  0x17   :  { %v1088_v22 = vld [vmem:[%s2544_s0 + $0x8] sm:$0x1]  }
  0x18   :  { %v1098_v23 = vld [vmem:[%s2544_s0 + $0x8] sm:$0x1]  }
  0x19   :  { %v1108_v24 = vld [vmem:[%s2544_s0 + $0x8] sm:$0x1]  }
  0x1a   :  { %208 = vrot.lane.b32.xlu1 %v938_v7, %s1217_s15  ;;  %187 = vrot.lane.b32.xlu0 %v1255_v0, %s1217_s15  ;;  %v1118_v25 = vld [vmem:[%s2544_s0 + $0x8] sm:$0x1]  }
  0x1b   :  { %v1128_v26 = vld [vmem:[%s2544_s0 + $0x8] sm:$0x1]  }
  0x1c   :  { %v1138_v27 = vld [vmem:[%s2544_s0 + $0x8] sm:$0x1]  }
  0x1d   :  { %v1148_v28 = vld [vmem:[%s2544_s0 + $0x8] sm:$0x1]  }
  0x1e   :  { %235 = vrot.lane.b32.xlu1 %v948_v8, %s1218_s18  ;;  %214 = vrot.lane.b32.xlu0 %v1255_v0, %s1218_s18  ;;  %v868_v29 = vld [vmem:[%s2544_s0 + $0x8] sm:$0x1]  }
  0x1f   :  { %869 = vst.msk [vmem:[%s2545_s1 + $0x100] sm:$0x1] %vm3_vm0, %v868_v29   ;;  %v1158_v30 = vld [vmem:[%s2544_s0 + $0x8] sm:$0x1]  }
  0x20   :  { %v1168_v31 = vld [vmem:[%s2544_s0 + $0x8] sm:$0x1]  }
  0x21   :  { %v1178_v34 = vld [vmem:[%s2544_s0 + $0x8] sm:$0x1]  }
  0x22   :  { %262 = vrot.lane.b32.xlu1 %v958_v9, %s1219_s21  ;;  %241 = vrot.lane.b32.xlu0 %v1255_v0, %s1219_s21 }
  0x26   :  { %289 = vrot.lane.b32.xlu1 %v968_v10, %s1220_s24  ;;  %268 = vrot.lane.b32.xlu0 %v1255_v0, %s1220_s24  ;;  %s1238_s24 = smov 100  }
  0x2a   :  { %316 = vrot.lane.b32.xlu1 %v978_v11, %s1221_s27  ;;  %295 = vrot.lane.b32.xlu0 %v1255_v0, %s1221_s27  ;;  %s1239_s27 = smov 99  }
  0x2e   :  { %343 = vrot.lane.b32.xlu1 %v988_v12, %s1222_s30  ;;  %322 = vrot.lane.b32.xlu0 %v1255_v0, %s1222_s30 }
  0x32   :  { %370 = vrot.lane.b32.xlu1 %v998_v13, %s1223_s4  ;;  %349 = vrot.lane.b32.xlu0 %v1255_v0, %s1223_s4  ;;  %s1240_s4 = smov 98  }
  0x36   :  { %397 = vrot.lane.b32.xlu1 %v1008_v14, %s1224_s7  ;;  %376 = vrot.lane.b32.xlu0 %v1255_v0, %s1224_s7 }
  0x3a   :  { %424 = vrot.lane.b32.xlu1 %v1018_v15, %s1225_s10  ;;  %403 = vrot.lane.b32.xlu0 %v1255_v0, %s1225_s10  ;;  %s1241_s10 = smov 97  }
  0x3e   :  { %451 = vrot.lane.b32.xlu1 %v1028_v16, %s1226_s13  ;;  %430 = vrot.lane.b32.xlu0 %v1255_v0, %s1226_s13 }
  0x42   :  { %478 = vrot.lane.b32.xlu1 %v1038_v17, %s1227_s16  ;;  %457 = vrot.lane.b32.xlu0 %v1255_v0, %s1227_s16 }
  0x46   :  { %505 = vrot.lane.b32.xlu1 %v1048_v18, %s1228_s19  ;;  %484 = vrot.lane.b32.xlu0 %v1255_v0, %s1228_s19 }
  0x4a   :  { %532 = vrot.lane.b32.xlu1 %v1058_v19, %s1229_s22  ;;  %511 = vrot.lane.b32.xlu0 %v1255_v0, %s1229_s22 }
  0x4e   :  { %559 = vrot.lane.b32.xlu1 %v1068_v20, %s1230_s25  ;;  %538 = vrot.lane.b32.xlu0 %v1255_v0, %s1230_s25 }
  0x52   :  { %586 = vrot.lane.b32.xlu1 %v1078_v21, %s1231_s28  ;;  %565 = vrot.lane.b32.xlu0 %v1255_v0, %s1231_s28 }
  0x56   :  { %613 = vrot.lane.b32.xlu1 %v1088_v22, %s1232_s2  ;;  %592 = vrot.lane.b32.xlu0 %v1255_v0, %s1232_s2 }
  0x5a   :  { %640 = vrot.lane.b32.xlu1 %v1098_v23, %s1233_s5  ;;  %619 = vrot.lane.b32.xlu0 %v1255_v0, %s1233_s5 }
  0x5e   :  { %667 = vrot.lane.b32.xlu1 %v1108_v24, %s1234_s8  ;;  %646 = vrot.lane.b32.xlu0 %v1255_v0, %s1234_s8 }
  0x62   :  { %694 = vrot.lane.b32.xlu1 %v1118_v25, %s1235_s11  ;;  %673 = vrot.lane.b32.xlu0 %v1255_v0, %s1235_s11 }
  0x66   :  { %721 = vrot.lane.b32.xlu1 %v1128_v26, %s1236_s14  ;;  %700 = vrot.lane.b32.xlu0 %v1255_v0, %s1236_s14 }
  0x6a   :  { %748 = vrot.lane.b32.xlu1 %v1138_v27, %s1237_s17  ;;  %727 = vrot.lane.b32.xlu0 %v1255_v0, %s1237_s17 }
  0x6e   :  { %775 = vrot.lane.b32.xlu1 %v1148_v28, %s1238_s24  ;;  %754 = vrot.lane.b32.xlu0 %v1255_v0, %s1238_s24 }
  0x72   :  { %802 = vrot.lane.b32.xlu1 %v1158_v30, %s1239_s27  ;;  %781 = vrot.lane.b32.xlu0 %v1255_v0, %s1239_s27 }
  0x74   :  { %v53_v32 = vpop.permute.xlu1 %52   ;;  %v26_v33 = vpop.permute.xlu0 %25  }
  0x75   :  { %880 = vst.msk [vmem:[%s2545_s1 + $0x2] sm:$0x1] %vm3_vm0, %v53_v32   ;;  %881 = vst.msk [vmem:[%s2545_s1 + $0x21] sm:$0x2] %vm3_vm0, %v53_v32  }
  0x76   :  { %882 = vst.msk [vmem:[%s2545_s1 + $0x40] sm:$0x4] %vm3_vm0, %v53_v32   ;;  %883 = vst.msk [vmem:[%s2545_s1 + $0x5f] sm:$0x8] %vm3_vm0, %v53_v32   ;;  %829 = vrot.lane.b32.xlu1 %v1168_v31, %s1240_s4  ;;  %808 = vrot.lane.b32.xlu0 %v1255_v0, %s1240_s4 }
  0x77   :  { %884 = vst.msk [vmem:[%s2545_s1 + $0x7e] sm:$0x10] %vm3_vm0, %v53_v32   ;;  %885 = vst.msk [vmem:[%s2545_s1 + $0x9d] sm:$0x20] %vm3_vm0, %v53_v32  }
  0x78   :  { %886 = vst.msk [vmem:[%s2545_s1 + $0xbc] sm:$0x40] %vm3_vm0, %v53_v32   ;;  %887 = vst.msk [vmem:[%s2545_s1 + $0xdb] sm:$0x80] %vm3_vm0, %v53_v32   ;;  %v74_v35 = vpop.permute.xlu1 %73   ;;  %v47_v36 = vpop.permute.xlu0 %46  }
  0x79   :  { %870 = vst.msk [vmem:[%s2545_s1 + $0x1] sm:$0x1] %vm3_vm0, %v26_v33   ;;  %871 = vst.msk [vmem:[%s2545_s1 + $0x20] sm:$0x2] %vm3_vm0, %v26_v33  }
  0x7a   :  { %872 = vst.msk [vmem:[%s2545_s1 + $0x3f] sm:$0x4] %vm3_vm0, %v26_v33   ;;  %873 = vst.msk [vmem:[%s2545_s1 + $0x5e] sm:$0x8] %vm3_vm0, %v26_v33   ;;  %856 = vrot.lane.b32.xlu1 %v1178_v34, %s1241_s10  ;;  %835 = vrot.lane.b32.xlu0 %v1255_v0, %s1241_s10 }
  0x7b   :  { %874 = vst.msk [vmem:[%s2545_s1 + $0x7d] sm:$0x10] %vm3_vm0, %v26_v33   ;;  %875 = vst.msk [vmem:[%s2545_s1 + $0x9c] sm:$0x20] %vm3_vm0, %v26_v33  }
  0x7c   :  { %876 = vst.msk [vmem:[%s2545_s1 + $0xbb] sm:$0x40] %vm3_vm0, %v26_v33   ;;  %877 = vst.msk [vmem:[%s2545_s1 + $0xda] sm:$0x80] %vm3_vm0, %v26_v33   ;;  %v101_v37 = vpop.permute.xlu1 %100   ;;  %v80_v38 = vpop.permute.xlu0 %79  }
  0x7d   :  { %889 = vst.msk [vmem:[%s2545_s1 + $0x102] sm:$0x1] %vm3_vm0, %v74_v35   ;;  %879 = vst.msk [vmem:[%s2545_s1 + $0x101] sm:$0x1] %vm3_vm0, %v47_v36  }
  0x7e   :  { %899 = vst.msk [vmem:[%s2545_s1 + $0x103] sm:$0x1] %vm3_vm0, %v101_v37   ;;  %890 = vst.msk [vmem:[%s2545_s1 + $0x3] sm:$0x1] %vm3_vm0, %v80_v38  }
  0x7f   :  { %891 = vst.msk [vmem:[%s2545_s1 + $0x22] sm:$0x2] %vm3_vm0, %v80_v38   ;;  %892 = vst.msk [vmem:[%s2545_s1 + $0x41] sm:$0x4] %vm3_vm0, %v80_v38  }
  0x80   :  { %893 = vst.msk [vmem:[%s2545_s1 + $0x60] sm:$0x8] %vm3_vm0, %v80_v38   ;;  %894 = vst.msk [vmem:[%s2545_s1 + $0x7f] sm:$0x10] %vm3_vm0, %v80_v38   ;;  %v128_v39 = vpop.permute.xlu1 %127   ;;  %v107_v40 = vpop.permute.xlu0 %106  }
  0x81   :  { %895 = vst.msk [vmem:[%s2545_s1 + $0x9e] sm:$0x20] %vm3_vm0, %v80_v38   ;;  %896 = vst.msk [vmem:[%s2545_s1 + $0xbd] sm:$0x40] %vm3_vm0, %v80_v38  }
  0x82   :  { %897 = vst.msk [vmem:[%s2545_s1 + $0xdc] sm:$0x80] %vm3_vm0, %v80_v38   ;;  %909 = vst.msk [vmem:[%s2545_s1 + $0x104] sm:$0x1] %vm3_vm0, %v128_v39  }
  0x83   :  { %900 = vst.msk [vmem:[%s2545_s1 + $0x4] sm:$0x1] %vm3_vm0, %v107_v40   ;;  %901 = vst.msk [vmem:[%s2545_s1 + $0x23] sm:$0x2] %vm3_vm0, %v107_v40  }
  0x84   :  { %902 = vst.msk [vmem:[%s2545_s1 + $0x42] sm:$0x4] %vm3_vm0, %v107_v40   ;;  %903 = vst.msk [vmem:[%s2545_s1 + $0x61] sm:$0x8] %vm3_vm0, %v107_v40   ;;  %v155_v41 = vpop.permute.xlu1 %154   ;;  %v134_v42 = vpop.permute.xlu0 %133  }
  0x85   :  { %904 = vst.msk [vmem:[%s2545_s1 + $0x80] sm:$0x10] %vm3_vm0, %v107_v40   ;;  %905 = vst.msk [vmem:[%s2545_s1 + $0x9f] sm:$0x20] %vm3_vm0, %v107_v40  }
  0x86   :  { %906 = vst.msk [vmem:[%s2545_s1 + $0xbe] sm:$0x40] %vm3_vm0, %v107_v40   ;;  %907 = vst.msk [vmem:[%s2545_s1 + $0xdd] sm:$0x80] %vm3_vm0, %v107_v40  }
  0x87   :  { %919 = vst.msk [vmem:[%s2545_s1 + $0x105] sm:$0x1] %vm3_vm0, %v155_v41   ;;  %910 = vst.msk [vmem:[%s2545_s1 + $0x5] sm:$0x1] %vm3_vm0, %v134_v42  }
  0x88   :  { %911 = vst.msk [vmem:[%s2545_s1 + $0x24] sm:$0x2] %vm3_vm0, %v134_v42   ;;  %912 = vst.msk [vmem:[%s2545_s1 + $0x43] sm:$0x4] %vm3_vm0, %v134_v42   ;;  %v182_v43 = vpop.permute.xlu1 %181   ;;  %v161_v44 = vpop.permute.xlu0 %160  }
  0x89   :  { %913 = vst.msk [vmem:[%s2545_s1 + $0x62] sm:$0x8] %vm3_vm0, %v134_v42   ;;  %914 = vst.msk [vmem:[%s2545_s1 + $0x81] sm:$0x10] %vm3_vm0, %v134_v42  }
  0x8a   :  { %915 = vst.msk [vmem:[%s2545_s1 + $0xa0] sm:$0x20] %vm3_vm0, %v134_v42   ;;  %916 = vst.msk [vmem:[%s2545_s1 + $0xbf] sm:$0x40] %vm3_vm0, %v134_v42  }
  0x8b   :  { %917 = vst.msk [vmem:[%s2545_s1 + $0xde] sm:$0x80] %vm3_vm0, %v134_v42   ;;  %929 = vst.msk [vmem:[%s2545_s1 + $0x106] sm:$0x1] %vm3_vm0, %v182_v43  }
  0x8c   :  { %920 = vst.msk [vmem:[%s2545_s1 + $0x6] sm:$0x1] %vm3_vm0, %v161_v44   ;;  %921 = vst.msk [vmem:[%s2545_s1 + $0x25] sm:$0x2] %vm3_vm0, %v161_v44   ;;  %v209_v45 = vpop.permute.xlu1 %208   ;;  %v188_v46 = vpop.permute.xlu0 %187  }
  0x8d   :  { %922 = vst.msk [vmem:[%s2545_s1 + $0x44] sm:$0x4] %vm3_vm0, %v161_v44   ;;  %923 = vst.msk [vmem:[%s2545_s1 + $0x63] sm:$0x8] %vm3_vm0, %v161_v44  }
  0x8e   :  { %924 = vst.msk [vmem:[%s2545_s1 + $0x82] sm:$0x10] %vm3_vm0, %v161_v44   ;;  %925 = vst.msk [vmem:[%s2545_s1 + $0xa1] sm:$0x20] %vm3_vm0, %v161_v44  }
  0x8f   :  { %926 = vst.msk [vmem:[%s2545_s1 + $0xc0] sm:$0x40] %vm3_vm0, %v161_v44   ;;  %927 = vst.msk [vmem:[%s2545_s1 + $0xdf] sm:$0x80] %vm3_vm0, %v161_v44  }
  0x90   :  { %939 = vst.msk [vmem:[%s2545_s1 + $0x107] sm:$0x1] %vm3_vm0, %v209_v45   ;;  %930 = vst.msk [vmem:[%s2545_s1 + $0x7] sm:$0x1] %vm3_vm0, %v188_v46   ;;  %v236_v47 = vpop.permute.xlu1 %235   ;;  %v215_v48 = vpop.permute.xlu0 %214  }
  0x91   :  { %931 = vst.msk [vmem:[%s2545_s1 + $0x26] sm:$0x2] %vm3_vm0, %v188_v46   ;;  %932 = vst.msk [vmem:[%s2545_s1 + $0x45] sm:$0x4] %vm3_vm0, %v188_v46  }
  0x92   :  { %933 = vst.msk [vmem:[%s2545_s1 + $0x64] sm:$0x8] %vm3_vm0, %v188_v46   ;;  %934 = vst.msk [vmem:[%s2545_s1 + $0x83] sm:$0x10] %vm3_vm0, %v188_v46  }
  0x93   :  { %935 = vst.msk [vmem:[%s2545_s1 + $0xa2] sm:$0x20] %vm3_vm0, %v188_v46   ;;  %936 = vst.msk [vmem:[%s2545_s1 + $0xc1] sm:$0x40] %vm3_vm0, %v188_v46  }
  0x94   :  { %937 = vst.msk [vmem:[%s2545_s1 + $0xe0] sm:$0x80] %vm3_vm0, %v188_v46   ;;  %949 = vst.msk [vmem:[%s2545_s1 + $0x108] sm:$0x1] %vm3_vm0, %v236_v47   ;;  %v263_v49 = vpop.permute.xlu1 %262   ;;  %v242_v50 = vpop.permute.xlu0 %241  }
  0x95   :  { %940 = vst.msk [vmem:[%s2545_s1 + $0x8] sm:$0x1] %vm3_vm0, %v215_v48   ;;  %941 = vst.msk [vmem:[%s2545_s1 + $0x27] sm:$0x2] %vm3_vm0, %v215_v48  }
  0x96   :  { %942 = vst.msk [vmem:[%s2545_s1 + $0x46] sm:$0x4] %vm3_vm0, %v215_v48   ;;  %943 = vst.msk [vmem:[%s2545_s1 + $0x65] sm:$0x8] %vm3_vm0, %v215_v48  }
  0x97   :  { %944 = vst.msk [vmem:[%s2545_s1 + $0x84] sm:$0x10] %vm3_vm0, %v215_v48   ;;  %945 = vst.msk [vmem:[%s2545_s1 + $0xa3] sm:$0x20] %vm3_vm0, %v215_v48  }
  0x98   :  { %946 = vst.msk [vmem:[%s2545_s1 + $0xc2] sm:$0x40] %vm3_vm0, %v215_v48   ;;  %947 = vst.msk [vmem:[%s2545_s1 + $0xe1] sm:$0x80] %vm3_vm0, %v215_v48   ;;  %v290_v51 = vpop.permute.xlu1 %289   ;;  %v269_v52 = vpop.permute.xlu0 %268  }
  0x99   :  { %959 = vst.msk [vmem:[%s2545_s1 + $0x109] sm:$0x1] %vm3_vm0, %v263_v49   ;;  %950 = vst.msk [vmem:[%s2545_s1 + $0x9] sm:$0x1] %vm3_vm0, %v242_v50  }
  0x9a   :  { %951 = vst.msk [vmem:[%s2545_s1 + $0x28] sm:$0x2] %vm3_vm0, %v242_v50   ;;  %952 = vst.msk [vmem:[%s2545_s1 + $0x47] sm:$0x4] %vm3_vm0, %v242_v50  }
  0x9b   :  { %953 = vst.msk [vmem:[%s2545_s1 + $0x66] sm:$0x8] %vm3_vm0, %v242_v50   ;;  %954 = vst.msk [vmem:[%s2545_s1 + $0x85] sm:$0x10] %vm3_vm0, %v242_v50  }
  0x9c   :  { %955 = vst.msk [vmem:[%s2545_s1 + $0xa4] sm:$0x20] %vm3_vm0, %v242_v50   ;;  %956 = vst.msk [vmem:[%s2545_s1 + $0xc3] sm:$0x40] %vm3_vm0, %v242_v50   ;;  %v317_v53 = vpop.permute.xlu1 %316   ;;  %v296_v54 = vpop.permute.xlu0 %295  }
  0x9d   :  { %957 = vst.msk [vmem:[%s2545_s1 + $0xe2] sm:$0x80] %vm3_vm0, %v242_v50   ;;  %969 = vst.msk [vmem:[%s2545_s1 + $0x10a] sm:$0x1] %vm3_vm0, %v290_v51  }
  0x9e   :  { %960 = vst.msk [vmem:[%s2545_s1 + $0xa] sm:$0x1] %vm3_vm0, %v269_v52   ;;  %961 = vst.msk [vmem:[%s2545_s1 + $0x29] sm:$0x2] %vm3_vm0, %v269_v52  }
  0x9f   :  { %962 = vst.msk [vmem:[%s2545_s1 + $0x48] sm:$0x4] %vm3_vm0, %v269_v52   ;;  %963 = vst.msk [vmem:[%s2545_s1 + $0x67] sm:$0x8] %vm3_vm0, %v269_v52  }
  0xa0   :  { %964 = vst.msk [vmem:[%s2545_s1 + $0x86] sm:$0x10] %vm3_vm0, %v269_v52   ;;  %965 = vst.msk [vmem:[%s2545_s1 + $0xa5] sm:$0x20] %vm3_vm0, %v269_v52   ;;  %v344_v55 = vpop.permute.xlu1 %343   ;;  %v323_v56 = vpop.permute.xlu0 %322  }
  0xa1   :  { %966 = vst.msk [vmem:[%s2545_s1 + $0xc4] sm:$0x40] %vm3_vm0, %v269_v52   ;;  %967 = vst.msk [vmem:[%s2545_s1 + $0xe3] sm:$0x80] %vm3_vm0, %v269_v52  }
  0xa2   :  { %979 = vst.msk [vmem:[%s2545_s1 + $0x10b] sm:$0x1] %vm3_vm0, %v317_v53   ;;  %970 = vst.msk [vmem:[%s2545_s1 + $0xb] sm:$0x1] %vm3_vm0, %v296_v54  }
  0xa3   :  { %971 = vst.msk [vmem:[%s2545_s1 + $0x2a] sm:$0x2] %vm3_vm0, %v296_v54   ;;  %972 = vst.msk [vmem:[%s2545_s1 + $0x49] sm:$0x4] %vm3_vm0, %v296_v54  }
  0xa4   :  { %973 = vst.msk [vmem:[%s2545_s1 + $0x68] sm:$0x8] %vm3_vm0, %v296_v54   ;;  %974 = vst.msk [vmem:[%s2545_s1 + $0x87] sm:$0x10] %vm3_vm0, %v296_v54   ;;  %v371_v57 = vpop.permute.xlu1 %370   ;;  %v350_v58 = vpop.permute.xlu0 %349  }
  0xa5   :  { %975 = vst.msk [vmem:[%s2545_s1 + $0xa6] sm:$0x20] %vm3_vm0, %v296_v54   ;;  %976 = vst.msk [vmem:[%s2545_s1 + $0xc5] sm:$0x40] %vm3_vm0, %v296_v54  }
  0xa6   :  { %977 = vst.msk [vmem:[%s2545_s1 + $0xe4] sm:$0x80] %vm3_vm0, %v296_v54   ;;  %989 = vst.msk [vmem:[%s2545_s1 + $0x10c] sm:$0x1] %vm3_vm0, %v344_v55  }
  0xa7   :  { %980 = vst.msk [vmem:[%s2545_s1 + $0xc] sm:$0x1] %vm3_vm0, %v323_v56   ;;  %981 = vst.msk [vmem:[%s2545_s1 + $0x2b] sm:$0x2] %vm3_vm0, %v323_v56  }
  0xa8   :  { %982 = vst.msk [vmem:[%s2545_s1 + $0x4a] sm:$0x4] %vm3_vm0, %v323_v56   ;;  %983 = vst.msk [vmem:[%s2545_s1 + $0x69] sm:$0x8] %vm3_vm0, %v323_v56   ;;  %v398_v59 = vpop.permute.xlu1 %397   ;;  %v377_v60 = vpop.permute.xlu0 %376  }
  0xa9   :  { %984 = vst.msk [vmem:[%s2545_s1 + $0x88] sm:$0x10] %vm3_vm0, %v323_v56   ;;  %985 = vst.msk [vmem:[%s2545_s1 + $0xa7] sm:$0x20] %vm3_vm0, %v323_v56  }
  0xaa   :  { %986 = vst.msk [vmem:[%s2545_s1 + $0xc6] sm:$0x40] %vm3_vm0, %v323_v56   ;;  %987 = vst.msk [vmem:[%s2545_s1 + $0xe5] sm:$0x80] %vm3_vm0, %v323_v56  }
  0xab   :  { %999 = vst.msk [vmem:[%s2545_s1 + $0x10d] sm:$0x1] %vm3_vm0, %v371_v57   ;;  %990 = vst.msk [vmem:[%s2545_s1 + $0xd] sm:$0x1] %vm3_vm0, %v350_v58  }
  0xac   :  { %991 = vst.msk [vmem:[%s2545_s1 + $0x2c] sm:$0x2] %vm3_vm0, %v350_v58   ;;  %992 = vst.msk [vmem:[%s2545_s1 + $0x4b] sm:$0x4] %vm3_vm0, %v350_v58   ;;  %v425_v61 = vpop.permute.xlu1 %424   ;;  %v404_v62 = vpop.permute.xlu0 %403  }
  0xad   :  { %993 = vst.msk [vmem:[%s2545_s1 + $0x6a] sm:$0x8] %vm3_vm0, %v350_v58   ;;  %994 = vst.msk [vmem:[%s2545_s1 + $0x89] sm:$0x10] %vm3_vm0, %v350_v58  }
  0xae   :  { %995 = vst.msk [vmem:[%s2545_s1 + $0xa8] sm:$0x20] %vm3_vm0, %v350_v58   ;;  %996 = vst.msk [vmem:[%s2545_s1 + $0xc7] sm:$0x40] %vm3_vm0, %v350_v58  }
  0xaf   :  { %997 = vst.msk [vmem:[%s2545_s1 + $0xe6] sm:$0x80] %vm3_vm0, %v350_v58   ;;  %1009 = vst.msk [vmem:[%s2545_s1 + $0x10e] sm:$0x1] %vm3_vm0, %v398_v59  }
  0xb0   :  { %1000 = vst.msk [vmem:[%s2545_s1 + $0xe] sm:$0x1] %vm3_vm0, %v377_v60   ;;  %1001 = vst.msk [vmem:[%s2545_s1 + $0x2d] sm:$0x2] %vm3_vm0, %v377_v60   ;;  %v452_v63 = vpop.permute.xlu1 %451   ;;  %v431_v0 = vpop.permute.xlu0 %430  }
  0xb1   :  { %1002 = vst.msk [vmem:[%s2545_s1 + $0x4c] sm:$0x4] %vm3_vm0, %v377_v60   ;;  %1003 = vst.msk [vmem:[%s2545_s1 + $0x6b] sm:$0x8] %vm3_vm0, %v377_v60  }
  0xb2   :  { %1004 = vst.msk [vmem:[%s2545_s1 + $0x8a] sm:$0x10] %vm3_vm0, %v377_v60   ;;  %1005 = vst.msk [vmem:[%s2545_s1 + $0xa9] sm:$0x20] %vm3_vm0, %v377_v60  }
  0xb3   :  { %1006 = vst.msk [vmem:[%s2545_s1 + $0xc8] sm:$0x40] %vm3_vm0, %v377_v60   ;;  %1007 = vst.msk [vmem:[%s2545_s1 + $0xe7] sm:$0x80] %vm3_vm0, %v377_v60  }
  0xb4   :  { %1019 = vst.msk [vmem:[%s2545_s1 + $0x10f] sm:$0x1] %vm3_vm0, %v425_v61   ;;  %1010 = vst.msk [vmem:[%s2545_s1 + $0xf] sm:$0x1] %vm3_vm0, %v404_v62   ;;  %v479_v1 = vpop.permute.xlu1 %478   ;;  %v458_v2 = vpop.permute.xlu0 %457  }
  0xb5   :  { %1011 = vst.msk [vmem:[%s2545_s1 + $0x2e] sm:$0x2] %vm3_vm0, %v404_v62   ;;  %1012 = vst.msk [vmem:[%s2545_s1 + $0x4d] sm:$0x4] %vm3_vm0, %v404_v62  }
  0xb6   :  { %1013 = vst.msk [vmem:[%s2545_s1 + $0x6c] sm:$0x8] %vm3_vm0, %v404_v62   ;;  %1014 = vst.msk [vmem:[%s2545_s1 + $0x8b] sm:$0x10] %vm3_vm0, %v404_v62  }
  0xb7   :  { %1015 = vst.msk [vmem:[%s2545_s1 + $0xaa] sm:$0x20] %vm3_vm0, %v404_v62   ;;  %1016 = vst.msk [vmem:[%s2545_s1 + $0xc9] sm:$0x40] %vm3_vm0, %v404_v62  }
  0xb8   :  { %1017 = vst.msk [vmem:[%s2545_s1 + $0xe8] sm:$0x80] %vm3_vm0, %v404_v62   ;;  %1029 = vst.msk [vmem:[%s2545_s1 + $0x110] sm:$0x1] %vm3_vm0, %v452_v63   ;;  %v506_v3 = vpop.permute.xlu1 %505   ;;  %v485_v4 = vpop.permute.xlu0 %484  }
  0xb9   :  { %1020 = vst.msk [vmem:[%s2545_s1 + $0x10] sm:$0x1] %vm3_vm0, %v431_v0   ;;  %1021 = vst.msk [vmem:[%s2545_s1 + $0x2f] sm:$0x2] %vm3_vm0, %v431_v0  }
  0xba   :  { %1022 = vst.msk [vmem:[%s2545_s1 + $0x4e] sm:$0x4] %vm3_vm0, %v431_v0   ;;  %1023 = vst.msk [vmem:[%s2545_s1 + $0x6d] sm:$0x8] %vm3_vm0, %v431_v0  }
  0xbb   :  { %1024 = vst.msk [vmem:[%s2545_s1 + $0x8c] sm:$0x10] %vm3_vm0, %v431_v0   ;;  %1025 = vst.msk [vmem:[%s2545_s1 + $0xab] sm:$0x20] %vm3_vm0, %v431_v0  }
  0xbc   :  { %1026 = vst.msk [vmem:[%s2545_s1 + $0xca] sm:$0x40] %vm3_vm0, %v431_v0   ;;  %1027 = vst.msk [vmem:[%s2545_s1 + $0xe9] sm:$0x80] %vm3_vm0, %v431_v0   ;;  %v533_v5 = vpop.permute.xlu1 %532   ;;  %v512_v6 = vpop.permute.xlu0 %511  }
  0xbd   :  { %1039 = vst.msk [vmem:[%s2545_s1 + $0x111] sm:$0x1] %vm3_vm0, %v479_v1   ;;  %1030 = vst.msk [vmem:[%s2545_s1 + $0x11] sm:$0x1] %vm3_vm0, %v458_v2  }
  0xbe   :  { %1031 = vst.msk [vmem:[%s2545_s1 + $0x30] sm:$0x2] %vm3_vm0, %v458_v2   ;;  %1032 = vst.msk [vmem:[%s2545_s1 + $0x4f] sm:$0x4] %vm3_vm0, %v458_v2  }
  0xbf   :  { %1033 = vst.msk [vmem:[%s2545_s1 + $0x6e] sm:$0x8] %vm3_vm0, %v458_v2   ;;  %1034 = vst.msk [vmem:[%s2545_s1 + $0x8d] sm:$0x10] %vm3_vm0, %v458_v2  }
  0xc0   :  { %1035 = vst.msk [vmem:[%s2545_s1 + $0xac] sm:$0x20] %vm3_vm0, %v458_v2   ;;  %1036 = vst.msk [vmem:[%s2545_s1 + $0xcb] sm:$0x40] %vm3_vm0, %v458_v2   ;;  %v560_v7 = vpop.permute.xlu1 %559   ;;  %v539_v8 = vpop.permute.xlu0 %538  }
  0xc1   :  { %1037 = vst.msk [vmem:[%s2545_s1 + $0xea] sm:$0x80] %vm3_vm0, %v458_v2   ;;  %1049 = vst.msk [vmem:[%s2545_s1 + $0x112] sm:$0x1] %vm3_vm0, %v506_v3  }
  0xc2   :  { %1040 = vst.msk [vmem:[%s2545_s1 + $0x12] sm:$0x1] %vm3_vm0, %v485_v4   ;;  %1041 = vst.msk [vmem:[%s2545_s1 + $0x31] sm:$0x2] %vm3_vm0, %v485_v4  }
  0xc3   :  { %1042 = vst.msk [vmem:[%s2545_s1 + $0x50] sm:$0x4] %vm3_vm0, %v485_v4   ;;  %1043 = vst.msk [vmem:[%s2545_s1 + $0x6f] sm:$0x8] %vm3_vm0, %v485_v4  }
  0xc4   :  { %1044 = vst.msk [vmem:[%s2545_s1 + $0x8e] sm:$0x10] %vm3_vm0, %v485_v4   ;;  %1045 = vst.msk [vmem:[%s2545_s1 + $0xad] sm:$0x20] %vm3_vm0, %v485_v4   ;;  %v587_v9 = vpop.permute.xlu1 %586   ;;  %v566_v10 = vpop.permute.xlu0 %565  }
  0xc5   :  { %1046 = vst.msk [vmem:[%s2545_s1 + $0xcc] sm:$0x40] %vm3_vm0, %v485_v4   ;;  %1047 = vst.msk [vmem:[%s2545_s1 + $0xeb] sm:$0x80] %vm3_vm0, %v485_v4  }
  0xc6   :  { %1059 = vst.msk [vmem:[%s2545_s1 + $0x113] sm:$0x1] %vm3_vm0, %v533_v5   ;;  %1050 = vst.msk [vmem:[%s2545_s1 + $0x13] sm:$0x1] %vm3_vm0, %v512_v6  }
  0xc7   :  { %1051 = vst.msk [vmem:[%s2545_s1 + $0x32] sm:$0x2] %vm3_vm0, %v512_v6   ;;  %1052 = vst.msk [vmem:[%s2545_s1 + $0x51] sm:$0x4] %vm3_vm0, %v512_v6  }
  0xc8   :  { %1053 = vst.msk [vmem:[%s2545_s1 + $0x70] sm:$0x8] %vm3_vm0, %v512_v6   ;;  %1054 = vst.msk [vmem:[%s2545_s1 + $0x8f] sm:$0x10] %vm3_vm0, %v512_v6   ;;  %v614_v11 = vpop.permute.xlu1 %613   ;;  %v593_v12 = vpop.permute.xlu0 %592  }
  0xc9   :  { %1055 = vst.msk [vmem:[%s2545_s1 + $0xae] sm:$0x20] %vm3_vm0, %v512_v6   ;;  %1056 = vst.msk [vmem:[%s2545_s1 + $0xcd] sm:$0x40] %vm3_vm0, %v512_v6  }
  0xca   :  { %1057 = vst.msk [vmem:[%s2545_s1 + $0xec] sm:$0x80] %vm3_vm0, %v512_v6   ;;  %1069 = vst.msk [vmem:[%s2545_s1 + $0x114] sm:$0x1] %vm3_vm0, %v560_v7  }
  0xcb   :  { %1060 = vst.msk [vmem:[%s2545_s1 + $0x14] sm:$0x1] %vm3_vm0, %v539_v8   ;;  %1061 = vst.msk [vmem:[%s2545_s1 + $0x33] sm:$0x2] %vm3_vm0, %v539_v8  }
  0xcc   :  { %1062 = vst.msk [vmem:[%s2545_s1 + $0x52] sm:$0x4] %vm3_vm0, %v539_v8   ;;  %1063 = vst.msk [vmem:[%s2545_s1 + $0x71] sm:$0x8] %vm3_vm0, %v539_v8   ;;  %v641_v13 = vpop.permute.xlu1 %640   ;;  %v620_v14 = vpop.permute.xlu0 %619  }
  0xcd   :  { %1064 = vst.msk [vmem:[%s2545_s1 + $0x90] sm:$0x10] %vm3_vm0, %v539_v8   ;;  %1065 = vst.msk [vmem:[%s2545_s1 + $0xaf] sm:$0x20] %vm3_vm0, %v539_v8  }
  0xce   :  { %1066 = vst.msk [vmem:[%s2545_s1 + $0xce] sm:$0x40] %vm3_vm0, %v539_v8   ;;  %1067 = vst.msk [vmem:[%s2545_s1 + $0xed] sm:$0x80] %vm3_vm0, %v539_v8  }
  0xcf   :  { %1079 = vst.msk [vmem:[%s2545_s1 + $0x115] sm:$0x1] %vm3_vm0, %v587_v9   ;;  %1070 = vst.msk [vmem:[%s2545_s1 + $0x15] sm:$0x1] %vm3_vm0, %v566_v10  }
  0xd0   :  { %1071 = vst.msk [vmem:[%s2545_s1 + $0x34] sm:$0x2] %vm3_vm0, %v566_v10   ;;  %1072 = vst.msk [vmem:[%s2545_s1 + $0x53] sm:$0x4] %vm3_vm0, %v566_v10   ;;  %v668_v15 = vpop.permute.xlu1 %667   ;;  %v647_v16 = vpop.permute.xlu0 %646  }
  0xd1   :  { %1073 = vst.msk [vmem:[%s2545_s1 + $0x72] sm:$0x8] %vm3_vm0, %v566_v10   ;;  %1074 = vst.msk [vmem:[%s2545_s1 + $0x91] sm:$0x10] %vm3_vm0, %v566_v10  }
  0xd2   :  { %1075 = vst.msk [vmem:[%s2545_s1 + $0xb0] sm:$0x20] %vm3_vm0, %v566_v10   ;;  %1076 = vst.msk [vmem:[%s2545_s1 + $0xcf] sm:$0x40] %vm3_vm0, %v566_v10  }
  0xd3   :  { %1077 = vst.msk [vmem:[%s2545_s1 + $0xee] sm:$0x80] %vm3_vm0, %v566_v10   ;;  %1089 = vst.msk [vmem:[%s2545_s1 + $0x116] sm:$0x1] %vm3_vm0, %v614_v11  }
  0xd4   :  { %1080 = vst.msk [vmem:[%s2545_s1 + $0x16] sm:$0x1] %vm3_vm0, %v593_v12   ;;  %1081 = vst.msk [vmem:[%s2545_s1 + $0x35] sm:$0x2] %vm3_vm0, %v593_v12   ;;  %v695_v17 = vpop.permute.xlu1 %694   ;;  %v674_v18 = vpop.permute.xlu0 %673  }
  0xd5   :  { %1082 = vst.msk [vmem:[%s2545_s1 + $0x54] sm:$0x4] %vm3_vm0, %v593_v12   ;;  %1083 = vst.msk [vmem:[%s2545_s1 + $0x73] sm:$0x8] %vm3_vm0, %v593_v12  }
  0xd6   :  { %1084 = vst.msk [vmem:[%s2545_s1 + $0x92] sm:$0x10] %vm3_vm0, %v593_v12   ;;  %1085 = vst.msk [vmem:[%s2545_s1 + $0xb1] sm:$0x20] %vm3_vm0, %v593_v12  }
  0xd7   :  { %1086 = vst.msk [vmem:[%s2545_s1 + $0xd0] sm:$0x40] %vm3_vm0, %v593_v12   ;;  %1087 = vst.msk [vmem:[%s2545_s1 + $0xef] sm:$0x80] %vm3_vm0, %v593_v12  }
  0xd8   :  { %1099 = vst.msk [vmem:[%s2545_s1 + $0x117] sm:$0x1] %vm3_vm0, %v641_v13   ;;  %1090 = vst.msk [vmem:[%s2545_s1 + $0x17] sm:$0x1] %vm3_vm0, %v620_v14   ;;  %v722_v19 = vpop.permute.xlu1 %721   ;;  %v701_v20 = vpop.permute.xlu0 %700  }
  0xd9   :  { %1091 = vst.msk [vmem:[%s2545_s1 + $0x36] sm:$0x2] %vm3_vm0, %v620_v14   ;;  %1092 = vst.msk [vmem:[%s2545_s1 + $0x55] sm:$0x4] %vm3_vm0, %v620_v14  }
  0xda   :  { %1093 = vst.msk [vmem:[%s2545_s1 + $0x74] sm:$0x8] %vm3_vm0, %v620_v14   ;;  %1094 = vst.msk [vmem:[%s2545_s1 + $0x93] sm:$0x10] %vm3_vm0, %v620_v14  }
  0xdb   :  { %1095 = vst.msk [vmem:[%s2545_s1 + $0xb2] sm:$0x20] %vm3_vm0, %v620_v14   ;;  %1096 = vst.msk [vmem:[%s2545_s1 + $0xd1] sm:$0x40] %vm3_vm0, %v620_v14  }
  0xdc   :  { %1097 = vst.msk [vmem:[%s2545_s1 + $0xf0] sm:$0x80] %vm3_vm0, %v620_v14   ;;  %1109 = vst.msk [vmem:[%s2545_s1 + $0x118] sm:$0x1] %vm3_vm0, %v668_v15   ;;  %v749_v21 = vpop.permute.xlu1 %748   ;;  %v728_v22 = vpop.permute.xlu0 %727  }
  0xdd   :  { %1100 = vst.msk [vmem:[%s2545_s1 + $0x18] sm:$0x1] %vm3_vm0, %v647_v16   ;;  %1101 = vst.msk [vmem:[%s2545_s1 + $0x37] sm:$0x2] %vm3_vm0, %v647_v16  }
  0xde   :  { %1102 = vst.msk [vmem:[%s2545_s1 + $0x56] sm:$0x4] %vm3_vm0, %v647_v16   ;;  %1103 = vst.msk [vmem:[%s2545_s1 + $0x75] sm:$0x8] %vm3_vm0, %v647_v16  }
  0xdf   :  { %1104 = vst.msk [vmem:[%s2545_s1 + $0x94] sm:$0x10] %vm3_vm0, %v647_v16   ;;  %1105 = vst.msk [vmem:[%s2545_s1 + $0xb3] sm:$0x20] %vm3_vm0, %v647_v16  }
  0xe0   :  { %1106 = vst.msk [vmem:[%s2545_s1 + $0xd2] sm:$0x40] %vm3_vm0, %v647_v16   ;;  %1107 = vst.msk [vmem:[%s2545_s1 + $0xf1] sm:$0x80] %vm3_vm0, %v647_v16   ;;  %v776_v23 = vpop.permute.xlu1 %775   ;;  %v755_v24 = vpop.permute.xlu0 %754  }
  0xe1   :  { %1119 = vst.msk [vmem:[%s2545_s1 + $0x119] sm:$0x1] %vm3_vm0, %v695_v17   ;;  %1110 = vst.msk [vmem:[%s2545_s1 + $0x19] sm:$0x1] %vm3_vm0, %v674_v18  }
  0xe2   :  { %1111 = vst.msk [vmem:[%s2545_s1 + $0x38] sm:$0x2] %vm3_vm0, %v674_v18   ;;  %1112 = vst.msk [vmem:[%s2545_s1 + $0x57] sm:$0x4] %vm3_vm0, %v674_v18  }
  0xe3   :  { %1113 = vst.msk [vmem:[%s2545_s1 + $0x76] sm:$0x8] %vm3_vm0, %v674_v18   ;;  %1114 = vst.msk [vmem:[%s2545_s1 + $0x95] sm:$0x10] %vm3_vm0, %v674_v18  }
  0xe4   :  { %1115 = vst.msk [vmem:[%s2545_s1 + $0xb4] sm:$0x20] %vm3_vm0, %v674_v18   ;;  %1116 = vst.msk [vmem:[%s2545_s1 + $0xd3] sm:$0x40] %vm3_vm0, %v674_v18   ;;  %v803_v25 = vpop.permute.xlu1 %802   ;;  %v782_v26 = vpop.permute.xlu0 %781  }
  0xe5   :  { %1117 = vst.msk [vmem:[%s2545_s1 + $0xf2] sm:$0x80] %vm3_vm0, %v674_v18   ;;  %1129 = vst.msk [vmem:[%s2545_s1 + $0x11a] sm:$0x1] %vm3_vm0, %v722_v19  }
  0xe6   :  { %1120 = vst.msk [vmem:[%s2545_s1 + $0x1a] sm:$0x1] %vm3_vm0, %v701_v20   ;;  %1121 = vst.msk [vmem:[%s2545_s1 + $0x39] sm:$0x2] %vm3_vm0, %v701_v20  }
  0xe7   :  { %1122 = vst.msk [vmem:[%s2545_s1 + $0x58] sm:$0x4] %vm3_vm0, %v701_v20   ;;  %1123 = vst.msk [vmem:[%s2545_s1 + $0x77] sm:$0x8] %vm3_vm0, %v701_v20  }
  0xe8   :  { %1124 = vst.msk [vmem:[%s2545_s1 + $0x96] sm:$0x10] %vm3_vm0, %v701_v20   ;;  %1125 = vst.msk [vmem:[%s2545_s1 + $0xb5] sm:$0x20] %vm3_vm0, %v701_v20   ;;  %v830_v27 = vpop.permute.xlu1 %829   ;;  %v809_v28 = vpop.permute.xlu0 %808  }
  0xe9   :  { %1126 = vst.msk [vmem:[%s2545_s1 + $0xd4] sm:$0x40] %vm3_vm0, %v701_v20   ;;  %1127 = vst.msk [vmem:[%s2545_s1 + $0xf3] sm:$0x80] %vm3_vm0, %v701_v20  }
  0xea   :  { %1139 = vst.msk [vmem:[%s2545_s1 + $0x11b] sm:$0x1] %vm3_vm0, %v749_v21   ;;  %1130 = vst.msk [vmem:[%s2545_s1 + $0x1b] sm:$0x1] %vm3_vm0, %v728_v22  }
  0xeb   :  { %1131 = vst.msk [vmem:[%s2545_s1 + $0x3a] sm:$0x2] %vm3_vm0, %v728_v22   ;;  %1132 = vst.msk [vmem:[%s2545_s1 + $0x59] sm:$0x4] %vm3_vm0, %v728_v22  }
  0xec   :  { %1133 = vst.msk [vmem:[%s2545_s1 + $0x78] sm:$0x8] %vm3_vm0, %v728_v22   ;;  %1134 = vst.msk [vmem:[%s2545_s1 + $0x97] sm:$0x10] %vm3_vm0, %v728_v22   ;;  %v857_v29 = vpop.permute.xlu1 %856   ;;  %v836_v30 = vpop.permute.xlu0 %835  }
  0xed   :  { %1135 = vst.msk [vmem:[%s2545_s1 + $0xb6] sm:$0x20] %vm3_vm0, %v728_v22   ;;  %1136 = vst.msk [vmem:[%s2545_s1 + $0xd5] sm:$0x40] %vm3_vm0, %v728_v22  }
  0xee   :  { %1137 = vst.msk [vmem:[%s2545_s1 + $0xf4] sm:$0x80] %vm3_vm0, %v728_v22   ;;  %1149 = vst.msk [vmem:[%s2545_s1 + $0x11c] sm:$0x1] %vm3_vm0, %v776_v23  }
  0xef   :  { %1140 = vst.msk [vmem:[%s2545_s1 + $0x1c] sm:$0x1] %vm3_vm0, %v755_v24   ;;  %1141 = vst.msk [vmem:[%s2545_s1 + $0x3b] sm:$0x2] %vm3_vm0, %v755_v24  }
  0xf0   :  { %1142 = vst.msk [vmem:[%s2545_s1 + $0x5a] sm:$0x4] %vm3_vm0, %v755_v24   ;;  %1143 = vst.msk [vmem:[%s2545_s1 + $0x79] sm:$0x8] %vm3_vm0, %v755_v24  }
  0xf1   :  { %1144 = vst.msk [vmem:[%s2545_s1 + $0x98] sm:$0x10] %vm3_vm0, %v755_v24   ;;  %1145 = vst.msk [vmem:[%s2545_s1 + $0xb7] sm:$0x20] %vm3_vm0, %v755_v24  }
  0xf2   :  { %1146 = vst.msk [vmem:[%s2545_s1 + $0xd6] sm:$0x40] %vm3_vm0, %v755_v24   ;;  %1147 = vst.msk [vmem:[%s2545_s1 + $0xf5] sm:$0x80] %vm3_vm0, %v755_v24  }
  0xf3   :  { %1159 = vst.msk [vmem:[%s2545_s1 + $0x11d] sm:$0x1] %vm3_vm0, %v803_v25   ;;  %1150 = vst.msk [vmem:[%s2545_s1 + $0x1d] sm:$0x1] %vm3_vm0, %v782_v26  }
  0xf4   :  { %1151 = vst.msk [vmem:[%s2545_s1 + $0x3c] sm:$0x2] %vm3_vm0, %v782_v26   ;;  %1152 = vst.msk [vmem:[%s2545_s1 + $0x5b] sm:$0x4] %vm3_vm0, %v782_v26  }
  0xf5   :  { %1153 = vst.msk [vmem:[%s2545_s1 + $0x7a] sm:$0x8] %vm3_vm0, %v782_v26   ;;  %1154 = vst.msk [vmem:[%s2545_s1 + $0x99] sm:$0x10] %vm3_vm0, %v782_v26  }
  0xf6   :  { %1155 = vst.msk [vmem:[%s2545_s1 + $0xb8] sm:$0x20] %vm3_vm0, %v782_v26   ;;  %1156 = vst.msk [vmem:[%s2545_s1 + $0xd7] sm:$0x40] %vm3_vm0, %v782_v26  }
  0xf7   :  { %1157 = vst.msk [vmem:[%s2545_s1 + $0xf6] sm:$0x80] %vm3_vm0, %v782_v26   ;;  %1169 = vst.msk [vmem:[%s2545_s1 + $0x11e] sm:$0x1] %vm3_vm0, %v830_v27  }
  0xf8   :  { %1160 = vst.msk [vmem:[%s2545_s1 + $0x1e] sm:$0x1] %vm3_vm0, %v809_v28   ;;  %1161 = vst.msk [vmem:[%s2545_s1 + $0x3d] sm:$0x2] %vm3_vm0, %v809_v28  }
  0xf9   :  { %1162 = vst.msk [vmem:[%s2545_s1 + $0x5c] sm:$0x4] %vm3_vm0, %v809_v28   ;;  %1163 = vst.msk [vmem:[%s2545_s1 + $0x7b] sm:$0x8] %vm3_vm0, %v809_v28  }
  0xfa   :  { %1164 = vst.msk [vmem:[%s2545_s1 + $0x9a] sm:$0x10] %vm3_vm0, %v809_v28   ;;  %1165 = vst.msk [vmem:[%s2545_s1 + $0xb9] sm:$0x20] %vm3_vm0, %v809_v28  }
  0xfb   :  { %1166 = vst.msk [vmem:[%s2545_s1 + $0xd8] sm:$0x40] %vm3_vm0, %v809_v28   ;;  %1167 = vst.msk [vmem:[%s2545_s1 + $0xf7] sm:$0x80] %vm3_vm0, %v809_v28  }
  0xfc   :  { %1179 = vst.msk [vmem:[%s2545_s1 + $0x11f] sm:$0x1] %vm3_vm0, %v857_v29   ;;  %1170 = vst.msk [vmem:[%s2545_s1 + $0x1f] sm:$0x1] %vm3_vm0, %v836_v30  }
  0xfd   :  { %1171 = vst.msk [vmem:[%s2545_s1 + $0x3e] sm:$0x2] %vm3_vm0, %v836_v30   ;;  %1172 = vst.msk [vmem:[%s2545_s1 + $0x5d] sm:$0x4] %vm3_vm0, %v836_v30  }
  0xfe   :  { %1173 = vst.msk [vmem:[%s2545_s1 + $0x7c] sm:$0x8] %vm3_vm0, %v836_v30   ;;  %1174 = vst.msk [vmem:[%s2545_s1 + $0x9b] sm:$0x10] %vm3_vm0, %v836_v30  }
  0xff   :  { %1175 = vst.msk [vmem:[%s2545_s1 + $0xba] sm:$0x20] %vm3_vm0, %v836_v30   ;;  %1176 = vst.msk [vmem:[%s2545_s1 + $0xd9] sm:$0x40] %vm3_vm0, %v836_v30  }
 0x100   :  { %1177 = vst.msk [vmem:[%s2545_s1 + $0xf8] sm:$0x80] %vm3_vm0, %v836_v30  }

// kernel: generator_forward.6
= control target key start
LH: loop header
LB: loop body
LE: loop exit
PB: predicated region body
PF: predicated region fallthrough
CT: control target
= control target key end

     0   :  { %s3161_s21 = smov 0   ;;  %s3163_s22 = smov 0   ;;  %s4209_s0 = inlined_call_operand.vmem [shape: f32[576,1], index: 0, kind: input, shape index: {}]   ;;  %s4210_s1 = inlined_call_operand.vmem [shape: f32[576,1], index: 1, kind: input, shape index: {}]   ;;  %s4211_s2 = inlined_call_operand.vmem [shape: bf16[2,576,16], index: 2, kind: input, shape index: {}]   ;;  %s4212_s3 = inlined_call_operand.vmem [shape: bf16[128,576], index: 3, kind: input, shape index: {}]   ;;  %s4213_s4 = inlined_call_operand.vmem [shape: bf16[2,128,16], index: 4, kind: output, shape index: {0}]   ;;  %s4214_s5 = inlined_call_operand.vmem [shape: f32[2,1,128,1], index: 5, kind: output, shape index: {1}]   ;;  %s4215_s6 = inlined_call_operand.vmem [shape: f32[2,1,128,1], index: 6, kind: output, shape index: {2}]  }
   0x1   :  { %s3165_s23 = smov 0  }
   0x2 LB: > { %s29_s24 = sadd.s32 1, %s3119_s22  ;;  %p2573_p0 = scmp.ge.s32.totalorder %s3123_s23, 1  ;;  %s3123_s23 = sphi %s3165_s23, %s17_s23   ;;  %s3119_s22 = sphi %s3163_s22, %s4227_s22   ;;  %s3115_s21 = sphi %s3161_s21, %s4226_s21  }
   0x3   : > { %p31_p1 = scmp.ge.s32.totalorder %s29_s24, 2  ;;  %p240_p2 = scmp.lt.s32.totalorder %s3123_s23, 3 }
   0x5   : > { %s4229_s24 = smov (%p31_p1, %s29_s24), 0  ;;  %p241_p3 = pnand %p2573_p0, %p240_p2 }
   0x7   : > { %244 = sbr.rel (%p241_p3) target bundleno = 887 (0x377), region = 36 }
   0xe   : > { %v475_v0 = vld [vmem:[%s4209_s0 + $0x10] sm:$0xff]  ;;  %v473_v1 = vld [vmem:[%s4209_s0] sm:$0xff]  ;;  %v3125_v2 = vmov 0   ;;  %v476_v3 = vld [vmem:[%s4209_s0 + $0x18] sm:$0xff]  ;;  %p294_p4 = scmp.lt.s32.totalorder %s3115_s21, 1  ;;  %vm1837_vm0 = vcmask 523264  }
   0xf   : > { %3044 = vset.pattern.permute.xlu1 %v3125_v2  ;;  %3043 = vset.pattern.permute.xlu0 %v3125_v2  ;;  %v474_v4 = vld [vmem:[%s4209_s0 + $0x8] sm:$0xff]  ;;  %v477_v6 = vld [vmem:[%s4209_s0 + $0x20] sm:$0xff]  ;;  %v480_v7 = vld [vmem:[%s4209_s0 + $0x38] sm:$0xff]  ;;  %vm2234_vm1 = vcmask 130048   ;;  %vm2217_vm2 = vcmask 125952   ;;  %vm2283_vm3 = vcmask 7168  }
  0x10   : > { %557 = vperm.xlu1 %3044, %v475_v0   ;;  %547 = vperm.xlu0 %3043, %v473_v1   ;;  %v478_v5 = vld [vmem:[%s4209_s0 + $0x28] sm:$0xff]  ;;  %v479_v8 = vld [vmem:[%s4209_s0 + $0x30] sm:$0xff]  ;;  %v481_v10 = vld [vmem:[%s4209_s0 + $0x40] sm:$0xff]  ;;  %s4231_s21 = smov (!%p294_p4, %s3115_s21), 1 }
  0x11   : > { %v482_v9 = vld [vmem:[%s4209_s0 + $0x48] sm:$0xff]  ;;  %v484_v11 = vld [vmem:[%s4209_s0 + $0x58] sm:$0xff]  ;;  %v483_v12 = vld [vmem:[%s4209_s0 + $0x50] sm:$0xff]  ;;  %s3017_s17 = smul.u32 288, %s4231_s21  ;;  %s2648_s25 = sshll.u32 %s4231_s21, 7 }
  0x12   : > { %v486_v13 = vld [vmem:[%s4209_s0 + $0x68] sm:$0xff]  ;;  %v485_v14 = vld [vmem:[%s4209_s0 + $0x60] sm:$0xff]  ;;  %v488_v15 = vld [vmem:[%s4209_s0 + $0x78] sm:$0xff]  ;;  %s4129_s29 = scalar_lea.vmem %s4214_s5, %s2648_s25  ;;  %s4144_s7 = scalar_lea.vmem %s4215_s6, %s2648_s25 }
  0x13   : > { %v487_v16 = vld [vmem:[%s4209_s0 + $0x70] sm:$0xff]  ;;  %v490_v17 = vld [vmem:[%s4209_s0 + $0x88] sm:$0xff]  ;;  %v489_v18 = vld [vmem:[%s4209_s0 + $0x80] sm:$0xff]  ;;  %s3611_s28 = scalar_lea.vmem %s4211_s2, %s3017_s17  ;;  %s2647_s17 = sshll.u32 %s4231_s21, 6 }
  0x14   : > { %562 = vperm.xlu1 %3044, %v476_v3   ;;  %552 = vperm.xlu0 %3043, %v474_v4   ;;  %v492_v19 = vld [vmem:[%s4209_s0 + $0x98] sm:$0xff]  ;;  %v491_v20 = vld [vmem:[%s4209_s0 + $0x90] sm:$0xff]  ;;  %v494_v21 = vld [vmem:[%s4209_s0 + $0xa8] sm:$0xff]  ;;  %s3957_s20 = scalar_lea.vmem %s4213_s4, %s2647_s17 }
  0x15   : > { %v493_v22 = vld [vmem:[%s4209_s0 + $0xa0] sm:$0xff]  ;;  %v496_v23 = vld [vmem:[%s4209_s0 + $0xb8] sm:$0xff]  ;;  %v495_v24 = vld [vmem:[%s4209_s0 + $0xb0] sm:$0xff] }
  0x16   : > { %v498_v25 = vld [vmem:[%s4209_s0 + $0xc8] sm:$0xff]  ;;  %v497_v26 = vld [vmem:[%s4209_s0 + $0xc0] sm:$0xff]  ;;  %v500_v27 = vld [vmem:[%s4209_s0 + $0xd8] sm:$0xff] }
  0x17   : > { %v499_v28 = vld [vmem:[%s4209_s0 + $0xd0] sm:$0xff]  ;;  %v502_v29 = vld [vmem:[%s4209_s0 + $0xe8] sm:$0xff]  ;;  %v501_v30 = vld [vmem:[%s4209_s0 + $0xe0] sm:$0xff] }
  0x18   : > { %572 = vperm.xlu1 %3044, %v478_v5   ;;  %567 = vperm.xlu0 %3043, %v477_v6   ;;  %v504_v31 = vld [vmem:[%s4209_s0 + $0xf8] sm:$0xff]  ;;  %v503_v32 = vld [vmem:[%s4209_s0 + $0xf0] sm:$0xff]  ;;  %v506_v33 = vld [vmem:[%s4209_s0 + $0x108] sm:$0xff] }
  0x19   : > { %v505_v34 = vld [vmem:[%s4209_s0 + $0x100] sm:$0xff]  ;;  %v508_v35 = vld [vmem:[%s4209_s0 + $0x118] sm:$0xff]  ;;  %v507_v36 = vld [vmem:[%s4209_s0 + $0x110] sm:$0xff] }
  0x1a   : > { %v510_v37 = vld [vmem:[%s4209_s0 + $0x128] sm:$0xff]  ;;  %v509_v38 = vld [vmem:[%s4209_s0 + $0x120] sm:$0xff]  ;;  %v512_v39 = vld [vmem:[%s4209_s0 + $0x138] sm:$0xff] }
  0x1b   : > { %v511_v40 = vld [vmem:[%s4209_s0 + $0x130] sm:$0xff]  ;;  %v514_v41 = vld [vmem:[%s4209_s0 + $0x148] sm:$0xff]  ;;  %v513_v42 = vld [vmem:[%s4209_s0 + $0x140] sm:$0xff] }
  0x1c   : > { %582 = vperm.xlu1 %3044, %v480_v7   ;;  %577 = vperm.xlu0 %3043, %v479_v8   ;;  %v516_v43 = vld [vmem:[%s4209_s0 + $0x158] sm:$0xff]  ;;  %v515_v44 = vld [vmem:[%s4209_s0 + $0x150] sm:$0xff]  ;;  %v518_v45 = vld [vmem:[%s4209_s0 + $0x168] sm:$0xff] }
  0x1d   : > { %v517_v46 = vld [vmem:[%s4209_s0 + $0x160] sm:$0xff]  ;;  %v519_v48 = vld [vmem:[%s4209_s0 + $0x170] sm:$0xff]  ;;  %v522_v50 = vld [vmem:[%s4209_s0 + $0x188] sm:$0xff] }
  0x1e   : > { %v521_v47 = vld [vmem:[%s4209_s0 + $0x180] sm:$0xff]  ;;  %v994_v52 = vld [vmem:[%s4210_s1 + $0x88] sm:$0xff]  ;;  %v523_v57 = vld [vmem:[%s4209_s0 + $0x190] sm:$0xff] }
  0x1f   : > { %v993_v49 = vld [vmem:[%s4210_s1 + $0x80] sm:$0xff]  ;;  %v1026_v54 = vld [vmem:[%s4210_s1 + $0x188] sm:$0xff]  ;;  %v995_v59 = vld [vmem:[%s4210_s1 + $0x90] sm:$0xff] }
  0x20   : > { %592 = vperm.xlu1 %3044, %v482_v9   ;;  %587 = vperm.xlu0 %3043, %v481_v10   ;;  %v1025_v51 = vld [vmem:[%s4210_s1 + $0x180] sm:$0xff]  ;;  %v978_v56 = vld [vmem:[%s4210_s1 + $0x8] sm:$0xff]  ;;  %v524_v60 = vld [vmem:[%s4209_s0 + $0x198] sm:$0xff] }
  0x21   : > { %v977_v53 = vld [vmem:[%s4210_s1] sm:$0xff]  ;;  %v1010_v58 = vld [vmem:[%s4210_s1 + $0x108] sm:$0xff]  ;;  %v1027_v61 = vld [vmem:[%s4210_s1 + $0x190] sm:$0xff] }
  0x22   : > { %v1009_v55 = vld [vmem:[%s4210_s1 + $0x100] sm:$0xff]  ;;  %v996_v62 = vld [vmem:[%s4210_s1 + $0x98] sm:$0xff]  ;;  %v979_v63 = vld [vmem:[%s4210_s1 + $0x10] sm:$0xff] }
  0x23   : > { %v1028_v0 = vld [vmem:[%s4210_s1 + $0x198] sm:$0xff]  ;;  %v1011_v1 = vld [vmem:[%s4210_s1 + $0x110] sm:$0xff]  ;;  %v525_v5 = vld [vmem:[%s4209_s0 + $0x1a0] sm:$0xff] }
  0x24   : > { %602 = vperm.xlu1 %3044, %v484_v11   ;;  %597 = vperm.xlu0 %3043, %v483_v12   ;;  %v980_v2 = vld [vmem:[%s4210_s1 + $0x18] sm:$0xff]  ;;  %v997_v9 = vld [vmem:[%s4210_s1 + $0xa0] sm:$0xff]  ;;  %v526_v10 = vld [vmem:[%s4209_s0 + $0x1a8] sm:$0xff] }
  0x25   : > { %v1012_v6 = vld [vmem:[%s4210_s1 + $0x118] sm:$0xff] }
  0x28   : > { %612 = vperm.xlu1 %3044, %v486_v13   ;;  %607 = vperm.xlu0 %3043, %v485_v14   ;;  %v1029_v13 = vld [vmem:[%s4210_s1 + $0x1a0] sm:$0xff]  ;;  %v998_v14 = vld [vmem:[%s4210_s1 + $0xa8] sm:$0xff] }
  0x2c   : > { %622 = vperm.xlu1 %3044, %v488_v15   ;;  %617 = vperm.xlu0 %3043, %v487_v16  }
  0x30   : > { %632 = vperm.xlu1 %3044, %v490_v17   ;;  %627 = vperm.xlu0 %3043, %v489_v18   ;;  %v981_v17 = vld [vmem:[%s4210_s1 + $0x20] sm:$0xff]  ;;  %v1030_v18 = vld [vmem:[%s4210_s1 + $0x1a8] sm:$0xff] }
  0x34   : > { %642 = vperm.xlu1 %3044, %v492_v19   ;;  %637 = vperm.xlu0 %3043, %v491_v20  }
  0x38   : > { %652 = vperm.xlu1 %3044, %v494_v21   ;;  %647 = vperm.xlu0 %3043, %v493_v22   ;;  %v1013_v21 = vld [vmem:[%s4210_s1 + $0x120] sm:$0xff]  ;;  %v982_v22 = vld [vmem:[%s4210_s1 + $0x28] sm:$0xff] }
  0x3c   : > { %662 = vperm.xlu1 %3044, %v496_v23   ;;  %657 = vperm.xlu0 %3043, %v495_v24  }
  0x40   : > { %672 = vperm.xlu1 %3044, %v498_v25   ;;  %667 = vperm.xlu0 %3043, %v497_v26   ;;  %v527_v25 = vld [vmem:[%s4209_s0 + $0x1b0] sm:$0xff]  ;;  %v1014_v26 = vld [vmem:[%s4210_s1 + $0x128] sm:$0xff] }
  0x44   : > { %682 = vperm.xlu1 %3044, %v500_v27   ;;  %677 = vperm.xlu0 %3043, %v499_v28  }
  0x48   : > { %692 = vperm.xlu1 %3044, %v502_v29   ;;  %687 = vperm.xlu0 %3043, %v501_v30   ;;  %v999_v29 = vld [vmem:[%s4210_s1 + $0xb0] sm:$0xff]  ;;  %v528_v30 = vld [vmem:[%s4209_s0 + $0x1b8] sm:$0xff] }
  0x4c   : > { %702 = vperm.xlu1 %3044, %v504_v31   ;;  %697 = vperm.xlu0 %3043, %v503_v32  }
  0x50   : > { %712 = vperm.xlu1 %3044, %v506_v33   ;;  %707 = vperm.xlu0 %3043, %v505_v34   ;;  %v1031_v33 = vld [vmem:[%s4210_s1 + $0x1b0] sm:$0xff]  ;;  %v1000_v34 = vld [vmem:[%s4210_s1 + $0xb8] sm:$0xff] }
  0x54   : > { %722 = vperm.xlu1 %3044, %v508_v35   ;;  %717 = vperm.xlu0 %3043, %v507_v36  }
  0x58   : > { %732 = vperm.xlu1 %3044, %v510_v37   ;;  %727 = vperm.xlu0 %3043, %v509_v38   ;;  %v983_v37 = vld [vmem:[%s4210_s1 + $0x30] sm:$0xff]  ;;  %v1032_v38 = vld [vmem:[%s4210_s1 + $0x1b8] sm:$0xff] }
  0x5c   : > { %742 = vperm.xlu1 %3044, %v512_v39   ;;  %737 = vperm.xlu0 %3043, %v511_v40  }
  0x60   : > { %752 = vperm.xlu1 %3044, %v514_v41   ;;  %747 = vperm.xlu0 %3043, %v513_v42   ;;  %v1015_v41 = vld [vmem:[%s4210_s1 + $0x130] sm:$0xff]  ;;  %v984_v42 = vld [vmem:[%s4210_s1 + $0x38] sm:$0xff] }
  0x64   : > { %762 = vperm.xlu1 %3044, %v516_v43   ;;  %757 = vperm.xlu0 %3043, %v515_v44  }
  0x68   : > { %772 = vperm.xlu1 %3044, %v518_v45   ;;  %767 = vperm.xlu0 %3043, %v517_v46   ;;  %v529_v45 = vld [vmem:[%s4209_s0 + $0x1c0] sm:$0xff]  ;;  %v1016_v46 = vld [vmem:[%s4210_s1 + $0x138] sm:$0xff] }
  0x6c   : > { %787 = vperm.xlu1 %3044, %v521_v47   ;;  %777 = vperm.xlu0 %3043, %v519_v48  }
  0x70   : > { %1131 = vperm.xlu1 %3044, %v993_v49   ;;  %792 = vperm.xlu0 %3043, %v522_v50   ;;  %v1001_v49 = vld [vmem:[%s4210_s1 + $0xc0] sm:$0xff]  ;;  %v530_v50 = vld [vmem:[%s4209_s0 + $0x1c8] sm:$0xff] }
  0x74   : > { %1291 = vperm.xlu1 %3044, %v1025_v51   ;;  %1136 = vperm.xlu0 %3043, %v994_v52  }
  0x78   : > { %1051 = vperm.xlu1 %3044, %v977_v53   ;;  %1296 = vperm.xlu0 %3043, %v1026_v54   ;;  %v1033_v53 = vld [vmem:[%s4210_s1 + $0x1c0] sm:$0xff]  ;;  %v1002_v54 = vld [vmem:[%s4210_s1 + $0xc8] sm:$0xff] }
  0x7c   : > { %1211 = vperm.xlu1 %3044, %v1009_v55   ;;  %1056 = vperm.xlu0 %3043, %v978_v56  }
  0x80   : > { %797 = vperm.xlu1 %3044, %v523_v57   ;;  %1216 = vperm.xlu0 %3043, %v1010_v58   ;;  %v985_v57 = vld [vmem:[%s4210_s1 + $0x40] sm:$0xff]  ;;  %v1034_v58 = vld [vmem:[%s4210_s1 + $0x1c8] sm:$0xff] }
  0x84   : > { %1141 = vperm.xlu1 %3044, %v995_v59   ;;  %802 = vperm.xlu0 %3043, %v524_v60  }
  0x88   : > { %1301 = vperm.xlu1 %3044, %v1027_v61   ;;  %1146 = vperm.xlu0 %3043, %v996_v62   ;;  %v1017_v61 = vld [vmem:[%s4210_s1 + $0x140] sm:$0xff]  ;;  %v986_v62 = vld [vmem:[%s4210_s1 + $0x48] sm:$0xff] }
  0x8c   : > { %1061 = vperm.xlu1 %3044, %v979_v63   ;;  %1306 = vperm.xlu0 %3043, %v1028_v0  }
  0x8f   : > { %v3379_v3 = vpop.permute.xlu1 %557  ;;  %v3381_v4 = vpop.permute.xlu0 %547 }
  0x90   : > { %1221 = vperm.xlu1 %3044, %v1011_v1   ;;  %1066 = vperm.xlu0 %3043, %v980_v2   ;;  %v531_v1 = vld [vmem:[%s4209_s0 + $0x1d0] sm:$0xff]  ;;  %v1018_v2 = vld [vmem:[%s4210_s1 + $0x148] sm:$0xff] }
  0x93   : > { %v3389_v7 = vpop.permute.xlu1 %562  ;;  %v3391_v8 = vpop.permute.xlu0 %552 }
  0x94   : > { %807 = vperm.xlu1 %3044, %v525_v5   ;;  %1226 = vperm.xlu0 %3043, %v1012_v6  }
  0x97   : > { %v3399_v11 = vpop.permute.xlu1 %572  ;;  %v3401_v12 = vpop.permute.xlu0 %567 }
  0x98   : > { %1151 = vperm.xlu1 %3044, %v997_v9   ;;  %812 = vperm.xlu0 %3043, %v526_v10   ;;  %v1003_v9 = vld [vmem:[%s4210_s1 + $0xd0] sm:$0xff]  ;;  %v532_v10 = vld [vmem:[%s4209_s0 + $0x1d8] sm:$0xff] }
  0x9b   : > { %v3409_v15 = vpop.permute.xlu1 %582  ;;  %v3411_v16 = vpop.permute.xlu0 %577 }
  0x9c   : > { %1311 = vperm.xlu1 %3044, %v1029_v13   ;;  %1156 = vperm.xlu0 %3043, %v998_v14  }
  0x9f   : > { %v3419_v19 = vpop.permute.xlu1 %592  ;;  %v3421_v20 = vpop.permute.xlu0 %587 }
  0xa0   : > { %1071 = vperm.xlu1 %3044, %v981_v17   ;;  %1316 = vperm.xlu0 %3043, %v1030_v18   ;;  %v1035_v17 = vld [vmem:[%s4210_s1 + $0x1d0] sm:$0xff]  ;;  %v1004_v18 = vld [vmem:[%s4210_s1 + $0xd8] sm:$0xff] }
  0xa3   : > { %v3429_v23 = vpop.permute.xlu1 %602  ;;  %v3431_v24 = vpop.permute.xlu0 %597 }
  0xa4   : > { %1231 = vperm.xlu1 %3044, %v1013_v21   ;;  %1076 = vperm.xlu0 %3043, %v982_v22  }
  0xa7   : > { %v3439_v27 = vpop.permute.xlu1 %612  ;;  %v3441_v28 = vpop.permute.xlu0 %607 }
  0xa8   : > { %817 = vperm.xlu1 %3044, %v527_v25   ;;  %1236 = vperm.xlu0 %3043, %v1014_v26   ;;  %v987_v25 = vld [vmem:[%s4210_s1 + $0x50] sm:$0xff]  ;;  %v1036_v26 = vld [vmem:[%s4210_s1 + $0x1d8] sm:$0xff] }
  0xab   : > { %v3449_v31 = vpop.permute.xlu1 %622  ;;  %v3451_v32 = vpop.permute.xlu0 %617 }
  0xac   : > { %4216 = vst [vmem:[#allocation2_spill] sm:$0xff] %v3449_v31  ;;  %4217 = vst [vmem:[#allocation3_spill] sm:$0xff] %v3451_v32  ;;  %1161 = vperm.xlu1 %3044, %v999_v29   ;;  %822 = vperm.xlu0 %3043, %v528_v30   ;;  %v2825_v32 = vld [vmem:[%s3611_s28 + $0x80] sm:$0xff]   ;;  %v535_v31 = vld [vmem:[%s4209_s0 + $0x1f0] sm:$0xff] }
  0xaf   : > { %v3459_v35 = vpop.permute.xlu1 %632  ;;  %v3461_v36 = vpop.permute.xlu0 %627 }
  0xb0   : > { %1321 = vperm.xlu1 %3044, %v1031_v33   ;;  %1166 = vperm.xlu0 %3043, %v1000_v34   ;;  %v1019_v33 = vld [vmem:[%s4210_s1 + $0x150] sm:$0xff]  ;;  %v988_v34 = vld [vmem:[%s4210_s1 + $0x58] sm:$0xff] }
  0xb3   : > { %v3469_v39 = vpop.permute.xlu1 %642  ;;  %v3471_v40 = vpop.permute.xlu0 %637 }
  0xb4   : > { %1081 = vperm.xlu1 %3044, %v983_v37   ;;  %1326 = vperm.xlu0 %3043, %v1032_v38  }
  0xb7   : > { %v3479_v43 = vpop.permute.xlu1 %652  ;;  %v3481_v44 = vpop.permute.xlu0 %647 }
  0xb8   : > { %1241 = vperm.xlu1 %3044, %v1015_v41   ;;  %1086 = vperm.xlu0 %3043, %v984_v42   ;;  %v533_v41 = vld [vmem:[%s4209_s0 + $0x1e0] sm:$0xff]  ;;  %v1020_v42 = vld [vmem:[%s4210_s1 + $0x158] sm:$0xff] }
  0xbb   : > { %v3489_v47 = vpop.permute.xlu1 %662  ;;  %v3491_v48 = vpop.permute.xlu0 %657 }
  0xbc   : > { %827 = vperm.xlu1 %3044, %v529_v45   ;;  %1246 = vperm.xlu0 %3043, %v1016_v46  }
  0xbf   : > { %v3499_v51 = vpop.permute.xlu1 %672  ;;  %v3501_v52 = vpop.permute.xlu0 %667 }
  0xc0   : > { %1171 = vperm.xlu1 %3044, %v1001_v49   ;;  %832 = vperm.xlu0 %3043, %v530_v50   ;;  %v1005_v49 = vld [vmem:[%s4210_s1 + $0xe0] sm:$0xff]  ;;  %v534_v50 = vld [vmem:[%s4209_s0 + $0x1e8] sm:$0xff] }
  0xc3   : > { %v3509_v55 = vpop.permute.xlu1 %682  ;;  %v3511_v56 = vpop.permute.xlu0 %677 }
  0xc4   : > { %1331 = vperm.xlu1 %3044, %v1033_v53   ;;  %1176 = vperm.xlu0 %3043, %v1002_v54  }
  0xc7   : > { %v3519_v59 = vpop.permute.xlu1 %692  ;;  %v3521_v60 = vpop.permute.xlu0 %687 }
  0xc8   : > { %1091 = vperm.xlu1 %3044, %v985_v57   ;;  %1336 = vperm.xlu0 %3043, %v1034_v58   ;;  %v2817_v57 = vld [vmem:[%s3611_s28 + $0x40] sm:$0xff]  }
  0xc9   : > { %v1037_v58 = vld [vmem:[%s4210_s1 + $0x1e0] sm:$0xff] }
  0xcb   : > { %v3529_v63 = vpop.permute.xlu1 %702  ;;  %v3531_v0 = vpop.permute.xlu0 %697 }
  0xcc   : > { %4218 = vst [vmem:[#allocation4_spill] sm:$0xff] %v3529_v63  ;;  %4219 = vst [vmem:[#allocation5_spill] sm:$0xff] %v3531_v0  ;;  %1251 = vperm.xlu1 %3044, %v1017_v61   ;;  %1096 = vperm.xlu0 %3043, %v986_v62   ;;  %v1006_v61 = vld [vmem:[%s4210_s1 + $0xe8] sm:$0xff] }
  0xcd   : > { %v1022_v0 = vld [vmem:[%s4210_s1 + $0x168] sm:$0xff] }
  0xcf   : > { %v3539_v5 = vpop.permute.xlu1 %712  ;;  %v3541_v6 = vpop.permute.xlu0 %707 }
  0xd0   : > { %837 = vperm.xlu1 %3044, %v531_v1   ;;  %1256 = vperm.xlu0 %3043, %v1018_v2   ;;  %v2700_v2 = vunpack.c.l.bf16 %v2817_v57 }
  0xd3   : > { %v3549_v13 = vpop.permute.xlu1 %722  ;;  %v3551_v14 = vpop.permute.xlu0 %717 }
  0xd4   : > { %1181 = vperm.xlu1 %3044, %v1003_v9   ;;  %842 = vperm.xlu0 %3043, %v532_v10   ;;  %v2833_v9 = vld [vmem:[%s3611_s28 + $0xc0] sm:$0xff]  }
  0xd5   : > { %v989_v10 = vld [vmem:[%s4210_s1 + $0x60] sm:$0xff] }
  0xd7   : > { %v3559_v21 = vpop.permute.xlu1 %732  ;;  %v3561_v22 = vpop.permute.xlu0 %727 }
  0xd8   : > { %1341 = vperm.xlu1 %3044, %v1035_v17   ;;  %1186 = vperm.xlu0 %3043, %v1004_v18   ;;  %v1038_v17 = vld [vmem:[%s4210_s1 + $0x1e8] sm:$0xff]  ;;  %v2701_v18 = vunpack.c.h.bf16 %v2817_v57 }
  0xdb   : > { %v3569_v29 = vpop.permute.xlu1 %742  ;;  %v3571_v30 = vpop.permute.xlu0 %737 }
  0xdc   : > { %1101 = vperm.xlu1 %3044, %v987_v25   ;;  %1346 = vperm.xlu0 %3043, %v1036_v26  }
  0xdf   : > { %v3580_v37 = vpop.permute.xlu1 %752  ;;  %v3582_v38 = vpop.permute.xlu0 %747 }
  0xe0   : > { %1261 = vperm.xlu1 %3044, %v1019_v33   ;;  %1106 = vperm.xlu0 %3043, %v988_v34   ;;  %v921_v33 = vmul.f32 %v2700_v2, %v3461_v36  ;;  %v2764_v34 = vunpack.c.l.bf16 %v2833_v9 }
  0xe3   : > { %v3593_v45 = vpop.permute.xlu1 %762  ;;  %v3595_v46 = vpop.permute.xlu0 %757 }
  0xe4   : > { %847 = vperm.xlu1 %3044, %v533_v41   ;;  %1266 = vperm.xlu0 %3043, %v1020_v42   ;;  %v2667_v41 = vld [vmem:[%s3611_s28] sm:$0xff]  }
  0xe5   : > { %v1021_v42 = vld [vmem:[%s4210_s1 + $0x160] sm:$0xff]  ;;  %v2668_v36 = vunpack.c.l.bf16 %v2667_v41 }
  0xe7   : > { %v3604_v53 = vpop.permute.xlu1 %772  ;;  %v3606_v54 = vpop.permute.xlu0 %767 }
  0xe8   : > { %1191 = vperm.xlu1 %3044, %v1005_v49   ;;  %852 = vperm.xlu0 %3043, %v534_v50   ;;  %v990_v49 = vld [vmem:[%s4210_s1 + $0x68] sm:$0xff]  ;;  %v922_v50 = vmul.f32 %v2701_v18, %v3459_v35 }
  0xeb   : > { %v788_v62 = vpop.permute.xlu1 %787  ;;  %v3620_v1 = vpop.permute.xlu0 %777 }
  0xec   : > { %4220 = vst [vmem:[#allocation6_spill] sm:$0xff] %v3620_v1  ;;  %1351 = vperm.xlu1 %3044, %v1037_v58   ;;  %1196 = vperm.xlu0 %3043, %v1006_v61   ;;  %v2765_v58 = vunpack.c.h.bf16 %v2833_v9  ;;  %v953_v2 = vmul.f32 %v2764_v34, %v788_v62  ;;  %v905_v62 = vmul.f32 %v2668_v36, %v3381_v4  ;;  %v2818_v36 = vld [vmem:[%s3611_s28 + $0x48] sm:$0xff]  }
  0xef   : > { %v1132_v25 = vpop.permute.xlu1 %1131  ;;  %v793_v26 = vpop.permute.xlu0 %792 }
  0xf0   : > { %1111 = vperm.xlu1 %3044, %v989_v10   ;;  %1356 = vperm.xlu0 %3043, %v1038_v17   ;;  %v1425_v57 = vadd.f32 %v1132_v25, %v921_v33  ;;  %v2669_v17 = vunpack.c.h.bf16 %v2667_v41  ;;  %v954_v35 = vmul.f32 %v2765_v58, %v793_v26  ;;  %v536_v26 = vld [vmem:[%s4209_s0 + $0x1f8] sm:$0xff] }
  0xf2   : > { %v1497_v9 = vmax.f32 %v1425_v57, 0.0 }
  0xf3   : > { %v1292_v61 = vpop.permute.xlu1 %1291  ;;  %v1137_v1 = vpop.permute.xlu0 %1136 }
  0xf4   : > { %v1426_v10 = vadd.f32 %v1137_v1, %v922_v50  ;;  %1271 = vperm.xlu1 %3044, %v1021_v42   ;;  %1116 = vperm.xlu0 %3043, %v990_v49   ;;  %v1457_v18 = vadd.f32 %v1292_v61, %v953_v2  ;;  %v2732_v1 = vunpack.c.l.bf16 %v2825_v32  ;;  %v2733_v42 = vunpack.c.h.bf16 %v2825_v32  ;;  %v520_v49 = vld [vmem:[%s4209_s0 + $0x178] sm:$0xff] }
  0xf5   : > { %v906_v50 = vmul.f32 %v2669_v17, %v3391_v8  ;;  %v1008_v2 = vld [vmem:[%s4210_s1 + $0xf8] sm:$0xff]  ;;  %v1007_v8 = vld [vmem:[%s4210_s1 + $0xf0] sm:$0xff] }
  0xf6   : > { %v1498_v25 = vmax.f32 %v1426_v10, 0.0  ;;  %v1529_v4 = vmax.f32 %v1457_v18, 0.0  ;;  %v938_v10 = vmul.f32 %v2733_v42, %v3539_v5  ;;  %v1039_v5 = vld [vmem:[%s4210_s1 + $0x1f0] sm:$0xff] }
  0xf7   : > { %v1052_v33 = vpop.permute.xlu1 %1051  ;;  %v1297_v63 = vpop.permute.xlu0 %1296 }
  0xf8   : > { %v1458_v34 = vadd.f32 %v1297_v63, %v954_v35  ;;  %857 = vperm.xlu1 %3044, %v535_v31   ;;  %1276 = vperm.xlu0 %3043, %v1022_v0   ;;  %v1609_v41 = vpack.c.bf16 %v1498_v25, %v1497_v9  ;;  %v1409_v57 = vadd.f32 %v1052_v33, %v905_v62  ;;  %v2704_v25 = vunpack.c.l.bf16 %v2818_v36 }
  0xf9   : > { %v937_v0 = vmul.f32 %v2732_v1, %v3541_v6  ;;  %v2834_v1 = vld [vmem:[%s3611_s28 + $0xc8] sm:$0xff]  }
  0xfa   : > { %2845 = vmatprep.subr.bf16.mxu0 %v1609_v41  ;;  %v1530_v58 = vmax.f32 %v1458_v34, 0.0  ;;  %v1481_v17 = vmax.f32 %v1409_v57, 0.0  ;;  %v1040_v34 = vld [vmem:[%s4210_s1 + $0x1f8] sm:$0xff]  ;;  %v2705_v41 = vunpack.c.h.bf16 %v2818_v36  ;;  %v923_v57 = vmul.f32 %v2704_v25, %v3471_v40 }
  0xfb   : > { %v1212_v63 = vpop.permute.xlu1 %1211  ;;  %v1057_v31 = vpop.permute.xlu0 %1056  ;;  %v2769_v36 = vunpack.c.h.bf16 %v2834_v1 }
  0xfc   : > { %v1410_v61 = vadd.f32 %v1057_v31, %v906_v50  ;;  %782 = vperm.xlu1 %3044, %v520_v49   ;;  %862 = vperm.xlu0 %3043, %v536_v26   ;;  %v1625_v32 = vpack.c.bf16 %v1530_v58, %v1529_v4  ;;  %v1441_v35 = vadd.f32 %v1212_v63, %v937_v0  ;;  %v2768_v4 = vunpack.c.l.bf16 %v2834_v1  ;;  %v2810_v63 = vld [vmem:[%s3611_s28 + $0x8] sm:$0xff]   ;;  %v992_v31 = vld [vmem:[%s4210_s1 + $0x78] sm:$0xff]  ;;  %v991_v0 = vld [vmem:[%s4210_s1 + $0x70] sm:$0xff] }
  0xfe   : > { %v1482_v18 = vmax.f32 %v1410_v61, 0.0  ;;  %2909 = vmatprep.subr.bf16.mxu1 %v1625_v32  ;;  %v1513_v42 = vmax.f32 %v1441_v35, 0.0  ;;  %v924_v61 = vmul.f32 %v2705_v41, %v3469_v39  ;;  %v2673_v35 = vunpack.c.h.bf16 %v2810_v63  ;;  %v1023_v39 = vld [vmem:[%s4210_s1 + $0x170] sm:$0xff] }
  0xff   : > { %v798_v6 = vpop.permute.xlu1 %797  ;;  %v1217_v9 = vpop.permute.xlu0 %1216 }
 0x100   : > { %v1442_v33 = vadd.f32 %v1217_v9, %v938_v10  ;;  %1206 = vperm.xlu1 %3044, %v1008_v2   ;;  %1201 = vperm.xlu0 %3043, %v1007_v8   ;;  %v1601_v62 = vpack.c.bf16 %v1482_v18, %v1481_v17  ;;  %v2672_v8 = vunpack.c.l.bf16 %v2810_v63  ;;  %v955_v10 = vmul.f32 %v2768_v4, %v798_v6  ;;  %v2826_v18 = vld [vmem:[%s3611_s28 + $0x88] sm:$0xff]   ;;  %v1024_v9 = vld [vmem:[%s4210_s1 + $0x178] sm:$0xff] }
 0x101   : > { %v2736_v41 = vunpack.c.l.bf16 %v2826_v18  ;;  %v908_v4 = vmul.f32 %v2673_v35, %v3389_v7  ;;  %v1042_v7 = vld [vmem:[%s4210_s1 + $0x208] sm:$0xff] }
 0x102   : > { %v1514_v49 = vmax.f32 %v1442_v33, 0.0  ;;  %2846 = vmatpush3.bf16.msra.mxu0 %v1601_v62  ;;  %v907_v6 = vmul.f32 %v2672_v8, %v3379_v3  ;;  %v1041_v8 = vld [vmem:[%s4210_s1 + $0x200] sm:$0xff] }
 0x103   : > { %v1142_v26 = vpop.permute.xlu1 %1141  ;;  %v803_v50 = vpop.permute.xlu0 %802 }
 0x104   : > { %1366 = vperm.xlu1 %3044, %v1040_v34   ;;  %1361 = vperm.xlu0 %3043, %v1039_v5   ;;  %v1617_v58 = vpack.c.bf16 %v1514_v49, %v1513_v42  ;;  %v1427_v32 = vadd.f32 %v1142_v26, %v923_v57  ;;  %v956_v33 = vmul.f32 %v2769_v36, %v803_v50  ;;  %v2737_v26 = vunpack.c.h.bf16 %v2826_v18  ;;  %v538_v57 = vld [vmem:[%s4209_s0 + $0x208] sm:$0xff]  ;;  %v537_v50 = vld [vmem:[%s4209_s0 + $0x200] sm:$0xff] }
 0x105   : > { %v3050_v18 = vld [vmem:[%s4212_s3 + $0xc] ss:$20 sps:$4 sm:$0xff]  }
 0x106   : > { %2910 = vmatpush3.bf16.msra.mxu1 %v1617_v58  ;;  %v1499_v25 = vmax.f32 %v1427_v32, 0.0  ;;  %v939_v32 = vmul.f32 %v2736_v41, %v3551_v14  ;;  %1991 = vmatprep.mubr.bf16.mxu1 %v3050_v18 }
 0x107   : > { %v1302_v40 = vpop.permute.xlu1 %1301  ;;  %v1147_v2 = vpop.permute.xlu0 %1146 }
 0x108   : > { %v1428_v17 = vadd.f32 %v1147_v2, %v924_v61  ;;  %1126 = vperm.xlu1 %3044, %v992_v31   ;;  %1121 = vperm.xlu0 %3043, %v991_v0   ;;  %v1459_v62 = vadd.f32 %v1302_v40, %v955_v10  ;;  %v3047_v31 = vld [vmem:[%s4212_s3 + $0x4] ss:$20 sps:$4 sm:$0xff]   ;;  %v2819_v2 = vld [vmem:[%s3611_s28 + $0x50] sm:$0xff]   ;;  %v940_v10 = vmul.f32 %v2737_v26, %v3549_v13 }
 0x109   : > { %1894 = vmatprep.mubr.bf16.mxu0 %v3047_v31  ;;  %v540_v13 = vld [vmem:[%s4209_s0 + $0x218] sm:$0xff] }
 0x10a   : > { %v1500_v1 = vmax.f32 %v1428_v17, 0.0  ;;  %v1531_v58 = vmax.f32 %v1459_v62, 0.0 }
 0x10b   : > { %v1062_v34 = vpop.permute.xlu1 %1061  ;;  %v1307_v5 = vpop.permute.xlu0 %1306 }
 0x10c   : > { %v1460_v42 = vadd.f32 %v1307_v5, %v956_v33  ;;  %1286 = vperm.xlu1 %3044, %v1024_v9   ;;  %1281 = vperm.xlu0 %3043, %v1023_v39   ;;  %v1610_v49 = vpack.c.bf16 %v1500_v1, %v1499_v25  ;;  %v1411_v63 = vadd.f32 %v1062_v34, %v907_v6  ;;  %v2708_v25 = vunpack.c.l.bf16 %v2819_v2  ;;  %v2835_v1 = vld [vmem:[%s3611_s28 + $0xd0] sm:$0xff]  }
 0x10d   : > { %v539_v34 = vld [vmem:[%s4209_s0 + $0x210] sm:$0xff]  ;;  %v2709_v5 = vunpack.c.h.bf16 %v2819_v2 }
 0x10e   : > { %v1532_v3 = vmax.f32 %v1460_v42, 0.0  ;;  %2847 = vmatprep.subr.bf16.mxu0 %v1610_v49  ;;  %v1483_v17 = vmax.f32 %v1411_v63, 0.0  ;;  %v925_v26 = vmul.f32 %v2708_v25, %v3481_v44  ;;  %v1043_v63 = vld [vmem:[%s4210_s1 + $0x210] sm:$0xff] }
 0x10f   : > { %v1222_v0 = vpop.permute.xlu1 %1221  ;;  %v1067_v61 = vpop.permute.xlu0 %1066 }
 0x110   : > { %v1412_v36 = vadd.f32 %v1067_v61, %v908_v4  ;;  %872 = vperm.xlu1 %3044, %v538_v57   ;;  %867 = vperm.xlu0 %3043, %v537_v50   ;;  %v1626_v40 = vpack.c.bf16 %v1532_v3, %v1531_v58  ;;  %v1443_v35 = vadd.f32 %v1222_v0, %v939_v32  ;;  %v2772_v57 = vunpack.c.l.bf16 %v2835_v1  ;;  %v2811_v4 = vld [vmem:[%s3611_s28 + $0x10] sm:$0xff]   ;;  %v1044_v58 = vld [vmem:[%s4210_s1 + $0x218] sm:$0xff] }
 0x111   : > { %v926_v3 = vmul.f32 %v2709_v5, %v3479_v43  ;;  %v2773_v0 = vunpack.c.h.bf16 %v2835_v1  ;;  %v2676_v32 = vunpack.c.l.bf16 %v2811_v4  ;;  %v2677_v2 = vunpack.c.h.bf16 %v2811_v4  ;;  %v541_v43 = vld [vmem:[%s4209_s0 + $0x220] sm:$0xff]  ;;  %v2820_v4 = vld [vmem:[%s3611_s28 + $0x58] sm:$0xff]  }
 0x112   : > { %v1484_v14 = vmax.f32 %v1412_v36, 0.0  ;;  %2911 = vmatprep.subr.bf16.mxu1 %v1626_v40  ;;  %v1515_v6 = vmax.f32 %v1443_v35, 0.0 }
 0x113   : > { %v808_v9 = vpop.permute.xlu1 %807  ;;  %v1227_v39 = vpop.permute.xlu0 %1226  ;;  %v910_v5 = vmul.f32 %v2677_v2, %v3399_v11  ;;  %v543_v11 = vld [vmem:[%s4209_s0 + $0x230] sm:$0xff]  ;;  %v1048_v2 = vld [vmem:[%s4210_s1 + $0x238] sm:$0xff] }
 0x114   : > { %v1444_v33 = vadd.f32 %v1227_v39, %v940_v10  ;;  %1376 = vperm.xlu1 %3044, %v1042_v7   ;;  %1371 = vperm.xlu0 %3043, %v1041_v8   ;;  %v1602_v62 = vpack.c.bf16 %v1484_v14, %v1483_v17  ;;  %v957_v36 = vmul.f32 %v2772_v57, %v808_v9  ;;  %v2827_v7 = vld [vmem:[%s3611_s28 + $0x90] sm:$0xff]   ;;  %v542_v8 = vld [vmem:[%s4209_s0 + $0x228] sm:$0xff] }
 0x115   : > { %v909_v9 = vmul.f32 %v2676_v32, %v3401_v12  ;;  %v2740_v25 = vunpack.c.l.bf16 %v2827_v7  ;;  %v2741_v1 = vunpack.c.h.bf16 %v2827_v7  ;;  %v2713_v7 = vunpack.c.h.bf16 %v2820_v4 }
 0x116   : > { %v1516_v41 = vmax.f32 %v1444_v33, 0.0  ;;  %2848 = vmatpush3.bf16.msra.mxu0 %v1602_v62 }
 0x117   : > { %v1152_v42 = vpop.permute.xlu1 %1151  ;;  %v813_v49 = vpop.permute.xlu0 %812 }
 0x118   : > { %882 = vperm.xlu1 %3044, %v540_v13   ;;  %877 = vperm.xlu0 %3043, %v539_v34   ;;  %v1618_v50 = vpack.c.bf16 %v1516_v41, %v1515_v6  ;;  %v1429_v31 = vadd.f32 %v1152_v42, %v925_v26  ;;  %v958_v17 = vmul.f32 %v2773_v0, %v813_v49  ;;  %v1046_v13 = vld [vmem:[%s4210_s1 + $0x228] sm:$0xff]  ;;  %v1045_v34 = vld [vmem:[%s4210_s1 + $0x220] sm:$0xff] }
 0x119   : > { %v941_v26 = vmul.f32 %v2740_v25, %v3561_v22 }
 0x11a   : > { %2912 = vmatpush3.bf16.msra.mxu1 %v1618_v50  ;;  %v1501_v10 = vmax.f32 %v1429_v31, 0.0 }
 0x11b   : > { %v1312_v44 = vpop.permute.xlu1 %1311  ;;  %v1157_v61 = vpop.permute.xlu0 %1156 }
 0x11c   : > { %v1430_v40 = vadd.f32 %v1157_v61, %v926_v3  ;;  %1386 = vperm.xlu1 %3044, %v1044_v58   ;;  %1381 = vperm.xlu0 %3043, %v1043_v63   ;;  %v1461_v35 = vadd.f32 %v1312_v44, %v957_v36  ;;  %v544_v58 = vld [vmem:[%s4209_s0 + $0x238] sm:$0xff]  ;;  %v942_v63 = vmul.f32 %v2741_v1, %v3559_v21  ;;  %v2712_v61 = vunpack.c.l.bf16 %v2820_v4  ;;  %v1047_v21 = vld [vmem:[%s4210_s1 + $0x230] sm:$0xff] }
 0x11e   : > { %v1502_v14 = vmax.f32 %v1430_v40, 0.0  ;;  %v1533_v6 = vmax.f32 %v1461_v35, 0.0  ;;  %v2836_v40 = vld [vmem:[%s3611_s28 + $0xd8] sm:$0xff]   ;;  %v927_v35 = vmul.f32 %v2712_v61, %v3491_v48 }
 0x11f   : > { %v1072_v18 = vpop.permute.xlu1 %1071  ;;  %v1317_v39 = vpop.permute.xlu0 %1316 }
 0x120   : > { %v1462_v33 = vadd.f32 %v1317_v39, %v958_v17  ;;  %892 = vperm.xlu1 %3044, %v542_v8   ;;  %887 = vperm.xlu0 %3043, %v541_v43   ;;  %v1611_v62 = vpack.c.bf16 %v1502_v14, %v1501_v10  ;;  %v1413_v41 = vadd.f32 %v1072_v18, %v909_v9  ;;  %v2776_v14 = vunpack.c.l.bf16 %v2836_v40  ;;  %v2812_v39 = vld [vmem:[%s3611_s28 + $0x18] sm:$0xff]  }
 0x121   : > { %v928_v9 = vmul.f32 %v2713_v7, %v3489_v47 }
 0x122   : > { %v1534_v12 = vmax.f32 %v1462_v33, 0.0  ;;  %2849 = vmatprep.subr.bf16.mxu0 %v1611_v62  ;;  %v1485_v3 = vmax.f32 %v1413_v41, 0.0  ;;  %v2777_v33 = vunpack.c.h.bf16 %v2836_v40  ;;  %v2828_v41 = vld [vmem:[%s3611_s28 + $0x98] sm:$0xff]   ;;  %v2821_v40 = vld [vmem:[%s3611_s28 + $0x60] sm:$0xff]  }
 0x123   : > { %v1232_v42 = vpop.permute.xlu1 %1231  ;;  %v1077_v49 = vpop.permute.xlu0 %1076  ;;  %v2744_v47 = vunpack.c.l.bf16 %v2828_v41 }
 0x124   : > { %v1414_v57 = vadd.f32 %v1077_v49, %v910_v5  ;;  %1396 = vperm.xlu1 %3044, %v1046_v13   ;;  %1391 = vperm.xlu0 %3043, %v1045_v34   ;;  %v1627_v50 = vpack.c.bf16 %v1534_v12, %v1533_v6  ;;  %v1445_v31 = vadd.f32 %v1232_v42, %v941_v26  ;;  %v2680_v13 = vunpack.c.l.bf16 %v2812_v39 }
 0x125   : > { %v2681_v6 = vunpack.c.h.bf16 %v2812_v39  ;;  %v943_v61 = vmul.f32 %v2744_v47, %v3571_v30 }
 0x126   : > { %v1486_v0 = vmax.f32 %v1414_v57, 0.0  ;;  %2913 = vmatprep.subr.bf16.mxu1 %v1627_v50  ;;  %v1517_v8 = vmax.f32 %v1445_v31, 0.0  ;;  %v911_v50 = vmul.f32 %v2680_v13, %v3411_v16 }
 0x127   : > { %v818_v22 = vpop.permute.xlu1 %817  ;;  %v1237_v44 = vpop.permute.xlu0 %1236 }
 0x128   : > { %v1446_v32 = vadd.f32 %v1237_v44, %v942_v63  ;;  %902 = vperm.xlu1 %3044, %v544_v58   ;;  %897 = vperm.xlu0 %3043, %v543_v11   ;;  %v1603_v36 = vpack.c.bf16 %v1486_v0, %v1485_v3  ;;  %v959_v34 = vmul.f32 %v2776_v14, %v818_v22  ;;  %v2745_v11 = vunpack.c.h.bf16 %v2828_v41 }
 0x129   : > { %v912_v63 = vmul.f32 %v2681_v6, %v3409_v15  ;;  %v2717_v14 = vunpack.c.h.bf16 %v2821_v40 }
 0x12a   : > { %v1518_v43 = vmax.f32 %v1446_v32, 0.0  ;;  %2850 = vmatpush3.bf16.msra.mxu0 %v1603_v36  ;;  %v944_v16 = vmul.f32 %v2745_v11, %v3569_v29 }
 0x12b   : > { %v1162_v10 = vpop.permute.xlu1 %1161  ;;  %v823_v17 = vpop.permute.xlu0 %822 }
 0x12c   : > { %1406 = vperm.xlu1 %3044, %v1048_v2   ;;  %1401 = vperm.xlu0 %3043, %v1047_v21   ;;  %v1619_v18 = vpack.c.bf16 %v1518_v43, %v1517_v8  ;;  %v1431_v25 = vadd.f32 %v1162_v10, %v927_v35  ;;  %v960_v48 = vmul.f32 %v2777_v33, %v823_v17  ;;  %v2716_v43 = vunpack.c.l.bf16 %v2821_v40  ;;  %v2837_v35 = vld [vmem:[%s3611_s28 + $0xe0] sm:$0xff]  }
 0x12e   : > { %2914 = vmatpush3.bf16.msra.mxu1 %v1619_v18  ;;  %v1503_v12 = vmax.f32 %v1431_v25, 0.0  ;;  %v929_v29 = vmul.f32 %v2716_v43, %v3501_v52  ;;  %v2780_v25 = vunpack.c.l.bf16 %v2837_v35 }
 0x12f   : > { %v1322_v62 = vpop.permute.xlu1 %1321  ;;  %v1167_v1 = vpop.permute.xlu0 %1166 }
 0x130   : > { %v1432_v5 = vadd.f32 %v1167_v1, %v928_v9  ;;  %v1463_v42 = vadd.f32 %v1322_v62, %v959_v34  ;;  %v2813_v62 = vld [vmem:[%s3611_s28 + $0x20] sm:$0xff]   ;;  %v930_v1 = vmul.f32 %v2717_v14, %v3499_v51  ;;  %v2781_v34 = vunpack.c.h.bf16 %v2837_v35  ;;  %v2838_v35 = vld [vmem:[%s3611_s28 + $0xe8] sm:$0xff]  }
 0x131   : > { %v2684_v41 = vunpack.c.l.bf16 %v2813_v62 }
 0x132   : > { %v1504_v49 = vmax.f32 %v1432_v5, 0.0  ;;  %v1535_v3 = vmax.f32 %v1463_v42, 0.0  ;;  %v2685_v42 = vunpack.c.h.bf16 %v2813_v62 }
 0x133   : > { %v1082_v26 = vpop.permute.xlu1 %1081  ;;  %v1327_v57 = vpop.permute.xlu0 %1326 }
 0x134   : > { %v1612_v4 = vpack.c.bf16 %v1504_v49, %v1503_v12  ;;  %v1464_v58 = vadd.f32 %v1327_v57, %v960_v48  ;;  %v1415_v31 = vadd.f32 %v1082_v26, %v911_v50  ;;  %v2829_v49 = vld [vmem:[%s3611_s28 + $0xa0] sm:$0xff]  }
 0x135   : > { %v2748_v51 = vunpack.c.l.bf16 %v2829_v49 }
 0x136   : > { %v1536_v0 = vmax.f32 %v1464_v58, 0.0  ;;  %2851 = vmatprep.subr.bf16.mxu0 %v1612_v4  ;;  %v1487_v2 = vmax.f32 %v1415_v31, 0.0  ;;  %v913_v58 = vmul.f32 %v2684_v41, %v3421_v20  ;;  %v914_v31 = vmul.f32 %v2685_v42, %v3419_v19 }
 0x137   : > { %v1242_v22 = vpop.permute.xlu1 %1241  ;;  %v1087_v44 = vpop.permute.xlu0 %1086 }
 0x138   : > { %v1628_v32 = vpack.c.bf16 %v1536_v0, %v1535_v3  ;;  %v1416_v36 = vadd.f32 %v1087_v44, %v912_v63  ;;  %v1447_v21 = vadd.f32 %v1242_v22, %v943_v61  ;;  %v2749_v3 = vunpack.c.h.bf16 %v2829_v49 }
 0x13a   : > { %v1488_v7 = vmax.f32 %v1416_v36, 0.0  ;;  %2915 = vmatprep.subr.bf16.mxu1 %v1628_v32  ;;  %v1519_v18 = vmax.f32 %v1447_v21, 0.0  ;;  %v945_v36 = vmul.f32 %v2748_v51, %v3582_v38  ;;  %v946_v20 = vmul.f32 %v2749_v3, %v3580_v37 }
 0x13b   : > { %v828_v15 = vpop.permute.xlu1 %827  ;;  %v1247_v8 = vpop.permute.xlu0 %1246 }
 0x13c   : > { %v1604_v10 = vpack.c.bf16 %v1488_v7, %v1487_v2  ;;  %v1448_v17 = vadd.f32 %v1247_v8, %v944_v16  ;;  %v961_v12 = vmul.f32 %v2780_v25, %v828_v15  ;;  %v2822_v2 = vld [vmem:[%s3611_s28 + $0x68] sm:$0xff]  }
 0x13d   : > { %v2720_v43 = vunpack.c.l.bf16 %v2822_v2  ;;  %v2721_v14 = vunpack.c.h.bf16 %v2822_v2  ;;  %v2814_v25 = vld [vmem:[%s3611_s28 + $0x28] sm:$0xff]  }
 0x13e   : > { %v1520_v39 = vmax.f32 %v1448_v17, 0.0  ;;  %2852 = vmatpush3.bf16.msra.mxu0 %v1604_v10 }
 0x13f   : > { %v1172_v30 = vpop.permute.xlu1 %1171  ;;  %v833_v9 = vpop.permute.xlu0 %832  ;;  %v931_v37 = vmul.f32 %v2720_v43, %v3511_v56 }
 0x140   : > { %v1620_v33 = vpack.c.bf16 %v1520_v39, %v1519_v18  ;;  %v1433_v13 = vadd.f32 %v1172_v30, %v929_v29  ;;  %v962_v57 = vmul.f32 %v2781_v34, %v833_v9  ;;  %v2784_v9 = vunpack.c.l.bf16 %v2838_v35 }
 0x142   : > { %2916 = vmatpush3.bf16.msra.mxu1 %v1620_v33  ;;  %v1505_v26 = vmax.f32 %v1433_v13, 0.0  ;;  %v932_v33 = vmul.f32 %v2721_v14, %v3509_v55  ;;  %v2815_v14 = vld [vmem:[%s3611_s28 + $0x30] sm:$0xff]  }
 0x143   : > { %v1332_v5 = vpop.permute.xlu1 %1331  ;;  %v1177_v6 = vpop.permute.xlu0 %1176 }
 0x144   : > { %v1434_v48 = vadd.f32 %v1177_v6, %v930_v1  ;;  %v1465_v50 = vadd.f32 %v1332_v5, %v961_v12  ;;  %v2785_v1 = vunpack.c.h.bf16 %v2838_v35  ;;  %v2688_v5 = vunpack.c.l.bf16 %v2814_v25 }
 0x145   : > { %v2689_v12 = vunpack.c.h.bf16 %v2814_v25 }
 0x146   : > { %v1506_v47 = vmax.f32 %v1434_v48, 0.0  ;;  %v1537_v0 = vmax.f32 %v1465_v50, 0.0  ;;  %v2830_v48 = vld [vmem:[%s3611_s28 + $0xa8] sm:$0xff]  }
 0x147   : > { %v1092_v52 = vpop.permute.xlu1 %1091  ;;  %v1337_v4 = vpop.permute.xlu0 %1336  ;;  %v2752_v55 = vunpack.c.l.bf16 %v2830_v48  ;;  %v916_v51 = vmul.f32 %v2689_v12, %v3429_v23 }
 0x148   : > { %v1613_v11 = vpack.c.bf16 %v1506_v47, %v1505_v26  ;;  %v1466_v63 = vadd.f32 %v1337_v4, %v962_v57  ;;  %v1417_v22 = vadd.f32 %v1092_v52, %v913_v58  ;;  %v915_v47 = vmul.f32 %v2688_v5, %v3431_v24 }
 0x149   : > { %v2753_v58 = vunpack.c.h.bf16 %v2830_v48 }
 0x14a   : > { %v1538_v44 = vmax.f32 %v1466_v63, 0.0  ;;  %2853 = vmatprep.subr.bf16.mxu0 %v1613_v11  ;;  %v1489_v21 = vmax.f32 %v1417_v22, 0.0  ;;  %v947_v22 = vmul.f32 %v2752_v55, %v3595_v46 }
 0x14b   : > { %v1252_v61 = vpop.permute.xlu1 %1251  ;;  %v1097_v32 = vpop.permute.xlu0 %1096  ;;  %v948_v24 = vmul.f32 %v2753_v58, %v3593_v45 }
 0x14c   : > { %v1629_v40 = vpack.c.bf16 %v1538_v44, %v1537_v0  ;;  %v1418_v16 = vadd.f32 %v1097_v32, %v914_v31  ;;  %v1449_v7 = vadd.f32 %v1252_v61, %v945_v36  ;;  %v2823_v32 = vld [vmem:[%s3611_s28 + $0x70] sm:$0xff]  }
 0x14e   : > { %v1490_v15 = vmax.f32 %v1418_v16, 0.0  ;;  %2917 = vmatprep.subr.bf16.mxu1 %v1629_v40  ;;  %v1521_v18 = vmax.f32 %v1449_v7, 0.0 }
 0x14f   : > { %v838_v19 = vpop.permute.xlu1 %837  ;;  %v1257_v8 = vpop.permute.xlu0 %1256 }
 0x150   : > { %v1605_v10 = vpack.c.bf16 %v1490_v15, %v1489_v21  ;;  %v1450_v17 = vadd.f32 %v1257_v8, %v946_v20  ;;  %v963_v6 = vmul.f32 %v2784_v9, %v838_v19  ;;  %v2724_v20 = vunpack.c.l.bf16 %v2823_v32  ;;  %v2839_v15 = vld [vmem:[%s3611_s28 + $0xf0] sm:$0xff]  }
 0x151   : > { %v2725_v19 = vunpack.c.h.bf16 %v2823_v32  ;;  %v2692_v9 = vunpack.c.l.bf16 %v2815_v14 }
 0x152   : > { %v1522_v39 = vmax.f32 %v1450_v17, 0.0  ;;  %2854 = vmatpush3.bf16.msra.mxu0 %v1605_v10  ;;  %v933_v45 = vmul.f32 %v2724_v20, %v3521_v60  ;;  %v2788_v17 = vunpack.c.l.bf16 %v2839_v15 }
 0x153   : > { %v1182_v38 = vpop.permute.xlu1 %1181  ;;  %v843_v30 = vpop.permute.xlu0 %842 }
 0x154   : > { %v1621_v29 = vpack.c.bf16 %v1522_v39, %v1521_v18  ;;  %v1435_v62 = vadd.f32 %v1182_v38, %v931_v37  ;;  %v964_v49 = vmul.f32 %v2785_v1, %v843_v30  ;;  %v934_v18 = vmul.f32 %v2725_v19, %v3519_v59 }
 0x155   : > { %v2789_v38 = vunpack.c.h.bf16 %v2839_v15 }
 0x156   : > { %2918 = vmatpush3.bf16.msra.mxu1 %v1621_v29  ;;  %v1507_v42 = vmax.f32 %v1435_v62, 0.0  ;;  %v2831_v62 = vld [vmem:[%s3611_s28 + $0xb0] sm:$0xff]  }
 0x157   : > { %v1342_v13 = vpop.permute.xlu1 %1341  ;;  %v1187_v34 = vpop.permute.xlu0 %1186  ;;  %v2756_v12 = vunpack.c.l.bf16 %v2831_v62 }
 0x158   : > { %v1436_v41 = vadd.f32 %v1187_v34, %v932_v33  ;;  %v1467_v26 = vadd.f32 %v1342_v13, %v963_v6  ;;  %v2693_v33 = vunpack.c.h.bf16 %v2815_v14 }
 0x159   : > { %v949_v55 = vmul.f32 %v2756_v12, %v3606_v54  ;;  %v2840_v54 = vld [vmem:[%s3611_s28 + $0xf8] sm:$0xff]  }
 0x15a   : > { %v1508_v57 = vmax.f32 %v1436_v41, 0.0  ;;  %v1539_v11 = vmax.f32 %v1467_v26, 0.0  ;;  %v917_v41 = vmul.f32 %v2692_v9, %v3441_v28 }
 0x15b   : > { %v1102_v56 = vpop.permute.xlu1 %1101  ;;  %v1347_v50 = vpop.permute.xlu0 %1346 }
 0x15c   : > { %v1614_v52 = vpack.c.bf16 %v1508_v57, %v1507_v42  ;;  %v1468_v4 = vadd.f32 %v1347_v50, %v964_v49  ;;  %v1419_v63 = vadd.f32 %v1102_v56, %v915_v47  ;;  %v2757_v42 = vunpack.c.h.bf16 %v2831_v62  ;;  %v4224_v62 = vld [vmem:[#allocation3_spill] sm:$0xff] }
 0x15d   : > { %v918_v49 = vmul.f32 %v2693_v33, %v3439_v27 }
 0x15e   : > { %v1540_v3 = vmax.f32 %v1468_v4, 0.0  ;;  %2855 = vmatprep.subr.bf16.mxu0 %v1614_v52  ;;  %v1491_v36 = vmax.f32 %v1419_v63, 0.0  ;;  %v950_v28 = vmul.f32 %v2757_v42, %v3604_v53  ;;  %v2824_v63 = vld [vmem:[%s3611_s28 + $0x78] sm:$0xff]  }
 0x15f   : > { %v1262_v31 = vpop.permute.xlu1 %1261  ;;  %v1107_v0 = vpop.permute.xlu0 %1106 }
 0x160   : > { %v1630_v44 = vpack.c.bf16 %v1540_v3, %v1539_v11  ;;  %v1420_v61 = vadd.f32 %v1107_v0, %v916_v51  ;;  %v1451_v40 = vadd.f32 %v1262_v31, %v947_v22  ;;  %v2729_v22 = vunpack.c.h.bf16 %v2824_v63 }
 0x162   : > { %v1492_v16 = vmax.f32 %v1420_v61, 0.0  ;;  %2919 = vmatprep.subr.bf16.mxu1 %v1630_v44  ;;  %v1523_v8 = vmax.f32 %v1451_v40, 0.0  ;;  %v2728_v44 = vunpack.c.l.bf16 %v2824_v63  ;;  %v2816_v40 = vld [vmem:[%s3611_s28 + $0x38] sm:$0xff]  }
 0x163   : > { %v848_v23 = vpop.permute.xlu1 %847  ;;  %v1267_v2 = vpop.permute.xlu0 %1266 }
 0x164   : > { %v1606_v21 = vpack.c.bf16 %v1492_v16, %v1491_v36  ;;  %v1452_v7 = vadd.f32 %v1267_v2, %v948_v24  ;;  %v965_v29 = vmul.f32 %v2788_v17, %v848_v23  ;;  %v4221_v16 = vld [vmem:[#allocation4_spill] sm:$0xff]  ;;  %v4222_v2 = vld [vmem:[#allocation5_spill] sm:$0xff] }
 0x165   : > { %v936_v23 = vmul.f32 %v2729_v22, %v4221_v16  ;;  %v935_v20 = vmul.f32 %v2728_v44, %v4222_v2  ;;  %v3048_v22 = vld [vmem:[%s4212_s3 + $0x8] ss:$20 sps:$4 sm:$0xff]  }
 0x166   : > { %v1524_v43 = vmax.f32 %v1452_v7, 0.0  ;;  %2856 = vmatpush3.bf16.msra.mxu0 %v1606_v21  ;;  %v2792_v21 = vunpack.c.l.bf16 %v2840_v54  ;;  %v2793_v7 = vunpack.c.h.bf16 %v2840_v54  ;;  %v3053_v16 = vld [vmem:[%s4212_s3 + $0x28] ss:$20 sps:$4 sm:$0xff]  }
 0x167   : > { %v1192_v46 = vpop.permute.xlu1 %1191  ;;  %v853_v10 = vpop.permute.xlu0 %852 }
 0x168   : > { %v1622_v35 = vpack.c.bf16 %v1524_v43, %v1523_v8  ;;  %v1437_v39 = vadd.f32 %v1192_v46, %v933_v45  ;;  %v966_v13 = vmul.f32 %v2789_v38, %v853_v10  ;;  %v2697_v46 = vunpack.c.h.bf16 %v2816_v40  ;;  %v2832_v45 = vld [vmem:[%s3611_s28 + $0xb8] sm:$0xff]  }
 0x169   : > { %v2696_v10 = vunpack.c.l.bf16 %v2816_v40  ;;  %v2760_v33 = vunpack.c.l.bf16 %v2832_v45 }
 0x16a   : > { %2920 = vmatpush3.bf16.msra.mxu1 %v1622_v35  ;;  %v1509_v1 = vmax.f32 %v1437_v39, 0.0 }
 0x16b   : > { %v1352_v30 = vpop.permute.xlu1 %1351  ;;  %v1197_v37 = vpop.permute.xlu0 %1196 }
 0x16c   : > { %v1438_v25 = vadd.f32 %v1197_v37, %v934_v18  ;;  %v1469_v34 = vadd.f32 %v1352_v30, %v965_v29  ;;  %v4223_v29 = vld [vmem:[#allocation2_spill] sm:$0xff] }
 0x16e   : > { %v1510_v5 = vmax.f32 %v1438_v25, 0.0  ;;  %v1541_v26 = vmax.f32 %v1469_v34, 0.0  ;;  %v920_v25 = vmul.f32 %v2697_v46, %v4223_v29 }
 0x16f   : > { %v1112_v60 = vpop.permute.xlu1 %1111  ;;  %v1357_v6 = vpop.permute.xlu0 %1356 }
 0x170   : > { %v1615_v59 = vpack.c.bf16 %v1510_v5, %v1509_v1  ;;  %v1470_v48 = vadd.f32 %v1357_v6, %v966_v13  ;;  %v1421_v57 = vadd.f32 %v1112_v60, %v917_v41  ;;  %v919_v1 = vmul.f32 %v2696_v10, %v4224_v62 }
 0x171   : > { %v2761_v13 = vunpack.c.h.bf16 %v2832_v45  ;;  %v3060_v45 = vld [vmem:[%s4212_s3 + $0x5c] ss:$20 sps:$4 sm:$0xff]  }
 0x172   : > { %v1542_v56 = vmax.f32 %v1470_v48, 0.0  ;;  %2857 = vmatprep.subr.bf16.mxu0 %v1615_v59  ;;  %v1493_v58 = vmax.f32 %v1421_v57, 0.0  ;;  %v4225_v48 = vld [vmem:[#allocation6_spill] sm:$0xff] }
 0x173   : > { %v1272_v50 = vpop.permute.xlu1 %1271  ;;  %v1117_v47 = vpop.permute.xlu0 %1116  ;;  %v951_v42 = vmul.f32 %v2760_v33, %v4225_v48 }
 0x174   : > { %v1631_v52 = vpack.c.bf16 %v1542_v56, %v1541_v26  ;;  %v1422_v4 = vadd.f32 %v1117_v47, %v918_v49  ;;  %v1453_v51 = vadd.f32 %v1272_v50, %v949_v55  ;;  %v2841_v47 = vld [vmem:[%s3611_s28 + $0x100] sm:$0xff]  }
 0x175   : > { %v2796_v63 = vunpack.c.l.bf16 %v2841_v47 }
 0x176   : > { %v1494_v11 = vmax.f32 %v1422_v4, 0.0  ;;  %2921 = vmatprep.subr.bf16.mxu1 %v1631_v52  ;;  %v1525_v61 = vmax.f32 %v1453_v51, 0.0 }
 0x177   : > { %v858_v27 = vpop.permute.xlu1 %857  ;;  %v1277_v3 = vpop.permute.xlu0 %1276 }
 0x178   : > { %v1607_v31 = vpack.c.bf16 %v1494_v11, %v1493_v58  ;;  %v1454_v0 = vadd.f32 %v1277_v3, %v950_v28  ;;  %v967_v17 = vmul.f32 %v2792_v21, %v858_v27  ;;  %v3045_v28 = vld [vmem:[%s4212_s3] ss:$20 sps:$4 sm:$0xff]   ;;  %v2797_v11 = vunpack.c.h.bf16 %v2841_v47 }
 0x179   : > { %v3051_v27 = vld [vmem:[%s4212_s3 + $0x2c] ss:$20 sps:$4 sm:$0xff]  }
 0x17a   : > { %v1526_v32 = vmax.f32 %v1454_v0, 0.0  ;;  %2858 = vmatpush3.bf16.msra.mxu0 %v1607_v31 }
 0x17b   : > { %v783_v24 = vpop.permute.xlu1 %782  ;;  %v863_v36 = vpop.permute.xlu0 %862 }
 0x17c   : > { %v1623_v53 = vpack.c.bf16 %v1526_v32, %v1525_v61  ;;  %v968_v35 = vmul.f32 %v2793_v7, %v863_v36  ;;  %v952_v49 = vmul.f32 %v2761_v13, %v783_v24  ;;  %v3054_v32 = vld [vmem:[%s4212_s3 + $0x34] ss:$20 sps:$4 sm:$0xff]   ;;  %v3062_v13 = vld [vmem:[%s4212_s3 + $0x58] ss:$20 sps:$4 sm:$0xff]  }
 0x17d   : > { %v2842_v36 = vld [vmem:[%s3611_s28 + $0x108] sm:$0xff]  }
 0x17e   : > { %2922 = vmatpush3.bf16.msra.mxu1 %v1623_v53  ;;  %v2800_v21 = vunpack.c.l.bf16 %v2842_v36 }
 0x17f   : > { %v1207_v15 = vpop.permute.xlu1 %1206  ;;  %v1202_v19 = vpop.permute.xlu0 %1201 }
 0x180   : > { %v1440_v8 = vadd.f32 %v1207_v15, %v936_v23  ;;  %v1439_v43 = vadd.f32 %v1202_v19, %v935_v20  ;;  %v2801_v20 = vunpack.c.h.bf16 %v2842_v36  ;;  %v3081_v36 = vld [vmem:[%s4212_s3 + $0xf4] ss:$20 sps:$4 sm:$0xff]  }
 0x182   : > { %v1512_v14 = vmax.f32 %v1440_v8, 0.0  ;;  %v1511_v18 = vmax.f32 %v1439_v43, 0.0  ;;  %v3057_v8 = vld [vmem:[%s4212_s3 + $0x54] ss:$20 sps:$4 sm:$0xff]   ;;  %v3056_v43 = vld [vmem:[%s4212_s3 + $0x30] ss:$20 sps:$4 sm:$0xff]  }
 0x183   : > { %v1367_v39 = vpop.permute.xlu1 %1366  ;;  %v1362_v38 = vpop.permute.xlu0 %1361 }
 0x184   : > { %v1616_v30 = vpack.c.bf16 %v1512_v14, %v1511_v18  ;;  %v1472_v37 = vadd.f32 %v1367_v39, %v968_v35  ;;  %v1471_v9 = vadd.f32 %v1362_v38, %v967_v17  ;;  %v2843_v14 = vld [vmem:[%s3611_s28 + $0x110] sm:$0xff]  }
 0x185   : > { %v3059_v38 = vld [vmem:[%s4212_s3 + $0x50] ss:$20 sps:$4 sm:$0xff]   ;;  %v2804_v29 = vunpack.c.l.bf16 %v2843_v14 }
 0x186   : > { %v1544_v34 = vmax.f32 %v1472_v37, 0.0  ;;  %v1543_v5 = vmax.f32 %v1471_v9, 0.0  ;;  %2859 = vmatprep.subr.bf16.mxu0 %v1616_v30  ;;  %v2805_v9 = vunpack.c.h.bf16 %v2843_v14 }
 0x187   : > { %v1127_v60 = vpop.permute.xlu1 %1126  ;;  %v1122_v6 = vpop.permute.xlu0 %1121 }
 0x188   : > { %v1632_v41 = vpack.c.bf16 %v1544_v34, %v1543_v5  ;;  %v1424_v12 = vadd.f32 %v1127_v60, %v920_v25  ;;  %v1423_v59 = vadd.f32 %v1122_v6, %v919_v1  ;;  %v3063_v1 = vld [vmem:[%s4212_s3 + $0x7c] ss:$20 sps:$4 sm:$0xff]   ;;  %v3066_v60 = vld [vmem:[%s4212_s3 + $0x84] ss:$20 sps:$4 sm:$0xff]  }
 0x18a   : > { %v1496_v26 = vmax.f32 %v1424_v12, 0.0  ;;  %v1495_v57 = vmax.f32 %v1423_v59, 0.0  ;;  %2923 = vmatprep.subr.bf16.mxu1 %v1632_v41  ;;  %v2844_v12 = vld [vmem:[%s3611_s28 + $0x118] sm:$0xff]  }
 0x18b   : > { %v1287_v56 = vpop.permute.xlu1 %1286  ;;  %v1282_v50 = vpop.permute.xlu0 %1281 }
 0x18c   : > { %v1608_v55 = vpack.c.bf16 %v1496_v26, %v1495_v57  ;;  %v1456_v52 = vadd.f32 %v1287_v56, %v952_v49  ;;  %v1455_v4 = vadd.f32 %v1282_v50, %v951_v42  ;;  %v3065_v42 = vld [vmem:[%s4212_s3 + $0x78] ss:$20 sps:$4 sm:$0xff]   ;;  %v2809_v57 = vunpack.c.h.bf16 %v2844_v12 }
 0x18d   : > { %v2808_v56 = vunpack.c.l.bf16 %v2844_v12 }
 0x18e   : > { %v1528_v58 = vmax.f32 %v1456_v52, 0.0  ;;  %v1527_v51 = vmax.f32 %v1455_v4, 0.0  ;;  %2860 = vmatpush3.bf16.msra.mxu0 %v1608_v55  ;;  %v3069_v52 = vld [vmem:[%s4212_s3 + $0xa4] ss:$20 sps:$4 sm:$0xff]   ;;  %v3068_v4 = vld [vmem:[%s4212_s3 + $0x80] ss:$20 sps:$4 sm:$0xff]  }
 0x18f   : > { %v873_v3 = vpop.permute.xlu1 %872  ;;  %v868_v31 = vpop.permute.xlu0 %867 }
 0x190   : > { %v1624_v0 = vpack.c.bf16 %v1528_v58, %v1527_v51  ;;  %v970_v44 = vmul.f32 %v2797_v11, %v873_v3  ;;  %v969_v61 = vmul.f32 %v2796_v63, %v868_v31  ;;  %v3072_v51 = vld [vmem:[%s4212_s3 + $0xac] ss:$20 sps:$4 sm:$0xff]  }
 0x191   : > { %1895 = vmatmul.mubr.bf16.vlgmr.msra.gmra.mrb[0].mxu0 %v3045_v28  ;;  %v3071_v31 = vld [vmem:[%s4212_s3 + $0xa0] ss:$20 sps:$4 sm:$0xff]  }
 0x192   : > { %2924 = vmatpush3.bf16.msra.mxu1 %v1624_v0  ;;  %1902 = vmatprep.mubr.bf16.mxu0 %v3051_v27 }
 0x193   : > { %v1377_v54 = vpop.permute.xlu1 %1376  ;;  %v1372_v24 = vpop.permute.xlu0 %1371 }
 0x194   : > { %v1474_v53 = vadd.f32 %v1377_v54, %v970_v44  ;;  %v1473_v40 = vadd.f32 %v1372_v24, %v969_v61  ;;  %v3075_v61 = vld [vmem:[%s4212_s3 + $0xcc] ss:$20 sps:$4 sm:$0xff]   ;;  %v3078_v54 = vld [vmem:[%s4212_s3 + $0xd4] ss:$20 sps:$4 sm:$0xff]  }
 0x195   : > { %1992 = vmatmul.mubr.bf16.vlgmr.msra.gmra.mrb[0].mxu1 %v3048_v22  ;;  %v3077_v24 = vld [vmem:[%s4212_s3 + $0xc8] ss:$20 sps:$4 sm:$0xff]  }
 0x196   : > { %v1546_v23 = vmax.f32 %v1474_v53, 0.0  ;;  %v1545_v2 = vmax.f32 %v1473_v40, 0.0  ;;  %1999 = vmatprep.mubr.bf16.mxu1 %v3054_v32  ;;  %v3074_v32 = vld [vmem:[%s4212_s3 + $0xa8] ss:$20 sps:$4 sm:$0xff]   ;;  %v3080_v53 = vld [vmem:[%s4212_s3 + $0xd0] ss:$20 sps:$4 sm:$0xff]  }
 0x197   : > { %v883_v7 = vpop.permute.xlu1 %882  ;;  %v878_v15 = vpop.permute.xlu0 %877  ;;  %v3084_v40 = vld [vmem:[%s4212_s3 + $0xfc] ss:$20 sps:$4 sm:$0xff]  }
 0x198   : > { %v1633_v19 = vpack.c.bf16 %v1546_v23, %v1545_v2  ;;  %v972_v46 = vmul.f32 %v2801_v20, %v883_v7  ;;  %v971_v10 = vmul.f32 %v2800_v21, %v878_v15  ;;  %v3087_v23 = vld [vmem:[%s4212_s3 + $0x11c] ss:$20 sps:$4 sm:$0xff]   ;;  %v3086_v2 = vld [vmem:[%s4212_s3 + $0xf8] ss:$20 sps:$4 sm:$0xff]   ;;  %v3092_v15 = vld [vmem:[%s4212_s3 + $0x120] ss:$20 sps:$4 sm:$0xff]  }
 0x199   : > { %1903 = vmatmul.mubr.bf16.gmra.mrb[4].mxu0 %v3053_v16  ;;  %v3083_v16 = vld [vmem:[%s4212_s3 + $0xf0] ss:$20 sps:$4 sm:$0xff]   ;;  %v3089_v21 = vld [vmem:[%s4212_s3 + $0x118] ss:$20 sps:$4 sm:$0xff]  }
 0x19a   : > { %2985 = vmatprep.subr.bf16.mxu0 %v1633_v19  ;;  %3009 = vmatprep.subr.bf16.mxu1 %v1633_v19  ;;  %v3090_v20 = vld [vmem:[%s4212_s3 + $0x124] ss:$20 sps:$4 sm:$0xff]  }
 0x19b   : > { %v1387_v17 = vpop.permute.xlu1 %1386  ;;  %v1382_v35 = vpop.permute.xlu0 %1381  ;;  %2986 = vmatpush3.bf16.msra.mxu0 %v1633_v19  ;;  %3013 = vmatpush3.bf16.msra.mxu1 %v1633_v19  ;;  %v3093_v7 = vld [vmem:[%s4212_s3 + $0x10] ss:$20 sps:$4 sm:$0xff]  }
 0x19c   : > { %v1476_v18 = vadd.f32 %v1387_v17, %v972_v46  ;;  %v1475_v39 = vadd.f32 %v1382_v35, %v971_v10  ;;  %1910 = vmatprep.mubr.bf16.mxu0 %v3057_v8  ;;  %v3095_v19 = vld [vmem:[%s4212_s3 + $0xb0] ss:$20 sps:$4 sm:$0xff]   ;;  %v3094_v8 = vld [vmem:[%s4212_s3 + $0x38] ss:$20 sps:$4 sm:$0xff]   ;;  %v3099_v10 = vld [vmem:[%s4212_s3 + $0x100] ss:$20 sps:$4 sm:$0xff]  }
 0x19d   : > { %2000 = vmatmul.mubr.bf16.gmra.mrb[4].mxu1 %v3056_v43  ;;  %v3097_v43 = vld [vmem:[%s4212_s3 + $0x60] ss:$20 sps:$4 sm:$0xff]   ;;  %v3096_v46 = vld [vmem:[%s4212_s3 + $0xd8] ss:$20 sps:$4 sm:$0xff]   ;;  %v3100_v17 = vld [vmem:[%s4212_s3 + $0x128] ss:$20 sps:$4 sm:$0xff]  }
 0x19e   : > { %v1548_v30 = vmax.f32 %v1476_v18, 0.0  ;;  %v1547_v37 = vmax.f32 %v1475_v39, 0.0  ;;  %2007 = vmatprep.mubr.bf16.mxu1 %v3060_v45  ;;  %v3098_v45 = vld [vmem:[%s4212_s3 + $0x88] ss:$20 sps:$4 sm:$0xff]  }
 0x19f   : > { %v893_v25 = vpop.permute.xlu1 %892  ;;  %v888_v33 = vpop.permute.xlu0 %887 }
 0x1a0   : > { %v1634_v62 = vpack.c.bf16 %v1548_v30, %v1547_v37  ;;  %v974_v34 = vmul.f32 %v2805_v9, %v893_v25  ;;  %v973_v5 = vmul.f32 %v2804_v29, %v888_v33 }
 0x1a1   : > { %1911 = vmatmul.mubr.bf16.gmra.mrb[8].mxu0 %v3059_v38 }
 0x1a2   : > { %2987 = vmatprep.subr.bf16.mxu0 %v1634_v62  ;;  %3010 = vmatprep.subr.bf16.mxu1 %v1634_v62 }
 0x1a3   : > { %v1397_v6 = vpop.permute.xlu1 %1396  ;;  %v1392_v41 = vpop.permute.xlu0 %1391  ;;  %2988 = vmatpush3.bf16.msra.mxu0 %v1634_v62  ;;  %3014 = vmatpush3.bf16.msra.mxu1 %v1634_v62 }
 0x1a4   : > { %v1478_v59 = vadd.f32 %v1397_v6, %v974_v34  ;;  %v1477_v48 = vadd.f32 %v1392_v41, %v973_v5  ;;  %1918 = vmatprep.mubr.bf16.mxu0 %v3063_v1 }
 0x1a5   : > { %2008 = vmatmul.mubr.bf16.gmra.mrb[8].mxu1 %v3062_v13 }
 0x1a6   : > { %v1550_v49 = vmax.f32 %v1478_v59, 0.0  ;;  %v1549_v26 = vmax.f32 %v1477_v48, 0.0  ;;  %2015 = vmatprep.mubr.bf16.mxu1 %v3066_v60 }
 0x1a7   : > { %v903_v50 = vpop.permute.xlu1 %902  ;;  %v898_v47 = vpop.permute.xlu0 %897 }
 0x1a8   : > { %v1635_v55 = vpack.c.bf16 %v1550_v49, %v1549_v26  ;;  %v976_v28 = vmul.f32 %v2809_v57, %v903_v50  ;;  %v975_v58 = vmul.f32 %v2808_v56, %v898_v47 }
 0x1a9   : > { %1919 = vmatmul.mubr.bf16.gmra.mrb[12].mxu0 %v3065_v42 }
 0x1aa   : > { %2989 = vmatprep.subr.bf16.mxu0 %v1635_v55  ;;  %3011 = vmatprep.subr.bf16.mxu1 %v1635_v55 }
 0x1ab   : > { %v1407_v11 = vpop.permute.xlu1 %1406  ;;  %v1402_v63 = vpop.permute.xlu0 %1401  ;;  %2990 = vmatpush3.bf16.msra.mxu0 %v1635_v55  ;;  %3015 = vmatpush3.bf16.msra.mxu1 %v1635_v55 }
 0x1ac   : > { %v1480_v27 = vadd.f32 %v1407_v11, %v976_v28  ;;  %v1479_v3 = vadd.f32 %v1402_v63, %v975_v58  ;;  %1926 = vmatprep.mubr.bf16.mxu0 %v3069_v52 }
 0x1ad   : > { %2016 = vmatmul.mubr.bf16.gmra.mrb[12].mxu1 %v3068_v4 }
 0x1ae   : > { %v1552_v0 = vmax.f32 %v1480_v27, 0.0  ;;  %v1551_v22 = vmax.f32 %v1479_v3, 0.0  ;;  %2023 = vmatprep.mubr.bf16.mxu1 %v3072_v51 }
 0x1b0   : > { %v1636_v44 = vpack.c.bf16 %v1552_v0, %v1551_v22 }
 0x1b1   : > { %1927 = vmatmul.mubr.bf16.gmra.mrb[16].mxu0 %v3071_v31 }
 0x1b2   : > { %2991 = vmatprep.subr.bf16.mxu0 %v1636_v44  ;;  %3012 = vmatprep.subr.bf16.mxu1 %v1636_v44 }
 0x1b3   : > { %2992 = vmatpush3.bf16.msra.mxu0 %v1636_v44  ;;  %3016 = vmatpush3.bf16.msra.mxu1 %v1636_v44 }
 0x1b4   : > { %1934 = vmatprep.mubr.bf16.mxu0 %v3075_v61 }
 0x1b5   : > { %2024 = vmatmul.mubr.bf16.gmra.mrb[16].mxu1 %v3074_v32 }
 0x1b6   : > { %2031 = vmatprep.mubr.bf16.mxu1 %v3078_v54 }
 0x1b9   : > { %1935 = vmatmul.mubr.bf16.gmra.mrb[20].mxu0 %v3077_v24 }
 0x1ba   : > { %1942 = vmatprep.mubr.bf16.mxu0 %v3081_v36 }
 0x1bd   : > { %2032 = vmatmul.mubr.bf16.gmra.mrb[20].mxu1 %v3080_v53 }
 0x1be   : > { %2039 = vmatprep.mubr.bf16.mxu1 %v3084_v40 }
 0x1c1   : > { %1943 = vmatmul.mubr.bf16.gmra.mrb[24].mxu0 %v3083_v16 }
 0x1c2   : > { %1950 = vmatprep.mubr.bf16.mxu0 %v3087_v23 }
 0x1c5   : > { %2040 = vmatmul.mubr.bf16.gmra.mrb[24].mxu1 %v3086_v2 }
 0x1c6   : > { %2047 = vmatprep.mubr.bf16.mxu1 %v3090_v20 }
 0x1c9   : > { %1951 = vmatmul.mubr.bf16.gmra.mrb[28].mxu0 %v3089_v21 }
 0x1ca   : > { %2993 = vmatprep.mubr.msk.bf16.mxu0 %vm1837_vm0, %v3093_v7 }
 0x1cd   : > { %2048 = vmatmul.mubr.bf16.gmra.mrb[28].mxu1 %v3092_v15 }
 0x1ce   : > { %3001 = vmatprep.mubr.msk.bf16.mxu1 %vm1837_vm0, %v3095_v19 }
 0x1d1   : > { %2994 = vmatmul.mubr.msk.bf16.vlgmr.msra.gmra.mrb[32].mxu0 %vm1837_vm0, %v3094_v8 }
 0x1d2   : > { %2997 = vmatprep.mubr.msk.bf16.mxu0 %vm1837_vm0, %v3097_v43 }
 0x1d5   : > { %3002 = vmatmul.mubr.msk.bf16.vlgmr.msra.gmra.mrb[32].mxu1 %vm1837_vm0, %v3096_v46 }
 0x1d6   : > { %3005 = vmatprep.mubr.msk.bf16.mxu1 %vm1837_vm0, %v3099_v10 }
 0x1d9   : > { %2998 = vmatmul.mubr.msk.bf16.gmra.mrb[36].mxu0 %vm1837_vm0, %v3098_v45 }
 0x1dd   : > { %3006 = vmatmul.mubr.msk.bf16.gmra.mrb[36].mxu1 %vm1837_vm0, %v3100_v17 }
 0x264   : > { %v2861_v35 = vpop.f32.mrb[0].mxu0 }
 0x265   : > { %v2862_v14 = vpop.f32.mrb[1].mxu0 }
 0x266   : > { %v2863_v18 = vadd.f32 %v2862_v14, %v2861_v35  ;;  %v2864_v39 = vpop.f32.mrb[2].mxu0 }
 0x267   : > { %v2865_v38 = vpop.f32.mrb[3].mxu0 }
 0x268   : > { %v2925_v30 = vpop.f32.mrb[0].mxu1  ;;  %v2866_v37 = vadd.f32 %v2865_v38, %v2864_v39 }
 0x269   : > { %v2926_v9 = vpop.f32.mrb[1].mxu1 }
 0x26a   : > { %v2927_v29 = vadd.f32 %v2926_v9, %v2925_v30  ;;  %v2928_v25 = vpop.f32.mrb[2].mxu1 }
 0x26b   : > { %v2929_v33 = vpop.f32.mrb[3].mxu1 }
 0x26c   : > { %v2930_v62 = vadd.f32 %v2929_v33, %v2928_v25  ;;  %v2867_v1 = vpop.f32.mrb[4].mxu0  ;;  %v3928_v13 = vadd.f32 %v2927_v29, %v2863_v18 }
 0x26d   : > { %v2868_v34 = vpop.f32.mrb[5].mxu0 }
 0x26e   : > { %v2869_v5 = vadd.f32 %v2868_v34, %v2867_v1  ;;  %v2870_v60 = vpop.f32.mrb[6].mxu0  ;;  %v3930_v6 = vadd.f32 %v2930_v62, %v2866_v37 }
 0x26f   : > { %v2871_v41 = vpop.f32.mrb[7].mxu0 }
 0x270   : > { %v2931_v12 = vpop.f32.mrb[4].mxu1  ;;  %v2872_v59 = vadd.f32 %v2871_v41, %v2870_v60 }
 0x271   : > { %v2932_v48 = vpop.f32.mrb[5].mxu1 }
 0x272   : > { %v2933_v42 = vadd.f32 %v2932_v48, %v2931_v12  ;;  %v2934_v49 = vpop.f32.mrb[6].mxu1 }
 0x273   : > { %v2935_v26 = vpop.f32.mrb[7].mxu1 }
 0x274   : > { %v2936_v57 = vadd.f32 %v2935_v26, %v2934_v49  ;;  %v2873_v56 = vpop.f32.mrb[8].mxu0  ;;  %v3932_v50 = vadd.f32 %v2933_v42, %v2869_v5 }
 0x275   : > { %v2874_v47 = vpop.f32.mrb[9].mxu0 }
 0x276   : > { %v2875_v55 = vadd.f32 %v2874_v47, %v2873_v56  ;;  %v2876_v52 = vpop.f32.mrb[10].mxu0  ;;  %v3934_v4 = vadd.f32 %v2936_v57, %v2872_v59 }
 0x277   : > { %v2877_v28 = vpop.f32.mrb[11].mxu0 }
 0x278   : > { %v2937_v58 = vpop.f32.mrb[8].mxu1  ;;  %v2878_v51 = vadd.f32 %v2877_v28, %v2876_v52 }
 0x279   : > { %v2938_v11 = vpop.f32.mrb[9].mxu1 }
 0x27a   : > { %v2939_v63 = vadd.f32 %v2938_v11, %v2937_v58  ;;  %v2940_v27 = vpop.f32.mrb[10].mxu1 }
 0x27b   : > { %v2941_v3 = vpop.f32.mrb[11].mxu1 }
 0x27c   : > { %v2942_v31 = vadd.f32 %v2941_v3, %v2940_v27  ;;  %v2879_v0 = vpop.f32.mrb[12].mxu0  ;;  %v3936_v22 = vadd.f32 %v2939_v63, %v2875_v55 }
 0x27d   : > { %v2880_v44 = vpop.f32.mrb[13].mxu0 }
 0x27e   : > { %v2881_v61 = vadd.f32 %v2880_v44, %v2879_v0  ;;  %v2882_v32 = vpop.f32.mrb[14].mxu0  ;;  %v3938_v54 = vadd.f32 %v2942_v31, %v2878_v51 }
 0x27f   : > { %v2883_v24 = vpop.f32.mrb[15].mxu0 }
 0x280   : > { %v2943_v36 = vpop.f32.mrb[12].mxu1  ;;  %v2884_v53 = vadd.f32 %v2883_v24, %v2882_v32 }
 0x281   : > { %v2944_v40 = vpop.f32.mrb[13].mxu1 }
 0x282   : > { %v2945_v16 = vadd.f32 %v2944_v40, %v2943_v36  ;;  %v2946_v23 = vpop.f32.mrb[14].mxu1 }
 0x283   : > { %v2947_v2 = vpop.f32.mrb[15].mxu1 }
 0x284   : > { %v2948_v20 = vadd.f32 %v2947_v2, %v2946_v23  ;;  %v2885_v21 = vpop.f32.mrb[16].mxu0  ;;  %v3940_v7 = vadd.f32 %v2945_v16, %v2881_v61 }
 0x285   : > { %v2886_v15 = vpop.f32.mrb[17].mxu0 }
 0x286   : > { %v2887_v19 = vadd.f32 %v2886_v15, %v2885_v21  ;;  %v2888_v8 = vpop.f32.mrb[18].mxu0  ;;  %v3942_v43 = vadd.f32 %v2948_v20, %v2884_v53 }
 0x287   : > { %v2889_v46 = vpop.f32.mrb[19].mxu0 }
 0x288   : > { %v2949_v10 = vpop.f32.mrb[16].mxu1  ;;  %v2890_v45 = vadd.f32 %v2889_v46, %v2888_v8 }
 0x289   : > { %v2950_v17 = vpop.f32.mrb[17].mxu1 }
 0x28a   : > { %v2951_v35 = vadd.f32 %v2950_v17, %v2949_v10  ;;  %v2952_v14 = vpop.f32.mrb[18].mxu1 }
 0x28b   : > { %v2953_v18 = vpop.f32.mrb[19].mxu1 }
 0x28c   : > { %v2954_v39 = vadd.f32 %v2953_v18, %v2952_v14  ;;  %v2891_v38 = vpop.f32.mrb[20].mxu0  ;;  %v3944_v30 = vadd.f32 %v2951_v35, %v2887_v19 }
 0x28d   : > { %v2892_v37 = vpop.f32.mrb[21].mxu0 }
 0x28e   : > { %v2893_v9 = vadd.f32 %v2892_v37, %v2891_v38  ;;  %v2894_v29 = vpop.f32.mrb[22].mxu0  ;;  %v3946_v25 = vadd.f32 %v2954_v39, %v2890_v45 }
 0x28f   : > { %v2895_v33 = vpop.f32.mrb[23].mxu0 }
 0x290   : > { %v2955_v62 = vpop.f32.mrb[20].mxu1  ;;  %v2896_v1 = vadd.f32 %v2895_v33, %v2894_v29 }
 0x291   : > { %v2956_v34 = vpop.f32.mrb[21].mxu1 }
 0x292   : > { %v2957_v5 = vadd.f32 %v2956_v34, %v2955_v62  ;;  %v2958_v60 = vpop.f32.mrb[22].mxu1 }
 0x293   : > { %v2959_v41 = vpop.f32.mrb[23].mxu1 }
 0x294   : > { %v2960_v12 = vadd.f32 %v2959_v41, %v2958_v60  ;;  %v2897_v59 = vpop.f32.mrb[24].mxu0  ;;  %v2034_v48 = vadd.f32 %v2957_v5, %v2893_v9 }
 0x295   : > { %v2898_v42 = vpop.f32.mrb[25].mxu0 }
 0x296   : > { %v2899_v49 = vadd.f32 %v2898_v42, %v2897_v59  ;;  %v2900_v26 = vpop.f32.mrb[26].mxu0  ;;  %v2037_v57 = vadd.f32 %v2960_v12, %v2896_v1 }
 0x297   : > { %v2901_v56 = vpop.f32.mrb[27].mxu0 }
 0x298   : > { %v2961_v47 = vpop.f32.mrb[24].mxu1  ;;  %v2902_v55 = vadd.f32 %v2901_v56, %v2900_v26 }
 0x299   : > { %v2962_v52 = vpop.f32.mrb[25].mxu1 }
 0x29a   : > { %v2963_v28 = vadd.f32 %v2962_v52, %v2961_v47  ;;  %v2964_v58 = vpop.f32.mrb[26].mxu1 }
 0x29b   : > { %v2965_v51 = vpop.f32.mrb[27].mxu1 }
 0x29c   : > { %v2966_v11 = vadd.f32 %v2965_v51, %v2964_v58  ;;  %v2903_v63 = vpop.f32.mrb[28].mxu0  ;;  %v3948_v27 = vadd.f32 %v2963_v28, %v2899_v49 }
 0x29d   : > { %v2904_v3 = vpop.f32.mrb[29].mxu0 }
 0x29e   : > { %v2905_v31 = vadd.f32 %v2904_v3, %v2903_v63  ;;  %v2906_v0 = vpop.f32.mrb[30].mxu0  ;;  %v3950_v44 = vadd.f32 %v2966_v11, %v2902_v55 }
 0x29f   : > { %v2907_v61 = vpop.f32.mrb[31].mxu0 }
 0x2a0   : > { %v2908_v32 = vadd.f32 %v2907_v61, %v2906_v0  ;;  %v2967_v24 = vpop.f32.mrb[28].mxu1 }
 0x2a1   : > { %v2968_v36 = vpop.f32.mrb[29].mxu1 }
 0x2a2   : > { %v2969_v53 = vadd.f32 %v2968_v36, %v2967_v24  ;;  %v2970_v40 = vpop.f32.mrb[30].mxu1 }
 0x2a3   : > { %v2971_v16 = vpop.f32.mrb[31].mxu1 }
 0x2a4   : > { %v2995_v23 = vpop.f32.mrb[32].mxu0  ;;  %v2972_v2 = vadd.f32 %v2971_v16, %v2970_v40  ;;  %v2050_v20 = vadd.f32 %v2969_v53, %v2905_v31 }
 0x2a5   : > { %v2099_v21 = vadd.f32 %v2995_v23, %v3932_v50  ;;  %v2090_v15 = vpop.f32.mrb[33].mxu0 }
 0x2a6   : > { %v3960_v19 = vadd.f32 %v2090_v15, %v3928_v13  ;;  %v2996_v8 = vpop.f32.mrb[34].mxu0  ;;  %v2053_v46 = vadd.f32 %v2972_v2, %v2908_v32 }
 0x2a7   : > { %v2652_v10 = vpack.c.bf16 %v2099_v21, %v2099_v21  ;;  %v3963_v45 = vadd.f32 %v2996_v8, %v3934_v4  ;;  %v2093_v50 = vpop.f32.mrb[35].mxu0  ;;  %v2241_v17 = vsel %vm2234_vm1, %v2099_v21, 0.0  ;;  %v2302_v42 = vmul.f32 %v2099_v21, %v2099_v21 }
 0x2a8   : > { %v2650_v35 = vpack.c.bf16 %v3960_v19, %v3960_v19  ;;  %v3969_v14 = vadd.f32 %v2093_v50, %v3930_v6  ;;  %v3003_v18 = vpop.f32.mrb[32].mxu1  ;;  %2242 = vadd.xlane.f32.xlu0 %v2241_v17  ;;  %v2235_v1 = vsel %vm2234_vm1, %v3960_v19, 0.0  ;;  %v2300_v21 = vmul.f32 %v3960_v19, %v3960_v19 }
 0x2a9   : > { %2220 = vst.msk [vmem:[%s3957_s20 + $0x8] sm:$0xf] %vm2217_vm2, %v2652_v10  ;;  %v2653_v13 = vpack.c.bf16 %v3963_v45, %v3963_v45  ;;  %v2131_v39 = vadd.f32 %v3003_v18, %v2034_v48  ;;  %v2122_v4 = vpop.f32.mrb[33].mxu1  ;;  %v2244_v56 = vsel %vm2234_vm1, %v3963_v45, 0.0  ;;  %v2322_v11 = vsel %vm2234_vm1, %v2302_v42, 0.0 }
 0x2aa   : > { %2218 = vst.msk [vmem:[%s3957_s20] sm:$0xf] %vm2217_vm2, %v2650_v35  ;;  %v2651_v38 = vpack.c.bf16 %v3969_v14, %v3969_v14  ;;  %v3980_v37 = vadd.f32 %v2122_v4, %v3944_v30  ;;  %v3004_v6 = vpop.f32.mrb[34].mxu1  ;;  %v2238_v2 = vsel %vm2234_vm1, %v3969_v14, 0.0  ;;  %v2316_v8 = vsel %vm2234_vm1, %v2300_v21, 0.0 }
 0x2ab   : > { %2221 = vst.msk [vmem:[%s3957_s20 + $0xc] sm:$0xf] %vm2217_vm2, %v2653_v13  ;;  %v2660_v9 = vpack.c.bf16 %v2131_v39, %v2131_v39  ;;  %v3984_v29 = vadd.f32 %v3004_v6, %v2037_v57  ;;  %v2125_v33 = vpop.f32.mrb[35].mxu1  ;;  %v2265_v62 = vsel %vm2234_vm1, %v2131_v39, 0.0  ;;  %v2310_v61 = vmul.f32 %v2131_v39, %v2131_v39 }
 0x2ac   : > { %2219 = vst.msk [vmem:[%s3957_s20 + $0x4] sm:$0xf] %vm2217_vm2, %v2651_v38  ;;  %v2658_v30 = vpack.c.bf16 %v3980_v37, %v3980_v37  ;;  %v3994_v34 = vadd.f32 %v2125_v33, %v3946_v25  ;;  %v2999_v5 = vpop.f32.mrb[36].mxu0  ;;  %2266 = vadd.xlane.f32.xlu1 %v2265_v62  ;;  %2236 = vadd.xlane.f32.xlu0 %v2235_v1  ;;  %v2259_v57 = vsel %vm2234_vm1, %v3980_v37, 0.0 }
 0x2ad   : > { %2228 = vst.msk [vmem:[%s3957_s20 + $0x28] sm:$0xf] %vm2217_vm2, %v2660_v9  ;;  %v2661_v60 = vpack.c.bf16 %v3984_v29, %v3984_v29  ;;  %v4001_v41 = vadd.f32 %v2999_v5, %v3940_v7  ;;  %v2106_v12 = vpop.f32.mrb[37].mxu0  ;;  %v2268_v0 = vsel %vm2234_vm1, %v3984_v29, 0.0  ;;  %v2346_v53 = vsel %vm2234_vm1, %v2310_v61, 0.0 }
 0x2ae   : > { %2226 = vst.msk [vmem:[%s3957_s20 + $0x20] sm:$0xf] %vm2217_vm2, %v2658_v30  ;;  %v2659_v59 = vpack.c.bf16 %v3994_v34, %v3994_v34  ;;  %v4008_v25 = vadd.f32 %v2106_v12, %v3936_v22  ;;  %v3000_v48 = vpop.f32.mrb[38].mxu0  ;;  %v2262_v40 = vsel %vm2234_vm1, %v3994_v34, 0.0  ;;  %v2311_v15 = vmul.f32 %v3984_v29, %v3984_v29 }
 0x2af   : > { %2229 = vst.msk [vmem:[%s3957_s20 + $0x2c] sm:$0xf] %vm2217_vm2, %v2661_v60  ;;  %v2656_v49 = vpack.c.bf16 %v4001_v41, %v4001_v41  ;;  %v4015_v7 = vadd.f32 %v3000_v48, %v3942_v43  ;;  %v2109_v26 = vpop.f32.mrb[39].mxu0  ;;  %v2308_v10 = vmul.f32 %v3980_v37, %v3980_v37  ;;  %v2309_v17 = vmul.f32 %v3994_v34, %v3994_v34 }
 0x2b0   : > { %2227 = vst.msk [vmem:[%s3957_s20 + $0x24] sm:$0xf] %vm2217_vm2, %v2659_v59  ;;  %v2654_v22 = vpack.c.bf16 %v4008_v25, %v4008_v25  ;;  %v4026_v47 = vadd.f32 %v2109_v26, %v3938_v54  ;;  %v3007_v55 = vpop.f32.mrb[36].mxu1  ;;  %2260 = vadd.xlane.f32.xlu1 %v2259_v57  ;;  %2245 = vadd.xlane.f32.xlu0 %v2244_v56  ;;  %v2253_v35 = vsel %vm2234_vm1, %v4001_v41, 0.0  ;;  %v2247_v39 = vsel %vm2234_vm1, %v4008_v25, 0.0 }
 0x2b1   : > { %2224 = vst.msk [vmem:[%s3957_s20 + $0x18] sm:$0xf] %vm2217_vm2, %v2656_v49  ;;  %v2657_v43 = vpack.c.bf16 %v4015_v7, %v4015_v7  ;;  %v4032_v52 = vadd.f32 %v3007_v55, %v2050_v20  ;;  %v2138_v28 = vpop.f32.mrb[37].mxu1  ;;  %v2340_v50 = vsel %vm2234_vm1, %v2308_v10, 0.0  ;;  %v2343_v18 = vsel %vm2234_vm1, %v2309_v17, 0.0 }
 0x2b2   : > { %2222 = vst.msk [vmem:[%s3957_s20 + $0x10] sm:$0xf] %vm2217_vm2, %v2654_v22  ;;  %v2655_v58 = vpack.c.bf16 %v4026_v47, %v4026_v47  ;;  %v4039_v54 = vadd.f32 %v2138_v28, %v3948_v27  ;;  %v3008_v51 = vpop.f32.mrb[38].mxu1  ;;  %v2256_v13 = vsel %vm2234_vm1, %v4015_v7, 0.0  ;;  %v2250_v37 = vsel %vm2234_vm1, %v4026_v47, 0.0 }
 0x2b3   : > { %2225 = vst.msk [vmem:[%s3957_s20 + $0x1c] sm:$0xf] %vm2217_vm2, %v2657_v43  ;;  %v2664_v63 = vpack.c.bf16 %v4032_v52, %v4032_v52  ;;  %v2150_v3 = vadd.f32 %v3008_v51, %v2053_v46  ;;  %v2141_v31 = vpop.f32.mrb[39].mxu1  ;;  %v2349_v46 = vsel %vm2234_vm1, %v2311_v15, 0.0  ;;  %v2306_v6 = vmul.f32 %v4001_v41, %v4001_v41 }
 0x2b4   : > { %2223 = vst.msk [vmem:[%s3957_s20 + $0x14] sm:$0xf] %vm2217_vm2, %v2655_v58  ;;  %v2662_v27 = vpack.c.bf16 %v4039_v54, %v4039_v54  ;;  %v4053_v32 = vadd.f32 %v2141_v31, %v3950_v44  ;;  %2323 = vadd.xlane.f32.xlu1 %v2322_v11  ;;  %2269 = vadd.xlane.f32.xlu0 %v2268_v0  ;;  %v2271_v38 = vsel %vm2234_vm1, %v4039_v54, 0.0 }
 0x2b5   : > { %2232 = vst.msk [vmem:[%s3957_s20 + $0x38] sm:$0xf] %vm2217_vm2, %v2664_v63  ;;  %v2665_v24 = vpack.c.bf16 %v2150_v3, %v2150_v3  ;;  %v2303_v44 = vmul.f32 %v3963_v45, %v3963_v45  ;;  %v2315_v16 = vmul.f32 %v2150_v3, %v2150_v3  ;;  %v2301_v45 = vmul.f32 %v3969_v14, %v3969_v14 }
 0x2b6   : > { %2230 = vst.msk [vmem:[%s3957_s20 + $0x30] sm:$0xf] %vm2217_vm2, %v2662_v27  ;;  %v2663_v36 = vpack.c.bf16 %v4053_v32, %v4053_v32  ;;  %v2277_v14 = vsel %vm2234_vm1, %v4032_v52, 0.0  ;;  %v2280_v4 = vsel %vm2234_vm1, %v2150_v3, 0.0  ;;  %v2334_v9 = vsel %vm2234_vm1, %v2306_v6, 0.0 }
 0x2b7   : > { %2233 = vst.msk [vmem:[%s3957_s20 + $0x3c] sm:$0xf] %vm2217_vm2, %v2665_v24  ;;  %v2361_v23 = vsel %vm2234_vm1, %v2315_v16, 0.0  ;;  %v2325_v20 = vsel %vm2234_vm1, %v2303_v44, 0.0  ;;  %v2319_v19 = vsel %vm2234_vm1, %v2301_v45, 0.0  ;;  %v2274_v29 = vsel %vm2234_vm1, %v4053_v32, 0.0 }
 0x2b8   : > { %2231 = vst.msk [vmem:[%s3957_s20 + $0x34] sm:$0xf] %vm2217_vm2, %v2663_v36  ;;  %2347 = vadd.xlane.f32.xlu1 %v2346_v53  ;;  %2263 = vadd.xlane.f32.xlu0 %v2262_v40  ;;  %v2304_v33 = vmul.f32 %v4008_v25, %v4008_v25  ;;  %v2307_v62 = vmul.f32 %v4015_v7, %v4015_v7 }
 0x2b9   : > { %v2312_v34 = vmul.f32 %v4039_v54, %v4039_v54  ;;  %v2305_v5 = vmul.f32 %v4026_v47, %v4026_v47  ;;  %v2314_v12 = vmul.f32 %v4032_v52, %v4032_v52  ;;  %v2313_v59 = vmul.f32 %v4053_v32, %v4053_v32 }
 0x2ba   : > { %v2328_v1 = vsel %vm2234_vm1, %v2304_v33, 0.0  ;;  %v2337_v30 = vsel %vm2234_vm1, %v2307_v62, 0.0 }
 0x2bb   : > { %v2352_v60 = vsel %vm2234_vm1, %v2312_v34, 0.0  ;;  %v2331_v41 = vsel %vm2234_vm1, %v2305_v5, 0.0  ;;  %v2358_v25 = vsel %vm2234_vm1, %v2314_v12, 0.0  ;;  %v2355_v48 = vsel %vm2234_vm1, %v2313_v59, 0.0 }
 0x2bc   : > { %2239 = vadd.xlane.f32.xlu1 %v2238_v2  ;;  %2326 = vadd.xlane.f32.xlu0 %v2325_v20 }
 0x2c0   : > { %2317 = vadd.xlane.f32.xlu1 %v2316_v8  ;;  %2350 = vadd.xlane.f32.xlu0 %v2349_v46 }
 0x2c4   : > { %2341 = vadd.xlane.f32.xlu1 %v2340_v50  ;;  %2320 = vadd.xlane.f32.xlu0 %v2319_v19 }
 0x2c8   : > { %2254 = vadd.xlane.f32.xlu1 %v2253_v35  ;;  %2344 = vadd.xlane.f32.xlu0 %v2343_v18 }
 0x2cc   : > { %2278 = vadd.xlane.f32.xlu1 %v2277_v14  ;;  %2257 = vadd.xlane.f32.xlu0 %v2256_v13 }
 0x2d0   : > { %2248 = vadd.xlane.f32.xlu1 %v2247_v39  ;;  %2281 = vadd.xlane.f32.xlu0 %v2280_v4 }
 0x2d4   : > { %2272 = vadd.xlane.f32.xlu1 %v2271_v38  ;;  %2251 = vadd.xlane.f32.xlu0 %v2250_v37 }
 0x2d8   : > { %2335 = vadd.xlane.f32.xlu1 %v2334_v9  ;;  %2275 = vadd.xlane.f32.xlu0 %v2274_v29 }
 0x2dc   : > { %2329 = vadd.xlane.f32.xlu1 %v2328_v1  ;;  %2338 = vadd.xlane.f32.xlu0 %v2337_v30 }
 0x2e0   : > { %2353 = vadd.xlane.f32.xlu1 %v2352_v60  ;;  %2332 = vadd.xlane.f32.xlu0 %v2331_v41 }
 0x2e4   : > { %2359 = vadd.xlane.f32.xlu1 %v2358_v25  ;;  %2356 = vadd.xlane.f32.xlu0 %v2355_v48 }
 0x2e8   : > { %2362 = vadd.xlane.f32.xlu0 %v2361_v23 }
 0x335   : > { %v2243_v42 = vpop.xlane.xlu0 %2242 }
 0x336   : > { %2286 = vst.msk [vmem:[%s4129_s29 + $0x10] sm:$0xff] %vm2283_vm3, %v2243_v42 }
 0x339   : > { %v2267_v49 = vpop.xlane.xlu1 %2266  ;;  %v2237_v7 = vpop.xlane.xlu0 %2236 }
 0x33a   : > { %2294 = vst.msk [vmem:[%s4129_s29 + $0x50] sm:$0xff] %vm2283_vm3, %v2267_v49  ;;  %2284 = vst.msk [vmem:[%s4129_s29] sm:$0xff] %vm2283_vm3, %v2237_v7 }
 0x33d   : > { %v2261_v26 = vpop.xlane.xlu1 %2260  ;;  %v2246_v57 = vpop.xlane.xlu0 %2245 }
 0x33e   : > { %2292 = vst.msk [vmem:[%s4129_s29 + $0x40] sm:$0xff] %vm2283_vm3, %v2261_v26  ;;  %2287 = vst.msk [vmem:[%s4129_s29 + $0x18] sm:$0xff] %vm2283_vm3, %v2246_v57 }
 0x341   : > { %v2324_v56 = vpop.xlane.xlu1 %2323  ;;  %v2270_v22 = vpop.xlane.xlu0 %2269 }
 0x342   : > { %2366 = vst.msk [vmem:[%s4144_s7 + $0x10] sm:$0xff] %vm2283_vm3, %v2324_v56  ;;  %2295 = vst.msk [vmem:[%s4129_s29 + $0x58] sm:$0xff] %vm2283_vm3, %v2270_v22 }
 0x345   : > { %v2348_v47 = vpop.xlane.xlu1 %2347  ;;  %v2264_v55 = vpop.xlane.xlu0 %2263 }
 0x346   : > { %2374 = vst.msk [vmem:[%s4144_s7 + $0x50] sm:$0xff] %vm2283_vm3, %v2348_v47  ;;  %2293 = vst.msk [vmem:[%s4129_s29 + $0x48] sm:$0xff] %vm2283_vm3, %v2264_v55 }
 0x349   : > { %v2240_v43 = vpop.xlane.xlu1 %2239  ;;  %v2327_v52 = vpop.xlane.xlu0 %2326 }
 0x34a   : > { %2285 = vst.msk [vmem:[%s4129_s29 + $0x8] sm:$0xff] %vm2283_vm3, %v2240_v43  ;;  %2367 = vst.msk [vmem:[%s4144_s7 + $0x18] sm:$0xff] %vm2283_vm3, %v2327_v52 }
 0x34d   : > { %v2318_v28 = vpop.xlane.xlu1 %2317  ;;  %v2351_v58 = vpop.xlane.xlu0 %2350 }
 0x34e   : > { %2364 = vst.msk [vmem:[%s4144_s7] sm:$0xff] %vm2283_vm3, %v2318_v28  ;;  %2375 = vst.msk [vmem:[%s4144_s7 + $0x58] sm:$0xff] %vm2283_vm3, %v2351_v58 }
 0x351   : > { %v2342_v54 = vpop.xlane.xlu1 %2341  ;;  %v2321_v51 = vpop.xlane.xlu0 %2320 }
 0x352   : > { %2372 = vst.msk [vmem:[%s4144_s7 + $0x40] sm:$0xff] %vm2283_vm3, %v2342_v54  ;;  %2365 = vst.msk [vmem:[%s4144_s7 + $0x8] sm:$0xff] %vm2283_vm3, %v2321_v51 }
 0x355   : > { %v2255_v11 = vpop.xlane.xlu1 %2254  ;;  %v2345_v63 = vpop.xlane.xlu0 %2344 }
 0x356   : > { %2290 = vst.msk [vmem:[%s4129_s29 + $0x30] sm:$0xff] %vm2283_vm3, %v2255_v11  ;;  %2373 = vst.msk [vmem:[%s4144_s7 + $0x48] sm:$0xff] %vm2283_vm3, %v2345_v63 }
 0x359   : > { %v2279_v3 = vpop.xlane.xlu1 %2278  ;;  %v2258_v31 = vpop.xlane.xlu0 %2257 }
 0x35a   : > { %2298 = vst.msk [vmem:[%s4129_s29 + $0x70] sm:$0xff] %vm2283_vm3, %v2279_v3  ;;  %2291 = vst.msk [vmem:[%s4129_s29 + $0x38] sm:$0xff] %vm2283_vm3, %v2258_v31 }
 0x35d   : > { %v2249_v0 = vpop.xlane.xlu1 %2248  ;;  %v2282_v61 = vpop.xlane.xlu0 %2281 }
 0x35e   : > { %2288 = vst.msk [vmem:[%s4129_s29 + $0x20] sm:$0xff] %vm2283_vm3, %v2249_v0  ;;  %2299 = vst.msk [vmem:[%s4129_s29 + $0x78] sm:$0xff] %vm2283_vm3, %v2282_v61 }
 0x361   : > { %v2273_v27 = vpop.xlane.xlu1 %2272  ;;  %v2252_v32 = vpop.xlane.xlu0 %2251 }
 0x362   : > { %2296 = vst.msk [vmem:[%s4129_s29 + $0x60] sm:$0xff] %vm2283_vm3, %v2273_v27  ;;  %2289 = vst.msk [vmem:[%s4129_s29 + $0x28] sm:$0xff] %vm2283_vm3, %v2252_v32 }
 0x365   : > { %v2336_v24 = vpop.xlane.xlu1 %2335  ;;  %v2276_v36 = vpop.xlane.xlu0 %2275 }
 0x366   : > { %2370 = vst.msk [vmem:[%s4144_s7 + $0x30] sm:$0xff] %vm2283_vm3, %v2336_v24  ;;  %2297 = vst.msk [vmem:[%s4129_s29 + $0x68] sm:$0xff] %vm2283_vm3, %v2276_v36 }
 0x369   : > { %v2330_v53 = vpop.xlane.xlu1 %2329  ;;  %v2339_v40 = vpop.xlane.xlu0 %2338 }
 0x36a   : > { %2368 = vst.msk [vmem:[%s4144_s7 + $0x20] sm:$0xff] %vm2283_vm3, %v2330_v53  ;;  %2371 = vst.msk [vmem:[%s4144_s7 + $0x38] sm:$0xff] %vm2283_vm3, %v2339_v40 }
 0x36d   : > { %v2354_v44 = vpop.xlane.xlu1 %2353  ;;  %v2333_v16 = vpop.xlane.xlu0 %2332 }
 0x36e   : > { %2376 = vst.msk [vmem:[%s4144_s7 + $0x60] sm:$0xff] %vm2283_vm3, %v2354_v44  ;;  %2369 = vst.msk [vmem:[%s4144_s7 + $0x28] sm:$0xff] %vm2283_vm3, %v2333_v16 }
 0x371   : > { %v2360_v23 = vpop.xlane.xlu1 %2359  ;;  %v2357_v2 = vpop.xlane.xlu0 %2356 }
 0x372   : > { %2378 = vst.msk [vmem:[%s4144_s7 + $0x70] sm:$0xff] %vm2283_vm3, %v2360_v23  ;;  %2377 = vst.msk [vmem:[%s4144_s7 + $0x68] sm:$0xff] %vm2283_vm3, %v2357_v2 }
 0x375   : > { %v2363_v20 = vpop.xlane.xlu0 %2362 }
 0x376   : > { %2379 = vst.msk [vmem:[%s4144_s7 + $0x78] sm:$0xff] %vm2283_vm3, %v2363_v20 }
 0x377 PF: > { %s17_s23 = sadd.s32 1, %s3123_s23   ;;  %s4226_s21 = smov %s3119_s22 }
 0x378   : > { %p14_p5 = scmp.ge.s32.totalorder %s17_s23, 4   ;;  %s4227_s22 = smov %s4229_s24 }
 0x37a   :  { %16 = sbr.rel (!%p14_p5) target bundleno = 2 (0x2), region = 90 }

// kernel: tile.68
= control target key start
LH: loop header
LB: loop body
LE: loop exit
PB: predicated region body
PF: predicated region fallthrough
CT: control target
= control target key end

     0   :  { %s28_s0 = inlined_call_operand.vmem [shape: f32[16], index: 0, kind: input, shape index: {}]   ;;  %s29_s1 = inlined_call_operand.vmem [shape: f32[9,16], index: 1, kind: output, shape index: {}]  }
   0x1   :  { %v4_v0 = vld [vmem:[%s28_s0] ss:$0 sm:$0xff] }
   0x2   :  { %5 = vst [vmem:[%s29_s1] sm:$0xff] %v4_v0  ;;  %8 = vst [vmem:[%s29_s1 + $0x8] sm:$0xff] %v4_v0 }

// kernel: tile.4
= control target key start
LH: loop header
LB: loop body
LE: loop exit
PB: predicated region body
PF: predicated region fallthrough
CT: control target
= control target key end

     0   :  { %vm3_vm0 = vcmask 7168   ;;  %s405_s8 = smov 126   ;;  %s406_s9 = smov 127   ;;  %s822_s0 = inlined_call_operand.vmem [shape: f32[9,16], index: 0, kind: input, shape index: {}]   ;;  %s823_s1 = inlined_call_operand.vmem [shape: f32[144,1], index: 1, kind: output, shape index: {}]  }
   0x1   :  { %v433_v0 = vld [vmem:[%s822_s0] sm:$0xff]   ;;  %v310_v1 = vld [vmem:[%s822_s0 + $0x8] sm:$0x1]   ;;  %s407_s24 = smov 125   ;;  %s408_s27 = smov 124  }
   0x2   :  { %33 = vrot.lane.b32.xlu1 %v433_v0, %s405_s8  ;;  %14 = vrot.lane.b32.xlu0 %v433_v0, %s406_s9  ;;  %4 = vst.msk [vmem:[%s823_s1] ss:$16 sm:$0x3] %vm3_vm0, %v433_v0   ;;  %5 = vst.msk [vmem:[%s823_s1] ss:$16 sm:$0xc] %vm3_vm0, %v433_v0  }
   0x3   :  { %6 = vst.msk [vmem:[%s823_s1] ss:$16 sm:$0x30] %vm3_vm0, %v433_v0   ;;  %7 = vst.msk [vmem:[%s823_s1] ss:$16 sm:$0xc0] %vm3_vm0, %v433_v0  }
   0x4   :  { %v304_v2 = vld [vmem:[%s822_s0 + $0x8] sm:$0x1]   ;;  %s409_s30 = smov 123   ;;  %s410_s4 = smov 122  }
   0x5   :  { %v316_v3 = vld [vmem:[%s822_s0 + $0x8] sm:$0x1]   ;;  %s411_s7 = smov 121   ;;  %s412_s10 = smov 120  }
   0x6   :  { %46 = vrot.lane.b32.xlu1 %v310_v1, %s405_s8  ;;  %27 = vrot.lane.b32.xlu0 %v304_v2, %s406_s9  ;;  %v322_v4 = vld [vmem:[%s822_s0 + $0x8] sm:$0x1]   ;;  %s413_s13 = smov 119   ;;  %s414_s16 = smov 118  }
   0x7   :  { %v328_v5 = vld [vmem:[%s822_s0 + $0x8] sm:$0x1]   ;;  %s415_s19 = smov 117   ;;  %s416_s26 = smov 116  }
   0x8   :  { %v334_v6 = vld [vmem:[%s822_s0 + $0x8] sm:$0x1]   ;;  %s417_s29 = smov 115   ;;  %s418_s3 = smov 114  }
   0x9   :  { %v340_v7 = vld [vmem:[%s822_s0 + $0x8] sm:$0x1]  }
   0xa   :  { %65 = vrot.lane.b32.xlu1 %v316_v3, %s407_s24  ;;  %52 = vrot.lane.b32.xlu0 %v433_v0, %s407_s24  ;;  %v346_v8 = vld [vmem:[%s822_s0 + $0x8] sm:$0x1]  }
   0xb   :  { %v352_v9 = vld [vmem:[%s822_s0 + $0x8] sm:$0x1]  }
   0xc   :  { %v358_v10 = vld [vmem:[%s822_s0 + $0x8] sm:$0x1]  }
   0xd   :  { %v364_v11 = vld [vmem:[%s822_s0 + $0x8] sm:$0x1]  }
   0xe   :  { %84 = vrot.lane.b32.xlu1 %v322_v4, %s408_s27  ;;  %71 = vrot.lane.b32.xlu0 %v433_v0, %s408_s27  ;;  %v370_v12 = vld [vmem:[%s822_s0 + $0x8] sm:$0x1]  }
   0xf   :  { %v298_v13 = vld [vmem:[%s822_s0 + $0x8] sm:$0x1]  }
  0x10   :  { %299 = vst.msk [vmem:[%s823_s1 + $0x80] sm:$0x1] %vm3_vm0, %v298_v13   ;;  %v376_v14 = vld [vmem:[%s822_s0 + $0x8] sm:$0x1]  }
  0x11   :  { %v382_v15 = vld [vmem:[%s822_s0 + $0x8] sm:$0x1]  }
  0x12   :  { %103 = vrot.lane.b32.xlu1 %v328_v5, %s409_s30  ;;  %90 = vrot.lane.b32.xlu0 %v433_v0, %s409_s30  ;;  %v388_v16 = vld [vmem:[%s822_s0 + $0x8] sm:$0x1]   ;;  %s419_s0 = smov 113  }
  0x16   :  { %122 = vrot.lane.b32.xlu1 %v334_v6, %s410_s4  ;;  %109 = vrot.lane.b32.xlu0 %v433_v0, %s410_s4 }
  0x1a   :  { %141 = vrot.lane.b32.xlu1 %v340_v7, %s411_s7  ;;  %128 = vrot.lane.b32.xlu0 %v433_v0, %s411_s7 }
  0x1e   :  { %160 = vrot.lane.b32.xlu1 %v346_v8, %s412_s10  ;;  %147 = vrot.lane.b32.xlu0 %v433_v0, %s412_s10 }
  0x22   :  { %179 = vrot.lane.b32.xlu1 %v352_v9, %s413_s13  ;;  %166 = vrot.lane.b32.xlu0 %v433_v0, %s413_s13 }
  0x26   :  { %198 = vrot.lane.b32.xlu1 %v358_v10, %s414_s16  ;;  %185 = vrot.lane.b32.xlu0 %v433_v0, %s414_s16 }
  0x2a   :  { %217 = vrot.lane.b32.xlu1 %v364_v11, %s415_s19  ;;  %204 = vrot.lane.b32.xlu0 %v433_v0, %s415_s19 }
  0x2e   :  { %236 = vrot.lane.b32.xlu1 %v370_v12, %s416_s26  ;;  %223 = vrot.lane.b32.xlu0 %v433_v0, %s416_s26 }
  0x32   :  { %255 = vrot.lane.b32.xlu1 %v376_v14, %s417_s29  ;;  %242 = vrot.lane.b32.xlu0 %v433_v0, %s417_s29 }
  0x36   :  { %274 = vrot.lane.b32.xlu1 %v382_v15, %s418_s3  ;;  %261 = vrot.lane.b32.xlu0 %v433_v0, %s418_s3 }
  0x3a   :  { %293 = vrot.lane.b32.xlu1 %v388_v16, %s419_s0  ;;  %280 = vrot.lane.b32.xlu0 %v433_v0, %s419_s0 }
  0x74   :  { %v34_v17 = vpop.permute.xlu1 %33   ;;  %v15_v18 = vpop.permute.xlu0 %14  }
  0x75   :  { %306 = vst.msk [vmem:[%s823_s1 + $0x2] ss:$16 sm:$0x3] %vm3_vm0, %v34_v17   ;;  %307 = vst.msk [vmem:[%s823_s1 + $0x2] ss:$16 sm:$0xc] %vm3_vm0, %v34_v17  }
  0x76   :  { %308 = vst.msk [vmem:[%s823_s1 + $0x2] ss:$16 sm:$0x30] %vm3_vm0, %v34_v17   ;;  %309 = vst.msk [vmem:[%s823_s1 + $0x2] ss:$16 sm:$0xc0] %vm3_vm0, %v34_v17  }
  0x77   :  { %300 = vst.msk [vmem:[%s823_s1 + $0x1] ss:$16 sm:$0x3] %vm3_vm0, %v15_v18   ;;  %301 = vst.msk [vmem:[%s823_s1 + $0x1] ss:$16 sm:$0xc] %vm3_vm0, %v15_v18  }
  0x78   :  { %302 = vst.msk [vmem:[%s823_s1 + $0x1] ss:$16 sm:$0x30] %vm3_vm0, %v15_v18   ;;  %303 = vst.msk [vmem:[%s823_s1 + $0x1] ss:$16 sm:$0xc0] %vm3_vm0, %v15_v18   ;;  %v47_v19 = vpop.permute.xlu1 %46   ;;  %v28_v20 = vpop.permute.xlu0 %27  }
  0x79   :  { %311 = vst.msk [vmem:[%s823_s1 + $0x82] sm:$0x1] %vm3_vm0, %v47_v19   ;;  %305 = vst.msk [vmem:[%s823_s1 + $0x81] sm:$0x1] %vm3_vm0, %v28_v20  }
  0x7c   :  { %v66_v21 = vpop.permute.xlu1 %65   ;;  %v53_v22 = vpop.permute.xlu0 %52  }
  0x7d   :  { %317 = vst.msk [vmem:[%s823_s1 + $0x83] sm:$0x1] %vm3_vm0, %v66_v21   ;;  %312 = vst.msk [vmem:[%s823_s1 + $0x3] ss:$16 sm:$0x3] %vm3_vm0, %v53_v22  }
  0x7e   :  { %313 = vst.msk [vmem:[%s823_s1 + $0x3] ss:$16 sm:$0xc] %vm3_vm0, %v53_v22   ;;  %314 = vst.msk [vmem:[%s823_s1 + $0x3] ss:$16 sm:$0x30] %vm3_vm0, %v53_v22  }
  0x7f   :  { %315 = vst.msk [vmem:[%s823_s1 + $0x3] ss:$16 sm:$0xc0] %vm3_vm0, %v53_v22  }
  0x80   :  { %v85_v23 = vpop.permute.xlu1 %84   ;;  %v72_v24 = vpop.permute.xlu0 %71  }
  0x81   :  { %323 = vst.msk [vmem:[%s823_s1 + $0x84] sm:$0x1] %vm3_vm0, %v85_v23   ;;  %318 = vst.msk [vmem:[%s823_s1 + $0x4] ss:$16 sm:$0x3] %vm3_vm0, %v72_v24  }
  0x82   :  { %319 = vst.msk [vmem:[%s823_s1 + $0x4] ss:$16 sm:$0xc] %vm3_vm0, %v72_v24   ;;  %320 = vst.msk [vmem:[%s823_s1 + $0x4] ss:$16 sm:$0x30] %vm3_vm0, %v72_v24  }
  0x83   :  { %321 = vst.msk [vmem:[%s823_s1 + $0x4] ss:$16 sm:$0xc0] %vm3_vm0, %v72_v24  }
  0x84   :  { %v104_v25 = vpop.permute.xlu1 %103   ;;  %v91_v26 = vpop.permute.xlu0 %90  }
  0x85   :  { %329 = vst.msk [vmem:[%s823_s1 + $0x85] sm:$0x1] %vm3_vm0, %v104_v25   ;;  %324 = vst.msk [vmem:[%s823_s1 + $0x5] ss:$16 sm:$0x3] %vm3_vm0, %v91_v26  }
  0x86   :  { %325 = vst.msk [vmem:[%s823_s1 + $0x5] ss:$16 sm:$0xc] %vm3_vm0, %v91_v26   ;;  %326 = vst.msk [vmem:[%s823_s1 + $0x5] ss:$16 sm:$0x30] %vm3_vm0, %v91_v26  }
  0x87   :  { %327 = vst.msk [vmem:[%s823_s1 + $0x5] ss:$16 sm:$0xc0] %vm3_vm0, %v91_v26  }
  0x88   :  { %v123_v27 = vpop.permute.xlu1 %122   ;;  %v110_v28 = vpop.permute.xlu0 %109  }
  0x89   :  { %335 = vst.msk [vmem:[%s823_s1 + $0x86] sm:$0x1] %vm3_vm0, %v123_v27   ;;  %330 = vst.msk [vmem:[%s823_s1 + $0x6] ss:$16 sm:$0x3] %vm3_vm0, %v110_v28  }
  0x8a   :  { %331 = vst.msk [vmem:[%s823_s1 + $0x6] ss:$16 sm:$0xc] %vm3_vm0, %v110_v28   ;;  %332 = vst.msk [vmem:[%s823_s1 + $0x6] ss:$16 sm:$0x30] %vm3_vm0, %v110_v28  }
  0x8b   :  { %333 = vst.msk [vmem:[%s823_s1 + $0x6] ss:$16 sm:$0xc0] %vm3_vm0, %v110_v28  }
  0x8c   :  { %v142_v29 = vpop.permute.xlu1 %141   ;;  %v129_v30 = vpop.permute.xlu0 %128  }
  0x8d   :  { %341 = vst.msk [vmem:[%s823_s1 + $0x87] sm:$0x1] %vm3_vm0, %v142_v29   ;;  %336 = vst.msk [vmem:[%s823_s1 + $0x7] ss:$16 sm:$0x3] %vm3_vm0, %v129_v30  }
  0x8e   :  { %337 = vst.msk [vmem:[%s823_s1 + $0x7] ss:$16 sm:$0xc] %vm3_vm0, %v129_v30   ;;  %338 = vst.msk [vmem:[%s823_s1 + $0x7] ss:$16 sm:$0x30] %vm3_vm0, %v129_v30  }
  0x8f   :  { %339 = vst.msk [vmem:[%s823_s1 + $0x7] ss:$16 sm:$0xc0] %vm3_vm0, %v129_v30  }
  0x90   :  { %v161_v31 = vpop.permute.xlu1 %160   ;;  %v148_v32 = vpop.permute.xlu0 %147  }
  0x91   :  { %347 = vst.msk [vmem:[%s823_s1 + $0x88] sm:$0x1] %vm3_vm0, %v161_v31   ;;  %342 = vst.msk [vmem:[%s823_s1 + $0x8] ss:$16 sm:$0x3] %vm3_vm0, %v148_v32  }
  0x92   :  { %343 = vst.msk [vmem:[%s823_s1 + $0x8] ss:$16 sm:$0xc] %vm3_vm0, %v148_v32   ;;  %344 = vst.msk [vmem:[%s823_s1 + $0x8] ss:$16 sm:$0x30] %vm3_vm0, %v148_v32  }
  0x93   :  { %345 = vst.msk [vmem:[%s823_s1 + $0x8] ss:$16 sm:$0xc0] %vm3_vm0, %v148_v32  }
  0x94   :  { %v180_v33 = vpop.permute.xlu1 %179   ;;  %v167_v34 = vpop.permute.xlu0 %166  }
  0x95   :  { %353 = vst.msk [vmem:[%s823_s1 + $0x89] sm:$0x1] %vm3_vm0, %v180_v33   ;;  %348 = vst.msk [vmem:[%s823_s1 + $0x9] ss:$16 sm:$0x3] %vm3_vm0, %v167_v34  }
  0x96   :  { %349 = vst.msk [vmem:[%s823_s1 + $0x9] ss:$16 sm:$0xc] %vm3_vm0, %v167_v34   ;;  %350 = vst.msk [vmem:[%s823_s1 + $0x9] ss:$16 sm:$0x30] %vm3_vm0, %v167_v34  }
  0x97   :  { %351 = vst.msk [vmem:[%s823_s1 + $0x9] ss:$16 sm:$0xc0] %vm3_vm0, %v167_v34  }
  0x98   :  { %v199_v35 = vpop.permute.xlu1 %198   ;;  %v186_v36 = vpop.permute.xlu0 %185  }
  0x99   :  { %359 = vst.msk [vmem:[%s823_s1 + $0x8a] sm:$0x1] %vm3_vm0, %v199_v35   ;;  %354 = vst.msk [vmem:[%s823_s1 + $0xa] ss:$16 sm:$0x3] %vm3_vm0, %v186_v36  }
  0x9a   :  { %355 = vst.msk [vmem:[%s823_s1 + $0xa] ss:$16 sm:$0xc] %vm3_vm0, %v186_v36   ;;  %356 = vst.msk [vmem:[%s823_s1 + $0xa] ss:$16 sm:$0x30] %vm3_vm0, %v186_v36  }
  0x9b   :  { %357 = vst.msk [vmem:[%s823_s1 + $0xa] ss:$16 sm:$0xc0] %vm3_vm0, %v186_v36  }
  0x9c   :  { %v218_v37 = vpop.permute.xlu1 %217   ;;  %v205_v38 = vpop.permute.xlu0 %204  }
  0x9d   :  { %365 = vst.msk [vmem:[%s823_s1 + $0x8b] sm:$0x1] %vm3_vm0, %v218_v37   ;;  %360 = vst.msk [vmem:[%s823_s1 + $0xb] ss:$16 sm:$0x3] %vm3_vm0, %v205_v38  }
  0x9e   :  { %361 = vst.msk [vmem:[%s823_s1 + $0xb] ss:$16 sm:$0xc] %vm3_vm0, %v205_v38   ;;  %362 = vst.msk [vmem:[%s823_s1 + $0xb] ss:$16 sm:$0x30] %vm3_vm0, %v205_v38  }
  0x9f   :  { %363 = vst.msk [vmem:[%s823_s1 + $0xb] ss:$16 sm:$0xc0] %vm3_vm0, %v205_v38  }
  0xa0   :  { %v237_v39 = vpop.permute.xlu1 %236   ;;  %v224_v40 = vpop.permute.xlu0 %223  }
  0xa1   :  { %371 = vst.msk [vmem:[%s823_s1 + $0x8c] sm:$0x1] %vm3_vm0, %v237_v39   ;;  %366 = vst.msk [vmem:[%s823_s1 + $0xc] ss:$16 sm:$0x3] %vm3_vm0, %v224_v40  }
  0xa2   :  { %367 = vst.msk [vmem:[%s823_s1 + $0xc] ss:$16 sm:$0xc] %vm3_vm0, %v224_v40   ;;  %368 = vst.msk [vmem:[%s823_s1 + $0xc] ss:$16 sm:$0x30] %vm3_vm0, %v224_v40  }
  0xa3   :  { %369 = vst.msk [vmem:[%s823_s1 + $0xc] ss:$16 sm:$0xc0] %vm3_vm0, %v224_v40  }
  0xa4   :  { %v256_v41 = vpop.permute.xlu1 %255   ;;  %v243_v42 = vpop.permute.xlu0 %242  }
  0xa5   :  { %377 = vst.msk [vmem:[%s823_s1 + $0x8d] sm:$0x1] %vm3_vm0, %v256_v41   ;;  %372 = vst.msk [vmem:[%s823_s1 + $0xd] ss:$16 sm:$0x3] %vm3_vm0, %v243_v42  }
  0xa6   :  { %373 = vst.msk [vmem:[%s823_s1 + $0xd] ss:$16 sm:$0xc] %vm3_vm0, %v243_v42   ;;  %374 = vst.msk [vmem:[%s823_s1 + $0xd] ss:$16 sm:$0x30] %vm3_vm0, %v243_v42  }
  0xa7   :  { %375 = vst.msk [vmem:[%s823_s1 + $0xd] ss:$16 sm:$0xc0] %vm3_vm0, %v243_v42  }
  0xa8   :  { %v275_v43 = vpop.permute.xlu1 %274   ;;  %v262_v44 = vpop.permute.xlu0 %261  }
  0xa9   :  { %383 = vst.msk [vmem:[%s823_s1 + $0x8e] sm:$0x1] %vm3_vm0, %v275_v43   ;;  %378 = vst.msk [vmem:[%s823_s1 + $0xe] ss:$16 sm:$0x3] %vm3_vm0, %v262_v44  }
  0xaa   :  { %379 = vst.msk [vmem:[%s823_s1 + $0xe] ss:$16 sm:$0xc] %vm3_vm0, %v262_v44   ;;  %380 = vst.msk [vmem:[%s823_s1 + $0xe] ss:$16 sm:$0x30] %vm3_vm0, %v262_v44  }
  0xab   :  { %381 = vst.msk [vmem:[%s823_s1 + $0xe] ss:$16 sm:$0xc0] %vm3_vm0, %v262_v44  }
  0xac   :  { %v294_v45 = vpop.permute.xlu1 %293   ;;  %v281_v46 = vpop.permute.xlu0 %280  }
  0xad   :  { %389 = vst.msk [vmem:[%s823_s1 + $0x8f] sm:$0x1] %vm3_vm0, %v294_v45   ;;  %384 = vst.msk [vmem:[%s823_s1 + $0xf] ss:$16 sm:$0x3] %vm3_vm0, %v281_v46  }
  0xae   :  { %385 = vst.msk [vmem:[%s823_s1 + $0xf] ss:$16 sm:$0xc] %vm3_vm0, %v281_v46   ;;  %386 = vst.msk [vmem:[%s823_s1 + $0xf] ss:$16 sm:$0x30] %vm3_vm0, %v281_v46  }
  0xaf   :  { %387 = vst.msk [vmem:[%s823_s1 + $0xf] ss:$16 sm:$0xc0] %vm3_vm0, %v281_v46  }

// kernel: generator_forward.7
= control target key start
LH: loop header
LB: loop body
LE: loop exit
PB: predicated region body
PF: predicated region fallthrough
CT: control target
= control target key end

     0   :  { %s1798_s21 = smov 0   ;;  %s1800_s22 = smov 0   ;;  %s2172_s0 = inlined_call_operand.vmem [shape: f32[288,1], index: 0, kind: input, shape index: {}]   ;;  %s2173_s1 = inlined_call_operand.vmem [shape: f32[288,1], index: 1, kind: input, shape index: {}]   ;;  %s2174_s2 = inlined_call_operand.vmem [shape: bf16[2,288,64], index: 2, kind: input, shape index: {}]   ;;  %s2175_s3 = inlined_call_operand.vmem [shape: bf16[64,288], index: 3, kind: input, shape index: {}]   ;;  %s2176_s4 = inlined_call_operand.vmem [shape: bf16[2,64,64], index: 4, kind: output, shape index: {0}]   ;;  %s2177_s5 = inlined_call_operand.vmem [shape: f32[2,1,64,1], index: 5, kind: output, shape index: {1}]   ;;  %s2178_s6 = inlined_call_operand.vmem [shape: f32[2,1,64,1], index: 6, kind: output, shape index: {2}]  }
   0x1   :  { %s1802_s23 = smov 0  }
   0x2 LB: > { %s29_s24 = sadd.s32 1, %s1756_s22  ;;  %p1486_p0 = scmp.ge.s32.totalorder %s1760_s23, 1  ;;  %s1760_s23 = sphi %s1802_s23, %s17_s23   ;;  %s1756_s22 = sphi %s1800_s22, %s2180_s22   ;;  %s1752_s21 = sphi %s1798_s21, %s2179_s21  }
   0x3   : > { %p31_p1 = scmp.ge.s32.totalorder %s29_s24, 2  ;;  %p240_p2 = scmp.lt.s32.totalorder %s1760_s23, 3 }
   0x5   : > { %s2182_s24 = smov (%p31_p1, %s29_s24), 0  ;;  %p241_p3 = pnand %p1486_p0, %p240_p2 }
   0x6   : > { %v417_v0 = vld [vmem:[%s2172_s0 + $0x80] sm:$0xff] (!%p241_p3)  ;;  %v1762_v2 = vmov (!%p241_p3), 0   ;;  %v418_v3 = vld [vmem:[%s2172_s0 + $0x88] sm:$0xff] (!%p241_p3)  ;;  %v419_v9 = vld [vmem:[%s2172_s0 + $0x90] sm:$0xff] (!%p241_p3)  ;;  %p294_p4 = scmp.lt.s32.totalorder (!%p241_p3), %s1752_s21, 1  ;;  %vm1035_vm0 = vcmask (!%p241_p3), 261120  }
   0x7   : > { %244 = sbr.rel (%p241_p3) target bundleno = 677 (0x2a5), region = 36  ;;  %v401_v1 = vld [vmem:[%s2172_s0] sm:$0xff] (!%p241_p3)  ;;  %1721 = vset.pattern.permute.xlu1 (!%p241_p3), %v1762_v2  ;;  %1720 = vset.pattern.permute.xlu0 (!%p241_p3), %v1762_v2  ;;  %v402_v4 = vld [vmem:[%s2172_s0 + $0x8] sm:$0xff] (!%p241_p3)  ;;  %v420_v10 = vld [vmem:[%s2172_s0 + $0x98] sm:$0xff] (!%p241_p3)  ;;  %vm1219_vm1 = vcmask (!%p241_p3), 523264   ;;  %vm1210_vm2 = vcmask (!%p241_p3), 519168  }
   0x8   : > { %519 = vperm.xlu0 (!%p241_p3), %1720, %v417_v0   ;;  %439 = vperm.xlu1 (!%p241_p3), %1721, %v401_v1   ;;  %v669_v5 = vld [vmem:[%s2173_s1 + $0x80] sm:$0xff] (!%p241_p3)  ;;  %v670_v6 = vld [vmem:[%s2173_s1 + $0x88] sm:$0xff] (!%p241_p3)  ;;  %v403_v11 = vld [vmem:[%s2172_s0 + $0x10] sm:$0xff] (!%p241_p3)  ;;  %vm1244_vm3 = vcmask (!%p241_p3), 7168  }
   0x9   : > { %v653_v7 = vld [vmem:[%s2173_s1] sm:$0xff] (!%p241_p3)  ;;  %v654_v8 = vld [vmem:[%s2173_s1 + $0x8] sm:$0xff] (!%p241_p3)  ;;  %v404_v12 = vld [vmem:[%s2172_s0 + $0x18] sm:$0xff] (!%p241_p3) }
   0xa   : > { %v671_v13 = vld [vmem:[%s2173_s1 + $0x90] sm:$0xff] (!%p241_p3)  ;;  %v672_v14 = vld [vmem:[%s2173_s1 + $0x98] sm:$0xff] (!%p241_p3)  ;;  %v421_v17 = vld [vmem:[%s2172_s0 + $0xa0] sm:$0xff] (!%p241_p3) }
   0xb   : > { %v655_v15 = vld [vmem:[%s2173_s1 + $0x10] sm:$0xff] (!%p241_p3)  ;;  %v656_v16 = vld [vmem:[%s2173_s1 + $0x18] sm:$0xff] (!%p241_p3)  ;;  %v422_v18 = vld [vmem:[%s2172_s0 + $0xa8] sm:$0xff] (!%p241_p3) }
   0xc   : > { %524 = vperm.xlu0 (!%p241_p3), %1720, %v418_v3   ;;  %444 = vperm.xlu1 (!%p241_p3), %1721, %v402_v4   ;;  %v405_v19 = vld [vmem:[%s2172_s0 + $0x20] sm:$0xff] (!%p241_p3)  ;;  %v406_v20 = vld [vmem:[%s2172_s0 + $0x28] sm:$0xff] (!%p241_p3)  ;;  %v423_v25 = vld [vmem:[%s2172_s0 + $0xb0] sm:$0xff] (!%p241_p3) }
   0xd   : > { %v673_v21 = vld [vmem:[%s2173_s1 + $0xa0] sm:$0xff] (!%p241_p3)  ;;  %v674_v22 = vld [vmem:[%s2173_s1 + $0xa8] sm:$0xff] (!%p241_p3)  ;;  %v424_v26 = vld [vmem:[%s2172_s0 + $0xb8] sm:$0xff] (!%p241_p3) }
   0xe   : > { %v657_v23 = vld [vmem:[%s2173_s1 + $0x20] sm:$0xff]  ;;  %v658_v24 = vld [vmem:[%s2173_s1 + $0x28] sm:$0xff]  ;;  %v407_v27 = vld [vmem:[%s2172_s0 + $0x30] sm:$0xff]  ;;  %s2184_s21 = smov (!%p294_p4, %s1752_s21), 1 }
   0xf   : > { %v408_v28 = vld [vmem:[%s2172_s0 + $0x38] sm:$0xff]  ;;  %v675_v29 = vld [vmem:[%s2173_s1 + $0xb0] sm:$0xff]  ;;  %v425_v33 = vld [vmem:[%s2172_s0 + $0xc0] sm:$0xff]  ;;  %s1694_s29 = smul.u32 144, %s2184_s21  ;;  %s1520_s14 = sshll.u32 %s2184_s21, 5 }
  0x10   : > { %771 = vperm.xlu0 %1720, %v669_v5   ;;  %776 = vperm.xlu1 %1721, %v670_v6   ;;  %v676_v30 = vld [vmem:[%s2173_s1 + $0xb8] sm:$0xff]  ;;  %v659_v31 = vld [vmem:[%s2173_s1 + $0x30] sm:$0xff]  ;;  %v426_v34 = vld [vmem:[%s2172_s0 + $0xc8] sm:$0xff]  ;;  %s2106_s17 = scalar_lea.vmem %s2176_s4, %s1520_s14  ;;  %s1521_s18 = sshll.u32 %s2184_s21, 6 }
  0x11   : > { %v660_v32 = vld [vmem:[%s2173_s1 + $0x38] sm:$0xff]  ;;  %v409_v35 = vld [vmem:[%s2172_s0 + $0x40] sm:$0xff]  ;;  %v410_v36 = vld [vmem:[%s2172_s0 + $0x48] sm:$0xff]  ;;  %s2018_s12 = scalar_lea.vmem %s2174_s2, %s1694_s29  ;;  %s318_s25 = scalar_lea.vmem %s2177_s5, %s1521_s18 }
  0x12   : > { %v677_v37 = vld [vmem:[%s2173_s1 + $0xc0] sm:$0xff]  ;;  %v678_v38 = vld [vmem:[%s2173_s1 + $0xc8] sm:$0xff]  ;;  %v427_v41 = vld [vmem:[%s2172_s0 + $0xd0] sm:$0xff] }
  0x13   : > { %v661_v39 = vld [vmem:[%s2173_s1 + $0x40] sm:$0xff]  ;;  %v662_v40 = vld [vmem:[%s2173_s1 + $0x48] sm:$0xff]  ;;  %v428_v42 = vld [vmem:[%s2172_s0 + $0xd8] sm:$0xff] }
  0x14   : > { %691 = vperm.xlu0 %1720, %v653_v7   ;;  %696 = vperm.xlu1 %1721, %v654_v8   ;;  %v411_v43 = vld [vmem:[%s2172_s0 + $0x50] sm:$0xff]  ;;  %v412_v44 = vld [vmem:[%s2172_s0 + $0x58] sm:$0xff]  ;;  %v429_v49 = vld [vmem:[%s2172_s0 + $0xe0] sm:$0xff] }
  0x15   : > { %v679_v45 = vld [vmem:[%s2173_s1 + $0xd0] sm:$0xff]  ;;  %v680_v46 = vld [vmem:[%s2173_s1 + $0xd8] sm:$0xff]  ;;  %v430_v50 = vld [vmem:[%s2172_s0 + $0xe8] sm:$0xff] }
  0x16   : > { %v663_v47 = vld [vmem:[%s2173_s1 + $0x50] sm:$0xff]  ;;  %v664_v48 = vld [vmem:[%s2173_s1 + $0x58] sm:$0xff]  ;;  %v413_v51 = vld [vmem:[%s2172_s0 + $0x60] sm:$0xff] }
  0x17   : > { %v414_v52 = vld [vmem:[%s2172_s0 + $0x68] sm:$0xff]  ;;  %v681_v53 = vld [vmem:[%s2173_s1 + $0xe0] sm:$0xff]  ;;  %v431_v57 = vld [vmem:[%s2172_s0 + $0xf0] sm:$0xff] }
  0x18   : > { %529 = vperm.xlu0 %1720, %v419_v9   ;;  %534 = vperm.xlu1 %1721, %v420_v10   ;;  %v682_v54 = vld [vmem:[%s2173_s1 + $0xe8] sm:$0xff]  ;;  %v665_v55 = vld [vmem:[%s2173_s1 + $0x60] sm:$0xff]  ;;  %v432_v58 = vld [vmem:[%s2172_s0 + $0xf8] sm:$0xff] }
  0x19   : > { %v666_v56 = vld [vmem:[%s2173_s1 + $0x68] sm:$0xff]  ;;  %v415_v59 = vld [vmem:[%s2172_s0 + $0x70] sm:$0xff]  ;;  %v416_v60 = vld [vmem:[%s2172_s0 + $0x78] sm:$0xff] }
  0x1a   : > { %v683_v61 = vld [vmem:[%s2173_s1 + $0xf0] sm:$0xff]  ;;  %v684_v62 = vld [vmem:[%s2173_s1 + $0xf8] sm:$0xff]  ;;  %v433_v1 = vld [vmem:[%s2172_s0 + $0x100] sm:$0xff] }
  0x1b   : > { %v667_v63 = vld [vmem:[%s2173_s1 + $0x70] sm:$0xff]  ;;  %v668_v0 = vld [vmem:[%s2173_s1 + $0x78] sm:$0xff]  ;;  %v434_v2 = vld [vmem:[%s2172_s0 + $0x108] sm:$0xff] }
  0x1c   : > { %449 = vperm.xlu0 %1720, %v403_v11   ;;  %454 = vperm.xlu1 %1721, %v404_v12   ;;  %v1610_v4 = vld [vmem:[%s2018_s12 + $0x40] sm:$0xff]   ;;  %v686_v7 = vld [vmem:[%s2173_s1 + $0x108] sm:$0xff] }
  0x1d   : > { %v685_v6 = vld [vmem:[%s2173_s1 + $0x100] sm:$0xff]  ;;  %v1565_v8 = vunpack.c.l.bf16 %v1610_v4  ;;  %v1566_v9 = vunpack.c.h.bf16 %v1610_v4 }
  0x1e   : > { %v1532_v10 = vld [vmem:[%s2018_s12] sm:$0xff]  }
  0x20   : > { %781 = vperm.xlu0 %1720, %v671_v13   ;;  %786 = vperm.xlu1 %1721, %v672_v14   ;;  %v435_v13 = vld [vmem:[%s2172_s0 + $0x110] sm:$0xff]  ;;  %v436_v14 = vld [vmem:[%s2172_s0 + $0x118] sm:$0xff] }
  0x24   : > { %701 = vperm.xlu0 %1720, %v655_v15   ;;  %706 = vperm.xlu1 %1721, %v656_v16   ;;  %v1533_v16 = vunpack.c.l.bf16 %v1532_v10 }
  0x28   : > { %539 = vperm.xlu0 %1720, %v421_v17   ;;  %544 = vperm.xlu1 %1721, %v422_v18   ;;  %v1534_v18 = vunpack.c.h.bf16 %v1532_v10 }
  0x2c   : > { %459 = vperm.xlu0 %1720, %v405_v19   ;;  %464 = vperm.xlu1 %1721, %v406_v20  }
  0x30   : > { %791 = vperm.xlu0 %1720, %v673_v21   ;;  %796 = vperm.xlu1 %1721, %v674_v22  }
  0x34   : > { %711 = vperm.xlu0 %1720, %v657_v23   ;;  %716 = vperm.xlu1 %1721, %v658_v24   ;;  %v1724_v23 = vld [vmem:[%s2175_s3 + $0x4] ss:$12 sps:$4 sm:$0xff]  }
  0x35   : > { %v687_v24 = vld [vmem:[%s2173_s1 + $0x110] sm:$0xff]  ;;  %1080 = vmatprep.mubr.bf16.mxu0 %v1724_v23 }
  0x38   : > { %549 = vperm.xlu0 %1720, %v423_v25   ;;  %554 = vperm.xlu1 %1721, %v424_v26   ;;  %v688_v25 = vld [vmem:[%s2173_s1 + $0x118] sm:$0xff] }
  0x39   : > { %v1727_v26 = vld [vmem:[%s2175_s3 + $0x4c] ss:$12 sps:$4 sm:$0xff]  }
  0x3a   : > { %1104 = vmatprep.mubr.bf16.mxu1 %v1727_v26 }
  0x3c   : > { %469 = vperm.xlu0 %1720, %v407_v27   ;;  %474 = vperm.xlu1 %1721, %v408_v28  }
  0x40   : > { %801 = vperm.xlu0 %1720, %v675_v29   ;;  %806 = vperm.xlu1 %1721, %v676_v30  }
  0x44   : > { %721 = vperm.xlu0 %1720, %v659_v31   ;;  %726 = vperm.xlu1 %1721, %v660_v32  }
  0x48   : > { %559 = vperm.xlu0 %1720, %v425_v33   ;;  %564 = vperm.xlu1 %1721, %v426_v34  }
  0x4c   : > { %479 = vperm.xlu0 %1720, %v409_v35   ;;  %484 = vperm.xlu1 %1721, %v410_v36  }
  0x50   : > { %811 = vperm.xlu0 %1720, %v677_v37   ;;  %816 = vperm.xlu1 %1721, %v678_v38  }
  0x54   : > { %731 = vperm.xlu0 %1720, %v661_v39   ;;  %736 = vperm.xlu1 %1721, %v662_v40   ;;  %v1611_v39 = vld [vmem:[%s2018_s12 + $0x48] sm:$0xff]  }
  0x58   : > { %569 = vperm.xlu0 %1720, %v427_v41   ;;  %574 = vperm.xlu1 %1721, %v428_v42   ;;  %v1569_v42 = vunpack.c.l.bf16 %v1611_v39 }
  0x5c   : > { %489 = vperm.xlu0 %1720, %v411_v43   ;;  %494 = vperm.xlu1 %1721, %v412_v44   ;;  %v1570_v43 = vunpack.c.h.bf16 %v1611_v39 }
  0x60   : > { %821 = vperm.xlu0 %1720, %v679_v45   ;;  %826 = vperm.xlu1 %1721, %v680_v46   ;;  %v1603_v45 = vld [vmem:[%s2018_s12 + $0x8] sm:$0xff]  }
  0x64   : > { %741 = vperm.xlu0 %1720, %v663_v47   ;;  %746 = vperm.xlu1 %1721, %v664_v48  }
  0x68   : > { %579 = vperm.xlu0 %1720, %v429_v49   ;;  %584 = vperm.xlu1 %1721, %v430_v50   ;;  %v1537_v49 = vunpack.c.l.bf16 %v1603_v45  ;;  %v1538_v50 = vunpack.c.h.bf16 %v1603_v45 }
  0x6c   : > { %499 = vperm.xlu0 %1720, %v413_v51   ;;  %504 = vperm.xlu1 %1721, %v414_v52  }
  0x70   : > { %831 = vperm.xlu0 %1720, %v681_v53   ;;  %836 = vperm.xlu1 %1721, %v682_v54  }
  0x74   : > { %751 = vperm.xlu0 %1720, %v665_v55   ;;  %756 = vperm.xlu1 %1721, %v666_v56  }
  0x78   : > { %589 = vperm.xlu0 %1720, %v431_v57   ;;  %594 = vperm.xlu1 %1721, %v432_v58  }
  0x7c   : > { %509 = vperm.xlu0 %1720, %v415_v59   ;;  %514 = vperm.xlu1 %1721, %v416_v60  }
  0x80   : > { %841 = vperm.xlu0 %1720, %v683_v61   ;;  %846 = vperm.xlu1 %1721, %v684_v62  }
  0x84   : > { %761 = vperm.xlu0 %1720, %v667_v63   ;;  %766 = vperm.xlu1 %1721, %v668_v0  }
  0x87   : > { %v520_v3 = vpop.permute.xlu0 %519  ;;  %v440_v5 = vpop.permute.xlu1 %439 }
  0x88   : > { %599 = vperm.xlu0 %1720, %v433_v1   ;;  %604 = vperm.xlu1 %1721, %v434_v2   ;;  %v633_v15 = vmul.f32 %v1565_v8, %v520_v3  ;;  %v617_v27 = vmul.f32 %v1533_v16, %v440_v5  ;;  %v1612_v3 = vld [vmem:[%s2018_s12 + $0x50] sm:$0xff]  }
  0x8b   : > { %v525_v11 = vpop.permute.xlu0 %524  ;;  %v445_v12 = vpop.permute.xlu1 %444 }
  0x8c   : > { %851 = vperm.xlu0 %1720, %v685_v6   ;;  %856 = vperm.xlu1 %1721, %v686_v7   ;;  %v634_v17 = vmul.f32 %v1566_v9, %v525_v11  ;;  %v618_v28 = vmul.f32 %v1534_v18, %v445_v12  ;;  %v1573_v6 = vunpack.c.l.bf16 %v1612_v3  ;;  %v1574_v7 = vunpack.c.h.bf16 %v1612_v3  ;;  %v1604_v9 = vld [vmem:[%s2018_s12 + $0x10] sm:$0xff]  }
  0x8f   : > { %v772_v19 = vpop.permute.xlu0 %771  ;;  %v777_v20 = vpop.permute.xlu1 %776 }
  0x90   : > { %v885_v21 = vadd.f32 %v772_v19, %v633_v15  ;;  %v886_v22 = vadd.f32 %v777_v20, %v634_v17  ;;  %609 = vperm.xlu0 %1720, %v435_v13   ;;  %614 = vperm.xlu1 %1721, %v436_v14   ;;  %v1541_v13 = vunpack.c.l.bf16 %v1604_v9  ;;  %v1542_v14 = vunpack.c.h.bf16 %v1604_v9 }
  0x92   : > { %v921_v29 = vmax.f32 %v885_v21, 0.0  ;;  %v922_v30 = vmax.f32 %v886_v22, 0.0 }
  0x93   : > { %v692_v31 = vpop.permute.xlu0 %691  ;;  %v697_v32 = vpop.permute.xlu1 %696 }
  0x94   : > { %v869_v33 = vadd.f32 %v692_v31, %v617_v27  ;;  %v870_v34 = vadd.f32 %v697_v32, %v618_v28  ;;  %861 = vperm.xlu0 %1720, %v687_v24   ;;  %866 = vperm.xlu1 %1721, %v688_v25   ;;  %v965_v35 = vpack.c.bf16 %v922_v30, %v921_v29  ;;  %v1613_v31 = vld [vmem:[%s2018_s12 + $0x58] sm:$0xff]  }
  0x96   : > { %v905_v36 = vmax.f32 %v869_v33, 0.0  ;;  %v906_v37 = vmax.f32 %v870_v34, 0.0  ;;  %1620 = vmatprep.subr.bf16.mxu0 %v965_v35  ;;  %1678 = vmatprep.subr.bf16.mxu1 %v965_v35  ;;  %v1577_v34 = vunpack.c.l.bf16 %v1613_v31  ;;  %v1578_v35 = vunpack.c.h.bf16 %v1613_v31 }
  0x97   : > { %v530_v38 = vpop.permute.xlu0 %529  ;;  %v535_v40 = vpop.permute.xlu1 %534 }
  0x98   : > { %v957_v41 = vpack.c.bf16 %v906_v37, %v905_v36  ;;  %v635_v47 = vmul.f32 %v1569_v42, %v530_v38  ;;  %v636_v48 = vmul.f32 %v1570_v43, %v535_v40  ;;  %v1605_v37 = vld [vmem:[%s2018_s12 + $0x18] sm:$0xff]  }
  0x99   : > { %v1546_v42 = vunpack.c.h.bf16 %v1605_v37 }
  0x9a   : > { %1621 = vmatpush3.bf16.msra.mxu0 %v957_v41  ;;  %1686 = vmatpush3.bf16.msra.mxu1 %v957_v41  ;;  %v1545_v41 = vunpack.c.l.bf16 %v1605_v37 }
  0x9b   : > { %v450_v44 = vpop.permute.xlu0 %449  ;;  %v455_v46 = vpop.permute.xlu1 %454 }
  0x9c   : > { %v619_v55 = vmul.f32 %v1537_v49, %v450_v44  ;;  %v620_v56 = vmul.f32 %v1538_v50, %v455_v46 }
  0x9f   : > { %v782_v51 = vpop.permute.xlu0 %781  ;;  %v787_v52 = vpop.permute.xlu1 %786 }
  0xa0   : > { %v887_v53 = vadd.f32 %v782_v51, %v635_v47  ;;  %v888_v54 = vadd.f32 %v787_v52, %v636_v48 }
  0xa2   : > { %v923_v57 = vmax.f32 %v887_v53, 0.0  ;;  %v924_v58 = vmax.f32 %v888_v54, 0.0 }
  0xa3   : > { %v702_v59 = vpop.permute.xlu0 %701  ;;  %v707_v60 = vpop.permute.xlu1 %706 }
  0xa4   : > { %v966_v61 = vpack.c.bf16 %v924_v58, %v923_v57  ;;  %v871_v62 = vadd.f32 %v702_v59, %v619_v55  ;;  %v872_v63 = vadd.f32 %v707_v60, %v620_v56  ;;  %v1614_v59 = vld [vmem:[%s2018_s12 + $0x60] sm:$0xff]  }
  0xa6   : > { %v907_v0 = vmax.f32 %v871_v62, 0.0  ;;  %v908_v1 = vmax.f32 %v872_v63, 0.0  ;;  %1622 = vmatprep.subr.bf16.mxu0 %v966_v61  ;;  %1679 = vmatprep.subr.bf16.mxu1 %v966_v61  ;;  %v1581_v62 = vunpack.c.l.bf16 %v1614_v59  ;;  %v1582_v63 = vunpack.c.h.bf16 %v1614_v59 }
  0xa7   : > { %v540_v2 = vpop.permute.xlu0 %539  ;;  %v545_v4 = vpop.permute.xlu1 %544 }
  0xa8   : > { %v958_v5 = vpack.c.bf16 %v908_v1, %v907_v0  ;;  %v637_v11 = vmul.f32 %v1573_v6, %v540_v2  ;;  %v638_v12 = vmul.f32 %v1574_v7, %v545_v4  ;;  %v1606_v1 = vld [vmem:[%s2018_s12 + $0x20] sm:$0xff]  }
  0xa9   : > { %v1550_v6 = vunpack.c.h.bf16 %v1606_v1 }
  0xaa   : > { %1623 = vmatpush3.bf16.msra.mxu0 %v958_v5  ;;  %1687 = vmatpush3.bf16.msra.mxu1 %v958_v5  ;;  %v1549_v5 = vunpack.c.l.bf16 %v1606_v1 }
  0xab   : > { %v460_v8 = vpop.permute.xlu0 %459  ;;  %v465_v10 = vpop.permute.xlu1 %464 }
  0xac   : > { %v621_v19 = vmul.f32 %v1541_v13, %v460_v8  ;;  %v622_v20 = vmul.f32 %v1542_v14, %v465_v10 }
  0xaf   : > { %v792_v15 = vpop.permute.xlu0 %791  ;;  %v797_v16 = vpop.permute.xlu1 %796 }
  0xb0   : > { %v889_v17 = vadd.f32 %v792_v15, %v637_v11  ;;  %v890_v18 = vadd.f32 %v797_v16, %v638_v12 }
  0xb2   : > { %v925_v21 = vmax.f32 %v889_v17, 0.0  ;;  %v926_v22 = vmax.f32 %v890_v18, 0.0 }
  0xb3   : > { %v712_v23 = vpop.permute.xlu0 %711  ;;  %v717_v24 = vpop.permute.xlu1 %716 }
  0xb4   : > { %v967_v25 = vpack.c.bf16 %v926_v22, %v925_v21  ;;  %v873_v26 = vadd.f32 %v712_v23, %v621_v19  ;;  %v874_v27 = vadd.f32 %v717_v24, %v622_v20  ;;  %v1615_v23 = vld [vmem:[%s2018_s12 + $0x68] sm:$0xff]  }
  0xb6   : > { %v909_v28 = vmax.f32 %v873_v26, 0.0  ;;  %v910_v29 = vmax.f32 %v874_v27, 0.0  ;;  %1624 = vmatprep.subr.bf16.mxu0 %v967_v25  ;;  %1680 = vmatprep.subr.bf16.mxu1 %v967_v25  ;;  %v1585_v26 = vunpack.c.l.bf16 %v1615_v23  ;;  %v1586_v27 = vunpack.c.h.bf16 %v1615_v23 }
  0xb7   : > { %v550_v30 = vpop.permute.xlu0 %549  ;;  %v555_v32 = vpop.permute.xlu1 %554 }
  0xb8   : > { %v959_v33 = vpack.c.bf16 %v910_v29, %v909_v28  ;;  %v639_v39 = vmul.f32 %v1577_v34, %v550_v30  ;;  %v640_v40 = vmul.f32 %v1578_v35, %v555_v32  ;;  %v1607_v29 = vld [vmem:[%s2018_s12 + $0x28] sm:$0xff]  }
  0xb9   : > { %v1554_v34 = vunpack.c.h.bf16 %v1607_v29 }
  0xba   : > { %1625 = vmatpush3.bf16.msra.mxu0 %v959_v33  ;;  %1688 = vmatpush3.bf16.msra.mxu1 %v959_v33  ;;  %v1553_v33 = vunpack.c.l.bf16 %v1607_v29 }
  0xbb   : > { %v470_v36 = vpop.permute.xlu0 %469  ;;  %v475_v38 = vpop.permute.xlu1 %474 }
  0xbc   : > { %v623_v47 = vmul.f32 %v1545_v41, %v470_v36  ;;  %v624_v48 = vmul.f32 %v1546_v42, %v475_v38 }
  0xbf   : > { %v802_v43 = vpop.permute.xlu0 %801  ;;  %v807_v44 = vpop.permute.xlu1 %806 }
  0xc0   : > { %v891_v45 = vadd.f32 %v802_v43, %v639_v39  ;;  %v892_v46 = vadd.f32 %v807_v44, %v640_v40 }
  0xc2   : > { %v927_v49 = vmax.f32 %v891_v45, 0.0  ;;  %v928_v50 = vmax.f32 %v892_v46, 0.0 }
  0xc3   : > { %v722_v51 = vpop.permute.xlu0 %721  ;;  %v727_v52 = vpop.permute.xlu1 %726 }
  0xc4   : > { %v968_v53 = vpack.c.bf16 %v928_v50, %v927_v49  ;;  %v875_v54 = vadd.f32 %v722_v51, %v623_v47  ;;  %v876_v55 = vadd.f32 %v727_v52, %v624_v48  ;;  %v1616_v51 = vld [vmem:[%s2018_s12 + $0x70] sm:$0xff]  }
  0xc6   : > { %v911_v56 = vmax.f32 %v875_v54, 0.0  ;;  %v912_v57 = vmax.f32 %v876_v55, 0.0  ;;  %1626 = vmatprep.subr.bf16.mxu0 %v968_v53  ;;  %1681 = vmatprep.subr.bf16.mxu1 %v968_v53  ;;  %v1589_v54 = vunpack.c.l.bf16 %v1616_v51  ;;  %v1590_v55 = vunpack.c.h.bf16 %v1616_v51 }
  0xc7   : > { %v560_v58 = vpop.permute.xlu0 %559  ;;  %v565_v60 = vpop.permute.xlu1 %564 }
  0xc8   : > { %v960_v61 = vpack.c.bf16 %v912_v57, %v911_v56  ;;  %v641_v3 = vmul.f32 %v1581_v62, %v560_v58  ;;  %v642_v4 = vmul.f32 %v1582_v63, %v565_v60  ;;  %v1608_v57 = vld [vmem:[%s2018_s12 + $0x30] sm:$0xff]  }
  0xc9   : > { %v1558_v62 = vunpack.c.h.bf16 %v1608_v57 }
  0xca   : > { %1627 = vmatpush3.bf16.msra.mxu0 %v960_v61  ;;  %1689 = vmatpush3.bf16.msra.mxu1 %v960_v61  ;;  %v1557_v61 = vunpack.c.l.bf16 %v1608_v57 }
  0xcb   : > { %v480_v0 = vpop.permute.xlu0 %479  ;;  %v485_v2 = vpop.permute.xlu1 %484 }
  0xcc   : > { %v625_v11 = vmul.f32 %v1549_v5, %v480_v0  ;;  %v626_v12 = vmul.f32 %v1550_v6, %v485_v2 }
  0xcf   : > { %v812_v7 = vpop.permute.xlu0 %811  ;;  %v817_v8 = vpop.permute.xlu1 %816 }
  0xd0   : > { %v893_v9 = vadd.f32 %v812_v7, %v641_v3  ;;  %v894_v10 = vadd.f32 %v817_v8, %v642_v4 }
  0xd2   : > { %v929_v13 = vmax.f32 %v893_v9, 0.0  ;;  %v930_v14 = vmax.f32 %v894_v10, 0.0 }
  0xd3   : > { %v732_v15 = vpop.permute.xlu0 %731  ;;  %v737_v16 = vpop.permute.xlu1 %736 }
  0xd4   : > { %v969_v17 = vpack.c.bf16 %v930_v14, %v929_v13  ;;  %v877_v18 = vadd.f32 %v732_v15, %v625_v11  ;;  %v878_v19 = vadd.f32 %v737_v16, %v626_v12  ;;  %v1617_v15 = vld [vmem:[%s2018_s12 + $0x78] sm:$0xff]  }
  0xd6   : > { %v913_v20 = vmax.f32 %v877_v18, 0.0  ;;  %v914_v21 = vmax.f32 %v878_v19, 0.0  ;;  %1628 = vmatprep.subr.bf16.mxu0 %v969_v17  ;;  %1682 = vmatprep.subr.bf16.mxu1 %v969_v17  ;;  %v1593_v18 = vunpack.c.l.bf16 %v1617_v15  ;;  %v1594_v19 = vunpack.c.h.bf16 %v1617_v15  ;;  %v1733_v15 = vld [vmem:[%s2175_s3 + $0x38] ss:$12 sps:$4 sm:$0xff]  }
  0xd7   : > { %v570_v22 = vpop.permute.xlu0 %569  ;;  %v575_v24 = vpop.permute.xlu1 %574 }
  0xd8   : > { %v961_v25 = vpack.c.bf16 %v914_v21, %v913_v20  ;;  %v643_v31 = vmul.f32 %v1585_v26, %v570_v22  ;;  %v644_v32 = vmul.f32 %v1586_v27, %v575_v24  ;;  %v1609_v21 = vld [vmem:[%s2018_s12 + $0x38] sm:$0xff]  }
  0xd9   : > { %v1562_v26 = vunpack.c.h.bf16 %v1609_v21 }
  0xda   : > { %1629 = vmatpush3.bf16.msra.mxu0 %v961_v25  ;;  %1690 = vmatpush3.bf16.msra.mxu1 %v961_v25  ;;  %v1561_v25 = vunpack.c.l.bf16 %v1609_v21 }
  0xdb   : > { %v490_v28 = vpop.permute.xlu0 %489  ;;  %v495_v30 = vpop.permute.xlu1 %494 }
  0xdc   : > { %v627_v39 = vmul.f32 %v1553_v33, %v490_v28  ;;  %v628_v40 = vmul.f32 %v1554_v34, %v495_v30 }
  0xdf   : > { %v822_v35 = vpop.permute.xlu0 %821  ;;  %v827_v36 = vpop.permute.xlu1 %826 }
  0xe0   : > { %v895_v37 = vadd.f32 %v822_v35, %v643_v31  ;;  %v896_v38 = vadd.f32 %v827_v36, %v644_v32 }
  0xe2   : > { %v931_v41 = vmax.f32 %v895_v37, 0.0  ;;  %v932_v42 = vmax.f32 %v896_v38, 0.0  ;;  %v1618_v37 = vld [vmem:[%s2018_s12 + $0x80] sm:$0xff]  }
  0xe3   : > { %v742_v43 = vpop.permute.xlu0 %741  ;;  %v747_v44 = vpop.permute.xlu1 %746 }
  0xe4   : > { %v970_v45 = vpack.c.bf16 %v932_v42, %v931_v41  ;;  %v879_v46 = vadd.f32 %v742_v43, %v627_v39  ;;  %v880_v47 = vadd.f32 %v747_v44, %v628_v40  ;;  %v1597_v43 = vunpack.c.l.bf16 %v1618_v37 }
  0xe5   : > { %v1598_v44 = vunpack.c.h.bf16 %v1618_v37 }
  0xe6   : > { %v915_v48 = vmax.f32 %v879_v46, 0.0  ;;  %v916_v49 = vmax.f32 %v880_v47, 0.0  ;;  %1630 = vmatprep.subr.bf16.mxu0 %v970_v45  ;;  %1683 = vmatprep.subr.bf16.mxu1 %v970_v45 }
  0xe7   : > { %v580_v50 = vpop.permute.xlu0 %579  ;;  %v585_v52 = vpop.permute.xlu1 %584 }
  0xe8   : > { %v962_v53 = vpack.c.bf16 %v916_v49, %v915_v48  ;;  %v645_v59 = vmul.f32 %v1589_v54, %v580_v50  ;;  %v646_v60 = vmul.f32 %v1590_v55, %v585_v52  ;;  %v1722_v48 = vld [vmem:[%s2175_s3] ss:$12 sps:$4 sm:$0xff]   ;;  %v1725_v49 = vld [vmem:[%s2175_s3 + $0x48] ss:$12 sps:$4 sm:$0xff]  }
  0xe9   : > { %v1728_v52 = vld [vmem:[%s2175_s3 + $0x1c] ss:$12 sps:$4 sm:$0xff]  }
  0xea   : > { %1631 = vmatpush3.bf16.msra.mxu0 %v962_v53  ;;  %1691 = vmatpush3.bf16.msra.mxu1 %v962_v53  ;;  %v1731_v53 = vld [vmem:[%s2175_s3 + $0x8] ss:$12 sps:$4 sm:$0xff]  }
  0xeb   : > { %v500_v56 = vpop.permute.xlu0 %499  ;;  %v505_v58 = vpop.permute.xlu1 %504 }
  0xec   : > { %v629_v3 = vmul.f32 %v1557_v61, %v500_v56  ;;  %v630_v4 = vmul.f32 %v1558_v62, %v505_v58  ;;  %v1619_v56 = vld [vmem:[%s2018_s12 + $0x88] sm:$0xff]   ;;  %s327_s12 = scalar_lea.vmem %s2178_s6, %s1521_s18 }
  0xed   : > { %v1601_v61 = vunpack.c.l.bf16 %v1619_v56  ;;  %v1602_v62 = vunpack.c.h.bf16 %v1619_v56 }
  0xef   : > { %v832_v63 = vpop.permute.xlu0 %831  ;;  %v837_v0 = vpop.permute.xlu1 %836 }
  0xf0   : > { %v897_v1 = vadd.f32 %v832_v63, %v645_v59  ;;  %v898_v2 = vadd.f32 %v837_v0, %v646_v60 }
  0xf2   : > { %v933_v5 = vmax.f32 %v897_v1, 0.0  ;;  %v934_v6 = vmax.f32 %v898_v2, 0.0  ;;  %v1730_v2 = vld [vmem:[%s2175_s3 + $0x18] ss:$12 sps:$4 sm:$0xff]  }
  0xf3   : > { %v752_v7 = vpop.permute.xlu0 %751  ;;  %v757_v8 = vpop.permute.xlu1 %756 }
  0xf4   : > { %v971_v9 = vpack.c.bf16 %v934_v6, %v933_v5  ;;  %v881_v10 = vadd.f32 %v752_v7, %v629_v3  ;;  %v882_v11 = vadd.f32 %v757_v8, %v630_v4  ;;  %v1735_v5 = vld [vmem:[%s2175_s3 + $0x34] ss:$12 sps:$4 sm:$0xff]  }
  0xf6   : > { %v917_v12 = vmax.f32 %v881_v10, 0.0  ;;  %v918_v13 = vmax.f32 %v882_v11, 0.0  ;;  %1632 = vmatprep.subr.bf16.mxu0 %v971_v9  ;;  %1684 = vmatprep.subr.bf16.mxu1 %v971_v9 }
  0xf7   : > { %v590_v14 = vpop.permute.xlu0 %589  ;;  %v595_v16 = vpop.permute.xlu1 %594 }
  0xf8   : > { %v963_v17 = vpack.c.bf16 %v918_v13, %v917_v12  ;;  %v647_v23 = vmul.f32 %v1593_v18, %v590_v14  ;;  %v648_v24 = vmul.f32 %v1594_v19, %v595_v16  ;;  %v1737_v13 = vld [vmem:[%s2175_s3 + $0x30] ss:$12 sps:$4 sm:$0xff]   ;;  %v1732_v14 = vld [vmem:[%s2175_s3 + $0x20] ss:$12 sps:$4 sm:$0xff]  }
  0xf9   : > { %v1734_v16 = vld [vmem:[%s2175_s3 + $0x50] ss:$12 sps:$4 sm:$0xff]  }
  0xfa   : > { %1633 = vmatpush3.bf16.msra.mxu0 %v963_v17  ;;  %1692 = vmatpush3.bf16.msra.mxu1 %v963_v17 }
  0xfb   : > { %v510_v20 = vpop.permute.xlu0 %509  ;;  %v515_v22 = vpop.permute.xlu1 %514 }
  0xfc   : > { %v631_v31 = vmul.f32 %v1561_v25, %v510_v20  ;;  %v632_v32 = vmul.f32 %v1562_v26, %v515_v22 }
  0xff   : > { %v842_v27 = vpop.permute.xlu0 %841  ;;  %v847_v28 = vpop.permute.xlu1 %846 }
 0x100   : > { %v899_v29 = vadd.f32 %v842_v27, %v647_v23  ;;  %v900_v30 = vadd.f32 %v847_v28, %v648_v24 }
 0x102   : > { %v935_v33 = vmax.f32 %v899_v29, 0.0  ;;  %v936_v34 = vmax.f32 %v900_v30, 0.0 }
 0x103   : > { %v762_v35 = vpop.permute.xlu0 %761  ;;  %v767_v36 = vpop.permute.xlu1 %766 }
 0x104   : > { %v972_v38 = vpack.c.bf16 %v936_v34, %v935_v33  ;;  %v883_v39 = vadd.f32 %v762_v35, %v631_v31  ;;  %v884_v40 = vadd.f32 %v767_v36, %v632_v32 }
 0x106   : > { %v919_v41 = vmax.f32 %v883_v39, 0.0  ;;  %v920_v42 = vmax.f32 %v884_v40, 0.0  ;;  %1634 = vmatprep.subr.bf16.mxu0 %v972_v38  ;;  %1685 = vmatprep.subr.bf16.mxu1 %v972_v38 }
 0x107   : > { %v600_v45 = vpop.permute.xlu0 %599  ;;  %v605_v46 = vpop.permute.xlu1 %604 }
 0x108   : > { %v964_v47 = vpack.c.bf16 %v920_v42, %v919_v41  ;;  %v649_v50 = vmul.f32 %v1597_v43, %v600_v45  ;;  %v650_v51 = vmul.f32 %v1598_v44, %v605_v46 }
 0x10a   : > { %1635 = vmatpush3.bf16.msra.mxu0 %v964_v47  ;;  %1693 = vmatpush3.bf16.msra.mxu1 %v964_v47 }
 0x10b   : > { %v852_v54 = vpop.permute.xlu0 %851  ;;  %v857_v55 = vpop.permute.xlu1 %856 }
 0x10c   : > { %v901_v57 = vadd.f32 %v852_v54, %v649_v50  ;;  %v902_v58 = vadd.f32 %v857_v55, %v650_v51 }
 0x10d   : > { %1081 = vmatmul.mubr.bf16.vlgmr.msra.gmra.mrb[0].mxu0 %v1722_v48  ;;  %1105 = vmatmul.mubr.bf16.vlgmr.msra.gmra.mrb[0].mxu1 %v1725_v49 }
 0x10e   : > { %v937_v59 = vmax.f32 %v901_v57, 0.0  ;;  %v938_v60 = vmax.f32 %v902_v58, 0.0  ;;  %1088 = vmatprep.mubr.bf16.mxu0 %v1728_v52  ;;  %1670 = vmatprep.mubr.msk.bf16.mxu1 %vm1035_vm0, %v1731_v53 }
 0x10f   : > { %v610_v63 = vpop.permute.xlu0 %609  ;;  %v615_v0 = vpop.permute.xlu1 %614 }
 0x110   : > { %v973_v1 = vpack.c.bf16 %v938_v60, %v937_v59  ;;  %v651_v3 = vmul.f32 %v1601_v61, %v610_v63  ;;  %v652_v4 = vmul.f32 %v1602_v62, %v615_v0 }
 0x112   : > { %1666 = vmatprep.subr.bf16.mxu1 %v973_v1 }
 0x113   : > { %v862_v6 = vpop.permute.xlu0 %861  ;;  %v867_v7 = vpop.permute.xlu1 %866  ;;  %1667 = vmatpush3.bf16.msra.mxu1 %v973_v1 }
 0x114   : > { %v903_v8 = vadd.f32 %v862_v6, %v651_v3  ;;  %v904_v9 = vadd.f32 %v867_v7, %v652_v4 }
 0x115   : > { %1089 = vmatmul.mubr.bf16.gmra.mrb[4].mxu0 %v1730_v2 }
 0x116   : > { %v939_v10 = vmax.f32 %v903_v8, 0.0  ;;  %v940_v11 = vmax.f32 %v904_v9, 0.0  ;;  %1096 = vmatprep.mubr.bf16.mxu0 %v1735_v5 }
 0x118   : > { %v974_v12 = vpack.c.bf16 %v940_v11, %v939_v10 }
 0x11a   : > { %1668 = vmatprep.subr.bf16.mxu1 %v974_v12 }
 0x11b   : > { %1669 = vmatpush3.bf16.msra.mxu1 %v974_v12 }
 0x11d   : > { %1097 = vmatmul.mubr.bf16.gmra.mrb[8].mxu0 %v1737_v13 }
 0x11e   : > { %1671 = vmatmul.mubr.msk.bf16.vlgmr.msra.gmra.mrb[4].mxu1 %vm1035_vm0, %v1732_v14 }
 0x11f   : > { %1674 = vmatprep.mubr.msk.bf16.mxu1 %vm1035_vm0, %v1733_v15 }
 0x126   : > { %1675 = vmatmul.mubr.msk.bf16.gmra.mrb[8].mxu1 %vm1035_vm0, %v1734_v16 }
 0x1e0   : > { %v1654_v17 = vpop.f32.mrb[0].mxu1  ;;  %v1636_v18 = vpop.f32.mrb[0].mxu0 }
 0x1e1   : > { %v1655_v19 = vpop.f32.mrb[1].mxu1  ;;  %v1637_v20 = vpop.f32.mrb[1].mxu0 }
 0x1e2   : > { %v1656_v21 = vadd.f32 %v1655_v19, %v1654_v17  ;;  %v1657_v22 = vpop.f32.mrb[2].mxu1  ;;  %v1638_v23 = vadd.f32 %v1637_v20, %v1636_v18  ;;  %v1639_v24 = vpop.f32.mrb[2].mxu0 }
 0x1e3   : > { %v1658_v25 = vpop.f32.mrb[3].mxu1  ;;  %v1640_v26 = vpop.f32.mrb[3].mxu0 }
 0x1e4   : > { %v1659_v27 = vadd.f32 %v1658_v25, %v1657_v22  ;;  %v1641_v28 = vadd.f32 %v1640_v26, %v1639_v24 }
 0x1e8   : > { %v1642_v29 = vpop.f32.mrb[4].mxu0 }
 0x1e9   : > { %v1643_v30 = vpop.f32.mrb[5].mxu0 }
 0x1ea   : > { %v1644_v31 = vadd.f32 %v1643_v30, %v1642_v29  ;;  %v1645_v32 = vpop.f32.mrb[6].mxu0 }
 0x1eb   : > { %v1646_v33 = vpop.f32.mrb[7].mxu0 }
 0x1ec   : > { %v1647_v34 = vadd.f32 %v1646_v33, %v1645_v32 }
 0x1f0   : > { %v1648_v35 = vpop.f32.mrb[8].mxu0 }
 0x1f1   : > { %v1672_v36 = vpop.f32.mrb[4].mxu1  ;;  %v1649_v37 = vpop.f32.mrb[9].mxu0 }
 0x1f2   : > { %v1156_v38 = vadd.f32 %v1672_v36, %v1644_v31  ;;  %v1147_v39 = vpop.f32.mrb[5].mxu1  ;;  %v1650_v40 = vadd.f32 %v1649_v37, %v1648_v35  ;;  %v1651_v41 = vpop.f32.mrb[10].mxu0 }
 0x1f3   : > { %v1148_v42 = vadd.f32 %v1638_v23, %v1147_v39  ;;  %v1673_v43 = vpop.f32.mrb[6].mxu1  ;;  %v1652_v44 = vpop.f32.mrb[11].mxu0 }
 0x1f4   : > { %v1525_v45 = vpack.c.bf16 %v1156_v38, %v1156_v38  ;;  %v1159_v46 = vadd.f32 %v1673_v43, %v1647_v34  ;;  %v1150_v47 = vpop.f32.mrb[7].mxu1  ;;  %v1653_v52 = vadd.f32 %v1652_v44, %v1651_v41  ;;  %v1226_v57 = vsel %vm1219_vm1, %v1156_v38, 0.0 }
 0x1f5   : > { %v1523_v48 = vpack.c.bf16 %v1148_v42, %v1148_v42  ;;  %v1151_v49 = vadd.f32 %v1641_v28, %v1150_v47  ;;  %v1220_v50 = vsel %vm1219_vm1, %v1148_v42, 0.0  ;;  %v1253_v55 = vmul.f32 %v1148_v42, %v1148_v42 }
 0x1f6   : > { %1213 = vst.msk [vmem:[%s2106_s17 + $0x8] sm:$0xf] %vm1210_vm2, %v1525_v45  ;;  %v1526_v51 = vpack.c.bf16 %v1159_v46, %v1159_v46  ;;  %1221 = vadd.xlane.f32.xlu0 %v1220_v50  ;;  %v1255_v62 = vmul.f32 %v1156_v38, %v1156_v38  ;;  %v1229_v3 = vsel %vm1219_vm1, %v1159_v46, 0.0  ;;  %v1256_v11 = vmul.f32 %v1159_v46, %v1159_v46 }
 0x1f7   : > { %1211 = vst.msk [vmem:[%s2106_s17] sm:$0xf] %vm1210_vm2, %v1523_v48  ;;  %v1524_v53 = vpack.c.bf16 %v1151_v49, %v1151_v49  ;;  %v1223_v54 = vsel %vm1219_vm1, %v1151_v49, 0.0  ;;  %v1261_v61 = vsel %vm1219_vm1, %v1253_v55, 0.0  ;;  %v1254_v5 = vmul.f32 %v1151_v49, %v1151_v49 }
 0x1f8   : > { %1214 = vst.msk [vmem:[%s2106_s17 + $0xc] sm:$0xf] %vm1210_vm2, %v1526_v51  ;;  %1224 = vadd.xlane.f32.xlu1 %v1223_v54  ;;  %v1267_v8 = vsel %vm1219_vm1, %v1255_v62, 0.0  ;;  %v1270_v13 = vsel %vm1219_vm1, %v1256_v11, 0.0 }
 0x1f9   : > { %1212 = vst.msk [vmem:[%s2106_s17 + $0x4] sm:$0xf] %vm1210_vm2, %v1524_v53  ;;  %v1676_v56 = vpop.f32.mrb[8].mxu1  ;;  %v1264_v10 = vsel %vm1219_vm1, %v1254_v5, 0.0 }
 0x1fa   : > { %v1172_v58 = vadd.f32 %v1676_v56, %v1656_v21  ;;  %v1163_v59 = vpop.f32.mrb[9].mxu1  ;;  %1227 = vadd.xlane.f32.xlu0 %v1226_v57 }
 0x1fb   : > { %v1677_v60 = vpop.f32.mrb[10].mxu1  ;;  %v1164_v63 = vadd.f32 %v1650_v40, %v1163_v59 }
 0x1fc   : > { %v1529_v0 = vpack.c.bf16 %v1172_v58, %v1172_v58  ;;  %v1175_v1 = vadd.f32 %v1677_v60, %v1659_v27  ;;  %1262 = vadd.xlane.f32.xlu1 %v1261_v61  ;;  %v1166_v2 = vpop.f32.mrb[11].mxu1  ;;  %v1238_v12 = vsel %vm1219_vm1, %v1172_v58, 0.0  ;;  %v1259_v18 = vmul.f32 %v1172_v58, %v1172_v58 }
 0x1fd   : > { %v1527_v4 = vpack.c.bf16 %v1164_v63, %v1164_v63  ;;  %v1167_v6 = vadd.f32 %v1653_v52, %v1166_v2  ;;  %v1232_v14 = vsel %vm1219_vm1, %v1164_v63, 0.0  ;;  %v1257_v15 = vmul.f32 %v1164_v63, %v1164_v63 }
 0x1fe   : > { %1217 = vst.msk [vmem:[%s2106_s17 + $0x18] sm:$0xf] %vm1210_vm2, %v1529_v0  ;;  %v1530_v7 = vpack.c.bf16 %v1175_v1, %v1175_v1  ;;  %1230 = vadd.xlane.f32.xlu0 %v1229_v3  ;;  %v1241_v16 = vsel %vm1219_vm1, %v1175_v1, 0.0  ;;  %v1279_v21 = vsel %vm1219_vm1, %v1259_v18, 0.0  ;;  %v1260_v23 = vmul.f32 %v1175_v1, %v1175_v1 }
 0x1ff   : > { %1215 = vst.msk [vmem:[%s2106_s17 + $0x10] sm:$0xf] %vm1210_vm2, %v1527_v4  ;;  %v1528_v9 = vpack.c.bf16 %v1167_v6, %v1167_v6  ;;  %v1273_v17 = vsel %vm1219_vm1, %v1257_v15, 0.0  ;;  %v1235_v19 = vsel %vm1219_vm1, %v1167_v6, 0.0  ;;  %v1258_v20 = vmul.f32 %v1167_v6, %v1167_v6 }
 0x200   : > { %1218 = vst.msk [vmem:[%s2106_s17 + $0x1c] sm:$0xf] %vm1210_vm2, %v1530_v7  ;;  %1268 = vadd.xlane.f32.xlu1 %v1267_v8  ;;  %v1282_v24 = vsel %vm1219_vm1, %v1260_v23, 0.0 }
 0x201   : > { %1216 = vst.msk [vmem:[%s2106_s17 + $0x14] sm:$0xf] %vm1210_vm2, %v1528_v9  ;;  %v1276_v22 = vsel %vm1219_vm1, %v1258_v20, 0.0 }
 0x202   : > { %1265 = vadd.xlane.f32.xlu0 %v1264_v10 }
 0x204   : > { %1239 = vadd.xlane.f32.xlu1 %v1238_v12 }
 0x206   : > { %1271 = vadd.xlane.f32.xlu0 %v1270_v13 }
 0x208   : > { %1233 = vadd.xlane.f32.xlu1 %v1232_v14 }
 0x20a   : > { %1242 = vadd.xlane.f32.xlu0 %v1241_v16 }
 0x20c   : > { %1274 = vadd.xlane.f32.xlu1 %v1273_v17 }
 0x20e   : > { %1236 = vadd.xlane.f32.xlu0 %v1235_v19 }
 0x210   : > { %1280 = vadd.xlane.f32.xlu1 %v1279_v21 }
 0x212   : > { %1277 = vadd.xlane.f32.xlu0 %v1276_v22 }
 0x216   : > { %1283 = vadd.xlane.f32.xlu0 %v1282_v24 }
 0x283   : > { %v1222_v25 = vpop.xlane.xlu0 %1221 }
 0x284   : > { %1245 = vst.msk [vmem:[%s318_s25] sm:$0xff] %vm1244_vm3, %v1222_v25 }
 0x285   : > { %v1225_v26 = vpop.xlane.xlu1 %1224 }
 0x286   : > { %1246 = vst.msk [vmem:[%s318_s25 + $0x8] sm:$0xff] %vm1244_vm3, %v1225_v26 }
 0x287   : > { %v1228_v27 = vpop.xlane.xlu0 %1227 }
 0x288   : > { %1247 = vst.msk [vmem:[%s318_s25 + $0x10] sm:$0xff] %vm1244_vm3, %v1228_v27 }
 0x289   : > { %v1263_v28 = vpop.xlane.xlu1 %1262 }
 0x28a   : > { %1285 = vst.msk [vmem:[%s327_s12] sm:$0xff] %vm1244_vm3, %v1263_v28 }
 0x28b   : > { %v1231_v29 = vpop.xlane.xlu0 %1230 }
 0x28c   : > { %1248 = vst.msk [vmem:[%s318_s25 + $0x18] sm:$0xff] %vm1244_vm3, %v1231_v29 }
 0x28d   : > { %v1269_v30 = vpop.xlane.xlu1 %1268 }
 0x28e   : > { %1287 = vst.msk [vmem:[%s327_s12 + $0x10] sm:$0xff] %vm1244_vm3, %v1269_v30 }
 0x28f   : > { %v1266_v31 = vpop.xlane.xlu0 %1265 }
 0x290   : > { %1286 = vst.msk [vmem:[%s327_s12 + $0x8] sm:$0xff] %vm1244_vm3, %v1266_v31 }
 0x291   : > { %v1240_v32 = vpop.xlane.xlu1 %1239 }
 0x292   : > { %1251 = vst.msk [vmem:[%s318_s25 + $0x30] sm:$0xff] %vm1244_vm3, %v1240_v32 }
 0x293   : > { %v1272_v33 = vpop.xlane.xlu0 %1271 }
 0x294   : > { %1288 = vst.msk [vmem:[%s327_s12 + $0x18] sm:$0xff] %vm1244_vm3, %v1272_v33 }
 0x295   : > { %v1234_v34 = vpop.xlane.xlu1 %1233 }
 0x296   : > { %1249 = vst.msk [vmem:[%s318_s25 + $0x20] sm:$0xff] %vm1244_vm3, %v1234_v34 }
 0x297   : > { %v1243_v35 = vpop.xlane.xlu0 %1242 }
 0x298   : > { %1252 = vst.msk [vmem:[%s318_s25 + $0x38] sm:$0xff] %vm1244_vm3, %v1243_v35 }
 0x299   : > { %v1275_v36 = vpop.xlane.xlu1 %1274 }
 0x29a   : > { %1289 = vst.msk [vmem:[%s327_s12 + $0x20] sm:$0xff] %vm1244_vm3, %v1275_v36 }
 0x29b   : > { %v1237_v37 = vpop.xlane.xlu0 %1236 }
 0x29c   : > { %1250 = vst.msk [vmem:[%s318_s25 + $0x28] sm:$0xff] %vm1244_vm3, %v1237_v37 }
 0x29d   : > { %v1281_v38 = vpop.xlane.xlu1 %1280 }
 0x29e   : > { %1291 = vst.msk [vmem:[%s327_s12 + $0x30] sm:$0xff] %vm1244_vm3, %v1281_v38 }
 0x29f   : > { %v1278_v39 = vpop.xlane.xlu0 %1277 }
 0x2a0   : > { %1290 = vst.msk [vmem:[%s327_s12 + $0x28] sm:$0xff] %vm1244_vm3, %v1278_v39 }
 0x2a3   : > { %v1284_v40 = vpop.xlane.xlu0 %1283 }
 0x2a4   : > { %1292 = vst.msk [vmem:[%s327_s12 + $0x38] sm:$0xff] %vm1244_vm3, %v1284_v40 }
 0x2a5 PF: > { %s17_s23 = sadd.s32 1, %s1760_s23   ;;  %s2179_s21 = smov %s1756_s22 }
 0x2a6   : > { %p14_p5 = scmp.ge.s32.totalorder %s17_s23, 4   ;;  %s2180_s22 = smov %s2182_s24 }
 0x2a8   :  { %16 = sbr.rel (!%p14_p5) target bundleno = 2 (0x2), region = 90 }

// kernel: generator_forward.8
= control target key start
LH: loop header
LB: loop body
LE: loop exit
PB: predicated region body
PF: predicated region fallthrough
CT: control target
= control target key end

     0   :  { %s1220_s21 = smov 0   ;;  %s1222_s22 = smov 0   ;;  %s1420_s0 = inlined_call_operand.vmem [shape: f32[144,1], index: 0, kind: input, shape index: {}]   ;;  %s1421_s1 = inlined_call_operand.vmem [shape: f32[144,1], index: 1, kind: input, shape index: {}]   ;;  %s1422_s2 = inlined_call_operand.vmem [shape: bf16[2,144,256], index: 2, kind: input, shape index: {}]   ;;  %s1423_s3 = inlined_call_operand.vmem [shape: bf16[32,144], index: 3, kind: input, shape index: {}]   ;;  %s1424_s4 = inlined_call_operand.vmem [shape: bf16[2,32,256], index: 4, kind: output, shape index: {0}]   ;;  %s1425_s5 = inlined_call_operand.vmem [shape: f32[2,1,32,1], index: 5, kind: output, shape index: {1}]   ;;  %s1426_s6 = inlined_call_operand.vmem [shape: f32[2,1,32,1], index: 6, kind: output, shape index: {2}]  }
   0x1   :  { %s1224_s23 = smov 0  }
   0x2 LB: > { %s29_s24 = sadd.s32 1, %s1178_s22  ;;  %p1081_p0 = scmp.ge.s32.totalorder %s1182_s23, 1  ;;  %s1182_s23 = sphi %s1224_s23, %s17_s23   ;;  %s1178_s22 = sphi %s1222_s22, %s1428_s22   ;;  %s1174_s21 = sphi %s1220_s21, %s1427_s21  }
   0x3   : > { %p31_p1 = scmp.ge.s32.totalorder %s29_s24, 2  ;;  %p242_p2 = scmp.lt.s32.totalorder %s1182_s23, 3 }
   0x5   : > { %s1430_s24 = smov (%p31_p1, %s29_s24), 0  ;;  %p243_p3 = pnand %p1081_p0, %p242_p2 }
   0x6   : > { %v535_v0 = vld [vmem:[%s1421_s1] sm:$0xff] (!%p243_p3)  ;;  %v1184_v2 = vmov (!%p243_p3), 0   ;;  %v536_v3 = vld [vmem:[%s1421_s1 + $0x8] sm:$0xff] (!%p243_p3)  ;;  %v394_v5 = vld [vmem:[%s1420_s0 + $0x18] sm:$0xff] (!%p243_p3)  ;;  %vm755_vm0 = vcmask (!%p243_p3), 130048   ;;  %p299_p4 = scmp.lt.s32.totalorder (!%p243_p3), %s1174_s21, 1 }
   0x7   : > { %246 = sbr.rel (%p243_p3) target bundleno = 588 (0x24c), region = 36  ;;  %v391_v1 = vld [vmem:[%s1420_s0] sm:$0xff] (!%p243_p3)  ;;  %1153 = vset.pattern.permute.xlu1 (!%p243_p3), %v1184_v2  ;;  %1152 = vset.pattern.permute.xlu0 (!%p243_p3), %v1184_v2  ;;  %v392_v4 = vld [vmem:[%s1420_s0 + $0x8] sm:$0xff] (!%p243_p3)  ;;  %v393_v6 = vld [vmem:[%s1420_s0 + $0x10] sm:$0xff] (!%p243_p3)  ;;  %vm855_vm1 = vcmask (!%p243_p3), 7168  }
   0x8   : > { %555 = vperm.xlu1 (!%p243_p3), %1153, %v535_v0   ;;  %411 = vperm.xlu0 (!%p243_p3), %1152, %v391_v1   ;;  %v538_v7 = vld [vmem:[%s1421_s1 + $0x18] sm:$0xff] (!%p243_p3)  ;;  %v537_v8 = vld [vmem:[%s1421_s1 + $0x10] sm:$0xff] (!%p243_p3)  ;;  %v396_v9 = vld [vmem:[%s1420_s0 + $0x28] sm:$0xff] (!%p243_p3) }
   0x9   : > { %v395_v10 = vld [vmem:[%s1420_s0 + $0x20] sm:$0xff] (!%p243_p3)  ;;  %v540_v11 = vld [vmem:[%s1421_s1 + $0x28] sm:$0xff] (!%p243_p3)  ;;  %v398_v13 = vld [vmem:[%s1420_s0 + $0x38] sm:$0xff] (!%p243_p3) }
   0xa   : > { %v539_v12 = vld [vmem:[%s1421_s1 + $0x20] sm:$0xff] (!%p243_p3)  ;;  %v397_v14 = vld [vmem:[%s1420_s0 + $0x30] sm:$0xff] (!%p243_p3)  ;;  %v542_v15 = vld [vmem:[%s1421_s1 + $0x38] sm:$0xff] (!%p243_p3) }
   0xb   : > { %v541_v16 = vld [vmem:[%s1421_s1 + $0x30] sm:$0xff] (!%p243_p3)  ;;  %v400_v17 = vld [vmem:[%s1420_s0 + $0x48] sm:$0xff] (!%p243_p3)  ;;  %v399_v18 = vld [vmem:[%s1420_s0 + $0x40] sm:$0xff] (!%p243_p3) }
   0xc   : > { %560 = vperm.xlu1 (!%p243_p3), %1153, %v536_v3   ;;  %416 = vperm.xlu0 (!%p243_p3), %1152, %v392_v4   ;;  %v544_v19 = vld [vmem:[%s1421_s1 + $0x48] sm:$0xff] (!%p243_p3)  ;;  %v543_v20 = vld [vmem:[%s1421_s1 + $0x40] sm:$0xff] (!%p243_p3)  ;;  %v402_v21 = vld [vmem:[%s1420_s0 + $0x58] sm:$0xff] (!%p243_p3) }
   0xd   : > { %v401_v22 = vld [vmem:[%s1420_s0 + $0x50] sm:$0xff] (!%p243_p3)  ;;  %v546_v23 = vld [vmem:[%s1421_s1 + $0x58] sm:$0xff] (!%p243_p3)  ;;  %v404_v25 = vld [vmem:[%s1420_s0 + $0x68] sm:$0xff] (!%p243_p3) }
   0xe   : > { %v545_v24 = vld [vmem:[%s1421_s1 + $0x50] sm:$0xff]  ;;  %v403_v26 = vld [vmem:[%s1420_s0 + $0x60] sm:$0xff]  ;;  %v548_v27 = vld [vmem:[%s1421_s1 + $0x68] sm:$0xff]  ;;  %s1432_s21 = smov (!%p299_p4, %s1174_s21), 1 }
   0xf   : > { %v547_v28 = vld [vmem:[%s1421_s1 + $0x60] sm:$0xff]  ;;  %v406_v29 = vld [vmem:[%s1420_s0 + $0x78] sm:$0xff]  ;;  %v405_v30 = vld [vmem:[%s1420_s0 + $0x70] sm:$0xff]  ;;  %s1126_s17 = smul.u32 144, %s1432_s21  ;;  %s1389_s29 = sshll.u32 %s1432_s21, 5 }
  0x10   : > { %426 = vperm.xlu1 %1153, %v394_v5   ;;  %421 = vperm.xlu0 %1152, %v393_v6   ;;  %v550_v31 = vld [vmem:[%s1421_s1 + $0x78] sm:$0xff]  ;;  %v549_v32 = vld [vmem:[%s1421_s1 + $0x70] sm:$0xff]  ;;  %v408_v33 = vld [vmem:[%s1420_s0 + $0x88] sm:$0xff]  ;;  %s316_s8 = scalar_lea.vmem %s1424_s4, %s1389_s29  ;;  %s326_s10 = scalar_lea.vmem %s1425_s5, %s1389_s29 }
  0x11   : > { %v407_v34 = vld [vmem:[%s1420_s0 + $0x80] sm:$0xff]  ;;  %v552_v35 = vld [vmem:[%s1421_s1 + $0x88] sm:$0xff]  ;;  %v1159_v38 = vld [vmem:[%s1423_s3 + $0x14] ss:$8 sps:$4 sm:$0xff]   ;;  %s1362_s20 = scalar_lea.vmem %s1422_s2, %s1126_s17  ;;  %s335_s13 = scalar_lea.vmem %s1426_s6, %s1389_s29 }
  0x12   : > { %v551_v36 = vld [vmem:[%s1421_s1 + $0x80] sm:$0xff]  ;;  %1094 = vmatprep.mubr.msk.bf16.mxu1 %vm755_vm0, %v1159_v38  ;;  %v338_v42 = vld [vmem:[%s1362_s20 + $0x8] sm:$0xff]  ;;  %v340_v49 = vld [vmem:[%s1362_s20 + $0x18] sm:$0xff] }
  0x13   : > { %v1156_v37 = vld [vmem:[%s1423_s3 + $0x4] ss:$8 sps:$4 sm:$0xff]   ;;  %v357_v45 = vunpack.c.l.bf16 %v338_v42  ;;  %v358_v46 = vunpack.c.h.bf16 %v338_v42  ;;  %v339_v52 = vld [vmem:[%s1362_s20 + $0x10] sm:$0xff]  ;;  %v361_v57 = vunpack.c.l.bf16 %v340_v49  ;;  %v362_v58 = vunpack.c.h.bf16 %v340_v49 }
  0x14   : > { %570 = vperm.xlu1 %1153, %v538_v7   ;;  %565 = vperm.xlu0 %1152, %v537_v8   ;;  %v337_v39 = vld [vmem:[%s1362_s20] sm:$0xff]  ;;  %v359_v61 = vunpack.c.l.bf16 %v339_v52  ;;  %v360_v62 = vunpack.c.h.bf16 %v339_v52 }
  0x15   : > { %1093 = vmatprep.mubr.msk.bf16.mxu0 %vm755_vm0, %v1156_v37  ;;  %v355_v40 = vunpack.c.l.bf16 %v337_v39  ;;  %v356_v41 = vunpack.c.h.bf16 %v337_v39 }
  0x18   : > { %436 = vperm.xlu1 %1153, %v396_v9   ;;  %431 = vperm.xlu0 %1152, %v395_v10   ;;  %v342_v9 = vld [vmem:[%s1362_s20 + $0x28] sm:$0xff]  ;;  %v341_v10 = vld [vmem:[%s1362_s20 + $0x20] sm:$0xff] }
  0x1c   : > { %580 = vperm.xlu1 %1153, %v540_v11   ;;  %575 = vperm.xlu0 %1152, %v539_v12  }
  0x20   : > { %446 = vperm.xlu1 %1153, %v398_v13   ;;  %441 = vperm.xlu0 %1152, %v397_v14  }
  0x24   : > { %590 = vperm.xlu1 %1153, %v542_v15   ;;  %585 = vperm.xlu0 %1152, %v541_v16  }
  0x28   : > { %456 = vperm.xlu1 %1153, %v400_v17   ;;  %451 = vperm.xlu0 %1152, %v399_v18  }
  0x2c   : > { %600 = vperm.xlu1 %1153, %v544_v19   ;;  %595 = vperm.xlu0 %1152, %v543_v20   ;;  %v365_v19 = vunpack.c.l.bf16 %v342_v9  ;;  %v366_v20 = vunpack.c.h.bf16 %v342_v9 }
  0x30   : > { %466 = vperm.xlu1 %1153, %v402_v21   ;;  %461 = vperm.xlu0 %1152, %v401_v22   ;;  %v363_v21 = vunpack.c.l.bf16 %v341_v10  ;;  %v364_v22 = vunpack.c.h.bf16 %v341_v10 }
  0x34   : > { %610 = vperm.xlu1 %1153, %v546_v23   ;;  %605 = vperm.xlu0 %1152, %v545_v24  }
  0x38   : > { %476 = vperm.xlu1 %1153, %v404_v25   ;;  %471 = vperm.xlu0 %1152, %v403_v26  }
  0x3c   : > { %620 = vperm.xlu1 %1153, %v548_v27   ;;  %615 = vperm.xlu0 %1152, %v547_v28  }
  0x40   : > { %486 = vperm.xlu1 %1153, %v406_v29   ;;  %481 = vperm.xlu0 %1152, %v405_v30  }
  0x44   : > { %630 = vperm.xlu1 %1153, %v550_v31   ;;  %625 = vperm.xlu0 %1152, %v549_v32  }
  0x48   : > { %496 = vperm.xlu1 %1153, %v408_v33   ;;  %491 = vperm.xlu0 %1152, %v407_v34  }
  0x4c   : > { %640 = vperm.xlu1 %1153, %v552_v35   ;;  %635 = vperm.xlu0 %1152, %v551_v36   ;;  %v344_v35 = vld [vmem:[%s1362_s20 + $0x38] sm:$0xff]  ;;  %v343_v36 = vld [vmem:[%s1362_s20 + $0x30] sm:$0xff] }
  0x87   : > { %v556_v43 = vpop.permute.xlu1 %555  ;;  %v412_v44 = vpop.permute.xlu0 %411 }
  0x88   : > { %v499_v47 = vmul.f32 %v412_v44, %v355_v40  ;;  %v500_v48 = vmul.f32 %v412_v44, %v356_v41  ;;  %v370_v44 = vunpack.c.h.bf16 %v344_v35 }
  0x8a   : > { %v643_v55 = vadd.f32 %v556_v43, %v499_v47  ;;  %v644_v56 = vadd.f32 %v556_v43, %v500_v48  ;;  %v369_v43 = vunpack.c.l.bf16 %v344_v35 }
  0x8b   : > { %v561_v50 = vpop.permute.xlu1 %560  ;;  %v417_v51 = vpop.permute.xlu0 %416 }
  0x8c   : > { %v501_v53 = vmul.f32 %v417_v51, %v357_v45  ;;  %v502_v54 = vmul.f32 %v417_v51, %v358_v46  ;;  %v680_v1 = vmax.f32 %v644_v56, 0.0  ;;  %v679_v3 = vmax.f32 %v643_v55, 0.0 }
  0x8d   : > { %v367_v45 = vunpack.c.l.bf16 %v343_v36  ;;  %v368_v46 = vunpack.c.h.bf16 %v343_v36 }
  0x8e   : > { %v645_v59 = vadd.f32 %v561_v50, %v501_v53  ;;  %v646_v60 = vadd.f32 %v561_v50, %v502_v54 }
  0x8f   : > { %v427_v63 = vpop.permute.xlu1 %426  ;;  %v422_v0 = vpop.permute.xlu0 %421 }
  0x90   : > { %v682_v2 = vmax.f32 %v646_v60, 0.0  ;;  %v681_v4 = vmax.f32 %v645_v59, 0.0  ;;  %v505_v5 = vmul.f32 %v427_v63, %v361_v57  ;;  %v506_v6 = vmul.f32 %v427_v63, %v362_v58  ;;  %v346_v59 = vld [vmem:[%s1362_s20 + $0x48] sm:$0xff]  ;;  %v345_v60 = vld [vmem:[%s1362_s20 + $0x40] sm:$0xff] }
  0x91   : > { %v503_v7 = vmul.f32 %v422_v0, %v359_v61  ;;  %v504_v8 = vmul.f32 %v422_v0, %v360_v62 }
  0x92   : > { %v720_v13 = vpack.c.bf16 %v682_v2, %v680_v1  ;;  %v719_v14 = vpack.c.bf16 %v681_v4, %v679_v3  ;;  %v373_v3 = vunpack.c.l.bf16 %v346_v59  ;;  %v374_v4 = vunpack.c.h.bf16 %v346_v59 }
  0x93   : > { %v571_v11 = vpop.permute.xlu1 %570  ;;  %v566_v12 = vpop.permute.xlu0 %565 }
  0x94   : > { %v649_v15 = vadd.f32 %v571_v11, %v505_v5  ;;  %v650_v16 = vadd.f32 %v571_v11, %v506_v6  ;;  %v647_v17 = vadd.f32 %v566_v12, %v503_v7  ;;  %v648_v18 = vadd.f32 %v566_v12, %v504_v8  ;;  %762 = vmatprep.subr.bf16.mxu0 %v720_v13 }
  0x95   : > { %1108 = vmatprep.subr.bf16.mxu1 %v720_v13  ;;  %763 = vmatpush1.bf16.msra.mxu0 %v719_v14  ;;  %v371_v5 = vunpack.c.l.bf16 %v345_v60  ;;  %v372_v6 = vunpack.c.h.bf16 %v345_v60 }
  0x96   : > { %v685_v23 = vmax.f32 %v649_v15, 0.0  ;;  %v686_v24 = vmax.f32 %v650_v16, 0.0  ;;  %v683_v25 = vmax.f32 %v647_v17, 0.0  ;;  %v684_v26 = vmax.f32 %v648_v18, 0.0  ;;  %1117 = vmatpush1.bf16.msra.mxu1 %v719_v14 }
  0x97   : > { %v437_v27 = vpop.permute.xlu1 %436  ;;  %v432_v28 = vpop.permute.xlu0 %431 }
  0x98   : > { %v722_v29 = vpack.c.bf16 %v686_v24, %v684_v26  ;;  %v721_v30 = vpack.c.bf16 %v685_v23, %v683_v25  ;;  %v509_v31 = vmul.f32 %v437_v27, %v365_v19  ;;  %v510_v32 = vmul.f32 %v437_v27, %v366_v20  ;;  %v348_v19 = vld [vmem:[%s1362_s20 + $0x58] sm:$0xff]  ;;  %v347_v20 = vld [vmem:[%s1362_s20 + $0x50] sm:$0xff] }
  0x99   : > { %v507_v33 = vmul.f32 %v432_v28, %v363_v21  ;;  %v508_v34 = vmul.f32 %v432_v28, %v364_v22  ;;  %v377_v27 = vunpack.c.l.bf16 %v348_v19  ;;  %v378_v28 = vunpack.c.h.bf16 %v348_v19 }
  0x9a   : > { %764 = vmatprep.subr.bf16.mxu0 %v722_v29  ;;  %1109 = vmatprep.subr.bf16.mxu1 %v722_v29  ;;  %v375_v29 = vunpack.c.l.bf16 %v347_v20 }
  0x9b   : > { %v581_v37 = vpop.permute.xlu1 %580  ;;  %v576_v38 = vpop.permute.xlu0 %575  ;;  %765 = vmatpush1.bf16.msra.mxu0 %v721_v30  ;;  %1118 = vmatpush1.bf16.msra.mxu1 %v721_v30  ;;  %v376_v30 = vunpack.c.h.bf16 %v347_v20 }
  0x9c   : > { %v653_v39 = vadd.f32 %v581_v37, %v509_v31  ;;  %v654_v40 = vadd.f32 %v581_v37, %v510_v32  ;;  %v651_v41 = vadd.f32 %v576_v38, %v507_v33  ;;  %v652_v42 = vadd.f32 %v576_v38, %v508_v34 }
  0x9e   : > { %v689_v47 = vmax.f32 %v653_v39, 0.0  ;;  %v690_v48 = vmax.f32 %v654_v40, 0.0  ;;  %v687_v49 = vmax.f32 %v651_v41, 0.0  ;;  %v688_v50 = vmax.f32 %v652_v42, 0.0 }
  0x9f   : > { %v447_v51 = vpop.permute.xlu1 %446  ;;  %v442_v52 = vpop.permute.xlu0 %441 }
  0xa0   : > { %v724_v53 = vpack.c.bf16 %v690_v48, %v688_v50  ;;  %v723_v54 = vpack.c.bf16 %v689_v47, %v687_v49  ;;  %v513_v55 = vmul.f32 %v447_v51, %v369_v43  ;;  %v514_v56 = vmul.f32 %v447_v51, %v370_v44  ;;  %v350_v43 = vld [vmem:[%s1362_s20 + $0x68] sm:$0xff]  ;;  %v349_v44 = vld [vmem:[%s1362_s20 + $0x60] sm:$0xff] }
  0xa1   : > { %v511_v57 = vmul.f32 %v442_v52, %v367_v45  ;;  %v512_v58 = vmul.f32 %v442_v52, %v368_v46  ;;  %v381_v51 = vunpack.c.l.bf16 %v350_v43  ;;  %v382_v52 = vunpack.c.h.bf16 %v350_v43 }
  0xa2   : > { %766 = vmatprep.subr.bf16.mxu0 %v724_v53  ;;  %1110 = vmatprep.subr.bf16.mxu1 %v724_v53  ;;  %v379_v53 = vunpack.c.l.bf16 %v349_v44 }
  0xa3   : > { %v591_v61 = vpop.permute.xlu1 %590  ;;  %v586_v62 = vpop.permute.xlu0 %585  ;;  %767 = vmatpush1.bf16.msra.mxu0 %v723_v54  ;;  %1119 = vmatpush1.bf16.msra.mxu1 %v723_v54  ;;  %v380_v54 = vunpack.c.h.bf16 %v349_v44 }
  0xa4   : > { %v657_v63 = vadd.f32 %v591_v61, %v513_v55  ;;  %v658_v0 = vadd.f32 %v591_v61, %v514_v56  ;;  %v655_v1 = vadd.f32 %v586_v62, %v511_v57  ;;  %v656_v2 = vadd.f32 %v586_v62, %v512_v58 }
  0xa6   : > { %v693_v7 = vmax.f32 %v657_v63, 0.0  ;;  %v694_v8 = vmax.f32 %v658_v0, 0.0  ;;  %v691_v9 = vmax.f32 %v655_v1, 0.0  ;;  %v692_v10 = vmax.f32 %v656_v2, 0.0 }
  0xa7   : > { %v457_v11 = vpop.permute.xlu1 %456  ;;  %v452_v12 = vpop.permute.xlu0 %451 }
  0xa8   : > { %v726_v13 = vpack.c.bf16 %v694_v8, %v692_v10  ;;  %v725_v14 = vpack.c.bf16 %v693_v7, %v691_v9  ;;  %v517_v15 = vmul.f32 %v457_v11, %v373_v3  ;;  %v518_v16 = vmul.f32 %v457_v11, %v374_v4  ;;  %v352_v3 = vld [vmem:[%s1362_s20 + $0x78] sm:$0xff]  ;;  %v351_v4 = vld [vmem:[%s1362_s20 + $0x70] sm:$0xff] }
  0xa9   : > { %v515_v17 = vmul.f32 %v452_v12, %v371_v5  ;;  %v516_v18 = vmul.f32 %v452_v12, %v372_v6  ;;  %v385_v11 = vunpack.c.l.bf16 %v352_v3  ;;  %v386_v12 = vunpack.c.h.bf16 %v352_v3 }
  0xaa   : > { %768 = vmatprep.subr.bf16.mxu0 %v726_v13  ;;  %1111 = vmatprep.subr.bf16.mxu1 %v726_v13  ;;  %v383_v13 = vunpack.c.l.bf16 %v351_v4 }
  0xab   : > { %v601_v21 = vpop.permute.xlu1 %600  ;;  %v596_v22 = vpop.permute.xlu0 %595  ;;  %769 = vmatpush1.bf16.msra.mxu0 %v725_v14  ;;  %1120 = vmatpush1.bf16.msra.mxu1 %v725_v14  ;;  %v384_v14 = vunpack.c.h.bf16 %v351_v4 }
  0xac   : > { %v661_v23 = vadd.f32 %v601_v21, %v517_v15  ;;  %v662_v24 = vadd.f32 %v601_v21, %v518_v16  ;;  %v659_v25 = vadd.f32 %v596_v22, %v515_v17  ;;  %v660_v26 = vadd.f32 %v596_v22, %v516_v18 }
  0xae   : > { %v697_v31 = vmax.f32 %v661_v23, 0.0  ;;  %v698_v32 = vmax.f32 %v662_v24, 0.0  ;;  %v695_v33 = vmax.f32 %v659_v25, 0.0  ;;  %v696_v34 = vmax.f32 %v660_v26, 0.0 }
  0xaf   : > { %v467_v35 = vpop.permute.xlu1 %466  ;;  %v462_v36 = vpop.permute.xlu0 %461 }
  0xb0   : > { %v728_v37 = vpack.c.bf16 %v698_v32, %v696_v34  ;;  %v727_v38 = vpack.c.bf16 %v697_v31, %v695_v33  ;;  %v521_v39 = vmul.f32 %v467_v35, %v377_v27  ;;  %v522_v40 = vmul.f32 %v467_v35, %v378_v28  ;;  %v354_v27 = vld [vmem:[%s1362_s20 + $0x88] sm:$0xff]  ;;  %v353_v28 = vld [vmem:[%s1362_s20 + $0x80] sm:$0xff] }
  0xb1   : > { %v519_v41 = vmul.f32 %v462_v36, %v375_v29  ;;  %v520_v42 = vmul.f32 %v462_v36, %v376_v30  ;;  %v389_v35 = vunpack.c.l.bf16 %v354_v27  ;;  %v390_v36 = vunpack.c.h.bf16 %v354_v27 }
  0xb2   : > { %770 = vmatprep.subr.bf16.mxu0 %v728_v37  ;;  %1112 = vmatprep.subr.bf16.mxu1 %v728_v37  ;;  %v387_v37 = vunpack.c.l.bf16 %v353_v28 }
  0xb3   : > { %v611_v45 = vpop.permute.xlu1 %610  ;;  %v606_v46 = vpop.permute.xlu0 %605  ;;  %771 = vmatpush1.bf16.msra.mxu0 %v727_v38  ;;  %1121 = vmatpush1.bf16.msra.mxu1 %v727_v38  ;;  %v388_v38 = vunpack.c.h.bf16 %v353_v28 }
  0xb4   : > { %v665_v47 = vadd.f32 %v611_v45, %v521_v39  ;;  %v666_v48 = vadd.f32 %v611_v45, %v522_v40  ;;  %v663_v49 = vadd.f32 %v606_v46, %v519_v41  ;;  %v664_v50 = vadd.f32 %v606_v46, %v520_v42 }
  0xb6   : > { %v701_v55 = vmax.f32 %v665_v47, 0.0  ;;  %v702_v56 = vmax.f32 %v666_v48, 0.0  ;;  %v699_v57 = vmax.f32 %v663_v49, 0.0  ;;  %v700_v58 = vmax.f32 %v664_v50, 0.0 }
  0xb7   : > { %v477_v59 = vpop.permute.xlu1 %476  ;;  %v472_v60 = vpop.permute.xlu0 %471 }
  0xb8   : > { %v730_v61 = vpack.c.bf16 %v702_v56, %v700_v58  ;;  %v729_v62 = vpack.c.bf16 %v701_v55, %v699_v57  ;;  %v525_v63 = vmul.f32 %v477_v59, %v381_v51  ;;  %v526_v0 = vmul.f32 %v477_v59, %v382_v52 }
  0xb9   : > { %v523_v1 = vmul.f32 %v472_v60, %v379_v53  ;;  %v524_v2 = vmul.f32 %v472_v60, %v380_v54 }
  0xba   : > { %772 = vmatprep.subr.bf16.mxu0 %v730_v61  ;;  %1113 = vmatprep.subr.bf16.mxu1 %v730_v61 }
  0xbb   : > { %v621_v5 = vpop.permute.xlu1 %620  ;;  %v616_v6 = vpop.permute.xlu0 %615  ;;  %773 = vmatpush1.bf16.msra.mxu0 %v729_v62  ;;  %1122 = vmatpush1.bf16.msra.mxu1 %v729_v62 }
  0xbc   : > { %v669_v7 = vadd.f32 %v621_v5, %v525_v63  ;;  %v670_v8 = vadd.f32 %v621_v5, %v526_v0  ;;  %v667_v9 = vadd.f32 %v616_v6, %v523_v1  ;;  %v668_v10 = vadd.f32 %v616_v6, %v524_v2  ;;  %v1154_v63 = vld [vmem:[%s1423_s3] ss:$8 sps:$4 sm:$0xff]   ;;  %v1157_v0 = vld [vmem:[%s1423_s3 + $0x10] ss:$8 sps:$4 sm:$0xff]  }
  0xbe   : > { %v705_v15 = vmax.f32 %v669_v7, 0.0  ;;  %v706_v16 = vmax.f32 %v670_v8, 0.0  ;;  %v703_v17 = vmax.f32 %v667_v9, 0.0  ;;  %v704_v18 = vmax.f32 %v668_v10, 0.0 }
  0xbf   : > { %v487_v19 = vpop.permute.xlu1 %486  ;;  %v482_v20 = vpop.permute.xlu0 %481 }
  0xc0   : > { %v732_v21 = vpack.c.bf16 %v706_v16, %v704_v18  ;;  %v731_v22 = vpack.c.bf16 %v705_v15, %v703_v17  ;;  %v529_v23 = vmul.f32 %v487_v19, %v385_v11  ;;  %v530_v24 = vmul.f32 %v487_v19, %v386_v12 }
  0xc1   : > { %v527_v25 = vmul.f32 %v482_v20, %v383_v13  ;;  %v528_v26 = vmul.f32 %v482_v20, %v384_v14 }
  0xc2   : > { %774 = vmatprep.subr.bf16.mxu0 %v732_v21  ;;  %1114 = vmatprep.subr.bf16.mxu1 %v732_v21 }
  0xc3   : > { %v631_v29 = vpop.permute.xlu1 %630  ;;  %v626_v30 = vpop.permute.xlu0 %625  ;;  %775 = vmatpush1.bf16.msra.mxu0 %v731_v22  ;;  %1123 = vmatpush1.bf16.msra.mxu1 %v731_v22 }
  0xc4   : > { %v673_v31 = vadd.f32 %v631_v29, %v529_v23  ;;  %v674_v32 = vadd.f32 %v631_v29, %v530_v24  ;;  %v671_v33 = vadd.f32 %v626_v30, %v527_v25  ;;  %v672_v34 = vadd.f32 %v626_v30, %v528_v26 }
  0xc6   : > { %v709_v39 = vmax.f32 %v673_v31, 0.0  ;;  %v710_v40 = vmax.f32 %v674_v32, 0.0  ;;  %v707_v41 = vmax.f32 %v671_v33, 0.0  ;;  %v708_v42 = vmax.f32 %v672_v34, 0.0 }
  0xc7   : > { %v497_v43 = vpop.permute.xlu1 %496  ;;  %v492_v44 = vpop.permute.xlu0 %491 }
  0xc8   : > { %v734_v45 = vpack.c.bf16 %v710_v40, %v708_v42  ;;  %v733_v46 = vpack.c.bf16 %v709_v39, %v707_v41  ;;  %v533_v47 = vmul.f32 %v497_v43, %v389_v35  ;;  %v534_v48 = vmul.f32 %v497_v43, %v390_v36 }
  0xc9   : > { %v531_v49 = vmul.f32 %v492_v44, %v387_v37  ;;  %v532_v50 = vmul.f32 %v492_v44, %v388_v38 }
  0xca   : > { %776 = vmatprep.subr.bf16.mxu0 %v734_v45  ;;  %1115 = vmatprep.subr.bf16.mxu1 %v734_v45 }
  0xcb   : > { %v641_v51 = vpop.permute.xlu1 %640  ;;  %v636_v52 = vpop.permute.xlu0 %635  ;;  %777 = vmatpush1.bf16.msra.mxu0 %v733_v46  ;;  %1124 = vmatpush1.bf16.msra.mxu1 %v733_v46 }
  0xcc   : > { %v677_v53 = vadd.f32 %v641_v51, %v533_v47  ;;  %v678_v54 = vadd.f32 %v641_v51, %v534_v48  ;;  %v675_v55 = vadd.f32 %v636_v52, %v531_v49  ;;  %v676_v56 = vadd.f32 %v636_v52, %v532_v50 }
  0xce   : > { %v713_v57 = vmax.f32 %v677_v53, 0.0  ;;  %v714_v58 = vmax.f32 %v678_v54, 0.0  ;;  %v711_v59 = vmax.f32 %v675_v55, 0.0  ;;  %v712_v60 = vmax.f32 %v676_v56, 0.0 }
  0xd0   : > { %v736_v61 = vpack.c.bf16 %v714_v58, %v712_v60  ;;  %v735_v62 = vpack.c.bf16 %v713_v57, %v711_v59 }
  0xd2   : > { %778 = vmatprep.subr.bf16.mxu0 %v736_v61  ;;  %1116 = vmatprep.subr.bf16.mxu1 %v736_v61 }
  0xd3   : > { %779 = vmatpush1.bf16.msra.mxu0 %v735_v62  ;;  %1125 = vmatpush1.bf16.msra.mxu1 %v735_v62 }
  0xd6   : > { %795 = vmatmul.mubr.bf16.vlgmr.msra.gmra.mrb[0].mxu0 %v1154_v63  ;;  %805 = vmatmul.mubr.bf16.vlgmr.msra.gmra.mrb[0].mxu1 %v1157_v0 }
 0x1a9   : > { %v796_v1 = vpop.f32.mrb[0].mxu0  ;;  %v806_v2 = vpop.f32.mrb[0].mxu1 }
 0x1aa   : > { %v798_v3 = vpop.f32.mrb[1].mxu0  ;;  %v808_v4 = vpop.f32.mrb[1].mxu1  ;;  %v860_v5 = vmul.f32 %v796_v1, %v796_v1  ;;  %v864_v6 = vmul.f32 %v806_v2, %v806_v2 }
 0x1ab   : > { %v1104_v7 = vpack.c.bf16 %v798_v3, %v796_v1  ;;  %v800_v8 = vpop.f32.mrb[2].mxu0  ;;  %v1106_v9 = vpack.c.bf16 %v808_v4, %v806_v2  ;;  %v810_v10 = vpop.f32.mrb[2].mxu1  ;;  %v843_v11 = vadd.f32 %v798_v3, %v796_v1  ;;  %v849_v12 = vadd.f32 %v808_v4, %v806_v2 }
 0x1ac   : > { %v802_v13 = vpop.f32.mrb[3].mxu0  ;;  %v812_v14 = vpop.f32.mrb[3].mxu1  ;;  %v861_v15 = vmul.f32 %v798_v3, %v798_v3  ;;  %v865_v16 = vmul.f32 %v808_v4, %v808_v4  ;;  %v862_v17 = vmul.f32 %v800_v8, %v800_v8  ;;  %v866_v18 = vmul.f32 %v810_v10, %v810_v10 }
 0x1ad   : > { %839 = vst [vmem:[%s316_s8] sm:$0xff] %v1104_v7  ;;  %841 = vst [vmem:[%s316_s8 + $0x10] sm:$0xff] %v1106_v9  ;;  %v1105_v19 = vpack.c.bf16 %v802_v13, %v800_v8  ;;  %v863_v20 = vmul.f32 %v802_v13, %v802_v13  ;;  %v1107_v21 = vpack.c.bf16 %v812_v14, %v810_v10  ;;  %844 = vadd.xlane.f32.xlu0 %v843_v11 }
 0x1ae   : > { %v867_v22 = vmul.f32 %v812_v14, %v812_v14  ;;  %v846_v23 = vadd.f32 %v802_v13, %v800_v8  ;;  %v868_v24 = vadd.f32 %v861_v15, %v860_v5  ;;  %v852_v25 = vadd.f32 %v812_v14, %v810_v10 }
 0x1af   : > { %v874_v26 = vadd.f32 %v865_v16, %v864_v6  ;;  %840 = vst [vmem:[%s316_s8 + $0x8] sm:$0xff] %v1105_v19  ;;  %842 = vst [vmem:[%s316_s8 + $0x18] sm:$0xff] %v1107_v21  ;;  %v871_v27 = vadd.f32 %v863_v20, %v862_v17 }
 0x1b0   : > { %v877_v28 = vadd.f32 %v867_v22, %v866_v18  ;;  %847 = vadd.xlane.f32.xlu1 %v846_v23 }
 0x1b1   : > { %850 = vadd.xlane.f32.xlu0 %v849_v12 }
 0x1b4   : > { %869 = vadd.xlane.f32.xlu1 %v868_v24 }
 0x1b5   : > { %853 = vadd.xlane.f32.xlu0 %v852_v25 }
 0x1b8   : > { %875 = vadd.xlane.f32.xlu1 %v874_v26 }
 0x1b9   : > { %872 = vadd.xlane.f32.xlu0 %v871_v27 }
 0x1bd   : > { %878 = vadd.xlane.f32.xlu0 %v877_v28 }
 0x23a   : > { %v845_v29 = vpop.xlane.xlu0 %844 }
 0x23b   : > { %856 = vst.msk [vmem:[%s326_s10] sm:$0xff] %vm855_vm1, %v845_v29 }
 0x23d   : > { %v848_v30 = vpop.xlane.xlu1 %847 }
 0x23e   : > { %857 = vst.msk [vmem:[%s326_s10 + $0x8] sm:$0xff] %vm855_vm1, %v848_v30  ;;  %v851_v31 = vpop.xlane.xlu0 %850 }
 0x23f   : > { %858 = vst.msk [vmem:[%s326_s10 + $0x10] sm:$0xff] %vm855_vm1, %v851_v31 }
 0x241   : > { %v870_v32 = vpop.xlane.xlu1 %869 }
 0x242   : > { %880 = vst.msk [vmem:[%s335_s13] sm:$0xff] %vm855_vm1, %v870_v32  ;;  %v854_v33 = vpop.xlane.xlu0 %853 }
 0x243   : > { %859 = vst.msk [vmem:[%s326_s10 + $0x18] sm:$0xff] %vm855_vm1, %v854_v33 }
 0x245   : > { %v876_v34 = vpop.xlane.xlu1 %875 }
 0x246   : > { %882 = vst.msk [vmem:[%s335_s13 + $0x10] sm:$0xff] %vm855_vm1, %v876_v34  ;;  %v873_v35 = vpop.xlane.xlu0 %872 }
 0x247   : > { %881 = vst.msk [vmem:[%s335_s13 + $0x8] sm:$0xff] %vm855_vm1, %v873_v35 }
 0x24a   : > { %v879_v36 = vpop.xlane.xlu0 %878 }
 0x24b   : > { %883 = vst.msk [vmem:[%s335_s13 + $0x18] sm:$0xff] %vm855_vm1, %v879_v36 }
 0x24c PF: > { %s17_s23 = sadd.s32 1, %s1182_s23   ;;  %s1427_s21 = smov %s1178_s22 }
 0x24d   : > { %p14_p5 = scmp.ge.s32.totalorder %s17_s23, 4   ;;  %s1428_s22 = smov %s1430_s24 }
 0x24f   :  { %16 = sbr.rel (!%p14_p5) target bundleno = 2 (0x2), region = 90 }

// kernel: tile.78
= control target key start
LH: loop header
LB: loop body
LE: loop exit
PB: predicated region body
PF: predicated region fallthrough
CT: control target
= control target key end

     0   :  { %s28_s0 = inlined_call_operand.vmem [shape: f32[8], index: 0, kind: input, shape index: {}]   ;;  %s29_s1 = inlined_call_operand.vmem [shape: f32[9,8], index: 1, kind: output, shape index: {}]  }
   0x1   :  { %v4_v0 = vld [vmem:[%s28_s0] ss:$0 sm:$0xff] }
   0x2   :  { %5 = vst [vmem:[%s29_s1] sm:$0xff] %v4_v0  ;;  %8 = vst [vmem:[%s29_s1 + $0x8] sm:$0xff] %v4_v0 }

// kernel: tile.6
= control target key start
LH: loop header
LB: loop body
LE: loop exit
PB: predicated region body
PF: predicated region fallthrough
CT: control target
= control target key end

     0   :  { %vm3_vm0 = vcmask 7168   ;;  %s153_s8 = smov 126   ;;  %s154_s9 = smov 127   ;;  %s293_s0 = inlined_call_operand.vmem [shape: f32[9,8], index: 0, kind: input, shape index: {}]   ;;  %s294_s1 = inlined_call_operand.vmem [shape: f32[72,1], index: 1, kind: output, shape index: {}]  }
   0x1   :  { %v26_v0 = vld [vmem:[%s293_s0] sm:$0xff]   ;;  %v124_v1 = vld [vmem:[%s293_s0 + $0x8] sm:$0x1]   ;;  %s155_s20 = smov 125   ;;  %s156_s27 = smov 124  }
   0x2   :  { %27 = vrot.lane.b32.xlu1 %v26_v0, %s153_s8  ;;  %12 = vrot.lane.b32.xlu0 %v26_v0, %s154_s9  ;;  %4 = vst.msk [vmem:[%s294_s1] ss:$8 sm:$0xf] %vm3_vm0, %v26_v0   ;;  %5 = vst.msk [vmem:[%s294_s1] ss:$8 sm:$0xf0] %vm3_vm0, %v26_v0  }
   0x3   :  { %v120_v2 = vld [vmem:[%s293_s0 + $0x8] sm:$0x1]   ;;  %s157_s30 = smov 123   ;;  %s158_s4 = smov 122  }
   0x4   :  { %v128_v3 = vld [vmem:[%s293_s0 + $0x8] sm:$0x1]  }
   0x5   :  { %v132_v4 = vld [vmem:[%s293_s0 + $0x8] sm:$0x1]  }
   0x6   :  { %36 = vrot.lane.b32.xlu1 %v124_v1, %s153_s8  ;;  %21 = vrot.lane.b32.xlu0 %v120_v2, %s154_s9  ;;  %v116_v5 = vld [vmem:[%s293_s0 + $0x8] sm:$0x1]  }
   0x7   :  { %117 = vst.msk [vmem:[%s294_s1 + $0x40] sm:$0x1] %vm3_vm0, %v116_v5   ;;  %v136_v6 = vld [vmem:[%s293_s0 + $0x8] sm:$0x1]  }
   0x8   :  { %v140_v7 = vld [vmem:[%s293_s0 + $0x8] sm:$0x1]  }
   0x9   :  { %v144_v8 = vld [vmem:[%s293_s0 + $0x8] sm:$0x1]   ;;  %s159_s0 = smov 121  }
   0xa   :  { %51 = vrot.lane.b32.xlu1 %v128_v3, %s155_s20  ;;  %42 = vrot.lane.b32.xlu0 %v26_v0, %s155_s20 }
   0xe   :  { %66 = vrot.lane.b32.xlu1 %v132_v4, %s156_s27  ;;  %57 = vrot.lane.b32.xlu0 %v26_v0, %s156_s27 }
  0x12   :  { %81 = vrot.lane.b32.xlu1 %v136_v6, %s157_s30  ;;  %72 = vrot.lane.b32.xlu0 %v26_v0, %s157_s30 }
  0x16   :  { %96 = vrot.lane.b32.xlu1 %v140_v7, %s158_s4  ;;  %87 = vrot.lane.b32.xlu0 %v26_v0, %s158_s4 }
  0x1a   :  { %111 = vrot.lane.b32.xlu1 %v144_v8, %s159_s0  ;;  %102 = vrot.lane.b32.xlu0 %v26_v0, %s159_s0 }
  0x74   :  { %v28_v9 = vpop.permute.xlu1 %27   ;;  %v13_v10 = vpop.permute.xlu0 %12  }
  0x75   :  { %122 = vst.msk [vmem:[%s294_s1 + $0x2] ss:$8 sm:$0xf] %vm3_vm0, %v28_v9   ;;  %123 = vst.msk [vmem:[%s294_s1 + $0x2] ss:$8 sm:$0xf0] %vm3_vm0, %v28_v9  }
  0x76   :  { %118 = vst.msk [vmem:[%s294_s1 + $0x1] ss:$8 sm:$0xf] %vm3_vm0, %v13_v10   ;;  %119 = vst.msk [vmem:[%s294_s1 + $0x1] ss:$8 sm:$0xf0] %vm3_vm0, %v13_v10  }
  0x78   :  { %v37_v11 = vpop.permute.xlu1 %36   ;;  %v22_v12 = vpop.permute.xlu0 %21  }
  0x79   :  { %125 = vst.msk [vmem:[%s294_s1 + $0x42] sm:$0x1] %vm3_vm0, %v37_v11   ;;  %121 = vst.msk [vmem:[%s294_s1 + $0x41] sm:$0x1] %vm3_vm0, %v22_v12  }
  0x7c   :  { %v52_v13 = vpop.permute.xlu1 %51   ;;  %v43_v14 = vpop.permute.xlu0 %42  }
  0x7d   :  { %129 = vst.msk [vmem:[%s294_s1 + $0x43] sm:$0x1] %vm3_vm0, %v52_v13   ;;  %126 = vst.msk [vmem:[%s294_s1 + $0x3] ss:$8 sm:$0xf] %vm3_vm0, %v43_v14  }
  0x7e   :  { %127 = vst.msk [vmem:[%s294_s1 + $0x3] ss:$8 sm:$0xf0] %vm3_vm0, %v43_v14  }
  0x80   :  { %v67_v15 = vpop.permute.xlu1 %66   ;;  %v58_v16 = vpop.permute.xlu0 %57  }
  0x81   :  { %133 = vst.msk [vmem:[%s294_s1 + $0x44] sm:$0x1] %vm3_vm0, %v67_v15   ;;  %130 = vst.msk [vmem:[%s294_s1 + $0x4] ss:$8 sm:$0xf] %vm3_vm0, %v58_v16  }
  0x82   :  { %131 = vst.msk [vmem:[%s294_s1 + $0x4] ss:$8 sm:$0xf0] %vm3_vm0, %v58_v16  }
  0x84   :  { %v82_v17 = vpop.permute.xlu1 %81   ;;  %v73_v18 = vpop.permute.xlu0 %72  }
  0x85   :  { %137 = vst.msk [vmem:[%s294_s1 + $0x45] sm:$0x1] %vm3_vm0, %v82_v17   ;;  %134 = vst.msk [vmem:[%s294_s1 + $0x5] ss:$8 sm:$0xf] %vm3_vm0, %v73_v18  }
  0x86   :  { %135 = vst.msk [vmem:[%s294_s1 + $0x5] ss:$8 sm:$0xf0] %vm3_vm0, %v73_v18  }
  0x88   :  { %v97_v19 = vpop.permute.xlu1 %96   ;;  %v88_v20 = vpop.permute.xlu0 %87  }
  0x89   :  { %141 = vst.msk [vmem:[%s294_s1 + $0x46] sm:$0x1] %vm3_vm0, %v97_v19   ;;  %138 = vst.msk [vmem:[%s294_s1 + $0x6] ss:$8 sm:$0xf] %vm3_vm0, %v88_v20  }
  0x8a   :  { %139 = vst.msk [vmem:[%s294_s1 + $0x6] ss:$8 sm:$0xf0] %vm3_vm0, %v88_v20  }
  0x8c   :  { %v112_v21 = vpop.permute.xlu1 %111   ;;  %v103_v22 = vpop.permute.xlu0 %102  }
  0x8d   :  { %145 = vst.msk [vmem:[%s294_s1 + $0x47] sm:$0x1] %vm3_vm0, %v112_v21   ;;  %142 = vst.msk [vmem:[%s294_s1 + $0x7] ss:$8 sm:$0xf] %vm3_vm0, %v103_v22  }
  0x8e   :  { %143 = vst.msk [vmem:[%s294_s1 + $0x7] ss:$8 sm:$0xf0] %vm3_vm0, %v103_v22  }

// kernel: generator_forward.9
= control target key start
LH: loop header
LB: loop body
LE: loop exit
PB: predicated region body
PF: predicated region fallthrough
CT: control target
= control target key end

     0   :  { %s1168_s15 = smov 0   ;;  %s1170_s16 = smov 0   ;;  %s1814_s0 = inlined_call_operand.vmem [shape: f32[72,1], index: 0, kind: input, shape index: {}]   ;;  %s1815_s1 = inlined_call_operand.vmem [shape: f32[72,1], index: 1, kind: input, shape index: {}]   ;;  %s1816_s2 = inlined_call_operand.vmem [shape: bf16[2,72,1024], index: 2, kind: input, shape index: {}]   ;;  %s1817_s3 = inlined_call_operand.vmem [shape: bf16[12,72], index: 3, kind: input, shape index: {}]   ;;  %s1818_s4 = inlined_call_operand.vmem [shape: f32[2,12,1024], index: 4, kind: output, shape index: {}]  }
   0x1   :  { %s1172_s17 = smov 0  }
   0x2 LB: > { %s26_s18 = sadd.s32 1, %s1136_s16  ;;  %p1041_p0 = scmp.ge.s32.totalorder %s1140_s17, 1  ;;  %s1140_s17 = sphi %s1172_s17, %s14_s17   ;;  %s1136_s16 = sphi %s1170_s16, %s1876_s16   ;;  %s1132_s15 = sphi %s1168_s15, %s1875_s15  }
   0x3   : > { %p28_p1 = scmp.ge.s32.totalorder %s26_s18, 2  ;;  %p183_p2 = scmp.lt.s32.totalorder %s1140_s17, 3 }
   0x5   : > { %s1878_s18 = smov (%p28_p1, %s26_s18), 0  ;;  %p184_p3 = pnand %p1041_p0, %p183_p2 }
   0x6   : > { %v472_v0 = vld [vmem:[%s1815_s1] sm:$0xff] (!%p184_p3)  ;;  %v1819_v2 = vmov (!%p184_p3), 0   ;;  %v473_v3 = vld [vmem:[%s1815_s1 + $0x8] sm:$0xff] (!%p184_p3)  ;;  %v349_v5 = vld [vmem:[%s1814_s0 + $0x18] sm:$0xff] (!%p184_p3)  ;;  %p218_p4 = scmp.lt.s32.totalorder (!%p184_p3), %s1132_s15, 1  ;;  %vm721_vm0 = vcmask (!%p184_p3), 1043456  }
   0x7   : > { %187 = sbr.rel (%p184_p3) target bundleno = 453 (0x1c5), region = 36  ;;  %v346_v1 = vld [vmem:[%s1814_s0] sm:$0xff] (!%p184_p3)  ;;  %1084 = vset.pattern.permute.xlu1 (!%p184_p3), %v1819_v2  ;;  %1083 = vset.pattern.permute.xlu0 (!%p184_p3), %v1819_v2  ;;  %v347_v4 = vld [vmem:[%s1814_s0 + $0x8] sm:$0xff] (!%p184_p3)  ;;  %v348_v6 = vld [vmem:[%s1814_s0 + $0x10] sm:$0xff] (!%p184_p3)  ;;  %vm717_vm1 = vcmask (!%p184_p3), 588800  }
   0x8   : > { %483 = vperm.xlu1 (!%p184_p3), %1084, %v472_v0   ;;  %357 = vperm.xlu0 (!%p184_p3), %1083, %v346_v1   ;;  %v475_v7 = vld [vmem:[%s1815_s1 + $0x18] sm:$0xff] (!%p184_p3)  ;;  %v474_v8 = vld [vmem:[%s1815_s1 + $0x10] sm:$0xff] (!%p184_p3)  ;;  %v351_v9 = vld [vmem:[%s1814_s0 + $0x28] sm:$0xff] (!%p184_p3) }
   0x9   : > { %778 = vmatprep.mubr.bf16.mxu0 (!%p184_p3), %v1819_v2  ;;  %821 = vmatprep.mubr.bf16.mxu1 (!%p184_p3), %v1819_v2  ;;  %v350_v10 = vld [vmem:[%s1814_s0 + $0x20] sm:$0xff] (!%p184_p3)  ;;  %v477_v11 = vld [vmem:[%s1815_s1 + $0x28] sm:$0xff] (!%p184_p3)  ;;  %v353_v13 = vld [vmem:[%s1814_s0 + $0x38] sm:$0xff] (!%p184_p3) }
   0xa   : > { %v476_v12 = vld [vmem:[%s1815_s1 + $0x20] sm:$0xff] (!%p184_p3)  ;;  %v352_v14 = vld [vmem:[%s1814_s0 + $0x30] sm:$0xff] (!%p184_p3)  ;;  %v479_v15 = vld [vmem:[%s1815_s1 + $0x38] sm:$0xff] (!%p184_p3) }
   0xb   : > { %v478_v16 = vld [vmem:[%s1815_s1 + $0x30] sm:$0xff] (!%p184_p3)  ;;  %v480_v17 = vld [vmem:[%s1815_s1 + $0x40] sm:$0xff] (!%p184_p3) }
   0xc   : > { %488 = vperm.xlu1 (!%p184_p3), %1084, %v473_v3   ;;  %362 = vperm.xlu0 (!%p184_p3), %1083, %v347_v4   ;;  %v354_v18 = vld [vmem:[%s1814_s0 + $0x40] sm:$0xff] (!%p184_p3) }
   0xe   : > { %s1880_s15 = smov (!%p218_p4, %s1132_s15), 1 }
   0xf   : > { %s1057_s7 = smul.u32 288, %s1880_s15  ;;  %s1056_s13 = sshll.u32 %s1880_s15, 7 }
  0x10   : > { %372 = vperm.xlu1 %1084, %v349_v5   ;;  %367 = vperm.xlu0 %1083, %v348_v6   ;;  %s1787_s20 = scalar_lea.vmem %s1818_s4, %s1056_s13 }
  0x11   : > { %s1254_s10 = scalar_lea.vmem %s1816_s2, %s1057_s7 }
  0x12   : > { %v1257_v19 = vld [vmem:[%s1254_s10] sm:$0xff]  ;;  %v1263_v21 = vld [vmem:[%s1254_s10 + $0x8] sm:$0xff]  ;;  %v1288_v34 = vld [vmem:[%s1254_s10 + $0x10] sm:$0xff] }
  0x13   : > { %v1260_v20 = vld [vmem:[%s1254_s10 + $0x20] sm:$0xff]  ;;  %v1266_v22 = vld [vmem:[%s1254_s10 + $0x28] sm:$0xff]  ;;  %v275_v26 = vunpack.c.h.bf16 %v1257_v19  ;;  %v277_v28 = vunpack.c.h.bf16 %v1263_v21  ;;  %v274_v31 = vunpack.c.l.bf16 %v1257_v19  ;;  %v276_v33 = vunpack.c.l.bf16 %v1263_v21  ;;  %v1291_v35 = vld [vmem:[%s1254_s10 + $0x30] sm:$0xff] }
  0x14   : > { %498 = vperm.xlu1 %1084, %v475_v7   ;;  %493 = vperm.xlu0 %1083, %v474_v8   ;;  %v1269_v23 = vld [vmem:[%s1254_s10 + $0x40] sm:$0xff]  ;;  %v1275_v25 = vld [vmem:[%s1254_s10 + $0x48] sm:$0xff]  ;;  %v283_v27 = vunpack.c.h.bf16 %v1260_v20  ;;  %v285_v30 = vunpack.c.h.bf16 %v1266_v22  ;;  %v282_v32 = vunpack.c.l.bf16 %v1260_v20  ;;  %v284_v36 = vunpack.c.l.bf16 %v1266_v22  ;;  %v1321_v53 = vld [vmem:[%s1254_s10 + $0x18] sm:$0xff] }
  0x15   : > { %v1272_v24 = vld [vmem:[%s1254_s10 + $0x60] sm:$0xff]  ;;  %v1281_v29 = vld [vmem:[%s1254_s10 + $0x68] sm:$0xff]  ;;  %v291_v37 = vunpack.c.h.bf16 %v1269_v23  ;;  %v293_v39 = vunpack.c.h.bf16 %v1275_v25  ;;  %v278_v50 = vunpack.c.l.bf16 %v1288_v34  ;;  %v279_v51 = vunpack.c.h.bf16 %v1288_v34  ;;  %v1341_v1 = vld [vmem:[%s1254_s10 + $0x38] sm:$0xff] }
  0x16   : > { %v299_v38 = vunpack.c.h.bf16 %v1272_v24  ;;  %v1298_v40 = vld [vmem:[%s1254_s10 + $0x80] sm:$0xff]  ;;  %v1304_v42 = vld [vmem:[%s1254_s10 + $0x88] sm:$0xff]  ;;  %v287_v60 = vunpack.c.h.bf16 %v1291_v35  ;;  %v280_v7 = vunpack.c.l.bf16 %v1321_v53  ;;  %v281_v8 = vunpack.c.h.bf16 %v1321_v53  ;;  %v1368_v53 = vld [vmem:[%s1254_s10 + $0x58] sm:$0xff] }
  0x17   : > { %v1301_v41 = vld [vmem:[%s1254_s10 + $0xa0] sm:$0xff]  ;;  %v1311_v47 = vld [vmem:[%s1254_s10 + $0xa8] sm:$0xff]  ;;  %v1371_v2 = vld [vmem:[%s1254_s10 + $0x78] sm:$0xff] }
  0x18   : > { %382 = vperm.xlu1 %1084, %v351_v9   ;;  %377 = vperm.xlu0 %1083, %v350_v10   ;;  %v1315_v49 = vld [vmem:[%s1254_s10 + $0xc0] sm:$0xff]  ;;  %v1330_v58 = vld [vmem:[%s1254_s10 + $0xc8] sm:$0xff]  ;;  %v1381_v10 = vld [vmem:[%s1254_s10 + $0xb0] sm:$0xff] }
  0x19   : > { %v1327_v57 = vld [vmem:[%s1254_s10 + $0xe0] sm:$0xff]  ;;  %v1333_v59 = vld [vmem:[%s1254_s10 + $0xe8] sm:$0xff]  ;;  %v1391_v4 = vld [vmem:[%s1254_s10 + $0xb8] sm:$0xff] }
  0x1a   : > { %v1346_v5 = vld [vmem:[%s1254_s10 + $0x100] sm:$0xff]  ;;  %v1349_v6 = vld [vmem:[%s1254_s10 + $0x108] sm:$0xff]  ;;  %v1398_v63 = vld [vmem:[%s1254_s10 + $0xd0] sm:$0xff] }
  0x1b   : > { %v1408_v56 = vld [vmem:[%s1254_s10 + $0xd8] sm:$0xff]  ;;  %v1434_v52 = vld [vmem:[%s1254_s10 + $0x110] sm:$0xff] }
  0x1c   : > { %508 = vperm.xlu1 %1084, %v477_v11   ;;  %503 = vperm.xlu0 %1083, %v476_v12   ;;  %v289_v11 = vunpack.c.h.bf16 %v1341_v1  ;;  %v1388_v12 = vld [vmem:[%s1254_s10 + $0x98] sm:$0xff] }
  0x20   : > { %392 = vperm.xlu1 %1084, %v353_v13   ;;  %387 = vperm.xlu0 %1083, %v352_v14   ;;  %v1358_v13 = vld [vmem:[%s1254_s10 + $0x50] sm:$0xff] }
  0x21   : > { %v1361_v14 = vld [vmem:[%s1254_s10 + $0x70] sm:$0xff] }
  0x24   : > { %518 = vperm.xlu1 %1084, %v479_v15   ;;  %513 = vperm.xlu0 %1083, %v478_v16   ;;  %v1378_v16 = vld [vmem:[%s1254_s10 + $0x90] sm:$0xff]  ;;  %v1411_v15 = vld [vmem:[%s1254_s10 + $0xf8] sm:$0xff] }
  0x28   : > { %523 = vperm.xlu1 %1084, %v480_v17   ;;  %397 = vperm.xlu0 %1083, %v354_v18   ;;  %v1401_v17 = vld [vmem:[%s1254_s10 + $0xf0] sm:$0xff] }
  0x87   : > { %v484_v54 = vpop.permute.xlu1 %483  ;;  %v358_v48 = vpop.permute.xlu0 %357 }
  0x88   : > { %v401_v55 = vmul.f32 %v358_v48, %v275_v26  ;;  %v403_v9 = vmul.f32 %v358_v48, %v277_v28  ;;  %v400_v62 = vmul.f32 %v358_v48, %v274_v31  ;;  %v402_v61 = vmul.f32 %v358_v48, %v276_v33 }
  0x89   : > { %v405_v3 = vmul.f32 %v358_v48, %v279_v51  ;;  %v407_v18 = vmul.f32 %v358_v48, %v281_v8  ;;  %v404_v0 = vmul.f32 %v358_v48, %v278_v50  ;;  %v406_v46 = vmul.f32 %v358_v48, %v280_v7 }
  0x8a   : > { %v527_v26 = vadd.f32 %v484_v54, %v401_v55  ;;  %v529_v45 = vadd.f32 %v484_v54, %v403_v9  ;;  %v526_v44 = vadd.f32 %v484_v54, %v400_v62  ;;  %v528_v28 = vadd.f32 %v484_v54, %v402_v61 }
  0x8b   : > { %v1440_v43 = vpop.permute.xlu1 %488  ;;  %v1442_v19 = vpop.permute.xlu0 %362  ;;  %v1444_v21 = vadd.f32 %v484_v54, %v405_v3  ;;  %v1446_v31 = vadd.f32 %v484_v54, %v407_v18  ;;  %v1456_v50 = vadd.f32 %v484_v54, %v404_v0  ;;  %v1458_v55 = vadd.f32 %v484_v54, %v406_v46 }
  0x8c   : > { %v409_v34 = vmul.f32 %v1442_v19, %v283_v27  ;;  %v411_v48 = vmul.f32 %v1442_v19, %v285_v30  ;;  %v599_v61 = vmax.f32 %v527_v26, 0.0  ;;  %v601_v62 = vmax.f32 %v529_v45, 0.0 }
  0x8d   : > { %v408_v3 = vmul.f32 %v1442_v19, %v282_v32  ;;  %v410_v7 = vmul.f32 %v1442_v19, %v284_v36  ;;  %v598_v9 = vmax.f32 %v526_v44, 0.0  ;;  %v600_v30 = vmax.f32 %v528_v28, 0.0 }
  0x8e   : > { %v535_v27 = vadd.f32 %v1440_v43, %v409_v34  ;;  %v537_v8 = vadd.f32 %v1440_v43, %v411_v48  ;;  %v413_v22 = vmul.f32 %v1442_v19, %v287_v60  ;;  %v1480_v32 = vmul.f32 %v1442_v19, %v289_v11  ;;  %v1495_v48 = vld [vmem:[%s1254_s10 + $0x118] sm:$0xff] }
  0x8f   : > { %v1468_v0 = vpop.permute.xlu1 %372  ;;  %v1470_v46 = vpop.permute.xlu0 %367  ;;  %v534_v45 = vadd.f32 %v1440_v43, %v408_v3  ;;  %v536_v20 = vadd.f32 %v1440_v43, %v410_v7  ;;  %v1821_v34 = vunpack.c.h.bf16 %v1281_v29 }
  0x90   : > { %v607_v36 = vmax.f32 %v535_v27, 0.0  ;;  %v609_v44 = vmax.f32 %v537_v8, 0.0  ;;  %v417_v54 = vmul.f32 %v1470_v46, %v291_v37  ;;  %v425_v18 = vmul.f32 %v1468_v0, %v299_v38 }
  0x91   : > { %v606_v26 = vmax.f32 %v534_v45, 0.0  ;;  %v608_v28 = vmax.f32 %v536_v20, 0.0  ;;  %v419_v60 = vmul.f32 %v1470_v46, %v293_v39  ;;  %v427_v11 = vmul.f32 %v1468_v0, %v1821_v34 }
  0x92   : > { %v673_v3 = vpack.c.bf16 %v607_v36, %v599_v61  ;;  %v675_v7 = vpack.c.bf16 %v609_v44, %v601_v62  ;;  %v1822_v37 = vunpack.c.l.bf16 %v1269_v23  ;;  %v1823_v38 = vunpack.c.l.bf16 %v1272_v24 }
  0x93   : > { %v1503_v45 = vpop.permute.xlu1 %498  ;;  %v1505_v20 = vpop.permute.xlu0 %493  ;;  %v672_v39 = vpack.c.bf16 %v606_v26, %v598_v9  ;;  %v674_v51 = vpack.c.bf16 %v608_v28, %v600_v30  ;;  %v1824_v34 = vunpack.c.l.bf16 %v1275_v25  ;;  %v1825_v61 = vunpack.c.l.bf16 %v1281_v29 }
  0x94   : > { %v416_v27 = vmul.f32 %v1470_v46, %v1822_v37  ;;  %v424_v8 = vmul.f32 %v1468_v0, %v1823_v38  ;;  %746 = vmatprep.subr.bf16.mxu0 %v673_v3  ;;  %789 = vmatprep.subr.bf16.mxu1 %v675_v7  ;;  %v543_v24 = vadd.f32 %v1505_v20, %v417_v54  ;;  %v603_v30 = vmax.f32 %v1444_v21, 0.0 }
  0x95   : > { %v418_v33 = vmul.f32 %v1470_v46, %v1824_v34  ;;  %v426_v23 = vmul.f32 %v1468_v0, %v1825_v61  ;;  %v551_v62 = vadd.f32 %v1503_v45, %v425_v18  ;;  %v545_v36 = vadd.f32 %v1505_v20, %v419_v60  ;;  %747 = vmatpush1.bf16.msra.mxu0 %v672_v39 }
  0x96   : > { %790 = vmatpush1.bf16.msra.mxu1 %v674_v51  ;;  %v553_v25 = vadd.f32 %v1503_v45, %v427_v11  ;;  %v542_v9 = vadd.f32 %v1505_v20, %v416_v27  ;;  %v550_v29 = vadd.f32 %v1503_v45, %v424_v8  ;;  %v615_v26 = vmax.f32 %v543_v24, 0.0 }
  0x97   : > { %v623_v28 = vmax.f32 %v551_v62, 0.0  ;;  %v617_v3 = vmax.f32 %v545_v36, 0.0  ;;  %v544_v54 = vadd.f32 %v1505_v20, %v418_v33  ;;  %v1522_v18 = vpop.permute.xlu1 %382  ;;  %v1524_v60 = vpop.permute.xlu0 %377  ;;  %v552_v11 = vadd.f32 %v1503_v45, %v426_v23 }
  0x98   : > { %v625_v7 = vmax.f32 %v553_v25, 0.0  ;;  %v614_v37 = vmax.f32 %v542_v9, 0.0  ;;  %v622_v51 = vmax.f32 %v550_v29, 0.0  ;;  %v1826_v8 = vunpack.c.h.bf16 %v1298_v40 }
  0x99   : > { %v681_v38 = vpack.c.bf16 %v623_v28, %v615_v26  ;;  %v616_v27 = vmax.f32 %v544_v54, 0.0  ;;  %v1827_v34 = vunpack.c.h.bf16 %v1301_v41  ;;  %v624_v62 = vmax.f32 %v552_v11, 0.0 }
  0x9a   : > { %v433_v39 = vmul.f32 %v1524_v60, %v1826_v8  ;;  %v683_v33 = vpack.c.bf16 %v625_v7, %v617_v3  ;;  %v680_v24 = vpack.c.bf16 %v622_v51, %v614_v37  ;;  %v1828_v36 = vunpack.c.h.bf16 %v1304_v42 }
  0x9b   : > { %v441_v61 = vmul.f32 %v1522_v18, %v1827_v34  ;;  %748 = vmatprep.subr.bf16.mxu0 %v681_v38  ;;  %v1829_v23 = vunpack.c.h.bf16 %v1311_v47  ;;  %v1830_v29 = vunpack.c.l.bf16 %v1298_v40  ;;  %v1831_v28 = vunpack.c.l.bf16 %v1301_v41  ;;  %v1548_v37 = vpop.permute.xlu1 %508  ;;  %v1550_v51 = vpop.permute.xlu0 %503 }
  0x9c   : > { %v435_v25 = vmul.f32 %v1524_v60, %v1828_v36  ;;  %v1832_v3 = vunpack.c.l.bf16 %v1304_v42  ;;  %791 = vmatprep.subr.bf16.mxu1 %v683_v33  ;;  %749 = vmatpush1.bf16.msra.mxu0 %v680_v24  ;;  %v682_v11 = vpack.c.bf16 %v624_v62, %v616_v27  ;;  %v1833_v38 = vunpack.c.l.bf16 %v1311_v47 }
  0x9d   : > { %v443_v9 = vmul.f32 %v1522_v18, %v1829_v23  ;;  %v432_v26 = vmul.f32 %v1524_v60, %v1830_v29  ;;  %v440_v54 = vmul.f32 %v1522_v18, %v1831_v28  ;;  %v1556_v8 = vadd.f32 %v1440_v43, %v413_v22 }
  0x9e   : > { %v434_v7 = vmul.f32 %v1524_v60, %v1832_v3  ;;  %v442_v40 = vmul.f32 %v1522_v18, %v1833_v38  ;;  %v605_v41 = vmax.f32 %v1446_v31, 0.0  ;;  %v559_v42 = vadd.f32 %v1550_v51, %v433_v39  ;;  %792 = vmatpush1.bf16.msra.mxu1 %v682_v11 }
  0x9f   : > { %v567_v34 = vadd.f32 %v1548_v37, %v441_v61  ;;  %v561_v33 = vadd.f32 %v1550_v51, %v435_v25  ;;  %v569_v36 = vadd.f32 %v1548_v37, %v443_v9  ;;  %v558_v27 = vadd.f32 %v1550_v51, %v432_v26  ;;  %v1567_v39 = vpop.permute.xlu1 %392  ;;  %v1569_v61 = vpop.permute.xlu0 %387 }
  0xa0   : > { %v566_v47 = vadd.f32 %v1548_v37, %v440_v54  ;;  %v560_v24 = vadd.f32 %v1550_v51, %v434_v7  ;;  %v568_v22 = vadd.f32 %v1548_v37, %v442_v40  ;;  %v631_v62 = vmax.f32 %v559_v42, 0.0 }
  0xa1   : > { %v639_v23 = vmax.f32 %v567_v34, 0.0  ;;  %v633_v29 = vmax.f32 %v561_v33, 0.0  ;;  %v641_v28 = vmax.f32 %v569_v36, 0.0  ;;  %v630_v25 = vmax.f32 %v558_v27, 0.0 }
  0xa2   : > { %v638_v3 = vmax.f32 %v566_v47, 0.0  ;;  %v632_v9 = vmax.f32 %v560_v24, 0.0  ;;  %v640_v11 = vmax.f32 %v568_v22, 0.0  ;;  %v1834_v54 = vunpack.c.h.bf16 %v1315_v49 }
  0xa3   : > { %v689_v38 = vpack.c.bf16 %v639_v23, %v631_v62  ;;  %v691_v26 = vpack.c.bf16 %v641_v28, %v633_v29  ;;  %v1835_v40 = vunpack.c.h.bf16 %v1327_v57  ;;  %v1836_v36 = vunpack.c.h.bf16 %v1330_v58 }
  0xa4   : > { %v449_v7 = vmul.f32 %v1569_v61, %v1834_v54  ;;  %v688_v34 = vpack.c.bf16 %v638_v3, %v630_v25  ;;  %v690_v33 = vpack.c.bf16 %v640_v11, %v632_v9  ;;  %v1837_v27 = vunpack.c.h.bf16 %v1333_v59  ;;  %v1593_v3 = vpop.permute.xlu1 %518  ;;  %v1595_v9 = vpop.permute.xlu0 %513 }
  0xa5   : > { %v457_v42 = vmul.f32 %v1567_v39, %v1835_v40  ;;  %v451_v44 = vmul.f32 %v1569_v61, %v1836_v36  ;;  %750 = vmatprep.subr.bf16.mxu0 %v689_v38  ;;  %793 = vmatprep.subr.bf16.mxu1 %v691_v26  ;;  %v1838_v24 = vunpack.c.l.bf16 %v1315_v49  ;;  %v1839_v62 = vunpack.c.l.bf16 %v1327_v57 }
  0xa6   : > { %v459_v47 = vmul.f32 %v1567_v39, %v1837_v27  ;;  %v1840_v29 = vunpack.c.l.bf16 %v1330_v58  ;;  %v602_v25 = vmax.f32 %v1456_v50, 0.0  ;;  %751 = vmatpush1.bf16.msra.mxu0 %v688_v34  ;;  %794 = vmatpush1.bf16.msra.mxu1 %v690_v33  ;;  %v1841_v49 = vunpack.c.l.bf16 %v1333_v59 }
  0xa7   : > { %v448_v22 = vmul.f32 %v1569_v61, %v1838_v24  ;;  %v456_v23 = vmul.f32 %v1567_v39, %v1839_v62  ;;  %v611_v57 = vmax.f32 %v1556_v8, 0.0  ;;  %v541_v38 = vadd.f32 %v1440_v43, %v1480_v32 }
  0xa8   : > { %v450_v28 = vmul.f32 %v1569_v61, %v1840_v29  ;;  %v458_v11 = vmul.f32 %v1567_v39, %v1841_v49  ;;  %v1842_v58 = vunpack.c.l.bf16 %v1291_v35  ;;  %v575_v54 = vadd.f32 %v1595_v9, %v449_v7  ;;  %v1614_v7 = vpop.permute.xlu0 %397 }
  0xa9   : > { %v583_v40 = vadd.f32 %v1593_v3, %v457_v42  ;;  %v577_v34 = vadd.f32 %v1595_v9, %v451_v44  ;;  %v585_v33 = vadd.f32 %v1593_v3, %v459_v47  ;;  %v574_v59 = vadd.f32 %v1595_v9, %v448_v22 }
  0xaa   : > { %v412_v26 = vmul.f32 %v1442_v19, %v1842_v58  ;;  %v582_v36 = vadd.f32 %v1593_v3, %v456_v23  ;;  %v576_v8 = vadd.f32 %v1595_v9, %v450_v28  ;;  %v584_v32 = vadd.f32 %v1593_v3, %v458_v11 }
  0xab   : > { %v647_v35 = vmax.f32 %v575_v54, 0.0  ;;  %v655_v27 = vmax.f32 %v583_v40, 0.0  ;;  %v649_v24 = vmax.f32 %v577_v34, 0.0  ;;  %v657_v62 = vmax.f32 %v585_v33, 0.0  ;;  %v1622_v54 = vpop.permute.xlu1 %523 }
  0xac   : > { %v646_v42 = vmax.f32 %v574_v59, 0.0  ;;  %v654_v29 = vmax.f32 %v582_v36, 0.0  ;;  %v648_v44 = vmax.f32 %v576_v8, 0.0  ;;  %v656_v49 = vmax.f32 %v584_v32, 0.0 }
  0xad   : > { %v697_v47 = vpack.c.bf16 %v655_v27, %v647_v35  ;;  %v699_v58 = vpack.c.bf16 %v657_v62, %v649_v24  ;;  %v1843_v22 = vunpack.c.h.bf16 %v1346_v5  ;;  %v1844_v28 = vunpack.c.h.bf16 %v1349_v6 }
  0xae   : > { %v696_v40 = vpack.c.bf16 %v654_v29, %v646_v42  ;;  %v698_v34 = vpack.c.bf16 %v656_v49, %v648_v44  ;;  %v1845_v33 = vunpack.c.l.bf16 %v1346_v5  ;;  %v1846_v36 = vunpack.c.l.bf16 %v1349_v6 }
  0xaf   : > { %v465_v23 = vmul.f32 %v1614_v7, %v1843_v22  ;;  %v467_v11 = vmul.f32 %v1614_v7, %v1844_v28  ;;  %752 = vmatprep.subr.bf16.mxu0 %v697_v47  ;;  %795 = vmatprep.subr.bf16.mxu1 %v699_v58  ;;  %v677_v27 = vpack.c.bf16 %v611_v57, %v603_v30  ;;  %v613_v24 = vmax.f32 %v541_v38, 0.0 }
  0xb0   : > { %v464_v59 = vmul.f32 %v1614_v7, %v1845_v33  ;;  %v466_v8 = vmul.f32 %v1614_v7, %v1846_v36  ;;  %753 = vmatpush1.bf16.msra.mxu0 %v696_v40  ;;  %796 = vmatpush1.bf16.msra.mxu1 %v698_v34  ;;  %v538_v6 = vadd.f32 %v1440_v43, %v412_v26  ;;  %v604_v42 = vmax.f32 %v1458_v55, 0.0 }
  0xb1   : > { %v591_v32 = vadd.f32 %v1622_v54, %v465_v23  ;;  %v593_v35 = vadd.f32 %v1622_v54, %v467_v11  ;;  %v679_v49 = vpack.c.bf16 %v613_v24, %v605_v41  ;;  %v1847_v21 = vunpack.c.l.bf16 %v1341_v1 }
  0xb2   : > { %v590_v5 = vadd.f32 %v1622_v54, %v464_v59  ;;  %v592_v62 = vadd.f32 %v1622_v54, %v466_v8  ;;  %v610_v47 = vmax.f32 %v538_v6, 0.0  ;;  %v1848_v58 = vunpack.c.h.bf16 %v1358_v13  ;;  %v1667_v8 = vld [vmem:[%s1817_s3] sm:$0x3f]  }
  0xb3   : > { %v663_v29 = vmax.f32 %v591_v32, 0.0  ;;  %v665_v44 = vmax.f32 %v593_v35, 0.0  ;;  %v414_v30 = vmul.f32 %v1442_v19, %v1847_v21  ;;  %v1849_v28 = vunpack.c.h.bf16 %v1361_v14 }
  0xb4   : > { %v662_v57 = vmax.f32 %v590_v5, 0.0  ;;  %v664_v38 = vmax.f32 %v592_v62, 0.0  ;;  %v421_v22 = vmul.f32 %v1470_v46, %v1848_v58  ;;  %v676_v1 = vpack.c.bf16 %v610_v47, %v602_v25 }
  0xb5   : > { %v705_v23 = vpack.c.bf16 %v663_v29, %v663_v29  ;;  %v707_v26 = vpack.c.bf16 %v665_v44, %v665_v44  ;;  %v540_v55 = vadd.f32 %v1440_v43, %v414_v30  ;;  %v429_v31 = vmul.f32 %v1468_v0, %v1849_v28 }
  0xb6   : > { %v704_v41 = vpack.c.bf16 %v662_v57, %v662_v57  ;;  %v706_v11 = vpack.c.bf16 %v664_v38, %v664_v38  ;;  %v547_v19 = vadd.f32 %v1505_v20, %v421_v22  ;;  %v1850_v43 = vunpack.c.h.bf16 %v1368_v53 }
  0xb7   : > { %1046 = vmatprep.subr.msk.bf16.mxu0 %vm721_vm0, %v705_v23  ;;  %1048 = vmatprep.subr.msk.bf16.mxu1 %vm721_vm0, %v707_v26  ;;  %v612_v40 = vmax.f32 %v540_v55, 0.0  ;;  %v555_v34 = vadd.f32 %v1503_v45, %v429_v31  ;;  %v1851_v59 = vunpack.c.h.bf16 %v1371_v2  ;;  %v1852_v35 = vunpack.c.l.bf16 %v1358_v13 }
  0xb8   : > { %v423_v33 = vmul.f32 %v1470_v46, %v1850_v43  ;;  %v723_v50 = vsel %vm721_vm0, %v704_v41, 0  ;;  %v729_v25 = vsel %vm721_vm0, %v706_v11, 0  ;;  %v619_v32 = vmax.f32 %v547_v19, 0.0 }
  0xb9   : > { %v431_v36 = vmul.f32 %v1468_v0, %v1851_v59  ;;  %v420_v24 = vmul.f32 %v1470_v46, %v1852_v35  ;;  %755 = vmatpush1.bf16.msra.mxu0 %v723_v50  ;;  %798 = vmatpush1.bf16.msra.mxu1 %v729_v25  ;;  %v678_v5 = vpack.c.bf16 %v612_v40, %v604_v42  ;;  %v627_v62 = vmax.f32 %v555_v34, 0.0 }
  0xba   : > { %v549_v6 = vadd.f32 %v1505_v20, %v423_v33  ;;  %832 = vmatprep.subr.bf16.mxu0 %v677_v27  ;;  %875 = vmatprep.subr.bf16.mxu1 %v679_v49  ;;  %v1853_v44 = vunpack.c.l.bf16 %v1361_v14  ;;  %v1854_v13 = vunpack.c.l.bf16 %v1368_v53  ;;  %v342_v38 = vunpack.c.l.bf16 %v1434_v52 }
  0xbb   : > { %v557_v29 = vadd.f32 %v1503_v45, %v431_v36  ;;  %v546_v30 = vadd.f32 %v1505_v20, %v420_v24  ;;  %v685_v42 = vpack.c.bf16 %v627_v62, %v619_v32  ;;  %v1855_v22 = vunpack.c.l.bf16 %v1371_v2 }
  0xbc   : > { %v428_v21 = vmul.f32 %v1468_v0, %v1853_v44  ;;  %v422_v57 = vmul.f32 %v1470_v46, %v1854_v13  ;;  %v621_v47 = vmax.f32 %v549_v6, 0.0  ;;  %1047 = vmatmul.mubr.msk.bf16.vlgmr.msra.gmra.mrb[0].mxu0 %vm717_vm1, %v1667_v8  ;;  %1049 = vmatmul.mubr.msk.bf16.vlgmr.msra.gmra.mrb[0].mxu1 %vm717_vm1, %v1667_v8  ;;  %v1856_v49 = vunpack.c.h.bf16 %v1378_v16 }
  0xbd   : > { %v629_v58 = vmax.f32 %v557_v29, 0.0  ;;  %v430_v27 = vmul.f32 %v1468_v0, %v1855_v22  ;;  %v618_v53 = vmax.f32 %v546_v30, 0.0  ;;  %833 = vmatpush1.bf16.msra.mxu0 %v676_v1  ;;  %876 = vmatpush1.bf16.msra.mxu1 %v678_v5  ;;  %v1857_v26 = vunpack.c.h.bf16 %v1381_v10 }
  0xbe   : > { %v554_v14 = vadd.f32 %v1503_v45, %v428_v21  ;;  %v548_v46 = vadd.f32 %v1505_v20, %v422_v57  ;;  %v437_v23 = vmul.f32 %v1524_v60, %v1856_v49  ;;  %v344_v28 = vunpack.c.l.bf16 %v1495_v48  ;;  %834 = vmatprep.subr.bf16.mxu0 %v685_v42 }
  0xbf   : > { %v687_v2 = vpack.c.bf16 %v629_v58, %v621_v47  ;;  %v556_v0 = vadd.f32 %v1503_v45, %v430_v27  ;;  %v445_v55 = vmul.f32 %v1522_v18, %v1857_v26  ;;  %v1858_v11 = vunpack.c.h.bf16 %v1388_v12 }
  0xc0   : > { %v626_v31 = vmax.f32 %v554_v14, 0.0  ;;  %v620_v41 = vmax.f32 %v548_v46, 0.0  ;;  %v563_v20 = vadd.f32 %v1550_v51, %v437_v23  ;;  %v1859_v1 = vmov 0  }
  0xc1   : > { %v439_v19 = vmul.f32 %v1524_v60, %v1858_v11  ;;  %864 = vmatprep.mubr.bf16.mxu0 %v1859_v1  ;;  %877 = vmatprep.subr.bf16.mxu1 %v687_v2  ;;  %v628_v40 = vmax.f32 %v556_v0, 0.0  ;;  %v571_v45 = vadd.f32 %v1548_v37, %v445_v55  ;;  %v1860_v34 = vunpack.c.h.bf16 %v1391_v4 }
  0xc2   : > { %v1861_v33 = vunpack.c.l.bf16 %v1378_v16  ;;  %907 = vmatprep.mubr.bf16.mxu1 %v1859_v1  ;;  %v684_v36 = vpack.c.bf16 %v626_v31, %v618_v53  ;;  %v635_v50 = vmax.f32 %v563_v20, 0.0  ;;  %v1862_v32 = vunpack.c.l.bf16 %v1381_v10 }
  0xc3   : > { %v447_v43 = vmul.f32 %v1522_v18, %v1860_v34  ;;  %v565_v25 = vadd.f32 %v1550_v51, %v439_v19  ;;  %v686_v24 = vpack.c.bf16 %v628_v40, %v620_v41  ;;  %v643_v5 = vmax.f32 %v571_v45, 0.0 }
  0xc4   : > { %v436_v59 = vmul.f32 %v1524_v60, %v1861_v33  ;;  %v444_v35 = vmul.f32 %v1522_v18, %v1862_v32  ;;  %835 = vmatpush1.bf16.msra.mxu0 %v684_v36  ;;  %v1863_v44 = vunpack.c.l.bf16 %v1388_v12  ;;  %v1864_v30 = vunpack.c.l.bf16 %v1391_v4 }
  0xc5   : > { %v573_v62 = vadd.f32 %v1548_v37, %v447_v43  ;;  %v637_v16 = vmax.f32 %v565_v25, 0.0  ;;  %878 = vmatpush1.bf16.msra.mxu1 %v686_v24  ;;  %v693_v13 = vpack.c.bf16 %v643_v5, %v635_v50  ;;  %v1865_v47 = vunpack.c.h.bf16 %v1398_v63 }
  0xc6   : > { %v562_v6 = vadd.f32 %v1550_v51, %v436_v59  ;;  %v570_v29 = vadd.f32 %v1548_v37, %v444_v35  ;;  %v438_v21 = vmul.f32 %v1524_v60, %v1863_v44  ;;  %v446_v10 = vmul.f32 %v1522_v18, %v1864_v30 }
  0xc7   : > { %v645_v57 = vmax.f32 %v573_v62, 0.0  ;;  %v453_v58 = vmul.f32 %v1569_v61, %v1865_v47  ;;  %v1866_v12 = vunpack.c.h.bf16 %v1401_v17  ;;  %836 = vmatprep.subr.bf16.mxu0 %v693_v13  ;;  %v1867_v53 = vunpack.c.h.bf16 %v1408_v56 }
  0xc8   : > { %v634_v42 = vmax.f32 %v562_v6, 0.0  ;;  %v642_v22 = vmax.f32 %v570_v29, 0.0  ;;  %v564_v27 = vadd.f32 %v1550_v51, %v438_v21  ;;  %v572_v14 = vadd.f32 %v1548_v37, %v446_v10 }
  0xc9   : > { %v461_v60 = vmul.f32 %v1567_v39, %v1866_v12  ;;  %v695_v4 = vpack.c.bf16 %v645_v57, %v637_v16  ;;  %v579_v18 = vadd.f32 %v1595_v9, %v453_v58  ;;  %v455_v46 = vmul.f32 %v1569_v61, %v1867_v53 }
  0xca   : > { %v1868_v49 = vunpack.c.h.bf16 %v1411_v15  ;;  %v692_v2 = vpack.c.bf16 %v642_v22, %v634_v42  ;;  %v636_v51 = vmax.f32 %v564_v27, 0.0  ;;  %v644_v0 = vmax.f32 %v572_v14, 0.0 }
  0xcb   : > { %v587_v37 = vadd.f32 %v1593_v3, %v461_v60  ;;  %879 = vmatprep.subr.bf16.mxu1 %v695_v4  ;;  %v651_v26 = vmax.f32 %v579_v18, 0.0  ;;  %v581_v55 = vadd.f32 %v1595_v9, %v455_v46  ;;  %v1869_v41 = vunpack.c.l.bf16 %v1398_v63 }
  0xcc   : > { %v463_v23 = vmul.f32 %v1567_v39, %v1868_v49  ;;  %837 = vmatpush1.bf16.msra.mxu0 %v692_v2  ;;  %v694_v11 = vpack.c.bf16 %v644_v0, %v636_v51  ;;  %v1870_v1 = vunpack.c.l.bf16 %v1401_v17  ;;  %v1871_v45 = vunpack.c.l.bf16 %v1408_v56 }
  0xcd   : > { %v452_v20 = vmul.f32 %v1569_v61, %v1869_v41  ;;  %v659_v19 = vmax.f32 %v587_v37, 0.0  ;;  %v653_v43 = vmax.f32 %v581_v55, 0.0  ;;  %v1872_v36 = vunpack.c.l.bf16 %v1411_v15 }
  0xce   : > { %v589_v31 = vadd.f32 %v1593_v3, %v463_v23  ;;  %v460_v40 = vmul.f32 %v1567_v39, %v1870_v1  ;;  %v454_v34 = vmul.f32 %v1569_v61, %v1871_v45  ;;  %880 = vmatpush1.bf16.msra.mxu1 %v694_v11  ;;  %v1873_v32 = vunpack.c.h.bf16 %v1434_v52 }
  0xcf   : > { %v578_v59 = vadd.f32 %v1595_v9, %v452_v20  ;;  %v462_v63 = vmul.f32 %v1567_v39, %v1872_v36  ;;  %v701_v50 = vpack.c.bf16 %v659_v19, %v651_v26  ;;  %v1874_v5 = vunpack.c.h.bf16 %v1495_v48 }
  0xd0   : > { %v661_v33 = vmax.f32 %v589_v31, 0.0  ;;  %v586_v25 = vadd.f32 %v1593_v3, %v460_v40  ;;  %v580_v17 = vadd.f32 %v1595_v9, %v454_v34  ;;  %v469_v56 = vmul.f32 %v1614_v7, %v1873_v32 }
  0xd1   : > { %v650_v61 = vmax.f32 %v578_v59, 0.0  ;;  %v588_v24 = vadd.f32 %v1593_v3, %v462_v63  ;;  %v471_v15 = vmul.f32 %v1614_v7, %v1874_v5  ;;  %838 = vmatprep.subr.bf16.mxu0 %v701_v50  ;;  %v468_v9 = vmul.f32 %v1614_v7, %v342_v38 }
  0xd2   : > { %v703_v35 = vpack.c.bf16 %v661_v33, %v653_v43  ;;  %v658_v39 = vmax.f32 %v586_v25, 0.0  ;;  %v652_v62 = vmax.f32 %v580_v17, 0.0  ;;  %v595_v6 = vadd.f32 %v1622_v54, %v469_v56 }
  0xd3   : > { %v660_v16 = vmax.f32 %v588_v24, 0.0  ;;  %v597_v29 = vadd.f32 %v1622_v54, %v471_v15  ;;  %v470_v3 = vmul.f32 %v1614_v7, %v344_v28  ;;  %v594_v30 = vadd.f32 %v1622_v54, %v468_v9 }
  0xd4   : > { %881 = vmatprep.subr.bf16.mxu1 %v703_v35  ;;  %v700_v44 = vpack.c.bf16 %v658_v39, %v650_v61  ;;  %v667_v21 = vmax.f32 %v595_v6, 0.0 }
  0xd5   : > { %v702_v10 = vpack.c.bf16 %v660_v16, %v652_v62  ;;  %v669_v13 = vmax.f32 %v597_v29, 0.0  ;;  %v596_v57 = vadd.f32 %v1622_v54, %v470_v3  ;;  %v666_v42 = vmax.f32 %v594_v30, 0.0 }
  0xd6   : > { %839 = vmatpush1.bf16.msra.mxu0 %v700_v44  ;;  %v709_v52 = vpack.c.bf16 %v667_v21, %v667_v21 }
  0xd7   : > { %882 = vmatpush1.bf16.msra.mxu1 %v702_v10  ;;  %v711_v38 = vpack.c.bf16 %v669_v13, %v669_v13  ;;  %v668_v47 = vmax.f32 %v596_v57, 0.0  ;;  %v708_v58 = vpack.c.bf16 %v666_v42, %v666_v42 }
  0xd8   : > { %1050 = vmatprep.subr.msk.bf16.mxu0 %vm721_vm0, %v709_v52 }
  0xd9   : > { %1052 = vmatprep.subr.msk.bf16.mxu1 %vm721_vm0, %v711_v38  ;;  %v710_v48 = vpack.c.bf16 %v668_v47, %v668_v47  ;;  %v735_v7 = vsel %vm721_vm0, %v708_v58, 0 }
  0xda   : > { %841 = vmatpush1.bf16.msra.mxu0 %v735_v7 }
  0xdb   : > { %v741_v28 = vsel %vm721_vm0, %v710_v48, 0 }
  0xdc   : > { %884 = vmatpush1.bf16.msra.mxu1 %v741_v28 }
  0xdd   : > { %1051 = vmatmul.mubr.msk.bf16.vlgmr.msra.gmra.mrb[4].mxu0 %vm717_vm1, %v1667_v8 }
  0xdf   : > { %1053 = vmatmul.mubr.msk.bf16.vlgmr.msra.gmra.mrb[4].mxu1 %vm717_vm1, %v1667_v8 }
 0x18f   : > { %v780_v54 = vpop.f32.mrb[0].mxu0  ;;  %v823_v22 = vpop.f32.mrb[0].mxu1 }
 0x190   : > { %1086 = vtanh.f32 %v780_v54  ;;  %v782_v27 = vpop.f32.mrb[1].mxu0  ;;  %v825_v14 = vpop.f32.mrb[1].mxu1 }
 0x191   : > { %1088 = vtanh.f32 %v823_v22  ;;  %v784_v12 = vpop.f32.mrb[2].mxu0  ;;  %v827_v60 = vpop.f32.mrb[2].mxu1 }
 0x192   : > { %1090 = vtanh.f32 %v782_v27  ;;  %v786_v4 = vpop.f32.mrb[3].mxu0  ;;  %v829_v18 = vpop.f32.mrb[3].mxu1 }
 0x193   : > { %1092 = vtanh.f32 %v825_v14 }
 0x194   : > { %1094 = vtanh.f32 %v784_v12 }
 0x195   : > { %1096 = vtanh.f32 %v827_v60 }
 0x196   : > { %1098 = vtanh.f32 %v786_v4 }
 0x197   : > { %1100 = vtanh.f32 %v829_v18 }
 0x19a   : > { %v1087_v8 = vpop.eup %1086 }
 0x19b   : > { %v1089_v53 = vpop.eup %1088  ;;  %934 = vst [vmem:[%s1787_s20] sm:$0xff] %v1087_v8 }
 0x19c   : > { %v1091_v46 = vpop.eup %1090  ;;  %936 = vst [vmem:[%s1787_s20 + $0x10] sm:$0xff] %v1089_v53 }
 0x19d   : > { %v1093_v49 = vpop.eup %1092  ;;  %935 = vst [vmem:[%s1787_s20 + $0x8] sm:$0xff] %v1091_v46 }
 0x19e   : > { %v1095_v23 = vpop.eup %1094  ;;  %937 = vst [vmem:[%s1787_s20 + $0x18] sm:$0xff] %v1093_v49 }
 0x19f   : > { %v1097_v2 = vpop.eup %1096  ;;  %942 = vst [vmem:[%s1787_s20 + $0x40] sm:$0xf] %v1095_v23 }
 0x1a0   : > { %v1099_v51 = vpop.eup %1098  ;;  %944 = vst [vmem:[%s1787_s20 + $0x50] sm:$0xf] %v1097_v2 }
 0x1a1   : > { %v1101_v0 = vpop.eup %1100  ;;  %943 = vst [vmem:[%s1787_s20 + $0x48] sm:$0xf] %v1099_v51 }
 0x1a2   : > { %945 = vst [vmem:[%s1787_s20 + $0x58] sm:$0xf] %v1101_v0 }
 0x1b0   : > { %v866_v37 = vpop.f32.mrb[4].mxu0 }
 0x1b1   : > { %1102 = vtanh.f32 %v866_v37  ;;  %v868_v55 = vpop.f32.mrb[5].mxu0 }
 0x1b2   : > { %v909_v26 = vpop.f32.mrb[4].mxu1  ;;  %v870_v41 = vpop.f32.mrb[6].mxu0 }
 0x1b3   : > { %1104 = vtanh.f32 %v909_v26  ;;  %v911_v31 = vpop.f32.mrb[5].mxu1  ;;  %v872_v11 = vpop.f32.mrb[7].mxu0 }
 0x1b4   : > { %1106 = vtanh.f32 %v868_v55  ;;  %v913_v20 = vpop.f32.mrb[6].mxu1 }
 0x1b5   : > { %1108 = vtanh.f32 %v911_v31  ;;  %v915_v19 = vpop.f32.mrb[7].mxu1 }
 0x1b6   : > { %1110 = vtanh.f32 %v870_v41 }
 0x1b7   : > { %1112 = vtanh.f32 %v913_v20 }
 0x1b8   : > { %1114 = vtanh.f32 %v872_v11 }
 0x1b9   : > { %1116 = vtanh.f32 %v915_v19 }
 0x1bb   : > { %v1103_v1 = vpop.eup %1102 }
 0x1bc   : > { %938 = vst [vmem:[%s1787_s20 + $0x20] sm:$0xff] %v1103_v1 }
 0x1bd   : > { %v1105_v40 = vpop.eup %1104 }
 0x1be   : > { %v1107_v45 = vpop.eup %1106  ;;  %940 = vst [vmem:[%s1787_s20 + $0x30] sm:$0xff] %v1105_v40 }
 0x1bf   : > { %v1109_v34 = vpop.eup %1108  ;;  %939 = vst [vmem:[%s1787_s20 + $0x28] sm:$0xff] %v1107_v45 }
 0x1c0   : > { %v1111_v43 = vpop.eup %1110  ;;  %941 = vst [vmem:[%s1787_s20 + $0x38] sm:$0xff] %v1109_v34 }
 0x1c1   : > { %v1113_v33 = vpop.eup %1112  ;;  %946 = vst [vmem:[%s1787_s20 + $0x60] sm:$0xf] %v1111_v43 }
 0x1c2   : > { %v1115_v59 = vpop.eup %1114  ;;  %948 = vst [vmem:[%s1787_s20 + $0x70] sm:$0xf] %v1113_v33 }
 0x1c3   : > { %v1117_v36 = vpop.eup %1116  ;;  %947 = vst [vmem:[%s1787_s20 + $0x68] sm:$0xf] %v1115_v59 }
 0x1c4   : > { %949 = vst [vmem:[%s1787_s20 + $0x78] sm:$0xf] %v1117_v36 }
 0x1c5 PF: > { %s14_s17 = sadd.s32 1, %s1140_s17   ;;  %s1875_s15 = smov %s1136_s16 }
 0x1c6   : > { %p11_p5 = scmp.ge.s32.totalorder %s14_s17, 4   ;;  %s1876_s16 = smov %s1878_s18 }
 0x1c8   :  { %13 = sbr.rel (!%p11_p5) target bundleno = 2 (0x2), region = 66 }

</bundles_post_ra>
